<compile_context>
chip_gen: v7x
topology: tpu7x:2x2x1
jax: 0.10.0
libtpu: 0.0.40
codegen_flags: <defaults>
</compile_context>

<pallas_src>
import functools
import math

import jax
import jax.numpy as jnp
from jax import lax
from jax.experimental import pallas as pl
from jax.experimental.pallas import tpu as pltpu

DINO_DIM = 768      # hard-coded in the PyTorch module (Linear(embed_dim + 768, ...))
LN_EPS = 1e-5       # nn.LayerNorm default


# ----------------------------- in-kernel helpers ---------------------------------------


def _layernorm(z, g, b, eps=LN_EPS):
    mean = jnp.mean(z, axis=-1, keepdims=True)
    zc = z - mean
    var = jnp.mean(zc * zc, axis=-1, keepdims=True)
    return zc * lax.rsqrt(var + eps) * g + b


# ----------------------------- Pallas kernels ------------------------------------------


def _embed_kernel(x_ref, w_ref, b_ref, o_ref):
    """TransformerPointEmbedding: x.squeeze(3).transpose(1,2) @ W^T + b.

    x_ref: (1, C, TN)  native channel-major layout (no wrapper transpose of the cloud)
    w_ref: (E, C)      native torch nn.Linear weight layout
    b_ref: (1, E); o_ref: (1, TN, E)
    """
    acc = lax.dot_general(
        x_ref[0], w_ref[...],
        dimension_numbers=(((0,), (1,)), ((), ())),        # contract C on both operands
        preferred_element_type=jnp.float32)                # (TN, E)
    o_ref[0] = (acc + b_ref[...]).astype(o_ref.dtype)


def _attn_ln_body(xq, xkv, wq_ref, wk_ref, wv_ref, bq_ref, bk_ref, bv_ref,
                  wot_ref, bo_ref, g_ref, bln_ref, o_ref, *, num_heads):
    """Fused MHA(xq, xkv, xkv) + out_proj + residual + LayerNorm for one batch element.

    xq: (Sq, E), xkv: (Sk, E) values already loaded from VMEM.
    wq/wk/wv: (E, E) torch in_proj slices; biases reshaped to (H, D).
    wot: out_proj.weight TRANSPOSED -> (E_in, E_out) so per-head slices are sublane slices.
    Writes LayerNorm(xq + attn_out) to o_ref[0] (lane-dense (Sq, E) block).
    """
    Sq, E = xq.shape
    D = E // num_heads
    scale = 1.0 / math.sqrt(D)

    acc = jnp.zeros((Sq, E), jnp.float32)
    for h in range(num_heads):                              # static unroll over heads
        r0, r1 = h * D, (h + 1) * D
        qh = lax.dot_general(xq, wq_ref[r0:r1, :],
                             dimension_numbers=(((1,), (1,)), ((), ())),
                             preferred_element_type=jnp.float32) + bq_ref[h:h + 1, :]
        kh = lax.dot_general(xkv, wk_ref[r0:r1, :],
                             dimension_numbers=(((1,), (1,)), ((), ())),
                             preferred_element_type=jnp.float32) + bk_ref[h:h + 1, :]
        vh = lax.dot_general(xkv, wv_ref[r0:r1, :],
                             dimension_numbers=(((1,), (1,)), ((), ())),
                             preferred_element_type=jnp.float32) + bv_ref[h:h + 1, :]
        s = lax.dot_general(qh, kh,
                            dimension_numbers=(((1,), (1,)), ((), ())),
                            preferred_element_type=jnp.float32) * scale   # (Sq, Sk)
        m = jnp.max(s, axis=-1, keepdims=True)
        p = jnp.exp(s - m)
        p = p * pl.reciprocal(jnp.sum(p, axis=-1, keepdims=True), approx=True)
        oh = jnp.dot(p, vh, preferred_element_type=jnp.float32)           # (Sq, D)
        # out_proj contribution of this head: (Sq, D) @ (D, E) -> accumulate (Sq, E)
        acc = acc + lax.dot_general(oh, wot_ref[r0:r1, :],
                                    dimension_numbers=(((1,), (0,)), ((), ())),
                                    preferred_element_type=jnp.float32)

    z = xq.astype(jnp.float32) + acc + bo_ref[...]          # residual + out_proj bias
    o_ref[0] = _layernorm(z, g_ref[...], bln_ref[...]).astype(o_ref.dtype)


def _self_attn_ln_kernel(x_ref, wq, wk, wv, bq, bk, bv, wot, bo, g, bln, o_ref,
                         *, num_heads):
    x = x_ref[0]
    _attn_ln_body(x, x, wq, wk, wv, bq, bk, bv, wot, bo, g, bln, o_ref,
                  num_heads=num_heads)


def _cross_attn_ln_kernel(x_ref, mem_ref, wq, wk, wv, bq, bk, bv, wot, bo, g, bln, o_ref,
                          *, num_heads):
    _attn_ln_body(x_ref[0], mem_ref[0], wq, wk, wv, bq, bk, bv, wot, bo, g, bln, o_ref,
                  num_heads=num_heads)


def _ffn_core(x, h_pre, w2_ref, b2_ref, g_ref, bln_ref):
    """ReLU -> Linear2 -> residual -> LayerNorm; the (tm, F) intermediate stays in VMEM."""
    h = jnp.maximum(h_pre, 0.0)
    y = lax.dot_general(h, w2_ref[...],
                        dimension_numbers=(((1,), (1,)), ((), ())),
                        preferred_element_type=jnp.float32) + b2_ref[...]
    z = x.astype(jnp.float32) + y
    return _layernorm(z, g_ref[...], bln_ref[...])


def _ffn_ln_kernel(x_ref, w1_ref, b1_ref, w2_ref, b2_ref, g_ref, bln_ref, o_ref):
    """Fused Linear1 + ReLU + Linear2 + residual + LayerNorm over row tiles."""
    x = x_ref[...]
    h_pre = lax.dot_general(x, w1_ref[...],
                            dimension_numbers=(((1,), (1,)), ((), ())),
                            preferred_element_type=jnp.float32) + b1_ref[...]
    o_ref[...] = _ffn_core(x, h_pre, w2_ref, b2_ref, g_ref, bln_ref).astype(o_ref.dtype)


def _ffn_dino_ln_kernel(x_ref, add_ref, w1x_ref, w1d_ref, b1_ref, w2_ref, b2_ref,
                        g_ref, bln_ref, o_ref):
    """Encoder FFN with the dino concat replaced by a split-weight accumulation."""
    x = x_ref[...]
    h_pre = (lax.dot_general(x, w1x_ref[...],
                             dimension_numbers=(((1,), (1,)), ((), ())),
                             preferred_element_type=jnp.float32)
             + lax.dot_general(add_ref[...], w1d_ref[...],
                               dimension_numbers=(((1,), (1,)), ((), ())),
                               preferred_element_type=jnp.float32)
             + b1_ref[...])
    o_ref[...] = _ffn_core(x, h_pre, w2_ref, b2_ref, g_ref, bln_ref).astype(o_ref.dtype)


def _ffn_ln_head_kernel(x_ref, w1_ref, b1_ref, w2_ref, b2_ref, g_ref, bln_ref,
                        hw_ref, hb_ref, o_ref):
    """Final decoder FFN + LN with the Linear(E -> 1) head fused in (VPU reduce)."""
    x = x_ref[...]
    h_pre = lax.dot_general(x, w1_ref[...],
                            dimension_numbers=(((1,), (1,)), ((), ())),
                            preferred_element_type=jnp.float32) + b1_ref[...]
    ln = _ffn_core(x, h_pre, w2_ref, b2_ref, g_ref, bln_ref)
    o_ref[...] = (jnp.sum(ln * hw_ref[...], axis=-1, keepdims=True)
                  + hb_ref[...]).astype(o_ref.dtype)


# ----------------------------- Pallas wrappers -----------------------------------------


def _row_tile(m):
    """Row tile for the (batch*seq)-collapsed kernels.

    Cap at 512 so double-buffered (tm, 896) f32 tiles stay well under the 32 MiB
    scoped-VMEM default (tightest on v7x); split small problems in two so both v7x
    TensorCores get a "parallel" grid step. grid = pl.cdiv(M, tm) handles ragged tails.
    """
    if m >= 1024:
        return 512
    if m >= 16 and m % 16 == 0:
        return m // 2
    return m


def point_embedding(x_cm, weight, bias):
    """x_cm: (B, C, N) channel-major; weight: (E, C); bias: (E,). Returns (B, N, E)."""
    B, C, N = x_cm.shape
    E = weight.shape[0]
    tn = N if N <= 512 else 512
    return pl.pallas_call(
        _embed_kernel,
        out_shape=jax.ShapeDtypeStruct((B, N, E), x_cm.dtype),
        grid=(B, pl.cdiv(N, tn)),
        in_specs=[
            pl.BlockSpec((1, C, tn), lambda b, n: (b, 0, n)),
            pl.BlockSpec((E, C), lambda b, n: (0, 0)),
            pl.BlockSpec((1, E), lambda b, n: (0, 0)),
        ],
        out_specs=pl.BlockSpec((1, tn, E), lambda b, n: (b, n, 0)),
        compiler_params=pltpu.CompilerParams(
            dimension_semantics=("parallel", "parallel")),
    )(x_cm, weight, bias.reshape(1, E))


def _attn_weight_specs(E, num_heads):
    D = E // num_heads
    return ([pl.BlockSpec((E, E), lambda b: (0, 0))] * 3          # wq, wk, wv
            + [pl.BlockSpec((num_heads, D), lambda b: (0, 0))] * 3  # bq, bk, bv
            + [pl.BlockSpec((E, E), lambda b: (0, 0)),             # wo^T
               pl.BlockSpec((1, E), lambda b: (0, 0)),              # bo
               pl.BlockSpec((1, E), lambda b: (0, 0)),              # ln gamma
               pl.BlockSpec((1, E), lambda b: (0, 0))])             # ln beta


def _attn_weight_args(p, gamma, beta, E, num_heads):
    D = E // num_heads
    return (p["wq"], p["wk"], p["wv"],
            p["bq"].reshape(num_heads, D), p["bk"].reshape(num_heads, D),
            p["bv"].reshape(num_heads, D),
            p["out_w"].T,                       # 64 KiB weight transpose, negligible
            p["out_b"].reshape(1, E),
            gamma.reshape(1, E), beta.reshape(1, E))


def self_attn_ln(x, p, gamma, beta, num_heads):
    """LayerNorm(x + MHA(x, x, x)) fused in one kernel per batch element."""
    B, S, E = x.shape
    kernel = functools.partial(_self_attn_ln_kernel, num_heads=num_heads)
    return pl.pallas_call(
        kernel,
        out_shape=jax.ShapeDtypeStruct((B, S, E), x.dtype),
        grid=(B,),
        in_specs=[pl.BlockSpec((1, S, E), lambda b: (b, 0, 0))]
        + _attn_weight_specs(E, num_heads),
        out_specs=pl.BlockSpec((1, S, E), lambda b: (b, 0, 0)),
        compiler_params=pltpu.CompilerParams(dimension_semantics=("parallel",)),
    )(x, *_attn_weight_args(p, gamma, beta, E, num_heads))


def cross_attn_ln(x, memory, p, gamma, beta, num_heads):
    """LayerNorm(x + MHA(x, memory, memory)) fused in one kernel per batch element."""
    B, Sq, E = x.shape
    Sk = memory.shape[1]
    kernel = functools.partial(_cross_attn_ln_kernel, num_heads=num_heads)
    return pl.pallas_call(
        kernel,
        out_shape=jax.ShapeDtypeStruct((B, Sq, E), x.dtype),
        grid=(B,),
        in_specs=[pl.BlockSpec((1, Sq, E), lambda b: (b, 0, 0)),
                  pl.BlockSpec((1, Sk, E), lambda b: (b, 0, 0))]
        + _attn_weight_specs(E, num_heads),
        out_specs=pl.BlockSpec((1, Sq, E), lambda b: (b, 0, 0)),
        compiler_params=pltpu.CompilerParams(dimension_semantics=("parallel",)),
    )(x, memory, *_attn_weight_args(p, gamma, beta, E, num_heads))


def ffn_ln(x, w1, b1, w2, b2, gamma, beta):
    """LayerNorm(x + Linear2(ReLU(Linear1(x)))) over collapsed (B*S) rows."""
    B, S, E = x.shape
    F = w1.shape[0]
    M = B * S
    tm = _row_tile(M)
    out = pl.pallas_call(
        _ffn_ln_kernel,
        out_shape=jax.ShapeDtypeStruct((M, E), x.dtype),
        grid=(pl.cdiv(M, tm),),
        in_specs=[
            pl.BlockSpec((tm, E), lambda i: (i, 0)),
            pl.BlockSpec((F, E), lambda i: (0, 0)),
            pl.BlockSpec((1, F), lambda i: (0, 0)),
            pl.BlockSpec((E, F), lambda i: (0, 0)),
            pl.BlockSpec((1, E), lambda i: (0, 0)),
            pl.BlockSpec((1, E), lambda i: (0, 0)),
            pl.BlockSpec((1, E), lambda i: (0, 0)),
        ],
        out_specs=pl.BlockSpec((tm, E), lambda i: (i, 0)),
        compiler_params=pltpu.CompilerParams(dimension_semantics=("parallel",)),
    )(x.reshape(M, E), w1, b1.reshape(1, F), w2, b2.reshape(1, E),
      gamma.reshape(1, E), beta.reshape(1, E))
    return out.reshape(B, S, E)


def ffn_dino_ln(x, addition, w1x, w1d, b1, w2, b2, gamma, beta):
    """Encoder FFN+LN with dino features folded in-kernel (no wrapper concat)."""
    B, S, E = x.shape
    F = w1x.shape[0]
    Dn = addition.shape[-1]
    M = B * S
    tm = _row_tile(M)
    out = pl.pallas_call(
        _ffn_dino_ln_kernel,
        out_shape=jax.ShapeDtypeStruct((M, E), x.dtype),
        grid=(pl.cdiv(M, tm),),
        in_specs=[
            pl.BlockSpec((tm, E), lambda i: (i, 0)),
            pl.BlockSpec((tm, Dn), lambda i: (i, 0)),
            pl.BlockSpec((F, E), lambda i: (0, 0)),
            pl.BlockSpec((F, Dn), lambda i: (0, 0)),
            pl.BlockSpec((1, F), lambda i: (0, 0)),
            pl.BlockSpec((E, F), lambda i: (0, 0)),
            pl.BlockSpec((1, E), lambda i: (0, 0)),
            pl.BlockSpec((1, E), lambda i: (0, 0)),
            pl.BlockSpec((1, E), lambda i: (0, 0)),
        ],
        out_specs=pl.BlockSpec((tm, E), lambda i: (i, 0)),
        compiler_params=pltpu.CompilerParams(dimension_semantics=("parallel",)),
    )(x.reshape(M, E), addition.reshape(M, Dn), w1x, w1d, b1.reshape(1, F),
      w2, b2.reshape(1, E), gamma.reshape(1, E), beta.reshape(1, E))
    return out.reshape(B, S, E)


def ffn_ln_head(x, w1, b1, w2, b2, gamma, beta, head_w, head_b):
    """Final decoder FFN + LN with the Linear(E->1) output head fused. Returns (M, 1)."""
    B, S, E = x.shape
    F = w1.shape[0]
    M = B * S
    tm = _row_tile(M)
    return pl.pallas_call(
        _ffn_ln_head_kernel,
        out_shape=jax.ShapeDtypeStruct((M, 1), x.dtype),
        grid=(pl.cdiv(M, tm),),
        in_specs=[
            pl.BlockSpec((tm, E), lambda i: (i, 0)),
            pl.BlockSpec((F, E), lambda i: (0, 0)),
            pl.BlockSpec((1, F), lambda i: (0, 0)),
            pl.BlockSpec((E, F), lambda i: (0, 0)),
            pl.BlockSpec((1, E), lambda i: (0, 0)),
            pl.BlockSpec((1, E), lambda i: (0, 0)),
            pl.BlockSpec((1, E), lambda i: (0, 0)),
            pl.BlockSpec((1, E), lambda i: (0, 0)),
            pl.BlockSpec((1, 1), lambda i: (0, 0)),
        ],
        out_specs=pl.BlockSpec((tm, 1), lambda i: (i, 0)),
        compiler_params=pltpu.CompilerParams(dimension_semantics=("parallel",)),
    )(x.reshape(M, E), w1, b1.reshape(1, F), w2, b2.reshape(1, E),
      gamma.reshape(1, E), beta.reshape(1, E), head_w.reshape(1, E),
      head_b.reshape(1, 1))


# ----------------------------- Model composition ---------------------------------------
# Hidden state is kept batch-first (B, S, E); numerically identical to torch's seq-first
# layout since every op is per-row (Linear/LayerNorm) or per-batch (attention).
# Per block: encoder = 2 pallas_calls, decoder = 3 pallas_calls.


def encoder_block(x, addition, p, num_heads):
    x = self_attn_ln(x, p["attn"], p["ln1_g"], p["ln1_b"], num_heads)
    if addition is not None:
        return ffn_dino_ln(x, addition, p["ffn_w1x"], p["ffn_w1d"], p["ffn_b1"],
                           p["ffn_w2"], p["ffn_b2"], p["ln2_g"], p["ln2_b"])
    return ffn_ln(x, p["ffn_w1x"], p["ffn_b1"], p["ffn_w2"], p["ffn_b2"],
                  p["ln2_g"], p["ln2_b"])


def decoder_block(x, memory, p, num_heads, head=None):
    x = self_attn_ln(x, p["self_attn"], p["ln1_g"], p["ln1_b"], num_heads)
    x = cross_attn_ln(x, memory, p["cross_attn"], p["ln2_g"], p["ln2_b"], num_heads)
    if head is None:
        return ffn_ln(x, p["ffn_w1"], p["ffn_b1"], p["ffn_w2"], p["ffn_b2"],
                      p["ln3_g"], p["ln3_b"])
    head_w, head_b = head
    return ffn_ln_head(x, p["ffn_w1"], p["ffn_b1"], p["ffn_w2"], p["ffn_b2"],
                       p["ln3_g"], p["ln3_b"], head_w, head_b)


def transformer_pointnet_forward(data, params, *, num_heads, enable_dino):
    """data: (B, C_total, N, 1). Returns logits (B, 1, N) — matches the torch forward."""
    B, _, N, _ = data.shape
    if enable_dino:
        x_cm = data[:, :16, :, 0]                                # (B, 16, N) channel-major
        # dino features, feature-last for the encoder-FFN contraction; computed ONCE
        # outside the block loop (the per-block concat is gone).
        addition = jnp.transpose(data[:, 16:, :, 0], (0, 2, 1))  # (B, N, 768)
    else:
        x_cm = data[:, :, :, 0]
        addition = None

    x = point_embedding(x_cm, params["embed_w"], params["embed_b"])   # (B, N, E)

    memory = x
    for p in params["encoders"]:
        memory = encoder_block(memory, addition, p, num_heads)

    out = x
    decs = params["decoders"]
    assert len(decs) >= 1, "need at least one decoder block"
    logits_rows = None
    for i, p in enumerate(decs):
        if i + 1 < len(decs):
            out = decoder_block(out, memory, p, num_heads)
        else:
            logits_rows = decoder_block(out, memory, p, num_heads,
                                        head=(params["out_w"], params["out_b"]))
    # (B*N, 1) and (B, 1, N) share the same element order -> pure reshape, no transpose.
    return logits_rows.reshape(B, 1, N)


# ----------------------------- Parameter init ------------------------------------------


def _init_linear(key, out_f, in_f):
    kw, kb = jax.random.split(key)
    bound = 1.0 / math.sqrt(in_f)
    w = jax.random.uniform(kw, (out_f, in_f), jnp.float32, -bound, bound)
    b = jax.random.uniform(kb, (out_f,), jnp.float32, -bound, bound)
    return w, b


def _init_mha(key, E):
    kq, kk, kv, ko = jax.random.split(key, 4)
    wq, bq = _init_linear(kq, E, E)
    wk, bk = _init_linear(kk, E, E)
    wv, bv = _init_linear(kv, E, E)
    wo, bo = _init_linear(ko, E, E)
    return dict(wq=wq, wk=wk, wv=wv, bq=bq, bk=bk, bv=bv, out_w=wo, out_b=bo)


def _init_encoder(key, E, ffd, enable_dino):
    k_attn, k1x, k1d, k1b, k2 = jax.random.split(key, 5)
    ffn_in = E + DINO_DIM if enable_dino else E
    bound = 1.0 / math.sqrt(ffn_in)
    w1x = jax.random.uniform(k1x, (ffd, E), jnp.float32, -bound, bound)
    w1d = (jax.random.uniform(k1d, (ffd, DINO_DIM), jnp.float32, -bound, bound)
           if enable_dino else None)
    b1 = jax.random.uniform(k1b, (ffd,), jnp.float32, -bound, bound)
    w2, b2 = _init_linear(k2, E, ffd)
    ones = jnp.ones((E,), jnp.float32)
    zeros = jnp.zeros((E,), jnp.float32)
    return dict(attn=_init_mha(k_attn, E), ffn_w1x=w1x, ffn_w1d=w1d, ffn_b1=b1,
                ffn_w2=w2, ffn_b2=b2, ln1_g=ones, ln1_b=zeros, ln2_g=ones, ln2_b=zeros)


def _init_decoder(key, E, ffd):
    k_sa, k_ca, k1, k2 = jax.random.split(key, 4)
    w1, b1 = _init_linear(k1, ffd, E)
    w2, b2 = _init_linear(k2, E, ffd)
    ones = jnp.ones((E,), jnp.float32)
    zeros = jnp.zeros((E,), jnp.float32)
    return dict(self_attn=_init_mha(k_sa, E), cross_attn=_init_mha(k_ca, E),
                ffn_w1=w1, ffn_b1=b1, ffn_w2=w2, ffn_b2=b2,
                ln1_g=ones, ln1_b=zeros, ln2_g=ones, ln2_b=zeros,
                ln3_g=ones, ln3_b=zeros)


def init_params(key, *, out_dim, net_channels, depth, feedforward_dim, enable_dino):
    E = net_channels
    n_blocks = depth // 2
    keys = jax.random.split(key, 2 + 2 * n_blocks)
    embed_w, embed_b = _init_linear(keys[0], E, out_dim)
    out_w, out_b = _init_linear(keys[1], 1, E)
    encoders = [_init_encoder(k, E, feedforward_dim, enable_dino)
                for k in keys[2:2 + n_blocks]]
    decoders = [_init_decoder(k, E, feedforward_dim)
                for k in keys[2 + n_blocks:2 + 2 * n_blocks]]
    return dict(embed_w=embed_w, embed_b=embed_b, out_w=out_w, out_b=out_b,
                encoders=encoders, decoders=decoders)


# ----------------------------- Pure-JAX reference --------------------------------------


def _ref_forward(data, params, *, num_heads, enable_dino):
    prec = lax.Precision.HIGHEST
    E = params["embed_w"].shape[0]

    def lin(h, w, b):
        return jnp.einsum("...k,ek->...e", h, w, precision=prec) + b

    def ln(h, g, bb):
        m = jnp.mean(h, axis=-1, keepdims=True)
        v = jnp.mean(jnp.square(h - m), axis=-1, keepdims=True)
        return (h - m) * lax.rsqrt(v + LN_EPS) * g + bb

    def mha(qx, kx, p):
        Bq, Sq, _ = qx.shape
        Sk = kx.shape[1]
        D = E // num_heads
        q = lin(qx, p["wq"], p["bq"])
        k = lin(kx, p["wk"], p["bk"])
        v = lin(kx, p["wv"], p["bv"])
        q = q.reshape(Bq, Sq, num_heads, D).transpose(0, 2, 1, 3)
        k = k.reshape(Bq, Sk, num_heads, D).transpose(0, 2, 1, 3)
        v = v.reshape(Bq, Sk, num_heads, D).transpose(0, 2, 1, 3)
        s = jnp.einsum("bhqd,bhkd->bhqk", q, k, precision=prec) / math.sqrt(D)
        a = jax.nn.softmax(s, axis=-1)
        o = jnp.einsum("bhqk,bhkd->bhqd", a, v, precision=prec)
        o = o.transpose(0, 2, 1, 3).reshape(Bq, Sq, E)
        return lin(o, p["out_w"], p["out_b"])

    if enable_dino:
        x_att = data[:, :16, :, 0]
        addition = jnp.transpose(data[:, 16:, :, 0], (0, 2, 1))
    else:
        x_att = data[:, :, :, 0]
        addition = None
    x = jnp.einsum("bcn,ec->bne", x_att, params["embed_w"],
                   precision=prec) + params["embed_b"]

    memory = x
    for p in params["encoders"]:
        a = mha(memory, memory, p["attn"])
        memory = ln(memory + a, p["ln1_g"], p["ln1_b"])
        h = jnp.einsum("...k,fk->...f", memory, p["ffn_w1x"], precision=prec) + p["ffn_b1"]
        if addition is not None:
            h = h + jnp.einsum("...k,fk->...f", addition, p["ffn_w1d"], precision=prec)
        h = jax.nn.relu(h)
        h = lin(h, p["ffn_w2"], p["ffn_b2"])
        memory = ln(memory + h, p["ln2_g"], p["ln2_b"])

    out = x
    for p in params["decoders"]:
        a = mha(out, out, p["self_attn"])
        out = ln(out + a, p["ln1_g"], p["ln1_b"])
        c = mha(out, memory, p["cross_attn"])
        out = ln(out + c, p["ln2_g"], p["ln2_b"])
        h = jax.nn.relu(lin(out, p["ffn_w1"], p["ffn_b1"]))
        h = lin(h, p["ffn_w2"], p["ffn_b2"])
        out = ln(out + h, p["ln3_g"], p["ln3_b"])

    logits = lin(out, params["out_w"], params["out_b"])        # (B, N, 1)
    return jnp.transpose(logits, (0, 2, 1))                    # (B, 1, N)


# ----------------------------- Main -----------------------------------------------------


if __name__ == "__main__":
    # Small, module-consistent config: the torch forward hard-codes the 16-channel
    # attention slice and the 768-dim dino features; net_channels=128 / ffd=256 keep all
    # kernel blocks lane-dense; depth=2 -> 1 encoder + 1 decoder.
    OUT_DIM = 16
    NET_CHANNELS = 128
    DEPTH = 2
    NUM_HEADS = 8
    FFD = 256
    ENABLE_DINO = True

    B, N = 2, 16
    C_TOTAL = OUT_DIM + DINO_DIM if ENABLE_DINO else OUT_DIM

    key = jax.random.PRNGKey(0)
    k_data, k_params = jax.random.split(key)
    data = jax.random.normal(k_data, (B, C_TOTAL, N, 1), dtype=jnp.float32)
    params = init_params(k_params, out_dim=OUT_DIM, net_channels=NET_CHANNELS,
                         depth=DEPTH, feedforward_dim=FFD, enable_dino=ENABLE_DINO)

    fwd = jax.jit(functools.partial(transformer_pointnet_forward,
                                    num_heads=NUM_HEADS, enable_dino=ENABLE_DINO))
    out = jax.block_until_ready(fwd(data, params))

    ref = _ref_forward(data, params, num_heads=NUM_HEADS, enable_dino=ENABLE_DINO)

    assert out.shape == (B, 1, N), out.shape
    assert bool(jnp.all(jnp.isfinite(out))), "non-finite output"
    # Tolerance: the XLA reference runs at HIGHEST matmul precision while the in-kernel
    # MXU dots use the default f32 path and the softmax uses the approximate EUP
    # reciprocal; any semantic bug would be O(1) off.
    max_err = float(jnp.max(jnp.abs(out - ref)))
    assert jnp.allclose(out, ref, rtol=5e-2, atol=5e-2), f"mismatch vs reference: {max_err}"

    print("KERNEL_OK")
</pallas_src>

<mosaic_0001>
module attributes {stable_mosaic.version = 11 : i64} {
  func.func @_embed_kernel(%arg0: i32, %arg1: i32, %arg2: memref<1x16x16xf32, #tpu.memory_space<vmem>>, %arg3: memref<128x16xf32, #tpu.memory_space<vmem>>, %arg4: memref<1x128xf32, #tpu.memory_space<vmem>>, %arg5: memref<1x16x128xf32, #tpu.memory_space<vmem>>) attributes {dimension_semantics = [#tpu.dimension_semantics<parallel>, #tpu.dimension_semantics<parallel>], iteration_bounds = array<i64: 2, 1>, scalar_prefetch = 0 : i64, scratch_operands = 0 : i64, tpu.core_type = #tpu.core_type<tc>, window_params = [{transform_indices = @transform_0, window_bounds = array<i64: 1, 16, 16>}, {pipeline_mode = #tpu.pipeline_mode<synchronous>, transform_indices = @transform_1, window_bounds = array<i64: 128, 16>}, {pipeline_mode = #tpu.pipeline_mode<synchronous>, transform_indices = @transform_2, window_bounds = array<i64: 1, 128>}, {transform_indices = @transform_3, window_bounds = array<i64: 1, 16, 128>}]} {
    %c0 = arith.constant 0 : index
    %c0_0 = arith.constant 0 : index
    %c0_1 = arith.constant 0 : index
    %0 = vector.load %arg2[%c0, %c0_0, %c0_1] : memref<1x16x16xf32, #tpu.memory_space<vmem>>, vector<1x16x16xf32>
    %1 = vector.shape_cast %0 : vector<1x16x16xf32> to vector<16x16xf32>
    %c0_2 = arith.constant 0 : index
    %c0_3 = arith.constant 0 : index
    %2 = vector.load %arg3[%c0_2, %c0_3] : memref<128x16xf32, #tpu.memory_space<vmem>>, vector<128x16xf32>
    %cst = arith.constant dense<0.000000e+00> : vector<16x128xf32>
    %3 = tpu.matmul %1, %2, %cst {dimension_numbers = #tpu.dot_dimension_numbers<[0], [1], [1], [0], [0, 1, 1, 0], [], []>} : vector<16x16xf32>, vector<128x16xf32>, vector<16x128xf32> -> vector<16x128xf32>
    %c0_4 = arith.constant 0 : index
    %c0_5 = arith.constant 0 : index
    %4 = vector.load %arg4[%c0_4, %c0_5] : memref<1x128xf32, #tpu.memory_space<vmem>>, vector<1x128xf32>
    %5 = vector.broadcast %4 : vector<1x128xf32> to vector<16x128xf32>
    %6 = arith.addf %3, %5 : vector<16x128xf32>
    %c0_6 = arith.constant 0 : index
    %c0_7 = arith.constant 0 : index
    %c0_8 = arith.constant 0 : index
    %7 = vector.load %arg5[%c0_6, %c0_7, %c0_8] : memref<1x16x128xf32, #tpu.memory_space<vmem>>, vector<1x16x128xf32>
    %8 = vector.shape_cast %7 : vector<1x16x128xf32> to vector<16x128xf32>
    %9 = vector.shape_cast %6 : vector<16x128xf32> to vector<1x16x128xf32>
    tpu.vector_store %arg5[%c0_6, %c0_7, %c0_8], %9 {strides = array<i32>} : memref<1x16x128xf32, #tpu.memory_space<vmem>>, vector<1x16x128xf32>,
    return
  }
  func.func @transform_0(%arg0: i32, %arg1: i32) -> (i32, i32, i32) {
    %c0_i32 = arith.constant 0 : i32
    %c0_i32_0 = arith.constant 0 : i32
    return %arg0, %c0_i32, %arg1 : i32, i32, i32
  }
  func.func @transform_1(%arg0: i32, %arg1: i32) -> (i32, i32) {
    %c0_i32 = arith.constant 0 : i32
    %c0_i32_0 = arith.constant 0 : i32
    %c0_i32_1 = arith.constant 0 : i32
    return %c0_i32, %c0_i32_0 : i32, i32
  }
  func.func @transform_2(%arg0: i32, %arg1: i32) -> (i32, i32) {
    %c0_i32 = arith.constant 0 : i32
    %c0_i32_0 = arith.constant 0 : i32
    %c0_i32_1 = arith.constant 0 : i32
    return %c0_i32, %c0_i32_0 : i32, i32
  }
  func.func @transform_3(%arg0: i32, %arg1: i32) -> (i32, i32, i32) {
    %c0_i32 = arith.constant 0 : i32
    %c0_i32_0 = arith.constant 0 : i32
    return %arg0, %arg1, %c0_i32 : i32, i32, i32
  }
}

module attributes {stable_mosaic.version = 11 : i64} {
  func.func @_ffn_dino_ln_kernel(%arg0: i32, %arg1: memref<16x128xf32, #tpu.memory_space<vmem>>, %arg2: memref<16x768xf32, #tpu.memory_space<vmem>>, %arg3: memref<256x128xf32, #tpu.memory_space<vmem>>, %arg4: memref<256x768xf32, #tpu.memory_space<vmem>>, %arg5: memref<1x256xf32, #tpu.memory_space<vmem>>, %arg6: memref<128x256xf32, #tpu.memory_space<vmem>>, %arg7: memref<1x128xf32, #tpu.memory_space<vmem>>, %arg8: memref<1x128xf32, #tpu.memory_space<vmem>>, %arg9: memref<1x128xf32, #tpu.memory_space<vmem>>, %arg10: memref<16x128xf32, #tpu.memory_space<vmem>>) attributes {dimension_semantics = [#tpu.dimension_semantics<parallel>], iteration_bounds = array<i64: 2>, scalar_prefetch = 0 : i64, scratch_operands = 0 : i64, tpu.core_type = #tpu.core_type<tc>, window_params = [{transform_indices = @transform_0, window_bounds = array<i64: 16, 128>}, {transform_indices = @transform_1, window_bounds = array<i64: 16, 768>}, {pipeline_mode = #tpu.pipeline_mode<synchronous>, transform_indices = @transform_2, window_bounds = array<i64: 256, 128>}, {pipeline_mode = #tpu.pipeline_mode<synchronous>, transform_indices = @transform_3, window_bounds = array<i64: 256, 768>}, {pipeline_mode = #tpu.pipeline_mode<synchronous>, transform_indices = @transform_4, window_bounds = array<i64: 1, 256>}, {pipeline_mode = #tpu.pipeline_mode<synchronous>, transform_indices = @transform_5, window_bounds = array<i64: 128, 256>}, {pipeline_mode = #tpu.pipeline_mode<synchronous>, transform_indices = @transform_6, window_bounds = array<i64: 1, 128>}, {pipeline_mode = #tpu.pipeline_mode<synchronous>, transform_indices = @transform_7, window_bounds = array<i64: 1, 128>}, {pipeline_mode = #tpu.pipeline_mode<synchronous>, transform_indices = @transform_8, window_bounds = array<i64: 1, 128>}, {transform_indices = @transform_9, window_bounds = array<i64: 16, 128>}]} {
    %c0 = arith.constant 0 : index
    %c0_0 = arith.constant 0 : index
    %0 = vector.load %arg1[%c0, %c0_0] : memref<16x128xf32, #tpu.memory_space<vmem>>, vector<16x128xf32>
    %c0_1 = arith.constant 0 : index
    %c0_2 = arith.constant 0 : index
    %1 = vector.load %arg3[%c0_1, %c0_2] : memref<256x128xf32, #tpu.memory_space<vmem>>, vector<256x128xf32>
    %cst = arith.constant dense<0.000000e+00> : vector<16x256xf32>
    %2 = tpu.matmul %0, %1, %cst {dimension_numbers = #tpu.dot_dimension_numbers<[1], [1], [0], [0], [0, 0, 1, 0], [], []>} : vector<16x128xf32>, vector<256x128xf32>, vector<16x256xf32> -> vector<16x256xf32>
    %c0_3 = arith.constant 0 : index
    %c0_4 = arith.constant 0 : index
    %3 = vector.load %arg2[%c0_3, %c0_4] : memref<16x768xf32, #tpu.memory_space<vmem>>, vector<16x768xf32>
    %c0_5 = arith.constant 0 : index
    %c0_6 = arith.constant 0 : index
    %4 = vector.load %arg4[%c0_5, %c0_6] : memref<256x768xf32, #tpu.memory_space<vmem>>, vector<256x768xf32>
    %cst_7 = arith.constant dense<0.000000e+00> : vector<16x256xf32>
    %5 = tpu.matmul %3, %4, %cst_7 {dimension_numbers = #tpu.dot_dimension_numbers<[1], [1], [0], [0], [0, 0, 1, 0], [], []>} : vector<16x768xf32>, vector<256x768xf32>, vector<16x256xf32> -> vector<16x256xf32>
    %6 = arith.addf %2, %5 : vector<16x256xf32>
    %c0_8 = arith.constant 0 : index
    %c0_9 = arith.constant 0 : index
    %7 = vector.load %arg5[%c0_8, %c0_9] : memref<1x256xf32, #tpu.memory_space<vmem>>, vector<1x256xf32>
    %8 = vector.broadcast %7 : vector<1x256xf32> to vector<16x256xf32>
    %9 = arith.addf %6, %8 : vector<16x256xf32>
    %cst_10 = arith.constant 0.000000e+00 : f32
    %10 = vector.broadcast %cst_10 : f32 to vector<16x256xf32>
    %11 = arith.maximumf %9, %10 : vector<16x256xf32>
    %c0_11 = arith.constant 0 : index
    %c0_12 = arith.constant 0 : index
    %12 = vector.load %arg6[%c0_11, %c0_12] : memref<128x256xf32, #tpu.memory_space<vmem>>, vector<128x256xf32>
    %cst_13 = arith.constant dense<0.000000e+00> : vector<16x128xf32>
    %13 = tpu.matmul %11, %12, %cst_13 {dimension_numbers = #tpu.dot_dimension_numbers<[1], [1], [0], [0], [0, 0, 1, 0], [], []>} : vector<16x256xf32>, vector<128x256xf32>, vector<16x128xf32> -> vector<16x128xf32>
    %c0_14 = arith.constant 0 : index
    %c0_15 = arith.constant 0 : index
    %14 = vector.load %arg7[%c0_14, %c0_15] : memref<1x128xf32, #tpu.memory_space<vmem>>, vector<1x128xf32>
    %15 = vector.broadcast %14 : vector<1x128xf32> to vector<16x128xf32>
    %16 = arith.addf %13, %15 : vector<16x128xf32>
    %17 = arith.addf %0, %16 : vector<16x128xf32>
    %c0_16 = arith.constant 0 : index
    %c0_17 = arith.constant 0 : index
    %18 = vector.load %arg8[%c0_16, %c0_17] : memref<1x128xf32, #tpu.memory_space<vmem>>, vector<1x128xf32>
    %c0_18 = arith.constant 0 : index
    %c0_19 = arith.constant 0 : index
    %19 = vector.load %arg9[%c0_18, %c0_19] : memref<1x128xf32, #tpu.memory_space<vmem>>, vector<1x128xf32>
    %cst_20 = arith.constant dense<0.000000e+00> : vector<16xf32>
    %20 = vector.multi_reduction <add>, %17, %cst_20 [1] : vector<16x128xf32> to vector<16xf32>
    %21 = vector.shape_cast %20 : vector<16xf32> to vector<16x1xf32>
    %cst_21 = arith.constant 1.280000e+02 : f32
    %22 = vector.broadcast %cst_21 : f32 to vector<16x1xf32>
    %23 = arith.divf %21, %22 : vector<16x1xf32>
    %24 = vector.broadcast %23 : vector<16x1xf32> to vector<16x128xf32>
    %25 = arith.subf %17, %24 : vector<16x128xf32>
    %26 = arith.mulf %25, %25 : vector<16x128xf32>
    %cst_22 = arith.constant dense<0.000000e+00> : vector<16xf32>
    %27 = vector.multi_reduction <add>, %26, %cst_22 [1] : vector<16x128xf32> to vector<16xf32>
    %28 = vector.shape_cast %27 : vector<16xf32> to vector<16x1xf32>
    %cst_23 = arith.constant 1.280000e+02 : f32
    %29 = vector.broadcast %cst_23 : f32 to vector<16x1xf32>
    %30 = arith.divf %28, %29 : vector<16x1xf32>
    %cst_24 = arith.constant 9.99999974E-6 : f32
    %31 = vector.broadcast %cst_24 : f32 to vector<16x1xf32>
    %32 = arith.addf %30, %31 : vector<16x1xf32>
    %33 = math.rsqrt %32 : vector<16x1xf32>
    %34 = vector.broadcast %33 : vector<16x1xf32> to vector<16x128xf32>
    %35 = arith.mulf %25, %34 : vector<16x128xf32>
    %36 = vector.broadcast %18 : vector<1x128xf32> to vector<16x128xf32>
    %37 = arith.mulf %35, %36 : vector<16x128xf32>
    %38 = vector.broadcast %19 : vector<1x128xf32> to vector<16x128xf32>
    %39 = arith.addf %37, %38 : vector<16x128xf32>
    %c0_25 = arith.constant 0 : index
    %c0_26 = arith.constant 0 : index
    %40 = vector.load %arg10[%c0_25, %c0_26] : memref<16x128xf32, #tpu.memory_space<vmem>>, vector<16x128xf32>
    tpu.vector_store %arg10[%c0_25, %c0_26], %39 {strides = array<i32>} : memref<16x128xf32, #tpu.memory_space<vmem>>, vector<16x128xf32>,
    return
  }
  func.func @transform_0(%arg0: i32) -> (i32, i32) {
    %c0_i32 = arith.constant 0 : i32
    %c0_i32_0 = arith.constant 0 : i32
    return %arg0, %c0_i32 : i32, i32
  }
  func.func @transform_1(%arg0: i32) -> (i32, i32) {
    %c0_i32 = arith.constant 0 : i32
    %c0_i32_0 = arith.constant 0 : i32
    return %arg0, %c0_i32 : i32, i32
  }
  func.func @transform_2(%arg0: i32) -> (i32, i32) {
    %c0_i32 = arith.constant 0 : i32
    %c0_i32_0 = arith.constant 0 : i32
    %c0_i32_1 = arith.constant 0 : i32
    return %c0_i32, %c0_i32_0 : i32, i32
  }
  func.func @transform_3(%arg0: i32) -> (i32, i32) {
    %c0_i32 = arith.constant 0 : i32
    %c0_i32_0 = arith.constant 0 : i32
    %c0_i32_1 = arith.constant 0 : i32
    return %c0_i32, %c0_i32_0 : i32, i32
  }
  func.func @transform_4(%arg0: i32) -> (i32, i32) {
    %c0_i32 = arith.constant 0 : i32
    %c0_i32_0 = arith.constant 0 : i32
    %c0_i32_1 = arith.constant 0 : i32
    return %c0_i32, %c0_i32_0 : i32, i32
  }
  func.func @transform_5(%arg0: i32) -> (i32, i32) {
    %c0_i32 = arith.constant 0 : i32
    %c0_i32_0 = arith.constant 0 : i32
    %c0_i32_1 = arith.constant 0 : i32
    return %c0_i32, %c0_i32_0 : i32, i32
  }
  func.func @transform_6(%arg0: i32) -> (i32, i32) {
    %c0_i32 = arith.constant 0 : i32
    %c0_i32_0 = arith.constant 0 : i32
    %c0_i32_1 = arith.constant 0 : i32
    return %c0_i32, %c0_i32_0 : i32, i32
  }
  func.func @transform_7(%arg0: i32) -> (i32, i32) {
    %c0_i32 = arith.constant 0 : i32
    %c0_i32_0 = arith.constant 0 : i32
    %c0_i32_1 = arith.constant 0 : i32
    return %c0_i32, %c0_i32_0 : i32, i32
  }
  func.func @transform_8(%arg0: i32) -> (i32, i32) {
    %c0_i32 = arith.constant 0 : i32
    %c0_i32_0 = arith.constant 0 : i32
    %c0_i32_1 = arith.constant 0 : i32
    return %c0_i32, %c0_i32_0 : i32, i32
  }
  func.func @transform_9(%arg0: i32) -> (i32, i32) {
    %c0_i32 = arith.constant 0 : i32
    %c0_i32_0 = arith.constant 0 : i32
    return %arg0, %c0_i32 : i32, i32
  }
}

module attributes {stable_mosaic.version = 11 : i64} {
  func.func @_self_attn_ln_kernel(%arg0: i32, %arg1: memref<1x16x128xf32, #tpu.memory_space<vmem>>, %arg2: memref<128x128xf32, #tpu.memory_space<vmem>>, %arg3: memref<128x128xf32, #tpu.memory_space<vmem>>, %arg4: memref<128x128xf32, #tpu.memory_space<vmem>>, %arg5: memref<8x16xf32, #tpu.memory_space<vmem>>, %arg6: memref<8x16xf32, #tpu.memory_space<vmem>>, %arg7: memref<8x16xf32, #tpu.memory_space<vmem>>, %arg8: memref<128x128xf32, #tpu.memory_space<vmem>>, %arg9: memref<1x128xf32, #tpu.memory_space<vmem>>, %arg10: memref<1x128xf32, #tpu.memory_space<vmem>>, %arg11: memref<1x128xf32, #tpu.memory_space<vmem>>, %arg12: memref<1x16x128xf32, #tpu.memory_space<vmem>>) attributes {dimension_semantics = [#tpu.dimension_semantics<parallel>], iteration_bounds = array<i64: 2>, scalar_prefetch = 0 : i64, scratch_operands = 0 : i64, tpu.core_type = #tpu.core_type<tc>, window_params = [{transform_indices = @transform_0, window_bounds = array<i64: 1, 16, 128>}, {pipeline_mode = #tpu.pipeline_mode<synchronous>, transform_indices = @transform_1, window_bounds = array<i64: 128, 128>}, {pipeline_mode = #tpu.pipeline_mode<synchronous>, transform_indices = @transform_2, window_bounds = array<i64: 128, 128>}, {pipeline_mode = #tpu.pipeline_mode<synchronous>, transform_indices = @transform_3, window_bounds = array<i64: 128, 128>}, {pipeline_mode = #tpu.pipeline_mode<synchronous>, transform_indices = @transform_4, window_bounds = array<i64: 8, 16>}, {pipeline_mode = #tpu.pipeline_mode<synchronous>, transform_indices = @transform_5, window_bounds = array<i64: 8, 16>}, {pipeline_mode = #tpu.pipeline_mode<synchronous>, transform_indices = @transform_6, window_bounds = array<i64: 8, 16>}, {pipeline_mode = #tpu.pipeline_mode<synchronous>, transform_indices = @transform_7, window_bounds = array<i64: 128, 128>}, {pipeline_mode = #tpu.pipeline_mode<synchronous>, transform_indices = @transform_8, window_bounds = array<i64: 1, 128>}, {pipeline_mode = #tpu.pipeline_mode<synchronous>, transform_indices = @transform_9, window_bounds = array<i64: 1, 128>}, {pipeline_mode = #tpu.pipeline_mode<synchronous>, transform_indices = @transform_10, window_bounds = array<i64: 1, 128>}, {transform_indices = @transform_11, window_bounds = array<i64: 1, 16, 128>}]} {
    %c0 = arith.constant 0 : index
    %c0_0 = arith.constant 0 : index
    %c0_1 = arith.constant 0 : index
    %0 = vector.load %arg1[%c0, %c0_0, %c0_1] : memref<1x16x128xf32, #tpu.memory_space<vmem>>, vector<1x16x128xf32>
    %1 = vector.shape_cast %0 : vector<1x16x128xf32> to vector<16x128xf32>
    %cst = arith.constant 0.000000e+00 : f32
    %2 = vector.broadcast %cst : f32 to vector<16x128xf32>
    %c0_2 = arith.constant 0 : index
    %c0_3 = arith.constant 0 : index
    %3 = vector.load %arg2[%c0_2, %c0_3] : memref<128x128xf32, #tpu.memory_space<vmem>>, vector<16x128xf32>
    %cst_4 = arith.constant dense<0.000000e+00> : vector<16x16xf32>
    %4 = tpu.matmul %1, %3, %cst_4 {dimension_numbers = #tpu.dot_dimension_numbers<[1], [1], [0], [0], [0, 0, 1, 0], [], []>} : vector<16x128xf32>, vector<16x128xf32>, vector<16x16xf32> -> vector<16x16xf32>
    %c0_5 = arith.constant 0 : index
    %c0_6 = arith.constant 0 : index
    %5 = vector.load %arg5[%c0_5, %c0_6] : memref<8x16xf32, #tpu.memory_space<vmem>>, vector<1x16xf32>
    %6 = vector.broadcast %5 : vector<1x16xf32> to vector<16x16xf32>
    %7 = arith.addf %4, %6 : vector<16x16xf32>
    %c0_7 = arith.constant 0 : index
    %c0_8 = arith.constant 0 : index
    %8 = vector.load %arg3[%c0_7, %c0_8] : memref<128x128xf32, #tpu.memory_space<vmem>>, vector<16x128xf32>
    %cst_9 = arith.constant dense<0.000000e+00> : vector<16x16xf32>
    %9 = tpu.matmul %1, %8, %cst_9 {dimension_numbers = #tpu.dot_dimension_numbers<[1], [1], [0], [0], [0, 0, 1, 0], [], []>} : vector<16x128xf32>, vector<16x128xf32>, vector<16x16xf32> -> vector<16x16xf32>
    %c0_10 = arith.constant 0 : index
    %c0_11 = arith.constant 0 : index
    %10 = vector.load %arg6[%c0_10, %c0_11] : memref<8x16xf32, #tpu.memory_space<vmem>>, vector<1x16xf32>
    %11 = vector.broadcast %10 : vector<1x16xf32> to vector<16x16xf32>
    %12 = arith.addf %9, %11 : vector<16x16xf32>
    %c0_12 = arith.constant 0 : index
    %c0_13 = arith.constant 0 : index
    %13 = vector.load %arg4[%c0_12, %c0_13] : memref<128x128xf32, #tpu.memory_space<vmem>>, vector<16x128xf32>
    %cst_14 = arith.constant dense<0.000000e+00> : vector<16x16xf32>
    %14 = tpu.matmul %1, %13, %cst_14 {dimension_numbers = #tpu.dot_dimension_numbers<[1], [1], [0], [0], [0, 0, 1, 0], [], []>} : vector<16x128xf32>, vector<16x128xf32>, vector<16x16xf32> -> vector<16x16xf32>
    %c0_15 = arith.constant 0 : index
    %c0_16 = arith.constant 0 : index
    %15 = vector.load %arg7[%c0_15, %c0_16] : memref<8x16xf32, #tpu.memory_space<vmem>>, vector<1x16xf32>
    %16 = vector.broadcast %15 : vector<1x16xf32> to vector<16x16xf32>
    %17 = arith.addf %14, %16 : vector<16x16xf32>
    %cst_17 = arith.constant dense<0.000000e+00> : vector<16x16xf32>
    %18 = tpu.matmul %7, %12, %cst_17 {dimension_numbers = #tpu.dot_dimension_numbers<[1], [1], [0], [0], [0, 0, 1, 0], [], []>} : vector<16x16xf32>, vector<16x16xf32>, vector<16x16xf32> -> vector<16x16xf32>
    %cst_18 = arith.constant 2.500000e-01 : f32
    %19 = vector.broadcast %cst_18 : f32 to vector<16x16xf32>
    %20 = arith.mulf %18, %19 : vector<16x16xf32>
    %cst_19 = arith.constant dense<0xFF800000> : vector<16xf32>
    %21 = vector.multi_reduction <maximumf>, %20, %cst_19 [1] : vector<16x16xf32> to vector<16xf32>
    %22 = vector.shape_cast %21 : vector<16xf32> to vector<16x1xf32>
    %23 = vector.broadcast %22 : vector<16x1xf32> to vector<16x16xf32>
    %24 = arith.subf %20, %23 : vector<16x16xf32>
    %25 = math.exp %24 : vector<16x16xf32>
    %cst_20 = arith.constant dense<0.000000e+00> : vector<16xf32>
    %26 = vector.multi_reduction <add>, %25, %cst_20 [1] : vector<16x16xf32> to vector<16xf32>
    %27 = vector.shape_cast %26 : vector<16xf32> to vector<16x1xf32>
    %28 = tpu.reciprocal %27 {approx = true} : vector<16x1xf32> -> vector<16x1xf32>
    %29 = vector.broadcast %28 : vector<16x1xf32> to vector<16x16xf32>
    %30 = arith.mulf %25, %29 : vector<16x16xf32>
    %cst_21 = arith.constant dense<0.000000e+00> : vector<16x16xf32>
    %31 = tpu.matmul %30, %17, %cst_21 {dimension_numbers = #tpu.dot_dimension_numbers<[1], [0], [0], [1], [0, 0, 1, 1], [], []>} : vector<16x16xf32>, vector<16x16xf32>, vector<16x16xf32> -> vector<16x16xf32>
    %c0_22 = arith.constant 0 : index
    %c0_23 = arith.constant 0 : index
    %32 = vector.load %arg8[%c0_22, %c0_23] : memref<128x128xf32, #tpu.memory_space<vmem>>, vector<16x128xf32>
    %cst_24 = arith.constant dense<0.000000e+00> : vector<16x128xf32>
    %33 = tpu.matmul %31, %32, %cst_24 {dimension_numbers = #tpu.dot_dimension_numbers<[1], [0], [0], [1], [0, 0, 1, 1], [], []>} : vector<16x16xf32>, vector<16x128xf32>, vector<16x128xf32> -> vector<16x128xf32>
    %34 = arith.addf %2, %33 : vector<16x128xf32>
    %c16 = arith.constant 16 : index
    %c0_25 = arith.constant 0 : index
    %35 = vector.load %arg2[%c16, %c0_25] : memref<128x128xf32, #tpu.memory_space<vmem>>, vector<16x128xf32>
    %cst_26 = arith.constant dense<0.000000e+00> : vector<16x16xf32>
    %36 = tpu.matmul %1, %35, %cst_26 {dimension_numbers = #tpu.dot_dimension_numbers<[1], [1], [0], [0], [0, 0, 1, 0], [], []>} : vector<16x128xf32>, vector<16x128xf32>, vector<16x16xf32> -> vector<16x16xf32>
    %c1 = arith.constant 1 : index
    %c0_27 = arith.constant 0 : index
    %37 = vector.load %arg5[%c1, %c0_27] : memref<8x16xf32, #tpu.memory_space<vmem>>, vector<1x16xf32>
    %38 = vector.broadcast %37 : vector<1x16xf32> to vector<16x16xf32>
    %39 = arith.addf %36, %38 : vector<16x16xf32>
    %c16_28 = arith.constant 16 : index
    %c0_29 = arith.constant 0 : index
    %40 = vector.load %arg3[%c16_28, %c0_29] : memref<128x128xf32, #tpu.memory_space<vmem>>, vector<16x128xf32>
    %cst_30 = arith.constant dense<0.000000e+00> : vector<16x16xf32>
    %41 = tpu.matmul %1, %40, %cst_30 {dimension_numbers = #tpu.dot_dimension_numbers<[1], [1], [0], [0], [0, 0, 1, 0], [], []>} : vector<16x128xf32>, vector<16x128xf32>, vector<16x16xf32> -> vector<16x16xf32>
    %c1_31 = arith.constant 1 : index
    %c0_32 = arith.constant 0 : index
    %42 = vector.load %arg6[%c1_31, %c0_32] : memref<8x16xf32, #tpu.memory_space<vmem>>, vector<1x16xf32>
    %43 = vector.broadcast %42 : vector<1x16xf32> to vector<16x16xf32>
    %44 = arith.addf %41, %43 : vector<16x16xf32>
    %c16_33 = arith.constant 16 : index
    %c0_34 = arith.constant 0 : index
    %45 = vector.load %arg4[%c16_33, %c0_34] : memref<128x128xf32, #tpu.memory_space<vmem>>, vector<16x128xf32>
    %cst_35 = arith.constant dense<0.000000e+00> : vector<16x16xf32>
    %46 = tpu.matmul %1, %45, %cst_35 {dimension_numbers = #tpu.dot_dimension_numbers<[1], [1], [0], [0], [0, 0, 1, 0], [], []>} : vector<16x128xf32>, vector<16x128xf32>, vector<16x16xf32> -> vector<16x16xf32>
    %c1_36 = arith.constant 1 : index
    %c0_37 = arith.constant 0 : index
    %47 = vector.load %arg7[%c1_36, %c0_37] : memref<8x16xf32, #tpu.memory_space<vmem>>, vector<1x16xf32>
    %48 = vector.broadcast %47 : vector<1x16xf32> to vector<16x16xf32>
    %49 = arith.addf %46, %48 : vector<16x16xf32>
    %cst_38 = arith.constant dense<0.000000e+00> : vector<16x16xf32>
    %50 = tpu.matmul %39, %44, %cst_38 {dimension_numbers = #tpu.dot_dimension_numbers<[1], [1], [0], [0], [0, 0, 1, 0], [], []>} : vector<16x16xf32>, vector<16x16xf32>, vector<16x16xf32> -> vector<16x16xf32>
    %cst_39 = arith.constant 2.500000e-01 : f32
    %51 = vector.broadcast %cst_39 : f32 to vector<16x16xf32>
    %52 = arith.mulf %50, %51 : vector<16x16xf32>
    %cst_40 = arith.constant dense<0xFF800000> : vector<16xf32>
    %53 = vector.multi_reduction <maximumf>, %52, %cst_40 [1] : vector<16x16xf32> to vector<16xf32>
    %54 = vector.shape_cast %53 : vector<16xf32> to vector<16x1xf32>
    %55 = vector.broadcast %54 : vector<16x1xf32> to vector<16x16xf32>
    %56 = arith.subf %52, %55 : vector<16x16xf32>
    %57 = math.exp %56 : vector<16x16xf32>
    %cst_41 = arith.constant dense<0.000000e+00> : vector<16xf32>
    %58 = vector.multi_reduction <add>, %57, %cst_41 [1] : vector<16x16xf32> to vector<16xf32>
    %59 = vector.shape_cast %58 : vector<16xf32> to vector<16x1xf32>
    %60 = tpu.reciprocal %59 {approx = true} : vector<16x1xf32> -> vector<16x1xf32>
    %61 = vector.broadcast %60 : vector<16x1xf32> to vector<16x16xf32>
    %62 = arith.mulf %57, %61 : vector<16x16xf32>
    %cst_42 = arith.constant dense<0.000000e+00> : vector<16x16xf32>
    %63 = tpu.matmul %62, %49, %cst_42 {dimension_numbers = #tpu.dot_dimension_numbers<[1], [0], [0], [1], [0, 0, 1, 1], [], []>} : vector<16x16xf32>, vector<16x16xf32>, vector<16x16xf32> -> vector<16x16xf32>
    %c16_43 = arith.constant 16 : index
    %c0_44 = arith.constant 0 : index
    %64 = vector.load %arg8[%c16_43, %c0_44] : memref<128x128xf32, #tpu.memory_space<vmem>>, vector<16x128xf32>
    %cst_45 = arith.constant dense<0.000000e+00> : vector<16x128xf32>
    %65 = tpu.matmul %63, %64, %cst_45 {dimension_numbers = #tpu.dot_dimension_numbers<[1], [0], [0], [1], [0, 0, 1, 1], [], []>} : vector<16x16xf32>, vector<16x128xf32>, vector<16x128xf32> -> vector<16x128xf32>
    %66 = arith.addf %34, %65 : vector<16x128xf32>
    %c32 = arith.constant 32 : index
    %c0_46 = arith.constant 0 : index
    %67 = vector.load %arg2[%c32, %c0_46] : memref<128x128xf32, #tpu.memory_space<vmem>>, vector<16x128xf32>
    %cst_47 = arith.constant dense<0.000000e+00> : vector<16x16xf32>
    %68 = tpu.matmul %1, %67, %cst_47 {dimension_numbers = #tpu.dot_dimension_numbers<[1], [1], [0], [0], [0, 0, 1, 0], [], []>} : vector<16x128xf32>, vector<16x128xf32>, vector<16x16xf32> -> vector<16x16xf32>
    %c2 = arith.constant 2 : index
    %c0_48 = arith.constant 0 : index
    %69 = vector.load %arg5[%c2, %c0_48] : memref<8x16xf32, #tpu.memory_space<vmem>>, vector<1x16xf32>
    %70 = vector.broadcast %69 : vector<1x16xf32> to vector<16x16xf32>
    %71 = arith.addf %68, %70 : vector<16x16xf32>
    %c32_49 = arith.constant 32 : index
    %c0_50 = arith.constant 0 : index
    %72 = vector.load %arg3[%c32_49, %c0_50] : memref<128x128xf32, #tpu.memory_space<vmem>>, vector<16x128xf32>
    %cst_51 = arith.constant dense<0.000000e+00> : vector<16x16xf32>
    %73 = tpu.matmul %1, %72, %cst_51 {dimension_numbers = #tpu.dot_dimension_numbers<[1], [1], [0], [0], [0, 0, 1, 0], [], []>} : vector<16x128xf32>, vector<16x128xf32>, vector<16x16xf32> -> vector<16x16xf32>
    %c2_52 = arith.constant 2 : index
    %c0_53 = arith.constant 0 : index
    %74 = vector.load %arg6[%c2_52, %c0_53] : memref<8x16xf32, #tpu.memory_space<vmem>>, vector<1x16xf32>
    %75 = vector.broadcast %74 : vector<1x16xf32> to vector<16x16xf32>
    %76 = arith.addf %73, %75 : vector<16x16xf32>
    %c32_54 = arith.constant 32 : index
    %c0_55 = arith.constant 0 : index
    %77 = vector.load %arg4[%c32_54, %c0_55] : memref<128x128xf32, #tpu.memory_space<vmem>>, vector<16x128xf32>
    %cst_56 = arith.constant dense<0.000000e+00> : vector<16x16xf32>
    %78 = tpu.matmul %1, %77, %cst_56 {dimension_numbers = #tpu.dot_dimension_numbers<[1], [1], [0], [0], [0, 0, 1, 0], [], []>} : vector<16x128xf32>, vector<16x128xf32>, vector<16x16xf32> -> vector<16x16xf32>
    %c2_57 = arith.constant 2 : index
    %c0_58 = arith.constant 0 : index
    %79 = vector.load %arg7[%c2_57, %c0_58] : memref<8x16xf32, #tpu.memory_space<vmem>>, vector<1x16xf32>
    %80 = vector.broadcast %79 : vector<1x16xf32> to vector<16x16xf32>
    %81 = arith.addf %78, %80 : vector<16x16xf32>
    %cst_59 = arith.constant dense<0.000000e+00> : vector<16x16xf32>
    %82 = tpu.matmul %71, %76, %cst_59 {dimension_numbers = #tpu.dot_dimension_numbers<[1], [1], [0], [0], [0, 0, 1, 0], [], []>} : vector<16x16xf32>, vector<16x16xf32>, vector<16x16xf32> -> vector<16x16xf32>
    %cst_60 = arith.constant 2.500000e-01 : f32
    %83 = vector.broadcast %cst_60 : f32 to vector<16x16xf32>
    %84 = arith.mulf %82, %83 : vector<16x16xf32>
    %cst_61 = arith.constant dense<0xFF800000> : vector<16xf32>
    %85 = vector.multi_reduction <maximumf>, %84, %cst_61 [1] : vector<16x16xf32> to vector<16xf32>
    %86 = vector.shape_cast %85 : vector<16xf32> to vector<16x1xf32>
    %87 = vector.broadcast %86 : vector<16x1xf32> to vector<16x16xf32>
    %88 = arith.subf %84, %87 : vector<16x16xf32>
    %89 = math.exp %88 : vector<16x16xf32>
    %cst_62 = arith.constant dense<0.000000e+00> : vector<16xf32>
    %90 = vector.multi_reduction <add>, %89, %cst_62 [1] : vector<16x16xf32> to vector<16xf32>
    %91 = vector.shape_cast %90 : vector<16xf32> to vector<16x1xf32>
    %92 = tpu.reciprocal %91 {approx = true} : vector<16x1xf32> -> vector<16x1xf32>
    %93 = vector.broadcast %92 : vector<16x1xf32> to vector<16x16xf32>
    %94 = arith.mulf %89, %93 : vector<16x16xf32>
    %cst_63 = arith.constant dense<0.000000e+00> : vector<16x16xf32>
    %95 = tpu.matmul %94, %81, %cst_63 {dimension_numbers = #tpu.dot_dimension_numbers<[1], [0], [0], [1], [0, 0, 1, 1], [], []>} : vector<16x16xf32>, vector<16x16xf32>, vector<16x16xf32> -> vector<16x16xf32>
    %c32_64 = arith.constant 32 : index
    %c0_65 = arith.constant 0 : index
    %96 = vector.load %arg8[%c32_64, %c0_65] : memref<128x128xf32, #tpu.memory_space<vmem>>, vector<16x128xf32>
    %cst_66 = arith.constant dense<0.000000e+00> : vector<16x128xf32>
    %97 = tpu.matmul %95, %96, %cst_66 {dimension_numbers = #tpu.dot_dimension_numbers<[1], [0], [0], [1], [0, 0, 1, 1], [], []>} : vector<16x16xf32>, vector<16x128xf32>, vector<16x128xf32> -> vector<16x128xf32>
    %98 = arith.addf %66, %97 : vector<16x128xf32>
    %c48 = arith.constant 48 : index
    %c0_67 = arith.constant 0 : index
    %99 = vector.load %arg2[%c48, %c0_67] : memref<128x128xf32, #tpu.memory_space<vmem>>, vector<16x128xf32>
    %cst_68 = arith.constant dense<0.000000e+00> : vector<16x16xf32>
    %100 = tpu.matmul %1, %99, %cst_68 {dimension_numbers = #tpu.dot_dimension_numbers<[1], [1], [0], [0], [0, 0, 1, 0], [], []>} : vector<16x128xf32>, vector<16x128xf32>, vector<16x16xf32> -> vector<16x16xf32>
    %c3 = arith.constant 3 : index
    %c0_69 = arith.constant 0 : index
    %101 = vector.load %arg5[%c3, %c0_69] : memref<8x16xf32, #tpu.memory_space<vmem>>, vector<1x16xf32>
    %102 = vector.broadcast %101 : vector<1x16xf32> to vector<16x16xf32>
    %103 = arith.addf %100, %102 : vector<16x16xf32>
    %c48_70 = arith.constant 48 : index
    %c0_71 = arith.constant 0 : index
    %104 = vector.load %arg3[%c48_70, %c0_71] : memref<128x128xf32, #tpu.memory_space<vmem>>, vector<16x128xf32>
    %cst_72 = arith.constant dense<0.000000e+00> : vector<16x16xf32>
    %105 = tpu.matmul %1, %104, %cst_72 {dimension_numbers = #tpu.dot_dimension_numbers<[1], [1], [0], [0], [0, 0, 1, 0], [], []>} : vector<16x128xf32>, vector<16x128xf32>, vector<16x16xf32> -> vector<16x16xf32>
    %c3_73 = arith.constant 3 : index
    %c0_74 = arith.constant 0 : index
    %106 = vector.load %arg6[%c3_73, %c0_74] : memref<8x16xf32, #tpu.memory_space<vmem>>, vector<1x16xf32>
    %107 = vector.broadcast %106 : vector<1x16xf32> to vector<16x16xf32>
    %108 = arith.addf %105, %107 : vector<16x16xf32>
    %c48_75 = arith.constant 48 : index
    %c0_76 = arith.constant 0 : index
    %109 = vector.load %arg4[%c48_75, %c0_76] : memref<128x128xf32, #tpu.memory_space<vmem>>, vector<16x128xf32>
    %cst_77 = arith.constant dense<0.000000e+00> : vector<16x16xf32>
    %110 = tpu.matmul %1, %109, %cst_77 {dimension_numbers = #tpu.dot_dimension_numbers<[1], [1], [0], [0], [0, 0, 1, 0], [], []>} : vector<16x128xf32>, vector<16x128xf32>, vector<16x16xf32> -> vector<16x16xf32>
    %c3_78 = arith.constant 3 : index
    %c0_79 = arith.constant 0 : index
    %111 = vector.load %arg7[%c3_78, %c0_79] : memref<8x16xf32, #tpu.memory_space<vmem>>, vector<1x16xf32>
    %112 = vector.broadcast %111 : vector<1x16xf32> to vector<16x16xf32>
    %113 = arith.addf %110, %112 : vector<16x16xf32>
    %cst_80 = arith.constant dense<0.000000e+00> : vector<16x16xf32>
    %114 = tpu.matmul %103, %108, %cst_80 {dimension_numbers = #tpu.dot_dimension_numbers<[1], [1], [0], [0], [0, 0, 1, 0], [], []>} : vector<16x16xf32>, vector<16x16xf32>, vector<16x16xf32> -> vector<16x16xf32>
    %cst_81 = arith.constant 2.500000e-01 : f32
    %115 = vector.broadcast %cst_81 : f32 to vector<16x16xf32>
    %116 = arith.mulf %114, %115 : vector<16x16xf32>
    %cst_82 = arith.constant dense<0xFF800000> : vector<16xf32>
    %117 = vector.multi_reduction <maximumf>, %116, %cst_82 [1] : vector<16x16xf32> to vector<16xf32>
    %118 = vector.shape_cast %117 : vector<16xf32> to vector<16x1xf32>
    %119 = vector.broadcast %118 : vector<16x1xf32> to vector<16x16xf32>
    %120 = arith.subf %116, %119 : vector<16x16xf32>
    %121 = math.exp %120 : vector<16x16xf32>
    %cst_83 = arith.constant dense<0.000000e+00> : vector<16xf32>
    %122 = vector.multi_reduction <add>, %121, %cst_83 [1] : vector<16x16xf32> to vector<16xf32>
    %123 = vector.shape_cast %122 : vector<16xf32> to vector<16x1xf32>
    %124 = tpu.reciprocal %123 {approx = true} : vector<16x1xf32> -> vector<16x1xf32>
    %125 = vector.broadcast %124 : vector<16x1xf32> to vector<16x16xf32>
    %126 = arith.mulf %121, %125 : vector<16x16xf32>
    %cst_84 = arith.constant dense<0.000000e+00> : vector<16x16xf32>
    %127 = tpu.matmul %126, %113, %cst_84 {dimension_numbers = #tpu.dot_dimension_numbers<[1], [0], [0], [1], [0, 0, 1, 1], [], []>} : vector<16x16xf32>, vector<16x16xf32>, vector<16x16xf32> -> vector<16x16xf32>
    %c48_85 = arith.constant 48 : index
    %c0_86 = arith.constant 0 : index
    %128 = vector.load %arg8[%c48_85, %c0_86] : memref<128x128xf32, #tpu.memory_space<vmem>>, vector<16x128xf32>
    %cst_87 = arith.constant dense<0.000000e+00> : vector<16x128xf32>
    %129 = tpu.matmul %127, %128, %cst_87 {dimension_numbers = #tpu.dot_dimension_numbers<[1], [0], [0], [1], [0, 0, 1, 1], [], []>} : vector<16x16xf32>, vector<16x128xf32>, vector<16x128xf32> -> vector<16x128xf32>
    %130 = arith.addf %98, %129 : vector<16x128xf32>
    %c64 = arith.constant 64 : index
    %c0_88 = arith.constant 0 : index
    %131 = vector.load %arg2[%c64, %c0_88] : memref<128x128xf32, #tpu.memory_space<vmem>>, vector<16x128xf32>
    %cst_89 = arith.constant dense<0.000000e+00> : vector<16x16xf32>
    %132 = tpu.matmul %1, %131, %cst_89 {dimension_numbers = #tpu.dot_dimension_numbers<[1], [1], [0], [0], [0, 0, 1, 0], [], []>} : vector<16x128xf32>, vector<16x128xf32>, vector<16x16xf32> -> vector<16x16xf32>
    %c4 = arith.constant 4 : index
    %c0_90 = arith.constant 0 : index
    %133 = vector.load %arg5[%c4, %c0_90] : memref<8x16xf32, #tpu.memory_space<vmem>>, vector<1x16xf32>
    %134 = vector.broadcast %133 : vector<1x16xf32> to vector<16x16xf32>
    %135 = arith.addf %132, %134 : vector<16x16xf32>
    %c64_91 = arith.constant 64 : index
    %c0_92 = arith.constant 0 : index
    %136 = vector.load %arg3[%c64_91, %c0_92] : memref<128x128xf32, #tpu.memory_space<vmem>>, vector<16x128xf32>
    %cst_93 = arith.constant dense<0.000000e+00> : vector<16x16xf32>
    %137 = tpu.matmul %1, %136, %cst_93 {dimension_numbers = #tpu.dot_dimension_numbers<[1], [1], [0], [0], [0, 0, 1, 0], [], []>} : vector<16x128xf32>, vector<16x128xf32>, vector<16x16xf32> -> vector<16x16xf32>
    %c4_94 = arith.constant 4 : index
    %c0_95 = arith.constant 0 : index
    %138 = vector.load %arg6[%c4_94, %c0_95] : memref<8x16xf32, #tpu.memory_space<vmem>>, vector<1x16xf32>
    %139 = vector.broadcast %138 : vector<1x16xf32> to vector<16x16xf32>
    %140 = arith.addf %137, %139 : vector<16x16xf32>
    %c64_96 = arith.constant 64 : index
    %c0_97 = arith.constant 0 : index
    %141 = vector.load %arg4[%c64_96, %c0_97] : memref<128x128xf32, #tpu.memory_space<vmem>>, vector<16x128xf32>
    %cst_98 = arith.constant dense<0.000000e+00> : vector<16x16xf32>
    %142 = tpu.matmul %1, %141, %cst_98 {dimension_numbers = #tpu.dot_dimension_numbers<[1], [1], [0], [0], [0, 0, 1, 0], [], []>} : vector<16x128xf32>, vector<16x128xf32>, vector<16x16xf32> -> vector<16x16xf32>
    %c4_99 = arith.constant 4 : index
    %c0_100 = arith.constant 0 : index
    %143 = vector.load %arg7[%c4_99, %c0_100] : memref<8x16xf32, #tpu.memory_space<vmem>>, vector<1x16xf32>
    %144 = vector.broadcast %143 : vector<1x16xf32> to vector<16x16xf32>
    %145 = arith.addf %142, %144 : vector<16x16xf32>
    %cst_101 = arith.constant dense<0.000000e+00> : vector<16x16xf32>
    %146 = tpu.matmul %135, %140, %cst_101 {dimension_numbers = #tpu.dot_dimension_numbers<[1], [1], [0], [0], [0, 0, 1, 0], [], []>} : vector<16x16xf32>, vector<16x16xf32>, vector<16x16xf32> -> vector<16x16xf32>
    %cst_102 = arith.constant 2.500000e-01 : f32
    %147 = vector.broadcast %cst_102 : f32 to vector<16x16xf32>
    %148 = arith.mulf %146, %147 : vector<16x16xf32>
    %cst_103 = arith.constant dense<0xFF800000> : vector<16xf32>
    %149 = vector.multi_reduction <maximumf>, %148, %cst_103 [1] : vector<16x16xf32> to vector<16xf32>
    %150 = vector.shape_cast %149 : vector<16xf32> to vector<16x1xf32>
    %151 = vector.broadcast %150 : vector<16x1xf32> to vector<16x16xf32>
    %152 = arith.subf %148, %151 : vector<16x16xf32>
    %153 = math.exp %152 : vector<16x16xf32>
    %cst_104 = arith.constant dense<0.000000e+00> : vector<16xf32>
    %154 = vector.multi_reduction <add>, %153, %cst_104 [1] : vector<16x16xf32> to vector<16xf32>
    %155 = vector.shape_cast %154 : vector<16xf32> to vector<16x1xf32>
    %156 = tpu.reciprocal %155 {approx = true} : vector<16x1xf32> -> vector<16x1xf32>
    %157 = vector.broadcast %156 : vector<16x1xf32> to vector<16x16xf32>
    %158 = arith.mulf %153, %157 : vector<16x16xf32>
    %cst_105 = arith.constant dense<0.000000e+00> : vector<16x16xf32>
    %159 = tpu.matmul %158, %145, %cst_105 {dimension_numbers = #tpu.dot_dimension_numbers<[1], [0], [0], [1], [0, 0, 1, 1], [], []>} : vector<16x16xf32>, vector<16x16xf32>, vector<16x16xf32> -> vector<16x16xf32>
    %c64_106 = arith.constant 64 : index
    %c0_107 = arith.constant 0 : index
    %160 = vector.load %arg8[%c64_106, %c0_107] : memref<128x128xf32, #tpu.memory_space<vmem>>, vector<16x128xf32>
    %cst_108 = arith.constant dense<0.000000e+00> : vector<16x128xf32>
    %161 = tpu.matmul %159, %160, %cst_108 {dimension_numbers = #tpu.dot_dimension_numbers<[1], [0], [0], [1], [0, 0, 1, 1], [], []>} : vector<16x16xf32>, vector<16x128xf32>, vector<16x128xf32> -> vector<16x128xf32>
    %162 = arith.addf %130, %161 : vector<16x128xf32>
    %c80 = arith.constant 80 : index
    %c0_109 = arith.constant 0 : index
    %163 = vector.load %arg2[%c80, %c0_109] : memref<128x128xf32, #tpu.memory_space<vmem>>, vector<16x128xf32>
    %cst_110 = arith.constant dense<0.000000e+00> : vector<16x16xf32>
    %164 = tpu.matmul %1, %163, %cst_110 {dimension_numbers = #tpu.dot_dimension_numbers<[1], [1], [0], [0], [0, 0, 1, 0], [], []>} : vector<16x128xf32>, vector<16x128xf32>, vector<16x16xf32> -> vector<16x16xf32>
    %c5 = arith.constant 5 : index
    %c0_111 = arith.constant 0 : index
    %165 = vector.load %arg5[%c5, %c0_111] : memref<8x16xf32, #tpu.memory_space<vmem>>, vector<1x16xf32>
    %166 = vector.broadcast %165 : vector<1x16xf32> to vector<16x16xf32>
    %167 = arith.addf %164, %166 : vector<16x16xf32>
    %c80_112 = arith.constant 80 : index
    %c0_113 = arith.constant 0 : index
    %168 = vector.load %arg3[%c80_112, %c0_113] : memref<128x128xf32, #tpu.memory_space<vmem>>, vector<16x128xf32>
    %cst_114 = arith.constant dense<0.000000e+00> : vector<16x16xf32>
    %169 = tpu.matmul %1, %168, %cst_114 {dimension_numbers = #tpu.dot_dimension_numbers<[1], [1], [0], [0], [0, 0, 1, 0], [], []>} : vector<16x128xf32>, vector<16x128xf32>, vector<16x16xf32> -> vector<16x16xf32>
    %c5_115 = arith.constant 5 : index
    %c0_116 = arith.constant 0 : index
    %170 = vector.load %arg6[%c5_115, %c0_116] : memref<8x16xf32, #tpu.memory_space<vmem>>, vector<1x16xf32>
    %171 = vector.broadcast %170 : vector<1x16xf32> to vector<16x16xf32>
    %172 = arith.addf %169, %171 : vector<16x16xf32>
    %c80_117 = arith.constant 80 : index
    %c0_118 = arith.constant 0 : index
    %173 = vector.load %arg4[%c80_117, %c0_118] : memref<128x128xf32, #tpu.memory_space<vmem>>, vector<16x128xf32>
    %cst_119 = arith.constant dense<0.000000e+00> : vector<16x16xf32>
    %174 = tpu.matmul %1, %173, %cst_119 {dimension_numbers = #tpu.dot_dimension_numbers<[1], [1], [0], [0], [0, 0, 1, 0], [], []>} : vector<16x128xf32>, vector<16x128xf32>, vector<16x16xf32> -> vector<16x16xf32>
    %c5_120 = arith.constant 5 : index
    %c0_121 = arith.constant 0 : index
    %175 = vector.load %arg7[%c5_120, %c0_121] : memref<8x16xf32, #tpu.memory_space<vmem>>, vector<1x16xf32>
    %176 = vector.broadcast %175 : vector<1x16xf32> to vector<16x16xf32>
    %177 = arith.addf %174, %176 : vector<16x16xf32>
    %cst_122 = arith.constant dense<0.000000e+00> : vector<16x16xf32>
    %178 = tpu.matmul %167, %172, %cst_122 {dimension_numbers = #tpu.dot_dimension_numbers<[1], [1], [0], [0], [0, 0, 1, 0], [], []>} : vector<16x16xf32>, vector<16x16xf32>, vector<16x16xf32> -> vector<16x16xf32>
    %cst_123 = arith.constant 2.500000e-01 : f32
    %179 = vector.broadcast %cst_123 : f32 to vector<16x16xf32>
    %180 = arith.mulf %178, %179 : vector<16x16xf32>
    %cst_124 = arith.constant dense<0xFF800000> : vector<16xf32>
    %181 = vector.multi_reduction <maximumf>, %180, %cst_124 [1] : vector<16x16xf32> to vector<16xf32>
    %182 = vector.shape_cast %181 : vector<16xf32> to vector<16x1xf32>
    %183 = vector.broadcast %182 : vector<16x1xf32> to vector<16x16xf32>
    %184 = arith.subf %180, %183 : vector<16x16xf32>
    %185 = math.exp %184 : vector<16x16xf32>
    %cst_125 = arith.constant dense<0.000000e+00> : vector<16xf32>
    %186 = vector.multi_reduction <add>, %185, %cst_125 [1] : vector<16x16xf32> to vector<16xf32>
    %187 = vector.shape_cast %186 : vector<16xf32> to vector<16x1xf32>
    %188 = tpu.reciprocal %187 {approx = true} : vector<16x1xf32> -> vector<16x1xf32>
    %189 = vector.broadcast %188 : vector<16x1xf32> to vector<16x16xf32>
    %190 = arith.mulf %185, %189 : vector<16x16xf32>
    %cst_126 = arith.constant dense<0.000000e+00> : vector<16x16xf32>
    %191 = tpu.matmul %190, %177, %cst_126 {dimension_numbers = #tpu.dot_dimension_numbers<[1], [0], [0], [1], [0, 0, 1, 1], [], []>} : vector<16x16xf32>, vector<16x16xf32>, vector<16x16xf32> -> vector<16x16xf32>
    %c80_127 = arith.constant 80 : index
    %c0_128 = arith.constant 0 : index
    %192 = vector.load %arg8[%c80_127, %c0_128] : memref<128x128xf32, #tpu.memory_space<vmem>>, vector<16x128xf32>
    %cst_129 = arith.constant dense<0.000000e+00> : vector<16x128xf32>
    %193 = tpu.matmul %191, %192, %cst_129 {dimension_numbers = #tpu.dot_dimension_numbers<[1], [0], [0], [1], [0, 0, 1, 1], [], []>} : vector<16x16xf32>, vector<16x128xf32>, vector<16x128xf32> -> vector<16x128xf32>
    %194 = arith.addf %162, %193 : vector<16x128xf32>
    %c96 = arith.constant 96 : index
    %c0_130 = arith.constant 0 : index
    %195 = vector.load %arg2[%c96, %c0_130] : memref<128x128xf32, #tpu.memory_space<vmem>>, vector<16x128xf32>
    %cst_131 = arith.constant dense<0.000000e+00> : vector<16x16xf32>
    %196 = tpu.matmul %1, %195, %cst_131 {dimension_numbers = #tpu.dot_dimension_numbers<[1], [1], [0], [0], [0, 0, 1, 0], [], []>} : vector<16x128xf32>, vector<16x128xf32>, vector<16x16xf32> -> vector<16x16xf32>
    %c6 = arith.constant 6 : index
    %c0_132 = arith.constant 0 : index
    %197 = vector.load %arg5[%c6, %c0_132] : memref<8x16xf32, #tpu.memory_space<vmem>>, vector<1x16xf32>
    %198 = vector.broadcast %197 : vector<1x16xf32> to vector<16x16xf32>
    %199 = arith.addf %196, %198 : vector<16x16xf32>
    %c96_133 = arith.constant 96 : index
    %c0_134 = arith.constant 0 : index
    %200 = vector.load %arg3[%c96_133, %c0_134] : memref<128x128xf32, #tpu.memory_space<vmem>>, vector<16x128xf32>
    %cst_135 = arith.constant dense<0.000000e+00> : vector<16x16xf32>
    %201 = tpu.matmul %1, %200, %cst_135 {dimension_numbers = #tpu.dot_dimension_numbers<[1], [1], [0], [0], [0, 0, 1, 0], [], []>} : vector<16x128xf32>, vector<16x128xf32>, vector<16x16xf32> -> vector<16x16xf32>
    %c6_136 = arith.constant 6 : index
    %c0_137 = arith.constant 0 : index
    %202 = vector.load %arg6[%c6_136, %c0_137] : memref<8x16xf32, #tpu.memory_space<vmem>>, vector<1x16xf32>
    %203 = vector.broadcast %202 : vector<1x16xf32> to vector<16x16xf32>
    %204 = arith.addf %201, %203 : vector<16x16xf32>
    %c96_138 = arith.constant 96 : index
    %c0_139 = arith.constant 0 : index
    %205 = vector.load %arg4[%c96_138, %c0_139] : memref<128x128xf32, #tpu.memory_space<vmem>>, vector<16x128xf32>
    %cst_140 = arith.constant dense<0.000000e+00> : vector<16x16xf32>
    %206 = tpu.matmul %1, %205, %cst_140 {dimension_numbers = #tpu.dot_dimension_numbers<[1], [1], [0], [0], [0, 0, 1, 0], [], []>} : vector<16x128xf32>, vector<16x128xf32>, vector<16x16xf32> -> vector<16x16xf32>
    %c6_141 = arith.constant 6 : index
    %c0_142 = arith.constant 0 : index
    %207 = vector.load %arg7[%c6_141, %c0_142] : memref<8x16xf32, #tpu.memory_space<vmem>>, vector<1x16xf32>
    %208 = vector.broadcast %207 : vector<1x16xf32> to vector<16x16xf32>
    %209 = arith.addf %206, %208 : vector<16x16xf32>
    %cst_143 = arith.constant dense<0.000000e+00> : vector<16x16xf32>
    %210 = tpu.matmul %199, %204, %cst_143 {dimension_numbers = #tpu.dot_dimension_numbers<[1], [1], [0], [0], [0, 0, 1, 0], [], []>} : vector<16x16xf32>, vector<16x16xf32>, vector<16x16xf32> -> vector<16x16xf32>
    %cst_144 = arith.constant 2.500000e-01 : f32
    %211 = vector.broadcast %cst_144 : f32 to vector<16x16xf32>
    %212 = arith.mulf %210, %211 : vector<16x16xf32>
    %cst_145 = arith.constant dense<0xFF800000> : vector<16xf32>
    %213 = vector.multi_reduction <maximumf>, %212, %cst_145 [1] : vector<16x16xf32> to vector<16xf32>
    %214 = vector.shape_cast %213 : vector<16xf32> to vector<16x1xf32>
    %215 = vector.broadcast %214 : vector<16x1xf32> to vector<16x16xf32>
    %216 = arith.subf %212, %215 : vector<16x16xf32>
    %217 = math.exp %216 : vector<16x16xf32>
    %cst_146 = arith.constant dense<0.000000e+00> : vector<16xf32>
    %218 = vector.multi_reduction <add>, %217, %cst_146 [1] : vector<16x16xf32> to vector<16xf32>
    %219 = vector.shape_cast %218 : vector<16xf32> to vector<16x1xf32>
    %220 = tpu.reciprocal %219 {approx = true} : vector<16x1xf32> -> vector<16x1xf32>
    %221 = vector.broadcast %220 : vector<16x1xf32> to vector<16x16xf32>
    %222 = arith.mulf %217, %221 : vector<16x16xf32>
    %cst_147 = arith.constant dense<0.000000e+00> : vector<16x16xf32>
    %223 = tpu.matmul %222, %209, %cst_147 {dimension_numbers = #tpu.dot_dimension_numbers<[1], [0], [0], [1], [0, 0, 1, 1], [], []>} : vector<16x16xf32>, vector<16x16xf32>, vector<16x16xf32> -> vector<16x16xf32>
    %c96_148 = arith.constant 96 : index
    %c0_149 = arith.constant 0 : index
    %224 = vector.load %arg8[%c96_148, %c0_149] : memref<128x128xf32, #tpu.memory_space<vmem>>, vector<16x128xf32>
    %cst_150 = arith.constant dense<0.000000e+00> : vector<16x128xf32>
    %225 = tpu.matmul %223, %224, %cst_150 {dimension_numbers = #tpu.dot_dimension_numbers<[1], [0], [0], [1], [0, 0, 1, 1], [], []>} : vector<16x16xf32>, vector<16x128xf32>, vector<16x128xf32> -> vector<16x128xf32>
    %226 = arith.addf %194, %225 : vector<16x128xf32>
    %c112 = arith.constant 112 : index
    %c0_151 = arith.constant 0 : index
    %227 = vector.load %arg2[%c112, %c0_151] : memref<128x128xf32, #tpu.memory_space<vmem>>, vector<16x128xf32>
    %cst_152 = arith.constant dense<0.000000e+00> : vector<16x16xf32>
    %228 = tpu.matmul %1, %227, %cst_152 {dimension_numbers = #tpu.dot_dimension_numbers<[1], [1], [0], [0], [0, 0, 1, 0], [], []>} : vector<16x128xf32>, vector<16x128xf32>, vector<16x16xf32> -> vector<16x16xf32>
    %c7 = arith.constant 7 : index
    %c0_153 = arith.constant 0 : index
    %229 = vector.load %arg5[%c7, %c0_153] : memref<8x16xf32, #tpu.memory_space<vmem>>, vector<1x16xf32>
    %230 = vector.broadcast %229 : vector<1x16xf32> to vector<16x16xf32>
    %231 = arith.addf %228, %230 : vector<16x16xf32>
    %c112_154 = arith.constant 112 : index
    %c0_155 = arith.constant 0 : index
    %232 = vector.load %arg3[%c112_154, %c0_155] : memref<128x128xf32, #tpu.memory_space<vmem>>, vector<16x128xf32>
    %cst_156 = arith.constant dense<0.000000e+00> : vector<16x16xf32>
    %233 = tpu.matmul %1, %232, %cst_156 {dimension_numbers = #tpu.dot_dimension_numbers<[1], [1], [0], [0], [0, 0, 1, 0], [], []>} : vector<16x128xf32>, vector<16x128xf32>, vector<16x16xf32> -> vector<16x16xf32>
    %c7_157 = arith.constant 7 : index
    %c0_158 = arith.constant 0 : index
    %234 = vector.load %arg6[%c7_157, %c0_158] : memref<8x16xf32, #tpu.memory_space<vmem>>, vector<1x16xf32>
    %235 = vector.broadcast %234 : vector<1x16xf32> to vector<16x16xf32>
    %236 = arith.addf %233, %235 : vector<16x16xf32>
    %c112_159 = arith.constant 112 : index
    %c0_160 = arith.constant 0 : index
    %237 = vector.load %arg4[%c112_159, %c0_160] : memref<128x128xf32, #tpu.memory_space<vmem>>, vector<16x128xf32>
    %cst_161 = arith.constant dense<0.000000e+00> : vector<16x16xf32>
    %238 = tpu.matmul %1, %237, %cst_161 {dimension_numbers = #tpu.dot_dimension_numbers<[1], [1], [0], [0], [0, 0, 1, 0], [], []>} : vector<16x128xf32>, vector<16x128xf32>, vector<16x16xf32> -> vector<16x16xf32>
    %c7_162 = arith.constant 7 : index
    %c0_163 = arith.constant 0 : index
    %239 = vector.load %arg7[%c7_162, %c0_163] : memref<8x16xf32, #tpu.memory_space<vmem>>, vector<1x16xf32>
    %240 = vector.broadcast %239 : vector<1x16xf32> to vector<16x16xf32>
    %241 = arith.addf %238, %240 : vector<16x16xf32>
    %cst_164 = arith.constant dense<0.000000e+00> : vector<16x16xf32>
    %242 = tpu.matmul %231, %236, %cst_164 {dimension_numbers = #tpu.dot_dimension_numbers<[1], [1], [0], [0], [0, 0, 1, 0], [], []>} : vector<16x16xf32>, vector<16x16xf32>, vector<16x16xf32> -> vector<16x16xf32>
    %cst_165 = arith.constant 2.500000e-01 : f32
    %243 = vector.broadcast %cst_165 : f32 to vector<16x16xf32>
    %244 = arith.mulf %242, %243 : vector<16x16xf32>
    %cst_166 = arith.constant dense<0xFF800000> : vector<16xf32>
    %245 = vector.multi_reduction <maximumf>, %244, %cst_166 [1] : vector<16x16xf32> to vector<16xf32>
    %246 = vector.shape_cast %245 : vector<16xf32> to vector<16x1xf32>
    %247 = vector.broadcast %246 : vector<16x1xf32> to vector<16x16xf32>
    %248 = arith.subf %244, %247 : vector<16x16xf32>
    %249 = math.exp %248 : vector<16x16xf32>
    %cst_167 = arith.constant dense<0.000000e+00> : vector<16xf32>
    %250 = vector.multi_reduction <add>, %249, %cst_167 [1] : vector<16x16xf32> to vector<16xf32>
    %251 = vector.shape_cast %250 : vector<16xf32> to vector<16x1xf32>
    %252 = tpu.reciprocal %251 {approx = true} : vector<16x1xf32> -> vector<16x1xf32>
    %253 = vector.broadcast %252 : vector<16x1xf32> to vector<16x16xf32>
    %254 = arith.mulf %249, %253 : vector<16x16xf32>
    %cst_168 = arith.constant dense<0.000000e+00> : vector<16x16xf32>
    %255 = tpu.matmul %254, %241, %cst_168 {dimension_numbers = #tpu.dot_dimension_numbers<[1], [0], [0], [1], [0, 0, 1, 1], [], []>} : vector<16x16xf32>, vector<16x16xf32>, vector<16x16xf32> -> vector<16x16xf32>
    %c112_169 = arith.constant 112 : index
    %c0_170 = arith.constant 0 : index
    %256 = vector.load %arg8[%c112_169, %c0_170] : memref<128x128xf32, #tpu.memory_space<vmem>>, vector<16x128xf32>
    %cst_171 = arith.constant dense<0.000000e+00> : vector<16x128xf32>
    %257 = tpu.matmul %255, %256, %cst_171 {dimension_numbers = #tpu.dot_dimension_numbers<[1], [0], [0], [1], [0, 0, 1, 1], [], []>} : vector<16x16xf32>, vector<16x128xf32>, vector<16x128xf32> -> vector<16x128xf32>
    %258 = arith.addf %226, %257 : vector<16x128xf32>
    %259 = arith.addf %1, %258 : vector<16x128xf32>
    %c0_172 = arith.constant 0 : index
    %c0_173 = arith.constant 0 : index
    %260 = vector.load %arg9[%c0_172, %c0_173] : memref<1x128xf32, #tpu.memory_space<vmem>>, vector<1x128xf32>
    %261 = vector.broadcast %260 : vector<1x128xf32> to vector<16x128xf32>
    %262 = arith.addf %259, %261 : vector<16x128xf32>
    %c0_174 = arith.constant 0 : index
    %c0_175 = arith.constant 0 : index
    %263 = vector.load %arg10[%c0_174, %c0_175] : memref<1x128xf32, #tpu.memory_space<vmem>>, vector<1x128xf32>
    %c0_176 = arith.constant 0 : index
    %c0_177 = arith.constant 0 : index
    %264 = vector.load %arg11[%c0_176, %c0_177] : memref<1x128xf32, #tpu.memory_space<vmem>>, vector<1x128xf32>
    %cst_178 = arith.constant dense<0.000000e+00> : vector<16xf32>
    %265 = vector.multi_reduction <add>, %262, %cst_178 [1] : vector<16x128xf32> to vector<16xf32>
    %266 = vector.shape_cast %265 : vector<16xf32> to vector<16x1xf32>
    %cst_179 = arith.constant 1.280000e+02 : f32
    %267 = vector.broadcast %cst_179 : f32 to vector<16x1xf32>
    %268 = arith.divf %266, %267 : vector<16x1xf32>
    %269 = vector.broadcast %268 : vector<16x1xf32> to vector<16x128xf32>
    %270 = arith.subf %262, %269 : vector<16x128xf32>
    %271 = arith.mulf %270, %270 : vector<16x128xf32>
    %cst_180 = arith.constant dense<0.000000e+00> : vector<16xf32>
    %272 = vector.multi_reduction <add>, %271, %cst_180 [1] : vector<16x128xf32> to vector<16xf32>
    %273 = vector.shape_cast %272 : vector<16xf32> to vector<16x1xf32>
    %cst_181 = arith.constant 1.280000e+02 : f32
    %274 = vector.broadcast %cst_181 : f32 to vector<16x1xf32>
    %275 = arith.divf %273, %274 : vector<16x1xf32>
    %cst_182 = arith.constant 9.99999974E-6 : f32
    %276 = vector.broadcast %cst_182 : f32 to vector<16x1xf32>
    %277 = arith.addf %275, %276 : vector<16x1xf32>
    %278 = math.rsqrt %277 : vector<16x1xf32>
    %279 = vector.broadcast %278 : vector<16x1xf32> to vector<16x128xf32>
    %280 = arith.mulf %270, %279 : vector<16x128xf32>
    %281 = vector.broadcast %263 : vector<1x128xf32> to vector<16x128xf32>
    %282 = arith.mulf %280, %281 : vector<16x128xf32>
    %283 = vector.broadcast %264 : vector<1x128xf32> to vector<16x128xf32>
    %284 = arith.addf %282, %283 : vector<16x128xf32>
    %c0_183 = arith.constant 0 : index
    %c0_184 = arith.constant 0 : index
    %c0_185 = arith.constant 0 : index
    %285 = vector.load %arg12[%c0_183, %c0_184, %c0_185] : memref<1x16x128xf32, #tpu.memory_space<vmem>>, vector<1x16x128xf32>
    %286 = vector.shape_cast %285 : vector<1x16x128xf32> to vector<16x128xf32>
    %287 = vector.shape_cast %284 : vector<16x128xf32> to vector<1x16x128xf32>
    tpu.vector_store %arg12[%c0_183, %c0_184, %c0_185], %287 {strides = array<i32>} : memref<1x16x128xf32, #tpu.memory_space<vmem>>, vector<1x16x128xf32>,
    return
  }
  func.func @transform_0(%arg0: i32) -> (i32, i32, i32) {
    %c0_i32 = arith.constant 0 : i32
    %c0_i32_0 = arith.constant 0 : i32
    %c0_i32_1 = arith.constant 0 : i32
    return %arg0, %c0_i32, %c0_i32_0 : i32, i32, i32
  }
  func.func @transform_1(%arg0: i32) -> (i32, i32) {
    %c0_i32 = arith.constant 0 : i32
    %c0_i32_0 = arith.constant 0 : i32
    %c0_i32_1 = arith.constant 0 : i32
    return %c0_i32, %c0_i32_0 : i32, i32
  }
  func.func @transform_2(%arg0: i32) -> (i32, i32) {
    %c0_i32 = arith.constant 0 : i32
    %c0_i32_0 = arith.constant 0 : i32
    %c0_i32_1 = arith.constant 0 : i32
    return %c0_i32, %c0_i32_0 : i32, i32
  }
  func.func @transform_3(%arg0: i32) -> (i32, i32) {
    %c0_i32 = arith.constant 0 : i32
    %c0_i32_0 = arith.constant 0 : i32
    %c0_i32_1 = arith.constant 0 : i32
    return %c0_i32, %c0_i32_0 : i32, i32
  }
  func.func @transform_4(%arg0: i32) -> (i32, i32) {
    %c0_i32 = arith.constant 0 : i32
    %c0_i32_0 = arith.constant 0 : i32
    %c0_i32_1 = arith.constant 0 : i32
    return %c0_i32, %c0_i32_0 : i32, i32
  }
  func.func @transform_5(%arg0: i32) -> (i32, i32) {
    %c0_i32 = arith.constant 0 : i32
    %c0_i32_0 = arith.constant 0 : i32
    %c0_i32_1 = arith.constant 0 : i32
    return %c0_i32, %c0_i32_0 : i32, i32
  }
  func.func @transform_6(%arg0: i32) -> (i32, i32) {
    %c0_i32 = arith.constant 0 : i32
    %c0_i32_0 = arith.constant 0 : i32
    %c0_i32_1 = arith.constant 0 : i32
    return %c0_i32, %c0_i32_0 : i32, i32
  }
  func.func @transform_7(%arg0: i32) -> (i32, i32) {
    %c0_i32 = arith.constant 0 : i32
    %c0_i32_0 = arith.constant 0 : i32
    %c0_i32_1 = arith.constant 0 : i32
    return %c0_i32, %c0_i32_0 : i32, i32
  }
  func.func @transform_8(%arg0: i32) -> (i32, i32) {
    %c0_i32 = arith.constant 0 : i32
    %c0_i32_0 = arith.constant 0 : i32
    %c0_i32_1 = arith.constant 0 : i32
    return %c0_i32, %c0_i32_0 : i32, i32
  }
  func.func @transform_9(%arg0: i32) -> (i32, i32) {
    %c0_i32 = arith.constant 0 : i32
    %c0_i32_0 = arith.constant 0 : i32
    %c0_i32_1 = arith.constant 0 : i32
    return %c0_i32, %c0_i32_0 : i32, i32
  }
  func.func @transform_10(%arg0: i32) -> (i32, i32) {
    %c0_i32 = arith.constant 0 : i32
    %c0_i32_0 = arith.constant 0 : i32
    %c0_i32_1 = arith.constant 0 : i32
    return %c0_i32, %c0_i32_0 : i32, i32
  }
  func.func @transform_11(%arg0: i32) -> (i32, i32, i32) {
    %c0_i32 = arith.constant 0 : i32
    %c0_i32_0 = arith.constant 0 : i32
    %c0_i32_1 = arith.constant 0 : i32
    return %arg0, %c0_i32, %c0_i32_0 : i32, i32, i32
  }
}

module attributes {stable_mosaic.version = 11 : i64} {
  func.func @_cross_attn_ln_kernel(%arg0: i32, %arg1: memref<1x16x128xf32, #tpu.memory_space<vmem>>, %arg2: memref<1x16x128xf32, #tpu.memory_space<vmem>>, %arg3: memref<128x128xf32, #tpu.memory_space<vmem>>, %arg4: memref<128x128xf32, #tpu.memory_space<vmem>>, %arg5: memref<128x128xf32, #tpu.memory_space<vmem>>, %arg6: memref<8x16xf32, #tpu.memory_space<vmem>>, %arg7: memref<8x16xf32, #tpu.memory_space<vmem>>, %arg8: memref<8x16xf32, #tpu.memory_space<vmem>>, %arg9: memref<128x128xf32, #tpu.memory_space<vmem>>, %arg10: memref<1x128xf32, #tpu.memory_space<vmem>>, %arg11: memref<1x128xf32, #tpu.memory_space<vmem>>, %arg12: memref<1x128xf32, #tpu.memory_space<vmem>>, %arg13: memref<1x16x128xf32, #tpu.memory_space<vmem>>) attributes {dimension_semantics = [#tpu.dimension_semantics<parallel>], iteration_bounds = array<i64: 2>, scalar_prefetch = 0 : i64, scratch_operands = 0 : i64, tpu.core_type = #tpu.core_type<tc>, window_params = [{transform_indices = @transform_0, window_bounds = array<i64: 1, 16, 128>}, {transform_indices = @transform_1, window_bounds = array<i64: 1, 16, 128>}, {pipeline_mode = #tpu.pipeline_mode<synchronous>, transform_indices = @transform_2, window_bounds = array<i64: 128, 128>}, {pipeline_mode = #tpu.pipeline_mode<synchronous>, transform_indices = @transform_3, window_bounds = array<i64: 128, 128>}, {pipeline_mode = #tpu.pipeline_mode<synchronous>, transform_indices = @transform_4, window_bounds = array<i64: 128, 128>}, {pipeline_mode = #tpu.pipeline_mode<synchronous>, transform_indices = @transform_5, window_bounds = array<i64: 8, 16>}, {pipeline_mode = #tpu.pipeline_mode<synchronous>, transform_indices = @transform_6, window_bounds = array<i64: 8, 16>}, {pipeline_mode = #tpu.pipeline_mode<synchronous>, transform_indices = @transform_7, window_bounds = array<i64: 8, 16>}, {pipeline_mode = #tpu.pipeline_mode<synchronous>, transform_indices = @transform_8, window_bounds = array<i64: 128, 128>}, {pipeline_mode = #tpu.pipeline_mode<synchronous>, transform_indices = @transform_9, window_bounds = array<i64: 1, 128>}, {pipeline_mode = #tpu.pipeline_mode<synchronous>, transform_indices = @transform_10, window_bounds = array<i64: 1, 128>}, {pipeline_mode = #tpu.pipeline_mode<synchronous>, transform_indices = @transform_11, window_bounds = array<i64: 1, 128>}, {transform_indices = @transform_12, window_bounds = array<i64: 1, 16, 128>}]} {
    %c0 = arith.constant 0 : index
    %c0_0 = arith.constant 0 : index
    %c0_1 = arith.constant 0 : index
    %0 = vector.load %arg1[%c0, %c0_0, %c0_1] : memref<1x16x128xf32, #tpu.memory_space<vmem>>, vector<1x16x128xf32>
    %1 = vector.shape_cast %0 : vector<1x16x128xf32> to vector<16x128xf32>
    %c0_2 = arith.constant 0 : index
    %c0_3 = arith.constant 0 : index
    %c0_4 = arith.constant 0 : index
    %2 = vector.load %arg2[%c0_2, %c0_3, %c0_4] : memref<1x16x128xf32, #tpu.memory_space<vmem>>, vector<1x16x128xf32>
    %3 = vector.shape_cast %2 : vector<1x16x128xf32> to vector<16x128xf32>
    %cst = arith.constant 0.000000e+00 : f32
    %4 = vector.broadcast %cst : f32 to vector<16x128xf32>
    %c0_5 = arith.constant 0 : index
    %c0_6 = arith.constant 0 : index
    %5 = vector.load %arg3[%c0_5, %c0_6] : memref<128x128xf32, #tpu.memory_space<vmem>>, vector<16x128xf32>
    %cst_7 = arith.constant dense<0.000000e+00> : vector<16x16xf32>
    %6 = tpu.matmul %1, %5, %cst_7 {dimension_numbers = #tpu.dot_dimension_numbers<[1], [1], [0], [0], [0, 0, 1, 0], [], []>} : vector<16x128xf32>, vector<16x128xf32>, vector<16x16xf32> -> vector<16x16xf32>
    %c0_8 = arith.constant 0 : index
    %c0_9 = arith.constant 0 : index
    %7 = vector.load %arg6[%c0_8, %c0_9] : memref<8x16xf32, #tpu.memory_space<vmem>>, vector<1x16xf32>
    %8 = vector.broadcast %7 : vector<1x16xf32> to vector<16x16xf32>
    %9 = arith.addf %6, %8 : vector<16x16xf32>
    %c0_10 = arith.constant 0 : index
    %c0_11 = arith.constant 0 : index
    %10 = vector.load %arg4[%c0_10, %c0_11] : memref<128x128xf32, #tpu.memory_space<vmem>>, vector<16x128xf32>
    %cst_12 = arith.constant dense<0.000000e+00> : vector<16x16xf32>
    %11 = tpu.matmul %3, %10, %cst_12 {dimension_numbers = #tpu.dot_dimension_numbers<[1], [1], [0], [0], [0, 0, 1, 0], [], []>} : vector<16x128xf32>, vector<16x128xf32>, vector<16x16xf32> -> vector<16x16xf32>
    %c0_13 = arith.constant 0 : index
    %c0_14 = arith.constant 0 : index
    %12 = vector.load %arg7[%c0_13, %c0_14] : memref<8x16xf32, #tpu.memory_space<vmem>>, vector<1x16xf32>
    %13 = vector.broadcast %12 : vector<1x16xf32> to vector<16x16xf32>
    %14 = arith.addf %11, %13 : vector<16x16xf32>
    %c0_15 = arith.constant 0 : index
    %c0_16 = arith.constant 0 : index
    %15 = vector.load %arg5[%c0_15, %c0_16] : memref<128x128xf32, #tpu.memory_space<vmem>>, vector<16x128xf32>
    %cst_17 = arith.constant dense<0.000000e+00> : vector<16x16xf32>
    %16 = tpu.matmul %3, %15, %cst_17 {dimension_numbers = #tpu.dot_dimension_numbers<[1], [1], [0], [0], [0, 0, 1, 0], [], []>} : vector<16x128xf32>, vector<16x128xf32>, vector<16x16xf32> -> vector<16x16xf32>
    %c0_18 = arith.constant 0 : index
    %c0_19 = arith.constant 0 : index
    %17 = vector.load %arg8[%c0_18, %c0_19] : memref<8x16xf32, #tpu.memory_space<vmem>>, vector<1x16xf32>
    %18 = vector.broadcast %17 : vector<1x16xf32> to vector<16x16xf32>
    %19 = arith.addf %16, %18 : vector<16x16xf32>
    %cst_20 = arith.constant dense<0.000000e+00> : vector<16x16xf32>
    %20 = tpu.matmul %9, %14, %cst_20 {dimension_numbers = #tpu.dot_dimension_numbers<[1], [1], [0], [0], [0, 0, 1, 0], [], []>} : vector<16x16xf32>, vector<16x16xf32>, vector<16x16xf32> -> vector<16x16xf32>
    %cst_21 = arith.constant 2.500000e-01 : f32
    %21 = vector.broadcast %cst_21 : f32 to vector<16x16xf32>
    %22 = arith.mulf %20, %21 : vector<16x16xf32>
    %cst_22 = arith.constant dense<0xFF800000> : vector<16xf32>
    %23 = vector.multi_reduction <maximumf>, %22, %cst_22 [1] : vector<16x16xf32> to vector<16xf32>
    %24 = vector.shape_cast %23 : vector<16xf32> to vector<16x1xf32>
    %25 = vector.broadcast %24 : vector<16x1xf32> to vector<16x16xf32>
    %26 = arith.subf %22, %25 : vector<16x16xf32>
    %27 = math.exp %26 : vector<16x16xf32>
    %cst_23 = arith.constant dense<0.000000e+00> : vector<16xf32>
    %28 = vector.multi_reduction <add>, %27, %cst_23 [1] : vector<16x16xf32> to vector<16xf32>
    %29 = vector.shape_cast %28 : vector<16xf32> to vector<16x1xf32>
    %30 = tpu.reciprocal %29 {approx = true} : vector<16x1xf32> -> vector<16x1xf32>
    %31 = vector.broadcast %30 : vector<16x1xf32> to vector<16x16xf32>
    %32 = arith.mulf %27, %31 : vector<16x16xf32>
    %cst_24 = arith.constant dense<0.000000e+00> : vector<16x16xf32>
    %33 = tpu.matmul %32, %19, %cst_24 {dimension_numbers = #tpu.dot_dimension_numbers<[1], [0], [0], [1], [0, 0, 1, 1], [], []>} : vector<16x16xf32>, vector<16x16xf32>, vector<16x16xf32> -> vector<16x16xf32>
    %c0_25 = arith.constant 0 : index
    %c0_26 = arith.constant 0 : index
    %34 = vector.load %arg9[%c0_25, %c0_26] : memref<128x128xf32, #tpu.memory_space<vmem>>, vector<16x128xf32>
    %cst_27 = arith.constant dense<0.000000e+00> : vector<16x128xf32>
    %35 = tpu.matmul %33, %34, %cst_27 {dimension_numbers = #tpu.dot_dimension_numbers<[1], [0], [0], [1], [0, 0, 1, 1], [], []>} : vector<16x16xf32>, vector<16x128xf32>, vector<16x128xf32> -> vector<16x128xf32>
    %36 = arith.addf %4, %35 : vector<16x128xf32>
    %c16 = arith.constant 16 : index
    %c0_28 = arith.constant 0 : index
    %37 = vector.load %arg3[%c16, %c0_28] : memref<128x128xf32, #tpu.memory_space<vmem>>, vector<16x128xf32>
    %cst_29 = arith.constant dense<0.000000e+00> : vector<16x16xf32>
    %38 = tpu.matmul %1, %37, %cst_29 {dimension_numbers = #tpu.dot_dimension_numbers<[1], [1], [0], [0], [0, 0, 1, 0], [], []>} : vector<16x128xf32>, vector<16x128xf32>, vector<16x16xf32> -> vector<16x16xf32>
    %c1 = arith.constant 1 : index
    %c0_30 = arith.constant 0 : index
    %39 = vector.load %arg6[%c1, %c0_30] : memref<8x16xf32, #tpu.memory_space<vmem>>, vector<1x16xf32>
    %40 = vector.broadcast %39 : vector<1x16xf32> to vector<16x16xf32>
    %41 = arith.addf %38, %40 : vector<16x16xf32>
    %c16_31 = arith.constant 16 : index
    %c0_32 = arith.constant 0 : index
    %42 = vector.load %arg4[%c16_31, %c0_32] : memref<128x128xf32, #tpu.memory_space<vmem>>, vector<16x128xf32>
    %cst_33 = arith.constant dense<0.000000e+00> : vector<16x16xf32>
    %43 = tpu.matmul %3, %42, %cst_33 {dimension_numbers = #tpu.dot_dimension_numbers<[1], [1], [0], [0], [0, 0, 1, 0], [], []>} : vector<16x128xf32>, vector<16x128xf32>, vector<16x16xf32> -> vector<16x16xf32>
    %c1_34 = arith.constant 1 : index
    %c0_35 = arith.constant 0 : index
    %44 = vector.load %arg7[%c1_34, %c0_35] : memref<8x16xf32, #tpu.memory_space<vmem>>, vector<1x16xf32>
    %45 = vector.broadcast %44 : vector<1x16xf32> to vector<16x16xf32>
    %46 = arith.addf %43, %45 : vector<16x16xf32>
    %c16_36 = arith.constant 16 : index
    %c0_37 = arith.constant 0 : index
    %47 = vector.load %arg5[%c16_36, %c0_37] : memref<128x128xf32, #tpu.memory_space<vmem>>, vector<16x128xf32>
    %cst_38 = arith.constant dense<0.000000e+00> : vector<16x16xf32>
    %48 = tpu.matmul %3, %47, %cst_38 {dimension_numbers = #tpu.dot_dimension_numbers<[1], [1], [0], [0], [0, 0, 1, 0], [], []>} : vector<16x128xf32>, vector<16x128xf32>, vector<16x16xf32> -> vector<16x16xf32>
    %c1_39 = arith.constant 1 : index
    %c0_40 = arith.constant 0 : index
    %49 = vector.load %arg8[%c1_39, %c0_40] : memref<8x16xf32, #tpu.memory_space<vmem>>, vector<1x16xf32>
    %50 = vector.broadcast %49 : vector<1x16xf32> to vector<16x16xf32>
    %51 = arith.addf %48, %50 : vector<16x16xf32>
    %cst_41 = arith.constant dense<0.000000e+00> : vector<16x16xf32>
    %52 = tpu.matmul %41, %46, %cst_41 {dimension_numbers = #tpu.dot_dimension_numbers<[1], [1], [0], [0], [0, 0, 1, 0], [], []>} : vector<16x16xf32>, vector<16x16xf32>, vector<16x16xf32> -> vector<16x16xf32>
    %cst_42 = arith.constant 2.500000e-01 : f32
    %53 = vector.broadcast %cst_42 : f32 to vector<16x16xf32>
    %54 = arith.mulf %52, %53 : vector<16x16xf32>
    %cst_43 = arith.constant dense<0xFF800000> : vector<16xf32>
    %55 = vector.multi_reduction <maximumf>, %54, %cst_43 [1] : vector<16x16xf32> to vector<16xf32>
    %56 = vector.shape_cast %55 : vector<16xf32> to vector<16x1xf32>
    %57 = vector.broadcast %56 : vector<16x1xf32> to vector<16x16xf32>
    %58 = arith.subf %54, %57 : vector<16x16xf32>
    %59 = math.exp %58 : vector<16x16xf32>
    %cst_44 = arith.constant dense<0.000000e+00> : vector<16xf32>
    %60 = vector.multi_reduction <add>, %59, %cst_44 [1] : vector<16x16xf32> to vector<16xf32>
    %61 = vector.shape_cast %60 : vector<16xf32> to vector<16x1xf32>
    %62 = tpu.reciprocal %61 {approx = true} : vector<16x1xf32> -> vector<16x1xf32>
    %63 = vector.broadcast %62 : vector<16x1xf32> to vector<16x16xf32>
    %64 = arith.mulf %59, %63 : vector<16x16xf32>
    %cst_45 = arith.constant dense<0.000000e+00> : vector<16x16xf32>
    %65 = tpu.matmul %64, %51, %cst_45 {dimension_numbers = #tpu.dot_dimension_numbers<[1], [0], [0], [1], [0, 0, 1, 1], [], []>} : vector<16x16xf32>, vector<16x16xf32>, vector<16x16xf32> -> vector<16x16xf32>
    %c16_46 = arith.constant 16 : index
    %c0_47 = arith.constant 0 : index
    %66 = vector.load %arg9[%c16_46, %c0_47] : memref<128x128xf32, #tpu.memory_space<vmem>>, vector<16x128xf32>
    %cst_48 = arith.constant dense<0.000000e+00> : vector<16x128xf32>
    %67 = tpu.matmul %65, %66, %cst_48 {dimension_numbers = #tpu.dot_dimension_numbers<[1], [0], [0], [1], [0, 0, 1, 1], [], []>} : vector<16x16xf32>, vector<16x128xf32>, vector<16x128xf32> -> vector<16x128xf32>
    %68 = arith.addf %36, %67 : vector<16x128xf32>
    %c32 = arith.constant 32 : index
    %c0_49 = arith.constant 0 : index
    %69 = vector.load %arg3[%c32, %c0_49] : memref<128x128xf32, #tpu.memory_space<vmem>>, vector<16x128xf32>
    %cst_50 = arith.constant dense<0.000000e+00> : vector<16x16xf32>
    %70 = tpu.matmul %1, %69, %cst_50 {dimension_numbers = #tpu.dot_dimension_numbers<[1], [1], [0], [0], [0, 0, 1, 0], [], []>} : vector<16x128xf32>, vector<16x128xf32>, vector<16x16xf32> -> vector<16x16xf32>
    %c2 = arith.constant 2 : index
    %c0_51 = arith.constant 0 : index
    %71 = vector.load %arg6[%c2, %c0_51] : memref<8x16xf32, #tpu.memory_space<vmem>>, vector<1x16xf32>
    %72 = vector.broadcast %71 : vector<1x16xf32> to vector<16x16xf32>
    %73 = arith.addf %70, %72 : vector<16x16xf32>
    %c32_52 = arith.constant 32 : index
    %c0_53 = arith.constant 0 : index
    %74 = vector.load %arg4[%c32_52, %c0_53] : memref<128x128xf32, #tpu.memory_space<vmem>>, vector<16x128xf32>
    %cst_54 = arith.constant dense<0.000000e+00> : vector<16x16xf32>
    %75 = tpu.matmul %3, %74, %cst_54 {dimension_numbers = #tpu.dot_dimension_numbers<[1], [1], [0], [0], [0, 0, 1, 0], [], []>} : vector<16x128xf32>, vector<16x128xf32>, vector<16x16xf32> -> vector<16x16xf32>
    %c2_55 = arith.constant 2 : index
    %c0_56 = arith.constant 0 : index
    %76 = vector.load %arg7[%c2_55, %c0_56] : memref<8x16xf32, #tpu.memory_space<vmem>>, vector<1x16xf32>
    %77 = vector.broadcast %76 : vector<1x16xf32> to vector<16x16xf32>
    %78 = arith.addf %75, %77 : vector<16x16xf32>
    %c32_57 = arith.constant 32 : index
    %c0_58 = arith.constant 0 : index
    %79 = vector.load %arg5[%c32_57, %c0_58] : memref<128x128xf32, #tpu.memory_space<vmem>>, vector<16x128xf32>
    %cst_59 = arith.constant dense<0.000000e+00> : vector<16x16xf32>
    %80 = tpu.matmul %3, %79, %cst_59 {dimension_numbers = #tpu.dot_dimension_numbers<[1], [1], [0], [0], [0, 0, 1, 0], [], []>} : vector<16x128xf32>, vector<16x128xf32>, vector<16x16xf32> -> vector<16x16xf32>
    %c2_60 = arith.constant 2 : index
    %c0_61 = arith.constant 0 : index
    %81 = vector.load %arg8[%c2_60, %c0_61] : memref<8x16xf32, #tpu.memory_space<vmem>>, vector<1x16xf32>
    %82 = vector.broadcast %81 : vector<1x16xf32> to vector<16x16xf32>
    %83 = arith.addf %80, %82 : vector<16x16xf32>
    %cst_62 = arith.constant dense<0.000000e+00> : vector<16x16xf32>
    %84 = tpu.matmul %73, %78, %cst_62 {dimension_numbers = #tpu.dot_dimension_numbers<[1], [1], [0], [0], [0, 0, 1, 0], [], []>} : vector<16x16xf32>, vector<16x16xf32>, vector<16x16xf32> -> vector<16x16xf32>
    %cst_63 = arith.constant 2.500000e-01 : f32
    %85 = vector.broadcast %cst_63 : f32 to vector<16x16xf32>
    %86 = arith.mulf %84, %85 : vector<16x16xf32>
    %cst_64 = arith.constant dense<0xFF800000> : vector<16xf32>
    %87 = vector.multi_reduction <maximumf>, %86, %cst_64 [1] : vector<16x16xf32> to vector<16xf32>
    %88 = vector.shape_cast %87 : vector<16xf32> to vector<16x1xf32>
    %89 = vector.broadcast %88 : vector<16x1xf32> to vector<16x16xf32>
    %90 = arith.subf %86, %89 : vector<16x16xf32>
    %91 = math.exp %90 : vector<16x16xf32>
    %cst_65 = arith.constant dense<0.000000e+00> : vector<16xf32>
    %92 = vector.multi_reduction <add>, %91, %cst_65 [1] : vector<16x16xf32> to vector<16xf32>
    %93 = vector.shape_cast %92 : vector<16xf32> to vector<16x1xf32>
    %94 = tpu.reciprocal %93 {approx = true} : vector<16x1xf32> -> vector<16x1xf32>
    %95 = vector.broadcast %94 : vector<16x1xf32> to vector<16x16xf32>
    %96 = arith.mulf %91, %95 : vector<16x16xf32>
    %cst_66 = arith.constant dense<0.000000e+00> : vector<16x16xf32>
    %97 = tpu.matmul %96, %83, %cst_66 {dimension_numbers = #tpu.dot_dimension_numbers<[1], [0], [0], [1], [0, 0, 1, 1], [], []>} : vector<16x16xf32>, vector<16x16xf32>, vector<16x16xf32> -> vector<16x16xf32>
    %c32_67 = arith.constant 32 : index
    %c0_68 = arith.constant 0 : index
    %98 = vector.load %arg9[%c32_67, %c0_68] : memref<128x128xf32, #tpu.memory_space<vmem>>, vector<16x128xf32>
    %cst_69 = arith.constant dense<0.000000e+00> : vector<16x128xf32>
    %99 = tpu.matmul %97, %98, %cst_69 {dimension_numbers = #tpu.dot_dimension_numbers<[1], [0], [0], [1], [0, 0, 1, 1], [], []>} : vector<16x16xf32>, vector<16x128xf32>, vector<16x128xf32> -> vector<16x128xf32>
    %100 = arith.addf %68, %99 : vector<16x128xf32>
    %c48 = arith.constant 48 : index
    %c0_70 = arith.constant 0 : index
    %101 = vector.load %arg3[%c48, %c0_70] : memref<128x128xf32, #tpu.memory_space<vmem>>, vector<16x128xf32>
    %cst_71 = arith.constant dense<0.000000e+00> : vector<16x16xf32>
    %102 = tpu.matmul %1, %101, %cst_71 {dimension_numbers = #tpu.dot_dimension_numbers<[1], [1], [0], [0], [0, 0, 1, 0], [], []>} : vector<16x128xf32>, vector<16x128xf32>, vector<16x16xf32> -> vector<16x16xf32>
    %c3 = arith.constant 3 : index
    %c0_72 = arith.constant 0 : index
    %103 = vector.load %arg6[%c3, %c0_72] : memref<8x16xf32, #tpu.memory_space<vmem>>, vector<1x16xf32>
    %104 = vector.broadcast %103 : vector<1x16xf32> to vector<16x16xf32>
    %105 = arith.addf %102, %104 : vector<16x16xf32>
    %c48_73 = arith.constant 48 : index
    %c0_74 = arith.constant 0 : index
    %106 = vector.load %arg4[%c48_73, %c0_74] : memref<128x128xf32, #tpu.memory_space<vmem>>, vector<16x128xf32>
    %cst_75 = arith.constant dense<0.000000e+00> : vector<16x16xf32>
    %107 = tpu.matmul %3, %106, %cst_75 {dimension_numbers = #tpu.dot_dimension_numbers<[1], [1], [0], [0], [0, 0, 1, 0], [], []>} : vector<16x128xf32>, vector<16x128xf32>, vector<16x16xf32> -> vector<16x16xf32>
    %c3_76 = arith.constant 3 : index
    %c0_77 = arith.constant 0 : index
    %108 = vector.load %arg7[%c3_76, %c0_77] : memref<8x16xf32, #tpu.memory_space<vmem>>, vector<1x16xf32>
    %109 = vector.broadcast %108 : vector<1x16xf32> to vector<16x16xf32>
    %110 = arith.addf %107, %109 : vector<16x16xf32>
    %c48_78 = arith.constant 48 : index
    %c0_79 = arith.constant 0 : index
    %111 = vector.load %arg5[%c48_78, %c0_79] : memref<128x128xf32, #tpu.memory_space<vmem>>, vector<16x128xf32>
    %cst_80 = arith.constant dense<0.000000e+00> : vector<16x16xf32>
    %112 = tpu.matmul %3, %111, %cst_80 {dimension_numbers = #tpu.dot_dimension_numbers<[1], [1], [0], [0], [0, 0, 1, 0], [], []>} : vector<16x128xf32>, vector<16x128xf32>, vector<16x16xf32> -> vector<16x16xf32>
    %c3_81 = arith.constant 3 : index
    %c0_82 = arith.constant 0 : index
    %113 = vector.load %arg8[%c3_81, %c0_82] : memref<8x16xf32, #tpu.memory_space<vmem>>, vector<1x16xf32>
    %114 = vector.broadcast %113 : vector<1x16xf32> to vector<16x16xf32>
    %115 = arith.addf %112, %114 : vector<16x16xf32>
    %cst_83 = arith.constant dense<0.000000e+00> : vector<16x16xf32>
    %116 = tpu.matmul %105, %110, %cst_83 {dimension_numbers = #tpu.dot_dimension_numbers<[1], [1], [0], [0], [0, 0, 1, 0], [], []>} : vector<16x16xf32>, vector<16x16xf32>, vector<16x16xf32> -> vector<16x16xf32>
    %cst_84 = arith.constant 2.500000e-01 : f32
    %117 = vector.broadcast %cst_84 : f32 to vector<16x16xf32>
    %118 = arith.mulf %116, %117 : vector<16x16xf32>
    %cst_85 = arith.constant dense<0xFF800000> : vector<16xf32>
    %119 = vector.multi_reduction <maximumf>, %118, %cst_85 [1] : vector<16x16xf32> to vector<16xf32>
    %120 = vector.shape_cast %119 : vector<16xf32> to vector<16x1xf32>
    %121 = vector.broadcast %120 : vector<16x1xf32> to vector<16x16xf32>
    %122 = arith.subf %118, %121 : vector<16x16xf32>
    %123 = math.exp %122 : vector<16x16xf32>
    %cst_86 = arith.constant dense<0.000000e+00> : vector<16xf32>
    %124 = vector.multi_reduction <add>, %123, %cst_86 [1] : vector<16x16xf32> to vector<16xf32>
    %125 = vector.shape_cast %124 : vector<16xf32> to vector<16x1xf32>
    %126 = tpu.reciprocal %125 {approx = true} : vector<16x1xf32> -> vector<16x1xf32>
    %127 = vector.broadcast %126 : vector<16x1xf32> to vector<16x16xf32>
    %128 = arith.mulf %123, %127 : vector<16x16xf32>
    %cst_87 = arith.constant dense<0.000000e+00> : vector<16x16xf32>
    %129 = tpu.matmul %128, %115, %cst_87 {dimension_numbers = #tpu.dot_dimension_numbers<[1], [0], [0], [1], [0, 0, 1, 1], [], []>} : vector<16x16xf32>, vector<16x16xf32>, vector<16x16xf32> -> vector<16x16xf32>
    %c48_88 = arith.constant 48 : index
    %c0_89 = arith.constant 0 : index
    %130 = vector.load %arg9[%c48_88, %c0_89] : memref<128x128xf32, #tpu.memory_space<vmem>>, vector<16x128xf32>
    %cst_90 = arith.constant dense<0.000000e+00> : vector<16x128xf32>
    %131 = tpu.matmul %129, %130, %cst_90 {dimension_numbers = #tpu.dot_dimension_numbers<[1], [0], [0], [1], [0, 0, 1, 1], [], []>} : vector<16x16xf32>, vector<16x128xf32>, vector<16x128xf32> -> vector<16x128xf32>
    %132 = arith.addf %100, %131 : vector<16x128xf32>
    %c64 = arith.constant 64 : index
    %c0_91 = arith.constant 0 : index
    %133 = vector.load %arg3[%c64, %c0_91] : memref<128x128xf32, #tpu.memory_space<vmem>>, vector<16x128xf32>
    %cst_92 = arith.constant dense<0.000000e+00> : vector<16x16xf32>
    %134 = tpu.matmul %1, %133, %cst_92 {dimension_numbers = #tpu.dot_dimension_numbers<[1], [1], [0], [0], [0, 0, 1, 0], [], []>} : vector<16x128xf32>, vector<16x128xf32>, vector<16x16xf32> -> vector<16x16xf32>
    %c4 = arith.constant 4 : index
    %c0_93 = arith.constant 0 : index
    %135 = vector.load %arg6[%c4, %c0_93] : memref<8x16xf32, #tpu.memory_space<vmem>>, vector<1x16xf32>
    %136 = vector.broadcast %135 : vector<1x16xf32> to vector<16x16xf32>
    %137 = arith.addf %134, %136 : vector<16x16xf32>
    %c64_94 = arith.constant 64 : index
    %c0_95 = arith.constant 0 : index
    %138 = vector.load %arg4[%c64_94, %c0_95] : memref<128x128xf32, #tpu.memory_space<vmem>>, vector<16x128xf32>
    %cst_96 = arith.constant dense<0.000000e+00> : vector<16x16xf32>
    %139 = tpu.matmul %3, %138, %cst_96 {dimension_numbers = #tpu.dot_dimension_numbers<[1], [1], [0], [0], [0, 0, 1, 0], [], []>} : vector<16x128xf32>, vector<16x128xf32>, vector<16x16xf32> -> vector<16x16xf32>
    %c4_97 = arith.constant 4 : index
    %c0_98 = arith.constant 0 : index
    %140 = vector.load %arg7[%c4_97, %c0_98] : memref<8x16xf32, #tpu.memory_space<vmem>>, vector<1x16xf32>
    %141 = vector.broadcast %140 : vector<1x16xf32> to vector<16x16xf32>
    %142 = arith.addf %139, %141 : vector<16x16xf32>
    %c64_99 = arith.constant 64 : index
    %c0_100 = arith.constant 0 : index
    %143 = vector.load %arg5[%c64_99, %c0_100] : memref<128x128xf32, #tpu.memory_space<vmem>>, vector<16x128xf32>
    %cst_101 = arith.constant dense<0.000000e+00> : vector<16x16xf32>
    %144 = tpu.matmul %3, %143, %cst_101 {dimension_numbers = #tpu.dot_dimension_numbers<[1], [1], [0], [0], [0, 0, 1, 0], [], []>} : vector<16x128xf32>, vector<16x128xf32>, vector<16x16xf32> -> vector<16x16xf32>
    %c4_102 = arith.constant 4 : index
    %c0_103 = arith.constant 0 : index
    %145 = vector.load %arg8[%c4_102, %c0_103] : memref<8x16xf32, #tpu.memory_space<vmem>>, vector<1x16xf32>
    %146 = vector.broadcast %145 : vector<1x16xf32> to vector<16x16xf32>
    %147 = arith.addf %144, %146 : vector<16x16xf32>
    %cst_104 = arith.constant dense<0.000000e+00> : vector<16x16xf32>
    %148 = tpu.matmul %137, %142, %cst_104 {dimension_numbers = #tpu.dot_dimension_numbers<[1], [1], [0], [0], [0, 0, 1, 0], [], []>} : vector<16x16xf32>, vector<16x16xf32>, vector<16x16xf32> -> vector<16x16xf32>
    %cst_105 = arith.constant 2.500000e-01 : f32
    %149 = vector.broadcast %cst_105 : f32 to vector<16x16xf32>
    %150 = arith.mulf %148, %149 : vector<16x16xf32>
    %cst_106 = arith.constant dense<0xFF800000> : vector<16xf32>
    %151 = vector.multi_reduction <maximumf>, %150, %cst_106 [1] : vector<16x16xf32> to vector<16xf32>
    %152 = vector.shape_cast %151 : vector<16xf32> to vector<16x1xf32>
    %153 = vector.broadcast %152 : vector<16x1xf32> to vector<16x16xf32>
    %154 = arith.subf %150, %153 : vector<16x16xf32>
    %155 = math.exp %154 : vector<16x16xf32>
    %cst_107 = arith.constant dense<0.000000e+00> : vector<16xf32>
    %156 = vector.multi_reduction <add>, %155, %cst_107 [1] : vector<16x16xf32> to vector<16xf32>
    %157 = vector.shape_cast %156 : vector<16xf32> to vector<16x1xf32>
    %158 = tpu.reciprocal %157 {approx = true} : vector<16x1xf32> -> vector<16x1xf32>
    %159 = vector.broadcast %158 : vector<16x1xf32> to vector<16x16xf32>
    %160 = arith.mulf %155, %159 : vector<16x16xf32>
    %cst_108 = arith.constant dense<0.000000e+00> : vector<16x16xf32>
    %161 = tpu.matmul %160, %147, %cst_108 {dimension_numbers = #tpu.dot_dimension_numbers<[1], [0], [0], [1], [0, 0, 1, 1], [], []>} : vector<16x16xf32>, vector<16x16xf32>, vector<16x16xf32> -> vector<16x16xf32>
    %c64_109 = arith.constant 64 : index
    %c0_110 = arith.constant 0 : index
    %162 = vector.load %arg9[%c64_109, %c0_110] : memref<128x128xf32, #tpu.memory_space<vmem>>, vector<16x128xf32>
    %cst_111 = arith.constant dense<0.000000e+00> : vector<16x128xf32>
    %163 = tpu.matmul %161, %162, %cst_111 {dimension_numbers = #tpu.dot_dimension_numbers<[1], [0], [0], [1], [0, 0, 1, 1], [], []>} : vector<16x16xf32>, vector<16x128xf32>, vector<16x128xf32> -> vector<16x128xf32>
    %164 = arith.addf %132, %163 : vector<16x128xf32>
    %c80 = arith.constant 80 : index
    %c0_112 = arith.constant 0 : index
    %165 = vector.load %arg3[%c80, %c0_112] : memref<128x128xf32, #tpu.memory_space<vmem>>, vector<16x128xf32>
    %cst_113 = arith.constant dense<0.000000e+00> : vector<16x16xf32>
    %166 = tpu.matmul %1, %165, %cst_113 {dimension_numbers = #tpu.dot_dimension_numbers<[1], [1], [0], [0], [0, 0, 1, 0], [], []>} : vector<16x128xf32>, vector<16x128xf32>, vector<16x16xf32> -> vector<16x16xf32>
    %c5 = arith.constant 5 : index
    %c0_114 = arith.constant 0 : index
    %167 = vector.load %arg6[%c5, %c0_114] : memref<8x16xf32, #tpu.memory_space<vmem>>, vector<1x16xf32>
    %168 = vector.broadcast %167 : vector<1x16xf32> to vector<16x16xf32>
    %169 = arith.addf %166, %168 : vector<16x16xf32>
    %c80_115 = arith.constant 80 : index
    %c0_116 = arith.constant 0 : index
    %170 = vector.load %arg4[%c80_115, %c0_116] : memref<128x128xf32, #tpu.memory_space<vmem>>, vector<16x128xf32>
    %cst_117 = arith.constant dense<0.000000e+00> : vector<16x16xf32>
    %171 = tpu.matmul %3, %170, %cst_117 {dimension_numbers = #tpu.dot_dimension_numbers<[1], [1], [0], [0], [0, 0, 1, 0], [], []>} : vector<16x128xf32>, vector<16x128xf32>, vector<16x16xf32> -> vector<16x16xf32>
    %c5_118 = arith.constant 5 : index
    %c0_119 = arith.constant 0 : index
    %172 = vector.load %arg7[%c5_118, %c0_119] : memref<8x16xf32, #tpu.memory_space<vmem>>, vector<1x16xf32>
    %173 = vector.broadcast %172 : vector<1x16xf32> to vector<16x16xf32>
    %174 = arith.addf %171, %173 : vector<16x16xf32>
    %c80_120 = arith.constant 80 : index
    %c0_121 = arith.constant 0 : index
    %175 = vector.load %arg5[%c80_120, %c0_121] : memref<128x128xf32, #tpu.memory_space<vmem>>, vector<16x128xf32>
    %cst_122 = arith.constant dense<0.000000e+00> : vector<16x16xf32>
    %176 = tpu.matmul %3, %175, %cst_122 {dimension_numbers = #tpu.dot_dimension_numbers<[1], [1], [0], [0], [0, 0, 1, 0], [], []>} : vector<16x128xf32>, vector<16x128xf32>, vector<16x16xf32> -> vector<16x16xf32>
    %c5_123 = arith.constant 5 : index
    %c0_124 = arith.constant 0 : index
    %177 = vector.load %arg8[%c5_123, %c0_124] : memref<8x16xf32, #tpu.memory_space<vmem>>, vector<1x16xf32>
    %178 = vector.broadcast %177 : vector<1x16xf32> to vector<16x16xf32>
    %179 = arith.addf %176, %178 : vector<16x16xf32>
    %cst_125 = arith.constant dense<0.000000e+00> : vector<16x16xf32>
    %180 = tpu.matmul %169, %174, %cst_125 {dimension_numbers = #tpu.dot_dimension_numbers<[1], [1], [0], [0], [0, 0, 1, 0], [], []>} : vector<16x16xf32>, vector<16x16xf32>, vector<16x16xf32> -> vector<16x16xf32>
    %cst_126 = arith.constant 2.500000e-01 : f32
    %181 = vector.broadcast %cst_126 : f32 to vector<16x16xf32>
    %182 = arith.mulf %180, %181 : vector<16x16xf32>
    %cst_127 = arith.constant dense<0xFF800000> : vector<16xf32>
    %183 = vector.multi_reduction <maximumf>, %182, %cst_127 [1] : vector<16x16xf32> to vector<16xf32>
    %184 = vector.shape_cast %183 : vector<16xf32> to vector<16x1xf32>
    %185 = vector.broadcast %184 : vector<16x1xf32> to vector<16x16xf32>
    %186 = arith.subf %182, %185 : vector<16x16xf32>
    %187 = math.exp %186 : vector<16x16xf32>
    %cst_128 = arith.constant dense<0.000000e+00> : vector<16xf32>
    %188 = vector.multi_reduction <add>, %187, %cst_128 [1] : vector<16x16xf32> to vector<16xf32>
    %189 = vector.shape_cast %188 : vector<16xf32> to vector<16x1xf32>
    %190 = tpu.reciprocal %189 {approx = true} : vector<16x1xf32> -> vector<16x1xf32>
    %191 = vector.broadcast %190 : vector<16x1xf32> to vector<16x16xf32>
    %192 = arith.mulf %187, %191 : vector<16x16xf32>
    %cst_129 = arith.constant dense<0.000000e+00> : vector<16x16xf32>
    %193 = tpu.matmul %192, %179, %cst_129 {dimension_numbers = #tpu.dot_dimension_numbers<[1], [0], [0], [1], [0, 0, 1, 1], [], []>} : vector<16x16xf32>, vector<16x16xf32>, vector<16x16xf32> -> vector<16x16xf32>
    %c80_130 = arith.constant 80 : index
    %c0_131 = arith.constant 0 : index
    %194 = vector.load %arg9[%c80_130, %c0_131] : memref<128x128xf32, #tpu.memory_space<vmem>>, vector<16x128xf32>
    %cst_132 = arith.constant dense<0.000000e+00> : vector<16x128xf32>
    %195 = tpu.matmul %193, %194, %cst_132 {dimension_numbers = #tpu.dot_dimension_numbers<[1], [0], [0], [1], [0, 0, 1, 1], [], []>} : vector<16x16xf32>, vector<16x128xf32>, vector<16x128xf32> -> vector<16x128xf32>
    %196 = arith.addf %164, %195 : vector<16x128xf32>
    %c96 = arith.constant 96 : index
    %c0_133 = arith.constant 0 : index
    %197 = vector.load %arg3[%c96, %c0_133] : memref<128x128xf32, #tpu.memory_space<vmem>>, vector<16x128xf32>
    %cst_134 = arith.constant dense<0.000000e+00> : vector<16x16xf32>
    %198 = tpu.matmul %1, %197, %cst_134 {dimension_numbers = #tpu.dot_dimension_numbers<[1], [1], [0], [0], [0, 0, 1, 0], [], []>} : vector<16x128xf32>, vector<16x128xf32>, vector<16x16xf32> -> vector<16x16xf32>
    %c6 = arith.constant 6 : index
    %c0_135 = arith.constant 0 : index
    %199 = vector.load %arg6[%c6, %c0_135] : memref<8x16xf32, #tpu.memory_space<vmem>>, vector<1x16xf32>
    %200 = vector.broadcast %199 : vector<1x16xf32> to vector<16x16xf32>
    %201 = arith.addf %198, %200 : vector<16x16xf32>
    %c96_136 = arith.constant 96 : index
    %c0_137 = arith.constant 0 : index
    %202 = vector.load %arg4[%c96_136, %c0_137] : memref<128x128xf32, #tpu.memory_space<vmem>>, vector<16x128xf32>
    %cst_138 = arith.constant dense<0.000000e+00> : vector<16x16xf32>
    %203 = tpu.matmul %3, %202, %cst_138 {dimension_numbers = #tpu.dot_dimension_numbers<[1], [1], [0], [0], [0, 0, 1, 0], [], []>} : vector<16x128xf32>, vector<16x128xf32>, vector<16x16xf32> -> vector<16x16xf32>
    %c6_139 = arith.constant 6 : index
    %c0_140 = arith.constant 0 : index
    %204 = vector.load %arg7[%c6_139, %c0_140] : memref<8x16xf32, #tpu.memory_space<vmem>>, vector<1x16xf32>
    %205 = vector.broadcast %204 : vector<1x16xf32> to vector<16x16xf32>
    %206 = arith.addf %203, %205 : vector<16x16xf32>
    %c96_141 = arith.constant 96 : index
    %c0_142 = arith.constant 0 : index
    %207 = vector.load %arg5[%c96_141, %c0_142] : memref<128x128xf32, #tpu.memory_space<vmem>>, vector<16x128xf32>
    %cst_143 = arith.constant dense<0.000000e+00> : vector<16x16xf32>
    %208 = tpu.matmul %3, %207, %cst_143 {dimension_numbers = #tpu.dot_dimension_numbers<[1], [1], [0], [0], [0, 0, 1, 0], [], []>} : vector<16x128xf32>, vector<16x128xf32>, vector<16x16xf32> -> vector<16x16xf32>
    %c6_144 = arith.constant 6 : index
    %c0_145 = arith.constant 0 : index
    %209 = vector.load %arg8[%c6_144, %c0_145] : memref<8x16xf32, #tpu.memory_space<vmem>>, vector<1x16xf32>
    %210 = vector.broadcast %209 : vector<1x16xf32> to vector<16x16xf32>
    %211 = arith.addf %208, %210 : vector<16x16xf32>
    %cst_146 = arith.constant dense<0.000000e+00> : vector<16x16xf32>
    %212 = tpu.matmul %201, %206, %cst_146 {dimension_numbers = #tpu.dot_dimension_numbers<[1], [1], [0], [0], [0, 0, 1, 0], [], []>} : vector<16x16xf32>, vector<16x16xf32>, vector<16x16xf32> -> vector<16x16xf32>
    %cst_147 = arith.constant 2.500000e-01 : f32
    %213 = vector.broadcast %cst_147 : f32 to vector<16x16xf32>
    %214 = arith.mulf %212, %213 : vector<16x16xf32>
    %cst_148 = arith.constant dense<0xFF800000> : vector<16xf32>
    %215 = vector.multi_reduction <maximumf>, %214, %cst_148 [1] : vector<16x16xf32> to vector<16xf32>
    %216 = vector.shape_cast %215 : vector<16xf32> to vector<16x1xf32>
    %217 = vector.broadcast %216 : vector<16x1xf32> to vector<16x16xf32>
    %218 = arith.subf %214, %217 : vector<16x16xf32>
    %219 = math.exp %218 : vector<16x16xf32>
    %cst_149 = arith.constant dense<0.000000e+00> : vector<16xf32>
    %220 = vector.multi_reduction <add>, %219, %cst_149 [1] : vector<16x16xf32> to vector<16xf32>
    %221 = vector.shape_cast %220 : vector<16xf32> to vector<16x1xf32>
    %222 = tpu.reciprocal %221 {approx = true} : vector<16x1xf32> -> vector<16x1xf32>
    %223 = vector.broadcast %222 : vector<16x1xf32> to vector<16x16xf32>
    %224 = arith.mulf %219, %223 : vector<16x16xf32>
    %cst_150 = arith.constant dense<0.000000e+00> : vector<16x16xf32>
    %225 = tpu.matmul %224, %211, %cst_150 {dimension_numbers = #tpu.dot_dimension_numbers<[1], [0], [0], [1], [0, 0, 1, 1], [], []>} : vector<16x16xf32>, vector<16x16xf32>, vector<16x16xf32> -> vector<16x16xf32>
    %c96_151 = arith.constant 96 : index
    %c0_152 = arith.constant 0 : index
    %226 = vector.load %arg9[%c96_151, %c0_152] : memref<128x128xf32, #tpu.memory_space<vmem>>, vector<16x128xf32>
    %cst_153 = arith.constant dense<0.000000e+00> : vector<16x128xf32>
    %227 = tpu.matmul %225, %226, %cst_153 {dimension_numbers = #tpu.dot_dimension_numbers<[1], [0], [0], [1], [0, 0, 1, 1], [], []>} : vector<16x16xf32>, vector<16x128xf32>, vector<16x128xf32> -> vector<16x128xf32>
    %228 = arith.addf %196, %227 : vector<16x128xf32>
    %c112 = arith.constant 112 : index
    %c0_154 = arith.constant 0 : index
    %229 = vector.load %arg3[%c112, %c0_154] : memref<128x128xf32, #tpu.memory_space<vmem>>, vector<16x128xf32>
    %cst_155 = arith.constant dense<0.000000e+00> : vector<16x16xf32>
    %230 = tpu.matmul %1, %229, %cst_155 {dimension_numbers = #tpu.dot_dimension_numbers<[1], [1], [0], [0], [0, 0, 1, 0], [], []>} : vector<16x128xf32>, vector<16x128xf32>, vector<16x16xf32> -> vector<16x16xf32>
    %c7 = arith.constant 7 : index
    %c0_156 = arith.constant 0 : index
    %231 = vector.load %arg6[%c7, %c0_156] : memref<8x16xf32, #tpu.memory_space<vmem>>, vector<1x16xf32>
    %232 = vector.broadcast %231 : vector<1x16xf32> to vector<16x16xf32>
    %233 = arith.addf %230, %232 : vector<16x16xf32>
    %c112_157 = arith.constant 112 : index
    %c0_158 = arith.constant 0 : index
    %234 = vector.load %arg4[%c112_157, %c0_158] : memref<128x128xf32, #tpu.memory_space<vmem>>, vector<16x128xf32>
    %cst_159 = arith.constant dense<0.000000e+00> : vector<16x16xf32>
    %235 = tpu.matmul %3, %234, %cst_159 {dimension_numbers = #tpu.dot_dimension_numbers<[1], [1], [0], [0], [0, 0, 1, 0], [], []>} : vector<16x128xf32>, vector<16x128xf32>, vector<16x16xf32> -> vector<16x16xf32>
    %c7_160 = arith.constant 7 : index
    %c0_161 = arith.constant 0 : index
    %236 = vector.load %arg7[%c7_160, %c0_161] : memref<8x16xf32, #tpu.memory_space<vmem>>, vector<1x16xf32>
    %237 = vector.broadcast %236 : vector<1x16xf32> to vector<16x16xf32>
    %238 = arith.addf %235, %237 : vector<16x16xf32>
    %c112_162 = arith.constant 112 : index
    %c0_163 = arith.constant 0 : index
    %239 = vector.load %arg5[%c112_162, %c0_163] : memref<128x128xf32, #tpu.memory_space<vmem>>, vector<16x128xf32>
    %cst_164 = arith.constant dense<0.000000e+00> : vector<16x16xf32>
    %240 = tpu.matmul %3, %239, %cst_164 {dimension_numbers = #tpu.dot_dimension_numbers<[1], [1], [0], [0], [0, 0, 1, 0], [], []>} : vector<16x128xf32>, vector<16x128xf32>, vector<16x16xf32> -> vector<16x16xf32>
    %c7_165 = arith.constant 7 : index
    %c0_166 = arith.constant 0 : index
    %241 = vector.load %arg8[%c7_165, %c0_166] : memref<8x16xf32, #tpu.memory_space<vmem>>, vector<1x16xf32>
    %242 = vector.broadcast %241 : vector<1x16xf32> to vector<16x16xf32>
    %243 = arith.addf %240, %242 : vector<16x16xf32>
    %cst_167 = arith.constant dense<0.000000e+00> : vector<16x16xf32>
    %244 = tpu.matmul %233, %238, %cst_167 {dimension_numbers = #tpu.dot_dimension_numbers<[1], [1], [0], [0], [0, 0, 1, 0], [], []>} : vector<16x16xf32>, vector<16x16xf32>, vector<16x16xf32> -> vector<16x16xf32>
    %cst_168 = arith.constant 2.500000e-01 : f32
    %245 = vector.broadcast %cst_168 : f32 to vector<16x16xf32>
    %246 = arith.mulf %244, %245 : vector<16x16xf32>
    %cst_169 = arith.constant dense<0xFF800000> : vector<16xf32>
    %247 = vector.multi_reduction <maximumf>, %246, %cst_169 [1] : vector<16x16xf32> to vector<16xf32>
    %248 = vector.shape_cast %247 : vector<16xf32> to vector<16x1xf32>
    %249 = vector.broadcast %248 : vector<16x1xf32> to vector<16x16xf32>
    %250 = arith.subf %246, %249 : vector<16x16xf32>
    %251 = math.exp %250 : vector<16x16xf32>
    %cst_170 = arith.constant dense<0.000000e+00> : vector<16xf32>
    %252 = vector.multi_reduction <add>, %251, %cst_170 [1] : vector<16x16xf32> to vector<16xf32>
    %253 = vector.shape_cast %252 : vector<16xf32> to vector<16x1xf32>
    %254 = tpu.reciprocal %253 {approx = true} : vector<16x1xf32> -> vector<16x1xf32>
    %255 = vector.broadcast %254 : vector<16x1xf32> to vector<16x16xf32>
    %256 = arith.mulf %251, %255 : vector<16x16xf32>
    %cst_171 = arith.constant dense<0.000000e+00> : vector<16x16xf32>
    %257 = tpu.matmul %256, %243, %cst_171 {dimension_numbers = #tpu.dot_dimension_numbers<[1], [0], [0], [1], [0, 0, 1, 1], [], []>} : vector<16x16xf32>, vector<16x16xf32>, vector<16x16xf32> -> vector<16x16xf32>
    %c112_172 = arith.constant 112 : index
    %c0_173 = arith.constant 0 : index
    %258 = vector.load %arg9[%c112_172, %c0_173] : memref<128x128xf32, #tpu.memory_space<vmem>>, vector<16x128xf32>
    %cst_174 = arith.constant dense<0.000000e+00> : vector<16x128xf32>
    %259 = tpu.matmul %257, %258, %cst_174 {dimension_numbers = #tpu.dot_dimension_numbers<[1], [0], [0], [1], [0, 0, 1, 1], [], []>} : vector<16x16xf32>, vector<16x128xf32>, vector<16x128xf32> -> vector<16x128xf32>
    %260 = arith.addf %228, %259 : vector<16x128xf32>
    %261 = arith.addf %1, %260 : vector<16x128xf32>
    %c0_175 = arith.constant 0 : index
    %c0_176 = arith.constant 0 : index
    %262 = vector.load %arg10[%c0_175, %c0_176] : memref<1x128xf32, #tpu.memory_space<vmem>>, vector<1x128xf32>
    %263 = vector.broadcast %262 : vector<1x128xf32> to vector<16x128xf32>
    %264 = arith.addf %261, %263 : vector<16x128xf32>
    %c0_177 = arith.constant 0 : index
    %c0_178 = arith.constant 0 : index
    %265 = vector.load %arg11[%c0_177, %c0_178] : memref<1x128xf32, #tpu.memory_space<vmem>>, vector<1x128xf32>
    %c0_179 = arith.constant 0 : index
    %c0_180 = arith.constant 0 : index
    %266 = vector.load %arg12[%c0_179, %c0_180] : memref<1x128xf32, #tpu.memory_space<vmem>>, vector<1x128xf32>
    %cst_181 = arith.constant dense<0.000000e+00> : vector<16xf32>
    %267 = vector.multi_reduction <add>, %264, %cst_181 [1] : vector<16x128xf32> to vector<16xf32>
    %268 = vector.shape_cast %267 : vector<16xf32> to vector<16x1xf32>
    %cst_182 = arith.constant 1.280000e+02 : f32
    %269 = vector.broadcast %cst_182 : f32 to vector<16x1xf32>
    %270 = arith.divf %268, %269 : vector<16x1xf32>
    %271 = vector.broadcast %270 : vector<16x1xf32> to vector<16x128xf32>
    %272 = arith.subf %264, %271 : vector<16x128xf32>
    %273 = arith.mulf %272, %272 : vector<16x128xf32>
    %cst_183 = arith.constant dense<0.000000e+00> : vector<16xf32>
    %274 = vector.multi_reduction <add>, %273, %cst_183 [1] : vector<16x128xf32> to vector<16xf32>
    %275 = vector.shape_cast %274 : vector<16xf32> to vector<16x1xf32>
    %cst_184 = arith.constant 1.280000e+02 : f32
    %276 = vector.broadcast %cst_184 : f32 to vector<16x1xf32>
    %277 = arith.divf %275, %276 : vector<16x1xf32>
    %cst_185 = arith.constant 9.99999974E-6 : f32
    %278 = vector.broadcast %cst_185 : f32 to vector<16x1xf32>
    %279 = arith.addf %277, %278 : vector<16x1xf32>
    %280 = math.rsqrt %279 : vector<16x1xf32>
    %281 = vector.broadcast %280 : vector<16x1xf32> to vector<16x128xf32>
    %282 = arith.mulf %272, %281 : vector<16x128xf32>
    %283 = vector.broadcast %265 : vector<1x128xf32> to vector<16x128xf32>
    %284 = arith.mulf %282, %283 : vector<16x128xf32>
    %285 = vector.broadcast %266 : vector<1x128xf32> to vector<16x128xf32>
    %286 = arith.addf %284, %285 : vector<16x128xf32>
    %c0_186 = arith.constant 0 : index
    %c0_187 = arith.constant 0 : index
    %c0_188 = arith.constant 0 : index
    %287 = vector.load %arg13[%c0_186, %c0_187, %c0_188] : memref<1x16x128xf32, #tpu.memory_space<vmem>>, vector<1x16x128xf32>
    %288 = vector.shape_cast %287 : vector<1x16x128xf32> to vector<16x128xf32>
    %289 = vector.shape_cast %286 : vector<16x128xf32> to vector<1x16x128xf32>
    tpu.vector_store %arg13[%c0_186, %c0_187, %c0_188], %289 {strides = array<i32>} : memref<1x16x128xf32, #tpu.memory_space<vmem>>, vector<1x16x128xf32>,
    return
  }
  func.func @transform_0(%arg0: i32) -> (i32, i32, i32) {
    %c0_i32 = arith.constant 0 : i32
    %c0_i32_0 = arith.constant 0 : i32
    %c0_i32_1 = arith.constant 0 : i32
    return %arg0, %c0_i32, %c0_i32_0 : i32, i32, i32
  }
  func.func @transform_1(%arg0: i32) -> (i32, i32, i32) {
    %c0_i32 = arith.constant 0 : i32
    %c0_i32_0 = arith.constant 0 : i32
    %c0_i32_1 = arith.constant 0 : i32
    return %arg0, %c0_i32, %c0_i32_0 : i32, i32, i32
  }
  func.func @transform_2(%arg0: i32) -> (i32, i32) {
    %c0_i32 = arith.constant 0 : i32
    %c0_i32_0 = arith.constant 0 : i32
    %c0_i32_1 = arith.constant 0 : i32
    return %c0_i32, %c0_i32_0 : i32, i32
  }
  func.func @transform_3(%arg0: i32) -> (i32, i32) {
    %c0_i32 = arith.constant 0 : i32
    %c0_i32_0 = arith.constant 0 : i32
    %c0_i32_1 = arith.constant 0 : i32
    return %c0_i32, %c0_i32_0 : i32, i32
  }
  func.func @transform_4(%arg0: i32) -> (i32, i32) {
    %c0_i32 = arith.constant 0 : i32
    %c0_i32_0 = arith.constant 0 : i32
    %c0_i32_1 = arith.constant 0 : i32
    return %c0_i32, %c0_i32_0 : i32, i32
  }
  func.func @transform_5(%arg0: i32) -> (i32, i32) {
    %c0_i32 = arith.constant 0 : i32
    %c0_i32_0 = arith.constant 0 : i32
    %c0_i32_1 = arith.constant 0 : i32
    return %c0_i32, %c0_i32_0 : i32, i32
  }
  func.func @transform_6(%arg0: i32) -> (i32, i32) {
    %c0_i32 = arith.constant 0 : i32
    %c0_i32_0 = arith.constant 0 : i32
    %c0_i32_1 = arith.constant 0 : i32
    return %c0_i32, %c0_i32_0 : i32, i32
  }
  func.func @transform_7(%arg0: i32) -> (i32, i32) {
    %c0_i32 = arith.constant 0 : i32
    %c0_i32_0 = arith.constant 0 : i32
    %c0_i32_1 = arith.constant 0 : i32
    return %c0_i32, %c0_i32_0 : i32, i32
  }
  func.func @transform_8(%arg0: i32) -> (i32, i32) {
    %c0_i32 = arith.constant 0 : i32
    %c0_i32_0 = arith.constant 0 : i32
    %c0_i32_1 = arith.constant 0 : i32
    return %c0_i32, %c0_i32_0 : i32, i32
  }
  func.func @transform_9(%arg0: i32) -> (i32, i32) {
    %c0_i32 = arith.constant 0 : i32
    %c0_i32_0 = arith.constant 0 : i32
    %c0_i32_1 = arith.constant 0 : i32
    return %c0_i32, %c0_i32_0 : i32, i32
  }
  func.func @transform_10(%arg0: i32) -> (i32, i32) {
    %c0_i32 = arith.constant 0 : i32
    %c0_i32_0 = arith.constant 0 : i32
    %c0_i32_1 = arith.constant 0 : i32
    return %c0_i32, %c0_i32_0 : i32, i32
  }
  func.func @transform_11(%arg0: i32) -> (i32, i32) {
    %c0_i32 = arith.constant 0 : i32
    %c0_i32_0 = arith.constant 0 : i32
    %c0_i32_1 = arith.constant 0 : i32
    return %c0_i32, %c0_i32_0 : i32, i32
  }
  func.func @transform_12(%arg0: i32) -> (i32, i32, i32) {
    %c0_i32 = arith.constant 0 : i32
    %c0_i32_0 = arith.constant 0 : i32
    %c0_i32_1 = arith.constant 0 : i32
    return %arg0, %c0_i32, %c0_i32_0 : i32, i32, i32
  }
}

module attributes {stable_mosaic.version = 11 : i64} {
  func.func @_self_attn_ln_kernel(%arg0: i32, %arg1: memref<1x16x128xf32, #tpu.memory_space<vmem>>, %arg2: memref<128x128xf32, #tpu.memory_space<vmem>>, %arg3: memref<128x128xf32, #tpu.memory_space<vmem>>, %arg4: memref<128x128xf32, #tpu.memory_space<vmem>>, %arg5: memref<8x16xf32, #tpu.memory_space<vmem>>, %arg6: memref<8x16xf32, #tpu.memory_space<vmem>>, %arg7: memref<8x16xf32, #tpu.memory_space<vmem>>, %arg8: memref<128x128xf32, #tpu.memory_space<vmem>>, %arg9: memref<1x128xf32, #tpu.memory_space<vmem>>, %arg10: memref<1x128xf32, #tpu.memory_space<vmem>>, %arg11: memref<1x128xf32, #tpu.memory_space<vmem>>, %arg12: memref<1x16x128xf32, #tpu.memory_space<vmem>>) attributes {dimension_semantics = [#tpu.dimension_semantics<parallel>], iteration_bounds = array<i64: 2>, scalar_prefetch = 0 : i64, scratch_operands = 0 : i64, tpu.core_type = #tpu.core_type<tc>, window_params = [{transform_indices = @transform_0, window_bounds = array<i64: 1, 16, 128>}, {pipeline_mode = #tpu.pipeline_mode<synchronous>, transform_indices = @transform_1, window_bounds = array<i64: 128, 128>}, {pipeline_mode = #tpu.pipeline_mode<synchronous>, transform_indices = @transform_2, window_bounds = array<i64: 128, 128>}, {pipeline_mode = #tpu.pipeline_mode<synchronous>, transform_indices = @transform_3, window_bounds = array<i64: 128, 128>}, {pipeline_mode = #tpu.pipeline_mode<synchronous>, transform_indices = @transform_4, window_bounds = array<i64: 8, 16>}, {pipeline_mode = #tpu.pipeline_mode<synchronous>, transform_indices = @transform_5, window_bounds = array<i64: 8, 16>}, {pipeline_mode = #tpu.pipeline_mode<synchronous>, transform_indices = @transform_6, window_bounds = array<i64: 8, 16>}, {pipeline_mode = #tpu.pipeline_mode<synchronous>, transform_indices = @transform_7, window_bounds = array<i64: 128, 128>}, {pipeline_mode = #tpu.pipeline_mode<synchronous>, transform_indices = @transform_8, window_bounds = array<i64: 1, 128>}, {pipeline_mode = #tpu.pipeline_mode<synchronous>, transform_indices = @transform_9, window_bounds = array<i64: 1, 128>}, {pipeline_mode = #tpu.pipeline_mode<synchronous>, transform_indices = @transform_10, window_bounds = array<i64: 1, 128>}, {transform_indices = @transform_11, window_bounds = array<i64: 1, 16, 128>}]} {
    %c0 = arith.constant 0 : index
    %c0_0 = arith.constant 0 : index
    %c0_1 = arith.constant 0 : index
    %0 = vector.load %arg1[%c0, %c0_0, %c0_1] : memref<1x16x128xf32, #tpu.memory_space<vmem>>, vector<1x16x128xf32>
    %1 = vector.shape_cast %0 : vector<1x16x128xf32> to vector<16x128xf32>
    %cst = arith.constant 0.000000e+00 : f32
    %2 = vector.broadcast %cst : f32 to vector<16x128xf32>
    %c0_2 = arith.constant 0 : index
    %c0_3 = arith.constant 0 : index
    %3 = vector.load %arg2[%c0_2, %c0_3] : memref<128x128xf32, #tpu.memory_space<vmem>>, vector<16x128xf32>
    %cst_4 = arith.constant dense<0.000000e+00> : vector<16x16xf32>
    %4 = tpu.matmul %1, %3, %cst_4 {dimension_numbers = #tpu.dot_dimension_numbers<[1], [1], [0], [0], [0, 0, 1, 0], [], []>} : vector<16x128xf32>, vector<16x128xf32>, vector<16x16xf32> -> vector<16x16xf32>
    %c0_5 = arith.constant 0 : index
    %c0_6 = arith.constant 0 : index
    %5 = vector.load %arg5[%c0_5, %c0_6] : memref<8x16xf32, #tpu.memory_space<vmem>>, vector<1x16xf32>
    %6 = vector.broadcast %5 : vector<1x16xf32> to vector<16x16xf32>
    %7 = arith.addf %4, %6 : vector<16x16xf32>
    %c0_7 = arith.constant 0 : index
    %c0_8 = arith.constant 0 : index
    %8 = vector.load %arg3[%c0_7, %c0_8] : memref<128x128xf32, #tpu.memory_space<vmem>>, vector<16x128xf32>
    %cst_9 = arith.constant dense<0.000000e+00> : vector<16x16xf32>
    %9 = tpu.matmul %1, %8, %cst_9 {dimension_numbers = #tpu.dot_dimension_numbers<[1], [1], [0], [0], [0, 0, 1, 0], [], []>} : vector<16x128xf32>, vector<16x128xf32>, vector<16x16xf32> -> vector<16x16xf32>
    %c0_10 = arith.constant 0 : index
    %c0_11 = arith.constant 0 : index
    %10 = vector.load %arg6[%c0_10, %c0_11] : memref<8x16xf32, #tpu.memory_space<vmem>>, vector<1x16xf32>
    %11 = vector.broadcast %10 : vector<1x16xf32> to vector<16x16xf32>
    %12 = arith.addf %9, %11 : vector<16x16xf32>
    %c0_12 = arith.constant 0 : index
    %c0_13 = arith.constant 0 : index
    %13 = vector.load %arg4[%c0_12, %c0_13] : memref<128x128xf32, #tpu.memory_space<vmem>>, vector<16x128xf32>
    %cst_14 = arith.constant dense<0.000000e+00> : vector<16x16xf32>
    %14 = tpu.matmul %1, %13, %cst_14 {dimension_numbers = #tpu.dot_dimension_numbers<[1], [1], [0], [0], [0, 0, 1, 0], [], []>} : vector<16x128xf32>, vector<16x128xf32>, vector<16x16xf32> -> vector<16x16xf32>
    %c0_15 = arith.constant 0 : index
    %c0_16 = arith.constant 0 : index
    %15 = vector.load %arg7[%c0_15, %c0_16] : memref<8x16xf32, #tpu.memory_space<vmem>>, vector<1x16xf32>
    %16 = vector.broadcast %15 : vector<1x16xf32> to vector<16x16xf32>
    %17 = arith.addf %14, %16 : vector<16x16xf32>
    %cst_17 = arith.constant dense<0.000000e+00> : vector<16x16xf32>
    %18 = tpu.matmul %7, %12, %cst_17 {dimension_numbers = #tpu.dot_dimension_numbers<[1], [1], [0], [0], [0, 0, 1, 0], [], []>} : vector<16x16xf32>, vector<16x16xf32>, vector<16x16xf32> -> vector<16x16xf32>
    %cst_18 = arith.constant 2.500000e-01 : f32
    %19 = vector.broadcast %cst_18 : f32 to vector<16x16xf32>
    %20 = arith.mulf %18, %19 : vector<16x16xf32>
    %cst_19 = arith.constant dense<0xFF800000> : vector<16xf32>
    %21 = vector.multi_reduction <maximumf>, %20, %cst_19 [1] : vector<16x16xf32> to vector<16xf32>
    %22 = vector.shape_cast %21 : vector<16xf32> to vector<16x1xf32>
    %23 = vector.broadcast %22 : vector<16x1xf32> to vector<16x16xf32>
    %24 = arith.subf %20, %23 : vector<16x16xf32>
    %25 = math.exp %24 : vector<16x16xf32>
    %cst_20 = arith.constant dense<0.000000e+00> : vector<16xf32>
    %26 = vector.multi_reduction <add>, %25, %cst_20 [1] : vector<16x16xf32> to vector<16xf32>
    %27 = vector.shape_cast %26 : vector<16xf32> to vector<16x1xf32>
    %28 = tpu.reciprocal %27 {approx = true} : vector<16x1xf32> -> vector<16x1xf32>
    %29 = vector.broadcast %28 : vector<16x1xf32> to vector<16x16xf32>
    %30 = arith.mulf %25, %29 : vector<16x16xf32>
    %cst_21 = arith.constant dense<0.000000e+00> : vector<16x16xf32>
    %31 = tpu.matmul %30, %17, %cst_21 {dimension_numbers = #tpu.dot_dimension_numbers<[1], [0], [0], [1], [0, 0, 1, 1], [], []>} : vector<16x16xf32>, vector<16x16xf32>, vector<16x16xf32> -> vector<16x16xf32>
    %c0_22 = arith.constant 0 : index
    %c0_23 = arith.constant 0 : index
    %32 = vector.load %arg8[%c0_22, %c0_23] : memref<128x128xf32, #tpu.memory_space<vmem>>, vector<16x128xf32>
    %cst_24 = arith.constant dense<0.000000e+00> : vector<16x128xf32>
    %33 = tpu.matmul %31, %32, %cst_24 {dimension_numbers = #tpu.dot_dimension_numbers<[1], [0], [0], [1], [0, 0, 1, 1], [], []>} : vector<16x16xf32>, vector<16x128xf32>, vector<16x128xf32> -> vector<16x128xf32>
    %34 = arith.addf %2, %33 : vector<16x128xf32>
    %c16 = arith.constant 16 : index
    %c0_25 = arith.constant 0 : index
    %35 = vector.load %arg2[%c16, %c0_25] : memref<128x128xf32, #tpu.memory_space<vmem>>, vector<16x128xf32>
    %cst_26 = arith.constant dense<0.000000e+00> : vector<16x16xf32>
    %36 = tpu.matmul %1, %35, %cst_26 {dimension_numbers = #tpu.dot_dimension_numbers<[1], [1], [0], [0], [0, 0, 1, 0], [], []>} : vector<16x128xf32>, vector<16x128xf32>, vector<16x16xf32> -> vector<16x16xf32>
    %c1 = arith.constant 1 : index
    %c0_27 = arith.constant 0 : index
    %37 = vector.load %arg5[%c1, %c0_27] : memref<8x16xf32, #tpu.memory_space<vmem>>, vector<1x16xf32>
    %38 = vector.broadcast %37 : vector<1x16xf32> to vector<16x16xf32>
    %39 = arith.addf %36, %38 : vector<16x16xf32>
    %c16_28 = arith.constant 16 : index
    %c0_29 = arith.constant 0 : index
    %40 = vector.load %arg3[%c16_28, %c0_29] : memref<128x128xf32, #tpu.memory_space<vmem>>, vector<16x128xf32>
    %cst_30 = arith.constant dense<0.000000e+00> : vector<16x16xf32>
    %41 = tpu.matmul %1, %40, %cst_30 {dimension_numbers = #tpu.dot_dimension_numbers<[1], [1], [0], [0], [0, 0, 1, 0], [], []>} : vector<16x128xf32>, vector<16x128xf32>, vector<16x16xf32> -> vector<16x16xf32>
    %c1_31 = arith.constant 1 : index
    %c0_32 = arith.constant 0 : index
    %42 = vector.load %arg6[%c1_31, %c0_32] : memref<8x16xf32, #tpu.memory_space<vmem>>, vector<1x16xf32>
    %43 = vector.broadcast %42 : vector<1x16xf32> to vector<16x16xf32>
    %44 = arith.addf %41, %43 : vector<16x16xf32>
    %c16_33 = arith.constant 16 : index
    %c0_34 = arith.constant 0 : index
    %45 = vector.load %arg4[%c16_33, %c0_34] : memref<128x128xf32, #tpu.memory_space<vmem>>, vector<16x128xf32>
    %cst_35 = arith.constant dense<0.000000e+00> : vector<16x16xf32>
    %46 = tpu.matmul %1, %45, %cst_35 {dimension_numbers = #tpu.dot_dimension_numbers<[1], [1], [0], [0], [0, 0, 1, 0], [], []>} : vector<16x128xf32>, vector<16x128xf32>, vector<16x16xf32> -> vector<16x16xf32>
    %c1_36 = arith.constant 1 : index
    %c0_37 = arith.constant 0 : index
    %47 = vector.load %arg7[%c1_36, %c0_37] : memref<8x16xf32, #tpu.memory_space<vmem>>, vector<1x16xf32>
    %48 = vector.broadcast %47 : vector<1x16xf32> to vector<16x16xf32>
    %49 = arith.addf %46, %48 : vector<16x16xf32>
    %cst_38 = arith.constant dense<0.000000e+00> : vector<16x16xf32>
    %50 = tpu.matmul %39, %44, %cst_38 {dimension_numbers = #tpu.dot_dimension_numbers<[1], [1], [0], [0], [0, 0, 1, 0], [], []>} : vector<16x16xf32>, vector<16x16xf32>, vector<16x16xf32> -> vector<16x16xf32>
    %cst_39 = arith.constant 2.500000e-01 : f32
    %51 = vector.broadcast %cst_39 : f32 to vector<16x16xf32>
    %52 = arith.mulf %50, %51 : vector<16x16xf32>
    %cst_40 = arith.constant dense<0xFF800000> : vector<16xf32>
    %53 = vector.multi_reduction <maximumf>, %52, %cst_40 [1] : vector<16x16xf32> to vector<16xf32>
    %54 = vector.shape_cast %53 : vector<16xf32> to vector<16x1xf32>
    %55 = vector.broadcast %54 : vector<16x1xf32> to vector<16x16xf32>
    %56 = arith.subf %52, %55 : vector<16x16xf32>
    %57 = math.exp %56 : vector<16x16xf32>
    %cst_41 = arith.constant dense<0.000000e+00> : vector<16xf32>
    %58 = vector.multi_reduction <add>, %57, %cst_41 [1] : vector<16x16xf32> to vector<16xf32>
    %59 = vector.shape_cast %58 : vector<16xf32> to vector<16x1xf32>
    %60 = tpu.reciprocal %59 {approx = true} : vector<16x1xf32> -> vector<16x1xf32>
    %61 = vector.broadcast %60 : vector<16x1xf32> to vector<16x16xf32>
    %62 = arith.mulf %57, %61 : vector<16x16xf32>
    %cst_42 = arith.constant dense<0.000000e+00> : vector<16x16xf32>
    %63 = tpu.matmul %62, %49, %cst_42 {dimension_numbers = #tpu.dot_dimension_numbers<[1], [0], [0], [1], [0, 0, 1, 1], [], []>} : vector<16x16xf32>, vector<16x16xf32>, vector<16x16xf32> -> vector<16x16xf32>
    %c16_43 = arith.constant 16 : index
    %c0_44 = arith.constant 0 : index
    %64 = vector.load %arg8[%c16_43, %c0_44] : memref<128x128xf32, #tpu.memory_space<vmem>>, vector<16x128xf32>
    %cst_45 = arith.constant dense<0.000000e+00> : vector<16x128xf32>
    %65 = tpu.matmul %63, %64, %cst_45 {dimension_numbers = #tpu.dot_dimension_numbers<[1], [0], [0], [1], [0, 0, 1, 1], [], []>} : vector<16x16xf32>, vector<16x128xf32>, vector<16x128xf32> -> vector<16x128xf32>
    %66 = arith.addf %34, %65 : vector<16x128xf32>
    %c32 = arith.constant 32 : index
    %c0_46 = arith.constant 0 : index
    %67 = vector.load %arg2[%c32, %c0_46] : memref<128x128xf32, #tpu.memory_space<vmem>>, vector<16x128xf32>
    %cst_47 = arith.constant dense<0.000000e+00> : vector<16x16xf32>
    %68 = tpu.matmul %1, %67, %cst_47 {dimension_numbers = #tpu.dot_dimension_numbers<[1], [1], [0], [0], [0, 0, 1, 0], [], []>} : vector<16x128xf32>, vector<16x128xf32>, vector<16x16xf32> -> vector<16x16xf32>
    %c2 = arith.constant 2 : index
    %c0_48 = arith.constant 0 : index
    %69 = vector.load %arg5[%c2, %c0_48] : memref<8x16xf32, #tpu.memory_space<vmem>>, vector<1x16xf32>
    %70 = vector.broadcast %69 : vector<1x16xf32> to vector<16x16xf32>
    %71 = arith.addf %68, %70 : vector<16x16xf32>
    %c32_49 = arith.constant 32 : index
    %c0_50 = arith.constant 0 : index
    %72 = vector.load %arg3[%c32_49, %c0_50] : memref<128x128xf32, #tpu.memory_space<vmem>>, vector<16x128xf32>
    %cst_51 = arith.constant dense<0.000000e+00> : vector<16x16xf32>
    %73 = tpu.matmul %1, %72, %cst_51 {dimension_numbers = #tpu.dot_dimension_numbers<[1], [1], [0], [0], [0, 0, 1, 0], [], []>} : vector<16x128xf32>, vector<16x128xf32>, vector<16x16xf32> -> vector<16x16xf32>
    %c2_52 = arith.constant 2 : index
    %c0_53 = arith.constant 0 : index
    %74 = vector.load %arg6[%c2_52, %c0_53] : memref<8x16xf32, #tpu.memory_space<vmem>>, vector<1x16xf32>
    %75 = vector.broadcast %74 : vector<1x16xf32> to vector<16x16xf32>
    %76 = arith.addf %73, %75 : vector<16x16xf32>
    %c32_54 = arith.constant 32 : index
    %c0_55 = arith.constant 0 : index
    %77 = vector.load %arg4[%c32_54, %c0_55] : memref<128x128xf32, #tpu.memory_space<vmem>>, vector<16x128xf32>
    %cst_56 = arith.constant dense<0.000000e+00> : vector<16x16xf32>
    %78 = tpu.matmul %1, %77, %cst_56 {dimension_numbers = #tpu.dot_dimension_numbers<[1], [1], [0], [0], [0, 0, 1, 0], [], []>} : vector<16x128xf32>, vector<16x128xf32>, vector<16x16xf32> -> vector<16x16xf32>
    %c2_57 = arith.constant 2 : index
    %c0_58 = arith.constant 0 : index
    %79 = vector.load %arg7[%c2_57, %c0_58] : memref<8x16xf32, #tpu.memory_space<vmem>>, vector<1x16xf32>
    %80 = vector.broadcast %79 : vector<1x16xf32> to vector<16x16xf32>
    %81 = arith.addf %78, %80 : vector<16x16xf32>
    %cst_59 = arith.constant dense<0.000000e+00> : vector<16x16xf32>
    %82 = tpu.matmul %71, %76, %cst_59 {dimension_numbers = #tpu.dot_dimension_numbers<[1], [1], [0], [0], [0, 0, 1, 0], [], []>} : vector<16x16xf32>, vector<16x16xf32>, vector<16x16xf32> -> vector<16x16xf32>
    %cst_60 = arith.constant 2.500000e-01 : f32
    %83 = vector.broadcast %cst_60 : f32 to vector<16x16xf32>
    %84 = arith.mulf %82, %83 : vector<16x16xf32>
    %cst_61 = arith.constant dense<0xFF800000> : vector<16xf32>
    %85 = vector.multi_reduction <maximumf>, %84, %cst_61 [1] : vector<16x16xf32> to vector<16xf32>
    %86 = vector.shape_cast %85 : vector<16xf32> to vector<16x1xf32>
    %87 = vector.broadcast %86 : vector<16x1xf32> to vector<16x16xf32>
    %88 = arith.subf %84, %87 : vector<16x16xf32>
    %89 = math.exp %88 : vector<16x16xf32>
    %cst_62 = arith.constant dense<0.000000e+00> : vector<16xf32>
    %90 = vector.multi_reduction <add>, %89, %cst_62 [1] : vector<16x16xf32> to vector<16xf32>
    %91 = vector.shape_cast %90 : vector<16xf32> to vector<16x1xf32>
    %92 = tpu.reciprocal %91 {approx = true} : vector<16x1xf32> -> vector<16x1xf32>
    %93 = vector.broadcast %92 : vector<16x1xf32> to vector<16x16xf32>
    %94 = arith.mulf %89, %93 : vector<16x16xf32>
    %cst_63 = arith.constant dense<0.000000e+00> : vector<16x16xf32>
    %95 = tpu.matmul %94, %81, %cst_63 {dimension_numbers = #tpu.dot_dimension_numbers<[1], [0], [0], [1], [0, 0, 1, 1], [], []>} : vector<16x16xf32>, vector<16x16xf32>, vector<16x16xf32> -> vector<16x16xf32>
    %c32_64 = arith.constant 32 : index
    %c0_65 = arith.constant 0 : index
    %96 = vector.load %arg8[%c32_64, %c0_65] : memref<128x128xf32, #tpu.memory_space<vmem>>, vector<16x128xf32>
    %cst_66 = arith.constant dense<0.000000e+00> : vector<16x128xf32>
    %97 = tpu.matmul %95, %96, %cst_66 {dimension_numbers = #tpu.dot_dimension_numbers<[1], [0], [0], [1], [0, 0, 1, 1], [], []>} : vector<16x16xf32>, vector<16x128xf32>, vector<16x128xf32> -> vector<16x128xf32>
    %98 = arith.addf %66, %97 : vector<16x128xf32>
    %c48 = arith.constant 48 : index
    %c0_67 = arith.constant 0 : index
    %99 = vector.load %arg2[%c48, %c0_67] : memref<128x128xf32, #tpu.memory_space<vmem>>, vector<16x128xf32>
    %cst_68 = arith.constant dense<0.000000e+00> : vector<16x16xf32>
    %100 = tpu.matmul %1, %99, %cst_68 {dimension_numbers = #tpu.dot_dimension_numbers<[1], [1], [0], [0], [0, 0, 1, 0], [], []>} : vector<16x128xf32>, vector<16x128xf32>, vector<16x16xf32> -> vector<16x16xf32>
    %c3 = arith.constant 3 : index
    %c0_69 = arith.constant 0 : index
    %101 = vector.load %arg5[%c3, %c0_69] : memref<8x16xf32, #tpu.memory_space<vmem>>, vector<1x16xf32>
    %102 = vector.broadcast %101 : vector<1x16xf32> to vector<16x16xf32>
    %103 = arith.addf %100, %102 : vector<16x16xf32>
    %c48_70 = arith.constant 48 : index
    %c0_71 = arith.constant 0 : index
    %104 = vector.load %arg3[%c48_70, %c0_71] : memref<128x128xf32, #tpu.memory_space<vmem>>, vector<16x128xf32>
    %cst_72 = arith.constant dense<0.000000e+00> : vector<16x16xf32>
    %105 = tpu.matmul %1, %104, %cst_72 {dimension_numbers = #tpu.dot_dimension_numbers<[1], [1], [0], [0], [0, 0, 1, 0], [], []>} : vector<16x128xf32>, vector<16x128xf32>, vector<16x16xf32> -> vector<16x16xf32>
    %c3_73 = arith.constant 3 : index
    %c0_74 = arith.constant 0 : index
    %106 = vector.load %arg6[%c3_73, %c0_74] : memref<8x16xf32, #tpu.memory_space<vmem>>, vector<1x16xf32>
    %107 = vector.broadcast %106 : vector<1x16xf32> to vector<16x16xf32>
    %108 = arith.addf %105, %107 : vector<16x16xf32>
    %c48_75 = arith.constant 48 : index
    %c0_76 = arith.constant 0 : index
    %109 = vector.load %arg4[%c48_75, %c0_76] : memref<128x128xf32, #tpu.memory_space<vmem>>, vector<16x128xf32>
    %cst_77 = arith.constant dense<0.000000e+00> : vector<16x16xf32>
    %110 = tpu.matmul %1, %109, %cst_77 {dimension_numbers = #tpu.dot_dimension_numbers<[1], [1], [0], [0], [0, 0, 1, 0], [], []>} : vector<16x128xf32>, vector<16x128xf32>, vector<16x16xf32> -> vector<16x16xf32>
    %c3_78 = arith.constant 3 : index
    %c0_79 = arith.constant 0 : index
    %111 = vector.load %arg7[%c3_78, %c0_79] : memref<8x16xf32, #tpu.memory_space<vmem>>, vector<1x16xf32>
    %112 = vector.broadcast %111 : vector<1x16xf32> to vector<16x16xf32>
    %113 = arith.addf %110, %112 : vector<16x16xf32>
    %cst_80 = arith.constant dense<0.000000e+00> : vector<16x16xf32>
    %114 = tpu.matmul %103, %108, %cst_80 {dimension_numbers = #tpu.dot_dimension_numbers<[1], [1], [0], [0], [0, 0, 1, 0], [], []>} : vector<16x16xf32>, vector<16x16xf32>, vector<16x16xf32> -> vector<16x16xf32>
    %cst_81 = arith.constant 2.500000e-01 : f32
    %115 = vector.broadcast %cst_81 : f32 to vector<16x16xf32>
    %116 = arith.mulf %114, %115 : vector<16x16xf32>
    %cst_82 = arith.constant dense<0xFF800000> : vector<16xf32>
    %117 = vector.multi_reduction <maximumf>, %116, %cst_82 [1] : vector<16x16xf32> to vector<16xf32>
    %118 = vector.shape_cast %117 : vector<16xf32> to vector<16x1xf32>
    %119 = vector.broadcast %118 : vector<16x1xf32> to vector<16x16xf32>
    %120 = arith.subf %116, %119 : vector<16x16xf32>
    %121 = math.exp %120 : vector<16x16xf32>
    %cst_83 = arith.constant dense<0.000000e+00> : vector<16xf32>
    %122 = vector.multi_reduction <add>, %121, %cst_83 [1] : vector<16x16xf32> to vector<16xf32>
    %123 = vector.shape_cast %122 : vector<16xf32> to vector<16x1xf32>
    %124 = tpu.reciprocal %123 {approx = true} : vector<16x1xf32> -> vector<16x1xf32>
    %125 = vector.broadcast %124 : vector<16x1xf32> to vector<16x16xf32>
    %126 = arith.mulf %121, %125 : vector<16x16xf32>
    %cst_84 = arith.constant dense<0.000000e+00> : vector<16x16xf32>
    %127 = tpu.matmul %126, %113, %cst_84 {dimension_numbers = #tpu.dot_dimension_numbers<[1], [0], [0], [1], [0, 0, 1, 1], [], []>} : vector<16x16xf32>, vector<16x16xf32>, vector<16x16xf32> -> vector<16x16xf32>
    %c48_85 = arith.constant 48 : index
    %c0_86 = arith.constant 0 : index
    %128 = vector.load %arg8[%c48_85, %c0_86] : memref<128x128xf32, #tpu.memory_space<vmem>>, vector<16x128xf32>
    %cst_87 = arith.constant dense<0.000000e+00> : vector<16x128xf32>
    %129 = tpu.matmul %127, %128, %cst_87 {dimension_numbers = #tpu.dot_dimension_numbers<[1], [0], [0], [1], [0, 0, 1, 1], [], []>} : vector<16x16xf32>, vector<16x128xf32>, vector<16x128xf32> -> vector<16x128xf32>
    %130 = arith.addf %98, %129 : vector<16x128xf32>
    %c64 = arith.constant 64 : index
    %c0_88 = arith.constant 0 : index
    %131 = vector.load %arg2[%c64, %c0_88] : memref<128x128xf32, #tpu.memory_space<vmem>>, vector<16x128xf32>
    %cst_89 = arith.constant dense<0.000000e+00> : vector<16x16xf32>
    %132 = tpu.matmul %1, %131, %cst_89 {dimension_numbers = #tpu.dot_dimension_numbers<[1], [1], [0], [0], [0, 0, 1, 0], [], []>} : vector<16x128xf32>, vector<16x128xf32>, vector<16x16xf32> -> vector<16x16xf32>
    %c4 = arith.constant 4 : index
    %c0_90 = arith.constant 0 : index
    %133 = vector.load %arg5[%c4, %c0_90] : memref<8x16xf32, #tpu.memory_space<vmem>>, vector<1x16xf32>
    %134 = vector.broadcast %133 : vector<1x16xf32> to vector<16x16xf32>
    %135 = arith.addf %132, %134 : vector<16x16xf32>
    %c64_91 = arith.constant 64 : index
    %c0_92 = arith.constant 0 : index
    %136 = vector.load %arg3[%c64_91, %c0_92] : memref<128x128xf32, #tpu.memory_space<vmem>>, vector<16x128xf32>
    %cst_93 = arith.constant dense<0.000000e+00> : vector<16x16xf32>
    %137 = tpu.matmul %1, %136, %cst_93 {dimension_numbers = #tpu.dot_dimension_numbers<[1], [1], [0], [0], [0, 0, 1, 0], [], []>} : vector<16x128xf32>, vector<16x128xf32>, vector<16x16xf32> -> vector<16x16xf32>
    %c4_94 = arith.constant 4 : index
    %c0_95 = arith.constant 0 : index
    %138 = vector.load %arg6[%c4_94, %c0_95] : memref<8x16xf32, #tpu.memory_space<vmem>>, vector<1x16xf32>
    %139 = vector.broadcast %138 : vector<1x16xf32> to vector<16x16xf32>
    %140 = arith.addf %137, %139 : vector<16x16xf32>
    %c64_96 = arith.constant 64 : index
    %c0_97 = arith.constant 0 : index
    %141 = vector.load %arg4[%c64_96, %c0_97] : memref<128x128xf32, #tpu.memory_space<vmem>>, vector<16x128xf32>
    %cst_98 = arith.constant dense<0.000000e+00> : vector<16x16xf32>
    %142 = tpu.matmul %1, %141, %cst_98 {dimension_numbers = #tpu.dot_dimension_numbers<[1], [1], [0], [0], [0, 0, 1, 0], [], []>} : vector<16x128xf32>, vector<16x128xf32>, vector<16x16xf32> -> vector<16x16xf32>
    %c4_99 = arith.constant 4 : index
    %c0_100 = arith.constant 0 : index
    %143 = vector.load %arg7[%c4_99, %c0_100] : memref<8x16xf32, #tpu.memory_space<vmem>>, vector<1x16xf32>
    %144 = vector.broadcast %143 : vector<1x16xf32> to vector<16x16xf32>
    %145 = arith.addf %142, %144 : vector<16x16xf32>
    %cst_101 = arith.constant dense<0.000000e+00> : vector<16x16xf32>
    %146 = tpu.matmul %135, %140, %cst_101 {dimension_numbers = #tpu.dot_dimension_numbers<[1], [1], [0], [0], [0, 0, 1, 0], [], []>} : vector<16x16xf32>, vector<16x16xf32>, vector<16x16xf32> -> vector<16x16xf32>
    %cst_102 = arith.constant 2.500000e-01 : f32
    %147 = vector.broadcast %cst_102 : f32 to vector<16x16xf32>
    %148 = arith.mulf %146, %147 : vector<16x16xf32>
    %cst_103 = arith.constant dense<0xFF800000> : vector<16xf32>
    %149 = vector.multi_reduction <maximumf>, %148, %cst_103 [1] : vector<16x16xf32> to vector<16xf32>
    %150 = vector.shape_cast %149 : vector<16xf32> to vector<16x1xf32>
    %151 = vector.broadcast %150 : vector<16x1xf32> to vector<16x16xf32>
    %152 = arith.subf %148, %151 : vector<16x16xf32>
    %153 = math.exp %152 : vector<16x16xf32>
    %cst_104 = arith.constant dense<0.000000e+00> : vector<16xf32>
    %154 = vector.multi_reduction <add>, %153, %cst_104 [1] : vector<16x16xf32> to vector<16xf32>
    %155 = vector.shape_cast %154 : vector<16xf32> to vector<16x1xf32>
    %156 = tpu.reciprocal %155 {approx = true} : vector<16x1xf32> -> vector<16x1xf32>
    %157 = vector.broadcast %156 : vector<16x1xf32> to vector<16x16xf32>
    %158 = arith.mulf %153, %157 : vector<16x16xf32>
    %cst_105 = arith.constant dense<0.000000e+00> : vector<16x16xf32>
    %159 = tpu.matmul %158, %145, %cst_105 {dimension_numbers = #tpu.dot_dimension_numbers<[1], [0], [0], [1], [0, 0, 1, 1], [], []>} : vector<16x16xf32>, vector<16x16xf32>, vector<16x16xf32> -> vector<16x16xf32>
    %c64_106 = arith.constant 64 : index
    %c0_107 = arith.constant 0 : index
    %160 = vector.load %arg8[%c64_106, %c0_107] : memref<128x128xf32, #tpu.memory_space<vmem>>, vector<16x128xf32>
    %cst_108 = arith.constant dense<0.000000e+00> : vector<16x128xf32>
    %161 = tpu.matmul %159, %160, %cst_108 {dimension_numbers = #tpu.dot_dimension_numbers<[1], [0], [0], [1], [0, 0, 1, 1], [], []>} : vector<16x16xf32>, vector<16x128xf32>, vector<16x128xf32> -> vector<16x128xf32>
    %162 = arith.addf %130, %161 : vector<16x128xf32>
    %c80 = arith.constant 80 : index
    %c0_109 = arith.constant 0 : index
    %163 = vector.load %arg2[%c80, %c0_109] : memref<128x128xf32, #tpu.memory_space<vmem>>, vector<16x128xf32>
    %cst_110 = arith.constant dense<0.000000e+00> : vector<16x16xf32>
    %164 = tpu.matmul %1, %163, %cst_110 {dimension_numbers = #tpu.dot_dimension_numbers<[1], [1], [0], [0], [0, 0, 1, 0], [], []>} : vector<16x128xf32>, vector<16x128xf32>, vector<16x16xf32> -> vector<16x16xf32>
    %c5 = arith.constant 5 : index
    %c0_111 = arith.constant 0 : index
    %165 = vector.load %arg5[%c5, %c0_111] : memref<8x16xf32, #tpu.memory_space<vmem>>, vector<1x16xf32>
    %166 = vector.broadcast %165 : vector<1x16xf32> to vector<16x16xf32>
    %167 = arith.addf %164, %166 : vector<16x16xf32>
    %c80_112 = arith.constant 80 : index
    %c0_113 = arith.constant 0 : index
    %168 = vector.load %arg3[%c80_112, %c0_113] : memref<128x128xf32, #tpu.memory_space<vmem>>, vector<16x128xf32>
    %cst_114 = arith.constant dense<0.000000e+00> : vector<16x16xf32>
    %169 = tpu.matmul %1, %168, %cst_114 {dimension_numbers = #tpu.dot_dimension_numbers<[1], [1], [0], [0], [0, 0, 1, 0], [], []>} : vector<16x128xf32>, vector<16x128xf32>, vector<16x16xf32> -> vector<16x16xf32>
    %c5_115 = arith.constant 5 : index
    %c0_116 = arith.constant 0 : index
    %170 = vector.load %arg6[%c5_115, %c0_116] : memref<8x16xf32, #tpu.memory_space<vmem>>, vector<1x16xf32>
    %171 = vector.broadcast %170 : vector<1x16xf32> to vector<16x16xf32>
    %172 = arith.addf %169, %171 : vector<16x16xf32>
    %c80_117 = arith.constant 80 : index
    %c0_118 = arith.constant 0 : index
    %173 = vector.load %arg4[%c80_117, %c0_118] : memref<128x128xf32, #tpu.memory_space<vmem>>, vector<16x128xf32>
    %cst_119 = arith.constant dense<0.000000e+00> : vector<16x16xf32>
    %174 = tpu.matmul %1, %173, %cst_119 {dimension_numbers = #tpu.dot_dimension_numbers<[1], [1], [0], [0], [0, 0, 1, 0], [], []>} : vector<16x128xf32>, vector<16x128xf32>, vector<16x16xf32> -> vector<16x16xf32>
    %c5_120 = arith.constant 5 : index
    %c0_121 = arith.constant 0 : index
    %175 = vector.load %arg7[%c5_120, %c0_121] : memref<8x16xf32, #tpu.memory_space<vmem>>, vector<1x16xf32>
    %176 = vector.broadcast %175 : vector<1x16xf32> to vector<16x16xf32>
    %177 = arith.addf %174, %176 : vector<16x16xf32>
    %cst_122 = arith.constant dense<0.000000e+00> : vector<16x16xf32>
    %178 = tpu.matmul %167, %172, %cst_122 {dimension_numbers = #tpu.dot_dimension_numbers<[1], [1], [0], [0], [0, 0, 1, 0], [], []>} : vector<16x16xf32>, vector<16x16xf32>, vector<16x16xf32> -> vector<16x16xf32>
    %cst_123 = arith.constant 2.500000e-01 : f32
    %179 = vector.broadcast %cst_123 : f32 to vector<16x16xf32>
    %180 = arith.mulf %178, %179 : vector<16x16xf32>
    %cst_124 = arith.constant dense<0xFF800000> : vector<16xf32>
    %181 = vector.multi_reduction <maximumf>, %180, %cst_124 [1] : vector<16x16xf32> to vector<16xf32>
    %182 = vector.shape_cast %181 : vector<16xf32> to vector<16x1xf32>
    %183 = vector.broadcast %182 : vector<16x1xf32> to vector<16x16xf32>
    %184 = arith.subf %180, %183 : vector<16x16xf32>
    %185 = math.exp %184 : vector<16x16xf32>
    %cst_125 = arith.constant dense<0.000000e+00> : vector<16xf32>
    %186 = vector.multi_reduction <add>, %185, %cst_125 [1] : vector<16x16xf32> to vector<16xf32>
    %187 = vector.shape_cast %186 : vector<16xf32> to vector<16x1xf32>
    %188 = tpu.reciprocal %187 {approx = true} : vector<16x1xf32> -> vector<16x1xf32>
    %189 = vector.broadcast %188 : vector<16x1xf32> to vector<16x16xf32>
    %190 = arith.mulf %185, %189 : vector<16x16xf32>
    %cst_126 = arith.constant dense<0.000000e+00> : vector<16x16xf32>
    %191 = tpu.matmul %190, %177, %cst_126 {dimension_numbers = #tpu.dot_dimension_numbers<[1], [0], [0], [1], [0, 0, 1, 1], [], []>} : vector<16x16xf32>, vector<16x16xf32>, vector<16x16xf32> -> vector<16x16xf32>
    %c80_127 = arith.constant 80 : index
    %c0_128 = arith.constant 0 : index
    %192 = vector.load %arg8[%c80_127, %c0_128] : memref<128x128xf32, #tpu.memory_space<vmem>>, vector<16x128xf32>
    %cst_129 = arith.constant dense<0.000000e+00> : vector<16x128xf32>
    %193 = tpu.matmul %191, %192, %cst_129 {dimension_numbers = #tpu.dot_dimension_numbers<[1], [0], [0], [1], [0, 0, 1, 1], [], []>} : vector<16x16xf32>, vector<16x128xf32>, vector<16x128xf32> -> vector<16x128xf32>
    %194 = arith.addf %162, %193 : vector<16x128xf32>
    %c96 = arith.constant 96 : index
    %c0_130 = arith.constant 0 : index
    %195 = vector.load %arg2[%c96, %c0_130] : memref<128x128xf32, #tpu.memory_space<vmem>>, vector<16x128xf32>
    %cst_131 = arith.constant dense<0.000000e+00> : vector<16x16xf32>
    %196 = tpu.matmul %1, %195, %cst_131 {dimension_numbers = #tpu.dot_dimension_numbers<[1], [1], [0], [0], [0, 0, 1, 0], [], []>} : vector<16x128xf32>, vector<16x128xf32>, vector<16x16xf32> -> vector<16x16xf32>
    %c6 = arith.constant 6 : index
    %c0_132 = arith.constant 0 : index
    %197 = vector.load %arg5[%c6, %c0_132] : memref<8x16xf32, #tpu.memory_space<vmem>>, vector<1x16xf32>
    %198 = vector.broadcast %197 : vector<1x16xf32> to vector<16x16xf32>
    %199 = arith.addf %196, %198 : vector<16x16xf32>
    %c96_133 = arith.constant 96 : index
    %c0_134 = arith.constant 0 : index
    %200 = vector.load %arg3[%c96_133, %c0_134] : memref<128x128xf32, #tpu.memory_space<vmem>>, vector<16x128xf32>
    %cst_135 = arith.constant dense<0.000000e+00> : vector<16x16xf32>
    %201 = tpu.matmul %1, %200, %cst_135 {dimension_numbers = #tpu.dot_dimension_numbers<[1], [1], [0], [0], [0, 0, 1, 0], [], []>} : vector<16x128xf32>, vector<16x128xf32>, vector<16x16xf32> -> vector<16x16xf32>
    %c6_136 = arith.constant 6 : index
    %c0_137 = arith.constant 0 : index
    %202 = vector.load %arg6[%c6_136, %c0_137] : memref<8x16xf32, #tpu.memory_space<vmem>>, vector<1x16xf32>
    %203 = vector.broadcast %202 : vector<1x16xf32> to vector<16x16xf32>
    %204 = arith.addf %201, %203 : vector<16x16xf32>
    %c96_138 = arith.constant 96 : index
    %c0_139 = arith.constant 0 : index
    %205 = vector.load %arg4[%c96_138, %c0_139] : memref<128x128xf32, #tpu.memory_space<vmem>>, vector<16x128xf32>
    %cst_140 = arith.constant dense<0.000000e+00> : vector<16x16xf32>
    %206 = tpu.matmul %1, %205, %cst_140 {dimension_numbers = #tpu.dot_dimension_numbers<[1], [1], [0], [0], [0, 0, 1, 0], [], []>} : vector<16x128xf32>, vector<16x128xf32>, vector<16x16xf32> -> vector<16x16xf32>
    %c6_141 = arith.constant 6 : index
    %c0_142 = arith.constant 0 : index
    %207 = vector.load %arg7[%c6_141, %c0_142] : memref<8x16xf32, #tpu.memory_space<vmem>>, vector<1x16xf32>
    %208 = vector.broadcast %207 : vector<1x16xf32> to vector<16x16xf32>
    %209 = arith.addf %206, %208 : vector<16x16xf32>
    %cst_143 = arith.constant dense<0.000000e+00> : vector<16x16xf32>
    %210 = tpu.matmul %199, %204, %cst_143 {dimension_numbers = #tpu.dot_dimension_numbers<[1], [1], [0], [0], [0, 0, 1, 0], [], []>} : vector<16x16xf32>, vector<16x16xf32>, vector<16x16xf32> -> vector<16x16xf32>
    %cst_144 = arith.constant 2.500000e-01 : f32
    %211 = vector.broadcast %cst_144 : f32 to vector<16x16xf32>
    %212 = arith.mulf %210, %211 : vector<16x16xf32>
    %cst_145 = arith.constant dense<0xFF800000> : vector<16xf32>
    %213 = vector.multi_reduction <maximumf>, %212, %cst_145 [1] : vector<16x16xf32> to vector<16xf32>
    %214 = vector.shape_cast %213 : vector<16xf32> to vector<16x1xf32>
    %215 = vector.broadcast %214 : vector<16x1xf32> to vector<16x16xf32>
    %216 = arith.subf %212, %215 : vector<16x16xf32>
    %217 = math.exp %216 : vector<16x16xf32>
    %cst_146 = arith.constant dense<0.000000e+00> : vector<16xf32>
    %218 = vector.multi_reduction <add>, %217, %cst_146 [1] : vector<16x16xf32> to vector<16xf32>
    %219 = vector.shape_cast %218 : vector<16xf32> to vector<16x1xf32>
    %220 = tpu.reciprocal %219 {approx = true} : vector<16x1xf32> -> vector<16x1xf32>
    %221 = vector.broadcast %220 : vector<16x1xf32> to vector<16x16xf32>
    %222 = arith.mulf %217, %221 : vector<16x16xf32>
    %cst_147 = arith.constant dense<0.000000e+00> : vector<16x16xf32>
    %223 = tpu.matmul %222, %209, %cst_147 {dimension_numbers = #tpu.dot_dimension_numbers<[1], [0], [0], [1], [0, 0, 1, 1], [], []>} : vector<16x16xf32>, vector<16x16xf32>, vector<16x16xf32> -> vector<16x16xf32>
    %c96_148 = arith.constant 96 : index
    %c0_149 = arith.constant 0 : index
    %224 = vector.load %arg8[%c96_148, %c0_149] : memref<128x128xf32, #tpu.memory_space<vmem>>, vector<16x128xf32>
    %cst_150 = arith.constant dense<0.000000e+00> : vector<16x128xf32>
    %225 = tpu.matmul %223, %224, %cst_150 {dimension_numbers = #tpu.dot_dimension_numbers<[1], [0], [0], [1], [0, 0, 1, 1], [], []>} : vector<16x16xf32>, vector<16x128xf32>, vector<16x128xf32> -> vector<16x128xf32>
    %226 = arith.addf %194, %225 : vector<16x128xf32>
    %c112 = arith.constant 112 : index
    %c0_151 = arith.constant 0 : index
    %227 = vector.load %arg2[%c112, %c0_151] : memref<128x128xf32, #tpu.memory_space<vmem>>, vector<16x128xf32>
    %cst_152 = arith.constant dense<0.000000e+00> : vector<16x16xf32>
    %228 = tpu.matmul %1, %227, %cst_152 {dimension_numbers = #tpu.dot_dimension_numbers<[1], [1], [0], [0], [0, 0, 1, 0], [], []>} : vector<16x128xf32>, vector<16x128xf32>, vector<16x16xf32> -> vector<16x16xf32>
    %c7 = arith.constant 7 : index
    %c0_153 = arith.constant 0 : index
    %229 = vector.load %arg5[%c7, %c0_153] : memref<8x16xf32, #tpu.memory_space<vmem>>, vector<1x16xf32>
    %230 = vector.broadcast %229 : vector<1x16xf32> to vector<16x16xf32>
    %231 = arith.addf %228, %230 : vector<16x16xf32>
    %c112_154 = arith.constant 112 : index
    %c0_155 = arith.constant 0 : index
    %232 = vector.load %arg3[%c112_154, %c0_155] : memref<128x128xf32, #tpu.memory_space<vmem>>, vector<16x128xf32>
    %cst_156 = arith.constant dense<0.000000e+00> : vector<16x16xf32>
    %233 = tpu.matmul %1, %232, %cst_156 {dimension_numbers = #tpu.dot_dimension_numbers<[1], [1], [0], [0], [0, 0, 1, 0], [], []>} : vector<16x128xf32>, vector<16x128xf32>, vector<16x16xf32> -> vector<16x16xf32>
    %c7_157 = arith.constant 7 : index
    %c0_158 = arith.constant 0 : index
    %234 = vector.load %arg6[%c7_157, %c0_158] : memref<8x16xf32, #tpu.memory_space<vmem>>, vector<1x16xf32>
    %235 = vector.broadcast %234 : vector<1x16xf32> to vector<16x16xf32>
    %236 = arith.addf %233, %235 : vector<16x16xf32>
    %c112_159 = arith.constant 112 : index
    %c0_160 = arith.constant 0 : index
    %237 = vector.load %arg4[%c112_159, %c0_160] : memref<128x128xf32, #tpu.memory_space<vmem>>, vector<16x128xf32>
    %cst_161 = arith.constant dense<0.000000e+00> : vector<16x16xf32>
    %238 = tpu.matmul %1, %237, %cst_161 {dimension_numbers = #tpu.dot_dimension_numbers<[1], [1], [0], [0], [0, 0, 1, 0], [], []>} : vector<16x128xf32>, vector<16x128xf32>, vector<16x16xf32> -> vector<16x16xf32>
    %c7_162 = arith.constant 7 : index
    %c0_163 = arith.constant 0 : index
    %239 = vector.load %arg7[%c7_162, %c0_163] : memref<8x16xf32, #tpu.memory_space<vmem>>, vector<1x16xf32>
    %240 = vector.broadcast %239 : vector<1x16xf32> to vector<16x16xf32>
    %241 = arith.addf %238, %240 : vector<16x16xf32>
    %cst_164 = arith.constant dense<0.000000e+00> : vector<16x16xf32>
    %242 = tpu.matmul %231, %236, %cst_164 {dimension_numbers = #tpu.dot_dimension_numbers<[1], [1], [0], [0], [0, 0, 1, 0], [], []>} : vector<16x16xf32>, vector<16x16xf32>, vector<16x16xf32> -> vector<16x16xf32>
    %cst_165 = arith.constant 2.500000e-01 : f32
    %243 = vector.broadcast %cst_165 : f32 to vector<16x16xf32>
    %244 = arith.mulf %242, %243 : vector<16x16xf32>
    %cst_166 = arith.constant dense<0xFF800000> : vector<16xf32>
    %245 = vector.multi_reduction <maximumf>, %244, %cst_166 [1] : vector<16x16xf32> to vector<16xf32>
    %246 = vector.shape_cast %245 : vector<16xf32> to vector<16x1xf32>
    %247 = vector.broadcast %246 : vector<16x1xf32> to vector<16x16xf32>
    %248 = arith.subf %244, %247 : vector<16x16xf32>
    %249 = math.exp %248 : vector<16x16xf32>
    %cst_167 = arith.constant dense<0.000000e+00> : vector<16xf32>
    %250 = vector.multi_reduction <add>, %249, %cst_167 [1] : vector<16x16xf32> to vector<16xf32>
    %251 = vector.shape_cast %250 : vector<16xf32> to vector<16x1xf32>
    %252 = tpu.reciprocal %251 {approx = true} : vector<16x1xf32> -> vector<16x1xf32>
    %253 = vector.broadcast %252 : vector<16x1xf32> to vector<16x16xf32>
    %254 = arith.mulf %249, %253 : vector<16x16xf32>
    %cst_168 = arith.constant dense<0.000000e+00> : vector<16x16xf32>
    %255 = tpu.matmul %254, %241, %cst_168 {dimension_numbers = #tpu.dot_dimension_numbers<[1], [0], [0], [1], [0, 0, 1, 1], [], []>} : vector<16x16xf32>, vector<16x16xf32>, vector<16x16xf32> -> vector<16x16xf32>
    %c112_169 = arith.constant 112 : index
    %c0_170 = arith.constant 0 : index
    %256 = vector.load %arg8[%c112_169, %c0_170] : memref<128x128xf32, #tpu.memory_space<vmem>>, vector<16x128xf32>
    %cst_171 = arith.constant dense<0.000000e+00> : vector<16x128xf32>
    %257 = tpu.matmul %255, %256, %cst_171 {dimension_numbers = #tpu.dot_dimension_numbers<[1], [0], [0], [1], [0, 0, 1, 1], [], []>} : vector<16x16xf32>, vector<16x128xf32>, vector<16x128xf32> -> vector<16x128xf32>
    %258 = arith.addf %226, %257 : vector<16x128xf32>
    %259 = arith.addf %1, %258 : vector<16x128xf32>
    %c0_172 = arith.constant 0 : index
    %c0_173 = arith.constant 0 : index
    %260 = vector.load %arg9[%c0_172, %c0_173] : memref<1x128xf32, #tpu.memory_space<vmem>>, vector<1x128xf32>
    %261 = vector.broadcast %260 : vector<1x128xf32> to vector<16x128xf32>
    %262 = arith.addf %259, %261 : vector<16x128xf32>
    %c0_174 = arith.constant 0 : index
    %c0_175 = arith.constant 0 : index
    %263 = vector.load %arg10[%c0_174, %c0_175] : memref<1x128xf32, #tpu.memory_space<vmem>>, vector<1x128xf32>
    %c0_176 = arith.constant 0 : index
    %c0_177 = arith.constant 0 : index
    %264 = vector.load %arg11[%c0_176, %c0_177] : memref<1x128xf32, #tpu.memory_space<vmem>>, vector<1x128xf32>
    %cst_178 = arith.constant dense<0.000000e+00> : vector<16xf32>
    %265 = vector.multi_reduction <add>, %262, %cst_178 [1] : vector<16x128xf32> to vector<16xf32>
    %266 = vector.shape_cast %265 : vector<16xf32> to vector<16x1xf32>
    %cst_179 = arith.constant 1.280000e+02 : f32
    %267 = vector.broadcast %cst_179 : f32 to vector<16x1xf32>
    %268 = arith.divf %266, %267 : vector<16x1xf32>
    %269 = vector.broadcast %268 : vector<16x1xf32> to vector<16x128xf32>
    %270 = arith.subf %262, %269 : vector<16x128xf32>
    %271 = arith.mulf %270, %270 : vector<16x128xf32>
    %cst_180 = arith.constant dense<0.000000e+00> : vector<16xf32>
    %272 = vector.multi_reduction <add>, %271, %cst_180 [1] : vector<16x128xf32> to vector<16xf32>
    %273 = vector.shape_cast %272 : vector<16xf32> to vector<16x1xf32>
    %cst_181 = arith.constant 1.280000e+02 : f32
    %274 = vector.broadcast %cst_181 : f32 to vector<16x1xf32>
    %275 = arith.divf %273, %274 : vector<16x1xf32>
    %cst_182 = arith.constant 9.99999974E-6 : f32
    %276 = vector.broadcast %cst_182 : f32 to vector<16x1xf32>
    %277 = arith.addf %275, %276 : vector<16x1xf32>
    %278 = math.rsqrt %277 : vector<16x1xf32>
    %279 = vector.broadcast %278 : vector<16x1xf32> to vector<16x128xf32>
    %280 = arith.mulf %270, %279 : vector<16x128xf32>
    %281 = vector.broadcast %263 : vector<1x128xf32> to vector<16x128xf32>
    %282 = arith.mulf %280, %281 : vector<16x128xf32>
    %283 = vector.broadcast %264 : vector<1x128xf32> to vector<16x128xf32>
    %284 = arith.addf %282, %283 : vector<16x128xf32>
    %c0_183 = arith.constant 0 : index
    %c0_184 = arith.constant 0 : index
    %c0_185 = arith.constant 0 : index
    %285 = vector.load %arg12[%c0_183, %c0_184, %c0_185] : memref<1x16x128xf32, #tpu.memory_space<vmem>>, vector<1x16x128xf32>
    %286 = vector.shape_cast %285 : vector<1x16x128xf32> to vector<16x128xf32>
    %287 = vector.shape_cast %284 : vector<16x128xf32> to vector<1x16x128xf32>
    tpu.vector_store %arg12[%c0_183, %c0_184, %c0_185], %287 {strides = array<i32>} : memref<1x16x128xf32, #tpu.memory_space<vmem>>, vector<1x16x128xf32>,
    return
  }
  func.func @transform_0(%arg0: i32) -> (i32, i32, i32) {
    %c0_i32 = arith.constant 0 : i32
    %c0_i32_0 = arith.constant 0 : i32
    %c0_i32_1 = arith.constant 0 : i32
    return %arg0, %c0_i32, %c0_i32_0 : i32, i32, i32
  }
  func.func @transform_1(%arg0: i32) -> (i32, i32) {
    %c0_i32 = arith.constant 0 : i32
    %c0_i32_0 = arith.constant 0 : i32
    %c0_i32_1 = arith.constant 0 : i32
    return %c0_i32, %c0_i32_0 : i32, i32
  }
  func.func @transform_2(%arg0: i32) -> (i32, i32) {
    %c0_i32 = arith.constant 0 : i32
    %c0_i32_0 = arith.constant 0 : i32
    %c0_i32_1 = arith.constant 0 : i32
    return %c0_i32, %c0_i32_0 : i32, i32
  }
  func.func @transform_3(%arg0: i32) -> (i32, i32) {
    %c0_i32 = arith.constant 0 : i32
    %c0_i32_0 = arith.constant 0 : i32
    %c0_i32_1 = arith.constant 0 : i32
    return %c0_i32, %c0_i32_0 : i32, i32
  }
  func.func @transform_4(%arg0: i32) -> (i32, i32) {
    %c0_i32 = arith.constant 0 : i32
    %c0_i32_0 = arith.constant 0 : i32
    %c0_i32_1 = arith.constant 0 : i32
    return %c0_i32, %c0_i32_0 : i32, i32
  }
  func.func @transform_5(%arg0: i32) -> (i32, i32) {
    %c0_i32 = arith.constant 0 : i32
    %c0_i32_0 = arith.constant 0 : i32
    %c0_i32_1 = arith.constant 0 : i32
    return %c0_i32, %c0_i32_0 : i32, i32
  }
  func.func @transform_6(%arg0: i32) -> (i32, i32) {
    %c0_i32 = arith.constant 0 : i32
    %c0_i32_0 = arith.constant 0 : i32
    %c0_i32_1 = arith.constant 0 : i32
    return %c0_i32, %c0_i32_0 : i32, i32
  }
  func.func @transform_7(%arg0: i32) -> (i32, i32) {
    %c0_i32 = arith.constant 0 : i32
    %c0_i32_0 = arith.constant 0 : i32
    %c0_i32_1 = arith.constant 0 : i32
    return %c0_i32, %c0_i32_0 : i32, i32
  }
  func.func @transform_8(%arg0: i32) -> (i32, i32) {
    %c0_i32 = arith.constant 0 : i32
    %c0_i32_0 = arith.constant 0 : i32
    %c0_i32_1 = arith.constant 0 : i32
    return %c0_i32, %c0_i32_0 : i32, i32
  }
  func.func @transform_9(%arg0: i32) -> (i32, i32) {
    %c0_i32 = arith.constant 0 : i32
    %c0_i32_0 = arith.constant 0 : i32
    %c0_i32_1 = arith.constant 0 : i32
    return %c0_i32, %c0_i32_0 : i32, i32
  }
  func.func @transform_10(%arg0: i32) -> (i32, i32) {
    %c0_i32 = arith.constant 0 : i32
    %c0_i32_0 = arith.constant 0 : i32
    %c0_i32_1 = arith.constant 0 : i32
    return %c0_i32, %c0_i32_0 : i32, i32
  }
  func.func @transform_11(%arg0: i32) -> (i32, i32, i32) {
    %c0_i32 = arith.constant 0 : i32
    %c0_i32_0 = arith.constant 0 : i32
    %c0_i32_1 = arith.constant 0 : i32
    return %arg0, %c0_i32, %c0_i32_0 : i32, i32, i32
  }
}

module attributes {stable_mosaic.version = 11 : i64} {
  func.func @_ffn_ln_head_kernel(%arg0: i32, %arg1: memref<16x128xf32, #tpu.memory_space<vmem>>, %arg2: memref<256x128xf32, #tpu.memory_space<vmem>>, %arg3: memref<1x256xf32, #tpu.memory_space<vmem>>, %arg4: memref<128x256xf32, #tpu.memory_space<vmem>>, %arg5: memref<1x128xf32, #tpu.memory_space<vmem>>, %arg6: memref<1x128xf32, #tpu.memory_space<vmem>>, %arg7: memref<1x128xf32, #tpu.memory_space<vmem>>, %arg8: memref<1x128xf32, #tpu.memory_space<vmem>>, %arg9: memref<1x1xf32, #tpu.memory_space<vmem>>, %arg10: memref<16x1xf32, #tpu.memory_space<vmem>>) attributes {dimension_semantics = [#tpu.dimension_semantics<parallel>], iteration_bounds = array<i64: 2>, scalar_prefetch = 0 : i64, scratch_operands = 0 : i64, tpu.core_type = #tpu.core_type<tc>, window_params = [{transform_indices = @transform_0, window_bounds = array<i64: 16, 128>}, {pipeline_mode = #tpu.pipeline_mode<synchronous>, transform_indices = @transform_1, window_bounds = array<i64: 256, 128>}, {pipeline_mode = #tpu.pipeline_mode<synchronous>, transform_indices = @transform_2, window_bounds = array<i64: 1, 256>}, {pipeline_mode = #tpu.pipeline_mode<synchronous>, transform_indices = @transform_3, window_bounds = array<i64: 128, 256>}, {pipeline_mode = #tpu.pipeline_mode<synchronous>, transform_indices = @transform_4, window_bounds = array<i64: 1, 128>}, {pipeline_mode = #tpu.pipeline_mode<synchronous>, transform_indices = @transform_5, window_bounds = array<i64: 1, 128>}, {pipeline_mode = #tpu.pipeline_mode<synchronous>, transform_indices = @transform_6, window_bounds = array<i64: 1, 128>}, {pipeline_mode = #tpu.pipeline_mode<synchronous>, transform_indices = @transform_7, window_bounds = array<i64: 1, 128>}, {pipeline_mode = #tpu.pipeline_mode<synchronous>, transform_indices = @transform_8, window_bounds = array<i64: 1, 1>}, {transform_indices = @transform_9, window_bounds = array<i64: 16, 1>}]} {
    %c0 = arith.constant 0 : index
    %c0_0 = arith.constant 0 : index
    %0 = vector.load %arg1[%c0, %c0_0] : memref<16x128xf32, #tpu.memory_space<vmem>>, vector<16x128xf32>
    %c0_1 = arith.constant 0 : index
    %c0_2 = arith.constant 0 : index
    %1 = vector.load %arg2[%c0_1, %c0_2] : memref<256x128xf32, #tpu.memory_space<vmem>>, vector<256x128xf32>
    %cst = arith.constant dense<0.000000e+00> : vector<16x256xf32>
    %2 = tpu.matmul %0, %1, %cst {dimension_numbers = #tpu.dot_dimension_numbers<[1], [1], [0], [0], [0, 0, 1, 0], [], []>} : vector<16x128xf32>, vector<256x128xf32>, vector<16x256xf32> -> vector<16x256xf32>
    %c0_3 = arith.constant 0 : index
    %c0_4 = arith.constant 0 : index
    %3 = vector.load %arg3[%c0_3, %c0_4] : memref<1x256xf32, #tpu.memory_space<vmem>>, vector<1x256xf32>
    %4 = vector.broadcast %3 : vector<1x256xf32> to vector<16x256xf32>
    %5 = arith.addf %2, %4 : vector<16x256xf32>
    %cst_5 = arith.constant 0.000000e+00 : f32
    %6 = vector.broadcast %cst_5 : f32 to vector<16x256xf32>
    %7 = arith.maximumf %5, %6 : vector<16x256xf32>
    %c0_6 = arith.constant 0 : index
    %c0_7 = arith.constant 0 : index
    %8 = vector.load %arg4[%c0_6, %c0_7] : memref<128x256xf32, #tpu.memory_space<vmem>>, vector<128x256xf32>
    %cst_8 = arith.constant dense<0.000000e+00> : vector<16x128xf32>
    %9 = tpu.matmul %7, %8, %cst_8 {dimension_numbers = #tpu.dot_dimension_numbers<[1], [1], [0], [0], [0, 0, 1, 0], [], []>} : vector<16x256xf32>, vector<128x256xf32>, vector<16x128xf32> -> vector<16x128xf32>
    %c0_9 = arith.constant 0 : index
    %c0_10 = arith.constant 0 : index
    %10 = vector.load %arg5[%c0_9, %c0_10] : memref<1x128xf32, #tpu.memory_space<vmem>>, vector<1x128xf32>
    %11 = vector.broadcast %10 : vector<1x128xf32> to vector<16x128xf32>
    %12 = arith.addf %9, %11 : vector<16x128xf32>
    %13 = arith.addf %0, %12 : vector<16x128xf32>
    %c0_11 = arith.constant 0 : index
    %c0_12 = arith.constant 0 : index
    %14 = vector.load %arg6[%c0_11, %c0_12] : memref<1x128xf32, #tpu.memory_space<vmem>>, vector<1x128xf32>
    %c0_13 = arith.constant 0 : index
    %c0_14 = arith.constant 0 : index
    %15 = vector.load %arg7[%c0_13, %c0_14] : memref<1x128xf32, #tpu.memory_space<vmem>>, vector<1x128xf32>
    %cst_15 = arith.constant dense<0.000000e+00> : vector<16xf32>
    %16 = vector.multi_reduction <add>, %13, %cst_15 [1] : vector<16x128xf32> to vector<16xf32>
    %17 = vector.shape_cast %16 : vector<16xf32> to vector<16x1xf32>
    %cst_16 = arith.constant 1.280000e+02 : f32
    %18 = vector.broadcast %cst_16 : f32 to vector<16x1xf32>
    %19 = arith.divf %17, %18 : vector<16x1xf32>
    %20 = vector.broadcast %19 : vector<16x1xf32> to vector<16x128xf32>
    %21 = arith.subf %13, %20 : vector<16x128xf32>
    %22 = arith.mulf %21, %21 : vector<16x128xf32>
    %cst_17 = arith.constant dense<0.000000e+00> : vector<16xf32>
    %23 = vector.multi_reduction <add>, %22, %cst_17 [1] : vector<16x128xf32> to vector<16xf32>
    %24 = vector.shape_cast %23 : vector<16xf32> to vector<16x1xf32>
    %cst_18 = arith.constant 1.280000e+02 : f32
    %25 = vector.broadcast %cst_18 : f32 to vector<16x1xf32>
    %26 = arith.divf %24, %25 : vector<16x1xf32>
    %cst_19 = arith.constant 9.99999974E-6 : f32
    %27 = vector.broadcast %cst_19 : f32 to vector<16x1xf32>
    %28 = arith.addf %26, %27 : vector<16x1xf32>
    %29 = math.rsqrt %28 : vector<16x1xf32>
    %30 = vector.broadcast %29 : vector<16x1xf32> to vector<16x128xf32>
    %31 = arith.mulf %21, %30 : vector<16x128xf32>
    %32 = vector.broadcast %14 : vector<1x128xf32> to vector<16x128xf32>
    %33 = arith.mulf %31, %32 : vector<16x128xf32>
    %34 = vector.broadcast %15 : vector<1x128xf32> to vector<16x128xf32>
    %35 = arith.addf %33, %34 : vector<16x128xf32>
    %c0_20 = arith.constant 0 : index
    %c0_21 = arith.constant 0 : index
    %36 = vector.load %arg8[%c0_20, %c0_21] : memref<1x128xf32, #tpu.memory_space<vmem>>, vector<1x128xf32>
    %37 = vector.broadcast %36 : vector<1x128xf32> to vector<16x128xf32>
    %38 = arith.mulf %35, %37 : vector<16x128xf32>
    %cst_22 = arith.constant dense<0.000000e+00> : vector<16xf32>
    %39 = vector.multi_reduction <add>, %38, %cst_22 [1] : vector<16x128xf32> to vector<16xf32>
    %40 = vector.shape_cast %39 : vector<16xf32> to vector<16x1xf32>
    %c0_23 = arith.constant 0 : index
    %c0_24 = arith.constant 0 : index
    %41 = vector.load %arg9[%c0_23, %c0_24] : memref<1x1xf32, #tpu.memory_space<vmem>>, vector<1x1xf32>
    %42 = vector.broadcast %41 : vector<1x1xf32> to vector<16x1xf32>
    %43 = arith.addf %40, %42 : vector<16x1xf32>
    %c0_25 = arith.constant 0 : index
    %c0_26 = arith.constant 0 : index
    %44 = vector.load %arg10[%c0_25, %c0_26] : memref<16x1xf32, #tpu.memory_space<vmem>>, vector<16x1xf32>
    tpu.vector_store %arg10[%c0_25, %c0_26], %43 {strides = array<i32>} : memref<16x1xf32, #tpu.memory_space<vmem>>, vector<16x1xf32>,
    return
  }
  func.func @transform_0(%arg0: i32) -> (i32, i32) {
    %c0_i32 = arith.constant 0 : i32
    %c0_i32_0 = arith.constant 0 : i32
    return %arg0, %c0_i32 : i32, i32
  }
  func.func @transform_1(%arg0: i32) -> (i32, i32) {
    %c0_i32 = arith.constant 0 : i32
    %c0_i32_0 = arith.constant 0 : i32
    %c0_i32_1 = arith.constant 0 : i32
    return %c0_i32, %c0_i32_0 : i32, i32
  }
  func.func @transform_2(%arg0: i32) -> (i32, i32) {
    %c0_i32 = arith.constant 0 : i32
    %c0_i32_0 = arith.constant 0 : i32
    %c0_i32_1 = arith.constant 0 : i32
    return %c0_i32, %c0_i32_0 : i32, i32
  }
  func.func @transform_3(%arg0: i32) -> (i32, i32) {
    %c0_i32 = arith.constant 0 : i32
    %c0_i32_0 = arith.constant 0 : i32
    %c0_i32_1 = arith.constant 0 : i32
    return %c0_i32, %c0_i32_0 : i32, i32
  }
  func.func @transform_4(%arg0: i32) -> (i32, i32) {
    %c0_i32 = arith.constant 0 : i32
    %c0_i32_0 = arith.constant 0 : i32
    %c0_i32_1 = arith.constant 0 : i32
    return %c0_i32, %c0_i32_0 : i32, i32
  }
  func.func @transform_5(%arg0: i32) -> (i32, i32) {
    %c0_i32 = arith.constant 0 : i32
    %c0_i32_0 = arith.constant 0 : i32
    %c0_i32_1 = arith.constant 0 : i32
    return %c0_i32, %c0_i32_0 : i32, i32
  }
  func.func @transform_6(%arg0: i32) -> (i32, i32) {
    %c0_i32 = arith.constant 0 : i32
    %c0_i32_0 = arith.constant 0 : i32
    %c0_i32_1 = arith.constant 0 : i32
    return %c0_i32, %c0_i32_0 : i32, i32
  }
  func.func @transform_7(%arg0: i32) -> (i32, i32) {
    %c0_i32 = arith.constant 0 : i32
    %c0_i32_0 = arith.constant 0 : i32
    %c0_i32_1 = arith.constant 0 : i32
    return %c0_i32, %c0_i32_0 : i32, i32
  }
  func.func @transform_8(%arg0: i32) -> (i32, i32) {
    %c0_i32 = arith.constant 0 : i32
    %c0_i32_0 = arith.constant 0 : i32
    %c0_i32_1 = arith.constant 0 : i32
    return %c0_i32, %c0_i32_0 : i32, i32
  }
  func.func @transform_9(%arg0: i32) -> (i32, i32) {
    %c0_i32 = arith.constant 0 : i32
    %c0_i32_0 = arith.constant 0 : i32
    return %arg0, %c0_i32 : i32, i32
  }
}

</mosaic_0001>

<bundles_post_ra>
// kernel: transformer_pointnet_forward.6
= control target key start
LH: loop header
LB: loop body
LE: loop exit
PB: predicated region body
PF: predicated region fallthrough
CT: control target
= control target key end

     0   :  { %s683_s12 = smov 0   ;;  %s685_s13 = smov 0   ;;  %s814_s0 = inlined_call_operand.vmem [shape: f32[2,16,16], index: 0, kind: input, shape index: {}]   ;;  %s815_s1 = inlined_call_operand.vmem [shape: f32[128,16], index: 1, kind: input, shape index: {}]   ;;  %s816_s2 = inlined_call_operand.vmem [shape: f32[1,128], index: 2, kind: input, shape index: {}]   ;;  %s817_s3 = inlined_call_operand.vmem [shape: f32[2,16,128], index: 3, kind: output, shape index: {}]  }
   0x1   :  { %s687_s14 = smov 0  }
   0x2 LB: > { %s25_s15 = sadd.s32 1, %s657_s13  ;;  %p485_p0 = scmp.ge.s32.totalorder %s661_s14, 1  ;;  %s661_s14 = sphi %s687_s14, %s13_s14   ;;  %s657_s13 = sphi %s685_s13, %s821_s13   ;;  %s653_s12 = sphi %s683_s12, %s820_s12  }
   0x3   : > { %p27_p1 = scmp.ge.s32.totalorder %s25_s15, 2  ;;  %p156_p2 = scmp.lt.s32.totalorder %s661_s14, 3 }
   0x5   : > { %s823_s15 = smov (%p27_p1, %s25_s15), 0  ;;  %p157_p3 = pnand %p485_p0, %p156_p2 }
   0x6   : > { %p187_p4 = scmp.lt.s32.totalorder (!%p157_p3), %s653_s12, 1  ;;  %v207_v0 = vld [vmem:[%s815_s1] sm:$0xff] (!%p157_p3)  ;;  %v208_v1 = vld [vmem:[%s815_s1 + $0x8] sm:$0xff] (!%p157_p3)  ;;  %vm262_vm0 = vcmask (!%p157_p3), 130048   ;;  %v209_v2 = vld [vmem:[%s815_s1 + $0x10] sm:$0xff] (!%p157_p3) }
   0x7   : > { %160 = sbr.rel (%p157_p3) target bundleno = 367 (0x16f), region = 32  ;;  %v566_v3 = vpack.c.bf16 (!%p157_p3), %v208_v1, %v207_v0  ;;  %vm712_vm1 = vmpackc.low (!%p157_p3), %vm262_vm0, %vm262_vm0  ;;  %v210_v5 = vld [vmem:[%s815_s1 + $0x18] sm:$0xff] (!%p157_p3)  ;;  %v211_v8 = vld [vmem:[%s815_s1 + $0x20] sm:$0xff] (!%p157_p3) }
   0x8   : > { %v572_v6 = vpack.c.bf16 (!%p157_p3), %v210_v5, %v209_v2  ;;  %v212_v9 = vld [vmem:[%s815_s1 + $0x28] sm:$0xff] (!%p157_p3)  ;;  %v213_v12 = vld [vmem:[%s815_s1 + $0x30] sm:$0xff] (!%p157_p3)  ;;  %v214_v13 = vld [vmem:[%s815_s1 + $0x38] sm:$0xff] (!%p157_p3) }
   0x9   : > { %568 = vmatprep.subr.msk.bf16.mxu0 (!%p157_p3), %vm712_vm1, %v566_v3  ;;  %v578_v11 = vpack.c.bf16 (!%p157_p3), %v212_v9, %v211_v8  ;;  %v584_v14 = vpack.c.bf16 (!%p157_p3), %v214_v13, %v213_v12  ;;  %v215_v15 = vld [vmem:[%s815_s1 + $0x40] sm:$0xff] (!%p157_p3)  ;;  %v216_v16 = vld [vmem:[%s815_s1 + $0x48] sm:$0xff] (!%p157_p3)  ;;  %v217_v18 = vld [vmem:[%s815_s1 + $0x50] sm:$0xff] (!%p157_p3) }
   0xa   : > { %571 = vmatpush3.bf16.xpose.msk.msra.mxu0 (!%p157_p3), %vm712_vm1, %v566_v3  ;;  %v590_v17 = vpack.c.bf16 (!%p157_p3), %v216_v16, %v215_v15  ;;  %v218_v19 = vld [vmem:[%s815_s1 + $0x58] sm:$0xff] (!%p157_p3)  ;;  %v219_v21 = vld [vmem:[%s815_s1 + $0x60] sm:$0xff] (!%p157_p3)  ;;  %v220_v22 = vld [vmem:[%s815_s1 + $0x68] sm:$0xff] (!%p157_p3) }
   0xb   : > { %574 = vmatprep.subr.msk.bf16.mxu0 (!%p157_p3), %vm712_vm1, %v572_v6  ;;  %v596_v20 = vpack.c.bf16 (!%p157_p3), %v218_v19, %v217_v18  ;;  %v602_v23 = vpack.c.bf16 (!%p157_p3), %v220_v22, %v219_v21  ;;  %v221_v24 = vld [vmem:[%s815_s1 + $0x70] sm:$0xff] (!%p157_p3)  ;;  %v222_v25 = vld [vmem:[%s815_s1 + $0x78] sm:$0xff] (!%p157_p3)  ;;  %v490_v29 = vld [vmem:[%s816_s2] ss:$0 sm:$0xff] (!%p157_p3) }
   0xc   : > { %v608_v26 = vpack.c.bf16 (!%p157_p3), %v222_v25, %v221_v24 }
   0xe   : > { %s825_s12 = smov (!%p187_p4, %s653_s12), 1 }
   0xf   : > { %s511_s24 = sshll.u32 %s825_s12, 4 }
  0x10   : > { %s194_s27 = scalar_lea.vmem %s814_s0, %s511_s24  ;;  %s203_s7 = scalar_lea.vmem %s817_s3, %s511_s24 }
  0x11   : > { %v205_v7 = vld [vmem:[%s194_s27] sm:$0xff]  ;;  %v206_v10 = vld [vmem:[%s194_s27 + $0x8] sm:$0xff] }
  0x12   : > { %230 = vxpose.xlu0.b32.start [1/2] (short) (narrow) %v205_v7, 16  ;;  %577 = vmatpush3.bf16.xpose.msk.msra.mxu0 %vm712_vm1, %v572_v6 }
  0x13   : > { %580 = vmatprep.subr.msk.bf16.mxu0 %vm712_vm1, %v578_v11 }
  0x16   : > { %231 = vxpose.xlu0.b32.end [2/2] (short) (narrow) %v206_v10, 16 }
  0x1a   : > { %583 = vmatpush3.bf16.xpose.msk.msra.mxu0 %vm712_vm1, %v578_v11 }
  0x1b   : > { %586 = vmatprep.subr.msk.bf16.mxu0 %vm712_vm1, %v584_v14 }
  0x22   : > { %589 = vmatpush3.bf16.xpose.msk.msra.mxu0 %vm712_vm1, %v584_v14 }
  0x23   : > { %592 = vmatprep.subr.msk.bf16.mxu0 %vm712_vm1, %v590_v17 }
  0x2a   : > { %595 = vmatpush3.bf16.xpose.msk.msra.mxu0 %vm712_vm1, %v590_v17 }
  0x2b   : > { %598 = vmatprep.subr.msk.bf16.mxu0 %vm712_vm1, %v596_v20 }
  0x32   : > { %601 = vmatpush3.bf16.xpose.msk.msra.mxu0 %vm712_vm1, %v596_v20 }
  0x33   : > { %604 = vmatprep.subr.msk.bf16.mxu0 %vm712_vm1, %v602_v23 }
  0x3a   : > { %607 = vmatpush3.bf16.xpose.msk.msra.mxu0 %vm712_vm1, %v602_v23 }
  0x3b   : > { %610 = vmatprep.subr.msk.bf16.mxu0 %vm712_vm1, %v608_v26 }
  0x42   : > { %613 = vmatpush3.bf16.xpose.msk.msra.mxu0 %vm712_vm1, %v608_v26 }
  0x92   : > { %v246_v27 = vpop.trf.xlu0 }
  0x93   : > { %563 = vmatprep.mubr.msk.f32.mxu0 %vm262_vm0, %v246_v27 }
  0x96   : > { %v247_v28 = vpop.trf.xlu0 }
  0x97   : > { %564 = vmatmul.mubr.msk.f32.vlgmr.msra.gmra.mrb[0].mxu0 %vm262_vm0, %v247_v28 }
 0x16a   : > { %v565_v30 = vpop.f32.mrb[0].mxu0 }
 0x16b   : > { %v389_v31 = vadd.f32 %v565_v30, %v490_v29  ;;  %v383_v32 = vpop.f32.mrb[1].mxu0 }
 0x16c   : > { %v384_v33 = vadd.f32 %v490_v29, %v383_v32 }
 0x16d   : > { %393 = vst [vmem:[%s203_s7 + $0x8] sm:$0xff] %v389_v31 }
 0x16e   : > { %392 = vst [vmem:[%s203_s7] sm:$0xff] %v384_v33 }
 0x16f PF: > { %s13_s14 = sadd.s32 1, %s661_s14   ;;  %s820_s12 = smov %s657_s13 }
 0x170   : > { %p10_p5 = scmp.ge.s32.totalorder %s13_s14, 4   ;;  %s821_s13 = smov %s823_s15 }
 0x172   :  { %12 = sbr.rel (!%p10_p5) target bundleno = 2 (0x2), region = 62 }

// kernel: transformer_pointnet_forward.8
= control target key start
LH: loop header
LB: loop body
LE: loop exit
PB: predicated region body
PF: predicated region fallthrough
CT: control target
= control target key end

     0   :  { %14 = vsyncpa [#allocation3], 0  ;;  %s2679_s0 = inlined_call_operand.vmem [shape: f32[32,128], index: 0, kind: input, shape index: {}]   ;;  %s2680_s1 = inlined_call_operand.vmem [shape: f32[32,768], index: 1, kind: input, shape index: {}]   ;;  %s2681_s2 = inlined_call_operand.vmem [shape: f32[256,128], index: 2, kind: input, shape index: {}]   ;;  %s2682_s3 = inlined_call_operand.vmem [shape: f32[256,768], index: 3, kind: input, shape index: {}]   ;;  %s2683_s4 = inlined_call_operand.vmem [shape: f32[1,256], index: 4, kind: input, shape index: {}]   ;;  %s2684_s5 = inlined_call_operand.vmem [shape: f32[128,256], index: 5, kind: input, shape index: {}]   ;;  %s2685_s6 = inlined_call_operand.hbm [shape: f32[1,128], index: 6, kind: input, shape index: {}]   ;;  %s2686_s7 = inlined_call_operand.hbm [shape: f32[1,128], index: 7, kind: input, shape index: {}]   ;;  %s2687_s8 = inlined_call_operand.hbm [shape: f32[1,128], index: 8, kind: input, shape index: {}]   ;;  %s2688_s9 = inlined_call_operand.vmem [shape: f32[32,128], index: 9, kind: output, shape index: {}]  }
   0x1   :  { %15 = vsyncpa [#allocation5], 0  ;;  %s1746_s30 = smov 0  }
   0x2 LB: > { %s1223_s10 = sadd.s32 4294967295, %s1691_s30   ;;  %p1225_p0 = scmp.ge.s32.totalorder %s1691_s30, 1  ;;  %s1691_s30 = sphi %s1746_s30, %s21_s30  }
   0x3   : > { %p251_p1 = scmp.lt.s32.totalorder %s1691_s30, 3  ;;  %p1756_p2 = scmp.eq.s32.totalorder %s1223_s10, 0 }
   0x4   : > { %s1693_s13 = smov [#allocation4]   ;;  %s1694_s15 = smov [#allocation2]  }
   0x5   : > { %s2692_s11 = scalar_select %p1756_p2, 1, 0 }
   0x6   : > { %p1760_p3 = pnand %p1225_p0, %p251_p1  ;;  %s287_s14 = sshll.u32 %s1693_s13, 4  ;;  %s288_s14 = int_to_ptr.vmem [resolvable:$true] %s287_s14 }
   0x7   : > { %s276_s16 = sshll.u32 %s1694_s15, 4  ;;  %s1695_s17 = smov [#allocation6]   ;;  %s1772_s16 = int_to_ptr.vmem [resolvable:$true] %s276_s16 }
   0x8   : > { %s2693_s12 = scalar_select %p1760_p3, 1, 0 }
   0x9   : > { %p1562_p4 = pneg %p1760_p3  ;;  %s298_s18 = sshll.u32 %s1695_s17, 4  ;;  %s1774_s18 = int_to_ptr.vmem [resolvable:$true] %s298_s18 }
   0xa   : > { %s1593_s22 = scalar_lea.hbm %s2686_s7, 16 }
   0xb   : > { %p1768_p5 = pnand %p1756_p2, %p1562_p4  ;;  %p1594_p6 = scmp.ne.s32.totalorder %s2686_s7, %s1593_s22 }
   0xc   : > { %p1600_p10 = scmp.lt.u32.totalorder %s1593_s22, %s2686_s7 }
   0xd   : > { %p1784_p7 = pneg %p1768_p5 }
   0xf   : > { %p1596_p8 = pnand %p1784_p7, %p1594_p6 }
  0x11   : > { %p1597_p9 = pneg %p1596_p8 }
  0x13   : > { %p1602_p11 = pnand %p1600_p10, %p1597_p9 }
  0x15   : > { %1605 = shalt.err (!%p1602_p11)
}
  0x16   : > { %s1606_s28 = scalar_lea.vmem %s288_s14, 16  ;;  %s1613_s29 = scalar_lea.vmem %s288_s14, 32 }
  0x17   : > { %p1607_p12 = scmp.ne.s32.totalorder %s288_s14, %s1606_s28  ;;  %p1614_p1 = scmp.lt.s32.totalorder %s288_s14, %s288_s14 }
  0x18   : > { %p1615_p4 = scmp.lt.s32.totalorder %s1613_s29, %s1606_s28 }
  0x19   : > { %p1609_p13 = pnand %p1607_p12, %p1784_p7 }
  0x1a   : > { %p1616_p2 = por %p1615_p4, %p1614_p1 }
  0x1b   : > { %p1610_p0 = pneg %p1609_p13 }
  0x1d   : > { %p1617_p3 = pnand %p1616_p2, %p1610_p0 }
  0x1f   : > { %1620 = shalt.err (!%p1617_p3)
}
  0x20   : > { %1568 = dma.hbm_to_vmem [thread:$0]  (!%p1768_p5), %s2686_s7, 16, %s288_s14, [#allocation5]  }
  0x21   : > { %s1621_s21 = scalar_lea.hbm %s2685_s6, 16 }
  0x22   : > { %p1622_p6 = scmp.ne.s32.totalorder %s2685_s6, %s1621_s21  ;;  %p1628_p2 = scmp.lt.u32.totalorder %s1621_s21, %s2685_s6 }
  0x24   : > { %p1624_p8 = pnand %p1622_p6, %p1784_p7 }
  0x26   : > { %p1625_p9 = pneg %p1624_p8 }
  0x28   : > { %p1630_p3 = pnand %p1628_p2, %p1625_p9 }
  0x2a   : > { %1633 = shalt.err (!%p1630_p3)
}
  0x2b   : > { %s1634_s14 = scalar_lea.vmem %s1772_s16, 16  ;;  %s1641_s27 = scalar_lea.vmem %s1772_s16, 32 }
  0x2c   : > { %p1635_p10 = scmp.ne.s32.totalorder %s1772_s16, %s1634_s14  ;;  %p1642_p13 = scmp.lt.s32.totalorder %s1772_s16, %s1772_s16 }
  0x2d   : > { %p1643_p0 = scmp.lt.s32.totalorder %s1641_s27, %s1634_s14 }
  0x2e   : > { %p1637_p11 = pnand %p1635_p10, %p1784_p7 }
  0x2f   : > { %p1644_p1 = por %p1643_p0, %p1642_p13 }
  0x30   : > { %p1638_p12 = pneg %p1637_p11 }
  0x32   : > { %p1645_p4 = pnand %p1644_p1, %p1638_p12 }
  0x34   : > { %1648 = shalt.err (!%p1645_p4)
}
  0x35   : > { %1565 = dma.hbm_to_vmem [thread:$0]  (!%p1768_p5), %s2685_s6, 16, %s1772_s16, [#allocation3]  }
  0x36   : > { %s1649_s17 = scalar_lea.hbm %s2687_s8, 16 }
  0x37   : > { %p1650_p6 = scmp.ne.s32.totalorder %s2687_s8, %s1649_s17  ;;  %p1656_p2 = scmp.lt.u32.totalorder %s1649_s17, %s2687_s8 }
  0x39   : > { %p1652_p8 = pnand %p1650_p6, %p1784_p7 }
  0x3b   : > { %p1653_p9 = pneg %p1652_p8 }
  0x3d   : > { %p1658_p3 = pnand %p1656_p2, %p1653_p9 }
  0x3f   : > { %1661 = shalt.err (!%p1658_p3)
}
  0x40   : > { %s1662_s16 = scalar_lea.vmem %s1774_s18, 16  ;;  %s1669_s24 = scalar_lea.vmem %s1774_s18, 32 }
  0x41   : > { %p1663_p10 = scmp.ne.s32.totalorder %s1774_s18, %s1662_s16  ;;  %p1670_p13 = scmp.lt.s32.totalorder %s1774_s18, %s1774_s18 }
  0x42   : > { %p1671_p0 = scmp.lt.s32.totalorder %s1669_s24, %s1662_s16 }
  0x43   : > { %p1665_p11 = pnand %p1663_p10, %p1784_p7 }
  0x44   : > { %p1672_p1 = por %p1671_p0, %p1670_p13 }
  0x45   : > { %p1666_p12 = pneg %p1665_p11 }
  0x47   : > { %p1673_p4 = pnand %p1672_p1, %p1666_p12 }
  0x49   : > { %1676 = shalt.err (!%p1673_p4)
}
  0x4a   : > { %1571 = dma.hbm_to_vmem [thread:$0]  (!%p1768_p5), %s2687_s8, 16, %s1774_s18, [#allocation5]  }
  0x4b   : > { %p2696_p6 = scmp.ne.s32.totalorder %s2693_s12, 0 }
  0x4c   : > { %p2697_p7 = scmp.ne.s32.totalorder (!%p2696_p6), %s2692_s11, 0 }
  0x4d   : > { %330 = sbr.rel (%p2696_p6) target bundleno = 1100 (0x44c), region = 56 }
  0x54   : > { %1682 = dma.done.wait (%p2697_p7), [#allocation3], 16  }
  0x55   : > { %1684 = vsyncadd (%p2697_p7), [#allocation3], 4294967280 }
  0x56   : > { %1686 = dma.done.wait (%p2697_p7), [#allocation5], 32  }
  0x57   : > { %1688 = vsyncadd (%p2697_p7), [#allocation5], 4294967264  ;;  %v448_v0 = vld [vmem:[%s2682_s3 + $0x18] sm:$0xff]  ;;  %v454_v1 = vld [vmem:[%s2682_s3 + $0x48] sm:$0xff]  ;;  %s1234_s18 = sshll.u32 %s1223_s10, 1 }
  0x58   : > { %v447_v2 = vld [vmem:[%s2682_s3 + $0x10] sm:$0xff]  ;;  %v1345_v3 = vpack.c.bf16 %v454_v1, %v448_v0  ;;  %v453_v4 = vld [vmem:[%s2682_s3 + $0x40] sm:$0xff]  ;;  %v460_v5 = vld [vmem:[%s2682_s3 + $0x78] sm:$0xff]  ;;  %p381_p5 = scmp.lt.s32.totalorder %s1234_s18, 3 }
  0x59   : > { %v466_v6 = vld [vmem:[%s2682_s3 + $0xa8] sm:$0xff]  ;;  %v1347_v7 = vpack.c.bf16 %v453_v4, %v447_v2  ;;  %v459_v9 = vld [vmem:[%s2682_s3 + $0x70] sm:$0xff]  ;;  %v465_v10 = vld [vmem:[%s2682_s3 + $0xa0] sm:$0xff] }
  0x5a   : > { %v1349_v8 = vpack.c.bf16 %v466_v6, %v460_v5  ;;  %1346 = vmatprep.subr.bf16.mxu0 %v1345_v3  ;;  %v472_v11 = vld [vmem:[%s2682_s3 + $0xd8] sm:$0xff]  ;;  %v478_v12 = vld [vmem:[%s2682_s3 + $0x108] sm:$0xff]  ;;  %v1351_v13 = vpack.c.bf16 %v465_v10, %v459_v9  ;;  %v471_v17 = vld [vmem:[%s2682_s3 + $0xd0] sm:$0xff]  ;;  %s2699_s18 = smov (!%p381_p5, %s1234_s18), 3 }
  0x5b   : > { %1348 = vmatpush1.bf16.xpose.msra.mxu0 %v1347_v7  ;;  %v1353_v14 = vpack.c.bf16 %v478_v12, %v472_v11  ;;  %v446_v15 = vld [vmem:[%s2682_s3 + $0x8] sm:$0xff]  ;;  %v452_v16 = vld [vmem:[%s2682_s3 + $0x38] sm:$0xff]  ;;  %v445_v19 = vld [vmem:[%s2682_s3] sm:$0xff]  ;;  %s1549_s12 = smul.u32 48, %s2699_s18  ;;  %s1235_s19 = sshll.u32 %s2699_s18, 3 }
  0x5c   : > { %1350 = vmatprep.subr.bf16.mxu0 %v1349_v8  ;;  %v1281_v18 = vpack.c.bf16 %v452_v16, %v446_v15  ;;  %v477_v20 = vld [vmem:[%s2682_s3 + $0x100] sm:$0xff]  ;;  %v484_v21 = vld [vmem:[%s2682_s3 + $0x138] sm:$0xff]  ;;  %v451_v22 = vld [vmem:[%s2682_s3 + $0x30] sm:$0xff]  ;;  %s2326_s20 = scalar_lea.vmem %s2679_s0, %s1235_s19  ;;  %s397_s26 = scalar_lea.vmem %s2688_s9, %s1235_s19 }
  0x5d   : > { %v490_v23 = vld [vmem:[%s2682_s3 + $0x168] sm:$0xff]  ;;  %v1283_v24 = vpack.c.bf16 %v451_v22, %v445_v19  ;;  %v464_v26 = vld [vmem:[%s2682_s3 + $0x98] sm:$0xff]  ;;  %v1355_v28 = vpack.c.bf16 %v477_v20, %v471_v17  ;;  %v457_v30 = vld [vmem:[%s2682_s3 + $0x60] sm:$0xff]  ;;  %s1968_s23 = scalar_lea.vmem %s2680_s1, %s1549_s12 }
  0x5e   : > { %1282 = vmatprep.subr.bf16.mxu1 %v1281_v18  ;;  %v458_v25 = vld [vmem:[%s2682_s3 + $0x68] sm:$0xff]  ;;  %v1357_v29 = vpack.c.bf16 %v490_v23, %v484_v21  ;;  %v463_v31 = vld [vmem:[%s2682_s3 + $0x90] sm:$0xff]  ;;  %v476_v33 = vld [vmem:[%s2682_s3 + $0xf8] sm:$0xff] }
  0x5f   : > { %v1285_v27 = vpack.c.bf16 %v464_v26, %v458_v25  ;;  %1284 = vmatpush1.bf16.xpose.msra.mxu1 %v1283_v24  ;;  %v470_v32 = vld [vmem:[%s2682_s3 + $0xc8] sm:$0xff]  ;;  %v1287_v34 = vpack.c.bf16 %v463_v31, %v457_v30  ;;  %v483_v35 = vld [vmem:[%s2682_s3 + $0x130] sm:$0xff]  ;;  %v489_v36 = vld [vmem:[%s2682_s3 + $0x160] sm:$0xff] }
  0x60   : > { %v1289_v37 = vpack.c.bf16 %v476_v33, %v470_v32  ;;  %v496_v38 = vld [vmem:[%s2682_s3 + $0x198] sm:$0xff]  ;;  %v502_v39 = vld [vmem:[%s2682_s3 + $0x1c8] sm:$0xff]  ;;  %v1359_v40 = vpack.c.bf16 %v489_v36, %v483_v35  ;;  %v469_v42 = vld [vmem:[%s2682_s3 + $0xc0] sm:$0xff] }
  0x61   : > { %1286 = vmatprep.subr.bf16.mxu1 %v1285_v27  ;;  %v1361_v41 = vpack.c.bf16 %v502_v39, %v496_v38  ;;  %v475_v43 = vld [vmem:[%s2682_s3 + $0xf0] sm:$0xff]  ;;  %v482_v44 = vld [vmem:[%s2682_s3 + $0x128] sm:$0xff]  ;;  %v488_v45 = vld [vmem:[%s2682_s3 + $0x158] sm:$0xff] }
  0x62   : > { %v1291_v46 = vpack.c.bf16 %v475_v43, %v469_v42  ;;  %v495_v47 = vld [vmem:[%s2682_s3 + $0x190] sm:$0xff]  ;;  %v501_v48 = vld [vmem:[%s2682_s3 + $0x1c0] sm:$0xff]  ;;  %v1293_v49 = vpack.c.bf16 %v488_v45, %v482_v44  ;;  %v508_v50 = vld [vmem:[%s2682_s3 + $0x1f8] sm:$0xff] }
  0x63   : > { %1352 = vmatpush1.bf16.xpose.msra.mxu0 %v1351_v13  ;;  %v514_v51 = vld [vmem:[%s2682_s3 + $0x228] sm:$0xff]  ;;  %v1363_v52 = vpack.c.bf16 %v501_v48, %v495_v47  ;;  %v436_v53 = vld [vmem:[%s1968_s23 + $0x18] sm:$0xff]  ;;  %v481_v55 = vld [vmem:[%s2682_s3 + $0x120] sm:$0xff] }
  0x64   : > { %1354 = vmatprep.subr.bf16.mxu0 %v1353_v14  ;;  %v1365_v54 = vpack.c.bf16 %v514_v51, %v508_v50  ;;  %v487_v56 = vld [vmem:[%s2682_s3 + $0x150] sm:$0xff]  ;;  %778 = vmatprep.mubr.f32.mxu0 %v436_v53  ;;  %v494_v57 = vld [vmem:[%s2682_s3 + $0x188] sm:$0xff]  ;;  %v500_v58 = vld [vmem:[%s2682_s3 + $0x1b8] sm:$0xff] }
  0x65   : > { %v1295_v59 = vpack.c.bf16 %v487_v56, %v481_v55  ;;  %v507_v60 = vld [vmem:[%s2682_s3 + $0x1f0] sm:$0xff]  ;;  %v513_v61 = vld [vmem:[%s2682_s3 + $0x220] sm:$0xff]  ;;  %v1297_v62 = vpack.c.bf16 %v500_v58, %v494_v57  ;;  %v520_v63 = vld [vmem:[%s2682_s3 + $0x258] sm:$0xff] }
  0x66   : > { %v526_v0 = vld [vmem:[%s2682_s3 + $0x288] sm:$0xff]  ;;  %v1367_v1 = vpack.c.bf16 %v513_v61, %v507_v60  ;;  %v493_v3 = vld [vmem:[%s2682_s3 + $0x180] sm:$0xff]  ;;  %v499_v4 = vld [vmem:[%s2682_s3 + $0x1b0] sm:$0xff] }
  0x67   : > { %1288 = vmatpush1.bf16.xpose.msra.mxu1 %v1287_v34  ;;  %v1369_v2 = vpack.c.bf16 %v526_v0, %v520_v63  ;;  %v506_v5 = vld [vmem:[%s2682_s3 + $0x1e8] sm:$0xff]  ;;  %v512_v6 = vld [vmem:[%s2682_s3 + $0x218] sm:$0xff]  ;;  %v1299_v7 = vpack.c.bf16 %v499_v4, %v493_v3  ;;  %v519_v8 = vld [vmem:[%s2682_s3 + $0x250] sm:$0xff] }
  0x68   : > { %1290 = vmatprep.subr.bf16.mxu1 %v1289_v37  ;;  %v525_v9 = vld [vmem:[%s2682_s3 + $0x280] sm:$0xff]  ;;  %v1301_v10 = vpack.c.bf16 %v512_v6, %v506_v5  ;;  %v532_v11 = vld [vmem:[%s2682_s3 + $0x2b8] sm:$0xff]  ;;  %v538_v12 = vld [vmem:[%s2682_s3 + $0x2e8] sm:$0xff] }
  0x69   : > { %v1371_v13 = vpack.c.bf16 %v525_v9, %v519_v8  ;;  %v1373_v14 = vpack.c.bf16 %v538_v12, %v532_v11  ;;  %v505_v15 = vld [vmem:[%s2682_s3 + $0x1e0] sm:$0xff]  ;;  %v511_v16 = vld [vmem:[%s2682_s3 + $0x210] sm:$0xff]  ;;  %v518_v17 = vld [vmem:[%s2682_s3 + $0x248] sm:$0xff] }
  0x6a   : > { %v524_v18 = vld [vmem:[%s2682_s3 + $0x278] sm:$0xff]  ;;  %v1303_v19 = vpack.c.bf16 %v511_v16, %v505_v15  ;;  %v531_v20 = vld [vmem:[%s2682_s3 + $0x2b0] sm:$0xff]  ;;  %v537_v21 = vld [vmem:[%s2682_s3 + $0x2e0] sm:$0xff] }
  0x6b   : > { %1356 = vmatpush1.bf16.xpose.msra.mxu0 %v1355_v28  ;;  %v1305_v22 = vpack.c.bf16 %v524_v18, %v518_v17  ;;  %v544_v23 = vld [vmem:[%s2682_s3 + $0x318] sm:$0xff]  ;;  %v550_v24 = vld [vmem:[%s2682_s3 + $0x348] sm:$0xff]  ;;  %v1375_v25 = vpack.c.bf16 %v537_v21, %v531_v20  ;;  %v517_v27 = vld [vmem:[%s2682_s3 + $0x240] sm:$0xff] }
  0x6c   : > { %1358 = vmatprep.subr.bf16.mxu0 %v1357_v29  ;;  %v1377_v26 = vpack.c.bf16 %v550_v24, %v544_v23  ;;  %v523_v28 = vld [vmem:[%s2682_s3 + $0x270] sm:$0xff]  ;;  %v530_v29 = vld [vmem:[%s2682_s3 + $0x2a8] sm:$0xff]  ;;  %v536_v30 = vld [vmem:[%s2682_s3 + $0x2d8] sm:$0xff] }
  0x6d   : > { %v1307_v31 = vpack.c.bf16 %v523_v28, %v517_v27  ;;  %v543_v32 = vld [vmem:[%s2682_s3 + $0x310] sm:$0xff]  ;;  %v549_v33 = vld [vmem:[%s2682_s3 + $0x340] sm:$0xff]  ;;  %v1309_v34 = vpack.c.bf16 %v536_v30, %v530_v29  ;;  %v434_v35 = vld [vmem:[%s1968_s23 + $0x8] sm:$0xff] }
  0x6e   : > { %v556_v36 = vld [vmem:[%s2682_s3 + $0x378] sm:$0xff]  ;;  %v562_v37 = vld [vmem:[%s2682_s3 + $0x3a8] sm:$0xff]  ;;  %701 = vmatprep.mubr.f32.mxu1 %v434_v35  ;;  %v1379_v38 = vpack.c.bf16 %v549_v33, %v543_v32  ;;  %v555_v45 = vld [vmem:[%s2682_s3 + $0x370] sm:$0xff] }
  0x6f   : > { %1292 = vmatpush1.bf16.xpose.msra.mxu1 %v1291_v46  ;;  %v1381_v39 = vpack.c.bf16 %v562_v37, %v556_v36  ;;  %v542_v42 = vld [vmem:[%s2682_s3 + $0x308] sm:$0xff]  ;;  %v548_v43 = vld [vmem:[%s2682_s3 + $0x338] sm:$0xff]  ;;  %v561_v46 = vld [vmem:[%s2682_s3 + $0x3a0] sm:$0xff] }
  0x70   : > { %1294 = vmatprep.subr.bf16.mxu1 %v1293_v49  ;;  %v1313_v47 = vpack.c.bf16 %v548_v43, %v542_v42  ;;  %v568_v48 = vld [vmem:[%s2682_s3 + $0x3d8] sm:$0xff]  ;;  %v574_v49 = vld [vmem:[%s2682_s3 + $0x408] sm:$0xff]  ;;  %v1383_v50 = vpack.c.bf16 %v561_v46, %v555_v45  ;;  %v547_v53 = vld [vmem:[%s2682_s3 + $0x330] sm:$0xff] }
  0x71   : > { %v1385_v51 = vpack.c.bf16 %v574_v49, %v568_v48  ;;  %v560_v55 = vld [vmem:[%s2682_s3 + $0x398] sm:$0xff]  ;;  %v567_v57 = vld [vmem:[%s2682_s3 + $0x3d0] sm:$0xff]  ;;  %v573_v58 = vld [vmem:[%s2682_s3 + $0x400] sm:$0xff] }
  0x72   : > { %v580_v60 = vld [vmem:[%s2682_s3 + $0x438] sm:$0xff]  ;;  %v586_v61 = vld [vmem:[%s2682_s3 + $0x468] sm:$0xff]  ;;  %v553_v0 = vld [vmem:[%s2682_s3 + $0x360] sm:$0xff] }
  0x73   : > { %1360 = vmatpush1.bf16.xpose.msra.mxu0 %v1359_v40  ;;  %v529_v40 = vld [vmem:[%s2682_s3 + $0x2a0] sm:$0xff]  ;;  %v1389_v63 = vpack.c.bf16 %v586_v61, %v580_v60  ;;  %v572_v3 = vld [vmem:[%s2682_s3 + $0x3f8] sm:$0xff]  ;;  %v579_v5 = vld [vmem:[%s2682_s3 + $0x430] sm:$0xff] }
  0x74   : > { %1362 = vmatprep.subr.bf16.mxu0 %v1361_v41  ;;  %v535_v41 = vld [vmem:[%s2682_s3 + $0x2d0] sm:$0xff]  ;;  %v585_v6 = vld [vmem:[%s2682_s3 + $0x460] sm:$0xff]  ;;  %v592_v8 = vld [vmem:[%s2682_s3 + $0x498] sm:$0xff] }
  0x75   : > { %v1311_v44 = vpack.c.bf16 %v535_v41, %v529_v40  ;;  %v598_v9 = vld [vmem:[%s2682_s3 + $0x4c8] sm:$0xff]  ;;  %v565_v12 = vld [vmem:[%s2682_s3 + $0x3c0] sm:$0xff]  ;;  %v584_v15 = vld [vmem:[%s2682_s3 + $0x458] sm:$0xff] }
  0x76   : > { %v1393_v11 = vpack.c.bf16 %v598_v9, %v592_v8  ;;  %v591_v17 = vld [vmem:[%s2682_s3 + $0x490] sm:$0xff]  ;;  %v597_v18 = vld [vmem:[%s2682_s3 + $0x4c0] sm:$0xff]  ;;  %v604_v20 = vld [vmem:[%s2682_s3 + $0x4f8] sm:$0xff] }
  0x77   : > { %1296 = vmatpush1.bf16.xpose.msra.mxu1 %v1295_v59  ;;  %v610_v21 = vld [vmem:[%s2682_s3 + $0x528] sm:$0xff]  ;;  %v577_v24 = vld [vmem:[%s2682_s3 + $0x420] sm:$0xff]  ;;  %v596_v27 = vld [vmem:[%s2682_s3 + $0x4b8] sm:$0xff] }
  0x78   : > { %1298 = vmatprep.subr.bf16.mxu1 %v1297_v62  ;;  %v1387_v62 = vpack.c.bf16 %v573_v58, %v567_v57  ;;  %v1397_v23 = vpack.c.bf16 %v610_v21, %v604_v20  ;;  %v603_v29 = vld [vmem:[%s2682_s3 + $0x4f0] sm:$0xff]  ;;  %v609_v30 = vld [vmem:[%s2682_s3 + $0x520] sm:$0xff]  ;;  %v616_v32 = vld [vmem:[%s2682_s3 + $0x558] sm:$0xff] }
  0x79   : > { %v622_v33 = vld [vmem:[%s2682_s3 + $0x588] sm:$0xff]  ;;  %v589_v36 = vld [vmem:[%s2682_s3 + $0x480] sm:$0xff]  ;;  %v595_v37 = vld [vmem:[%s2682_s3 + $0x4b0] sm:$0xff] }
  0x7a   : > { %v1401_v35 = vpack.c.bf16 %v622_v33, %v616_v32  ;;  %v1331_v40 = vpack.c.bf16 %v595_v37, %v589_v36  ;;  %v615_v41 = vld [vmem:[%s2682_s3 + $0x550] sm:$0xff]  ;;  %v621_v42 = vld [vmem:[%s2682_s3 + $0x580] sm:$0xff]  ;;  %v634_v45 = vld [vmem:[%s2682_s3 + $0x5e8] sm:$0xff] }
  0x7b   : > { %1364 = vmatpush1.bf16.xpose.msra.mxu0 %v1363_v52  ;;  %v541_v52 = vld [vmem:[%s2682_s3 + $0x300] sm:$0xff]  ;;  %v1403_v46 = vpack.c.bf16 %v621_v42, %v615_v41  ;;  %v607_v49 = vld [vmem:[%s2682_s3 + $0x510] sm:$0xff]  ;;  %v456_v57 = vld [vmem:[%s2682_s3 + $0x58] sm:$0xff] }
  0x7c   : > { %1366 = vmatprep.subr.bf16.mxu0 %v1365_v54  ;;  %v554_v54 = vld [vmem:[%s2682_s3 + $0x368] sm:$0xff]  ;;  %v1315_v56 = vpack.c.bf16 %v547_v53, %v541_v52  ;;  %v601_v48 = vld [vmem:[%s2682_s3 + $0x4e0] sm:$0xff]  ;;  %v627_v53 = vld [vmem:[%s2682_s3 + $0x5b0] sm:$0xff] }
  0x7d   : > { %v1317_v59 = vpack.c.bf16 %v560_v55, %v554_v54  ;;  %v1335_v52 = vpack.c.bf16 %v607_v49, %v601_v48  ;;  %v633_v54 = vld [vmem:[%s2682_s3 + $0x5e0] sm:$0xff]  ;;  %v619_v61 = vld [vmem:[%s2682_s3 + $0x570] sm:$0xff]  ;;  %v474_v20 = vld [vmem:[%s2682_s3 + $0xe8] sm:$0xff] }
  0x7e   : > { %v1407_v58 = vpack.c.bf16 %v633_v54, %v627_v53  ;;  %v613_v60 = vld [vmem:[%s2682_s3 + $0x540] sm:$0xff]  ;;  %v480_v21 = vld [vmem:[%s2682_s3 + $0x118] sm:$0xff]  ;;  %v439_v37 = vld [vmem:[%s1968_s23 + $0x30] sm:$0xff] }
  0x7f   : > { %1300 = vmatpush1.bf16.xpose.msra.mxu1 %v1299_v7  ;;  %v625_v9 = vld [vmem:[%s2682_s3 + $0x5a0] sm:$0xff]  ;;  %v440_v33 = vld [vmem:[%s1968_s23 + $0x38] sm:$0xff]  ;;  %v498_v48 = vld [vmem:[%s2682_s3 + $0x1a8] sm:$0xff] }
  0x80   : > { %1302 = vmatprep.subr.bf16.mxu1 %v1301_v10  ;;  %v1391_v10 = vpack.c.bf16 %v585_v6, %v579_v5  ;;  %v468_v5 = vld [vmem:[%s2682_s3 + $0xb8] sm:$0xff]  ;;  %v435_v6 = vld [vmem:[%s1968_s23 + $0x10] sm:$0xff]  ;;  %v2336_v41 = vld [vmem:[%s2326_s20] sm:$0xff] }
  0x81   : > { %v421_v42 = vld [vmem:[%s2681_s2 + $0xa0] sm:$0xff]  ;;  %v504_v49 = vld [vmem:[%s2682_s3 + $0x1d8] sm:$0xff]  ;;  %v406_v53 = vld [vmem:[%s2681_s2 + $0x28] sm:$0xff] }
  0x82   : > { %v423_v54 = vld [vmem:[%s2681_s2 + $0xb0] sm:$0xff] }
  0x83   : > { %1368 = vmatpush1.bf16.xpose.msra.mxu0 %v1367_v1  ;;  %v559_v1 = vld [vmem:[%s2682_s3 + $0x390] sm:$0xff] }
  0x84   : > { %1370 = vmatprep.subr.bf16.mxu0 %v1369_v2  ;;  %v566_v2 = vld [vmem:[%s2682_s3 + $0x3c8] sm:$0xff]  ;;  %v1319_v4 = vpack.c.bf16 %v559_v1, %v553_v0  ;;  %v1339_v0 = vpack.c.bf16 %v619_v61, %v613_v60  ;;  %v449_v1 = vld [vmem:[%s2682_s3 + $0x20] sm:$0xff]  ;;  %v516_v61 = vld [vmem:[%s2682_s3 + $0x238] sm:$0xff] }
  0x85   : > { %v1321_v7 = vpack.c.bf16 %v572_v3, %v566_v2  ;;  %v455_v2 = vld [vmem:[%s2682_s3 + $0x50] sm:$0xff]  ;;  %v510_v60 = vld [vmem:[%s2682_s3 + $0x208] sm:$0xff] }
  0x87   : > { %1304 = vmatpush1.bf16.xpose.msra.mxu1 %v1303_v19 }
  0x88   : > { %1306 = vmatprep.subr.bf16.mxu1 %v1305_v22  ;;  %v1395_v22 = vpack.c.bf16 %v597_v18, %v591_v17  ;;  %v467_v17 = vld [vmem:[%s2682_s3 + $0xb0] sm:$0xff] }
  0x8b   : > { %1372 = vmatpush1.bf16.xpose.msra.mxu0 %v1371_v13  ;;  %v571_v13 = vld [vmem:[%s2682_s3 + $0x3f0] sm:$0xff] }
  0x8c   : > { %1374 = vmatprep.subr.bf16.mxu0 %v1373_v14  ;;  %v578_v14 = vld [vmem:[%s2682_s3 + $0x428] sm:$0xff]  ;;  %v1323_v16 = vpack.c.bf16 %v571_v13, %v565_v12  ;;  %v417_v12 = vld [vmem:[%s2681_s2 + $0x80] sm:$0xff] }
  0x8d   : > { %v1325_v19 = vpack.c.bf16 %v584_v15, %v578_v14  ;;  %v418_v13 = vld [vmem:[%s2681_s2 + $0x88] sm:$0xff]  ;;  %v441_v15 = vld [vmem:[%s1968_s23 + $0x40] sm:$0xff] }
  0x8e   : > { %v1473_v18 = vpack.c.bf16 %v418_v13, %v417_v12  ;;  %v409_v12 = vld [vmem:[%s2681_s2 + $0x40] sm:$0xff]  ;;  %v410_v13 = vld [vmem:[%s2681_s2 + $0x48] sm:$0xff] }
  0x8f   : > { %1308 = vmatpush1.bf16.xpose.msra.mxu1 %v1307_v31 }
  0x90   : > { %1310 = vmatprep.subr.bf16.mxu1 %v1309_v34  ;;  %v1399_v34 = vpack.c.bf16 %v609_v30, %v603_v29  ;;  %v473_v30 = vld [vmem:[%s2682_s3 + $0xe0] sm:$0xff] }
  0x93   : > { %1376 = vmatpush1.bf16.xpose.msra.mxu0 %v1375_v25  ;;  %v583_v25 = vld [vmem:[%s2682_s3 + $0x450] sm:$0xff] }
  0x94   : > { %1378 = vmatprep.subr.bf16.mxu0 %v1377_v26  ;;  %v590_v26 = vld [vmem:[%s2682_s3 + $0x488] sm:$0xff]  ;;  %v1327_v28 = vpack.c.bf16 %v583_v25, %v577_v24  ;;  %v401_v24 = vld [vmem:[%s2681_s2] sm:$0xff] }
  0x95   : > { %v1329_v31 = vpack.c.bf16 %v596_v27, %v590_v26  ;;  %v402_v25 = vld [vmem:[%s2681_s2 + $0x8] sm:$0xff]  ;;  %v419_v26 = vld [vmem:[%s2681_s2 + $0x90] sm:$0xff]  ;;  %v420_v27 = vld [vmem:[%s2681_s2 + $0x98] sm:$0xff] }
  0x96   : > { %v1475_v29 = vpack.c.bf16 %v402_v25, %v401_v24  ;;  %v1477_v32 = vpack.c.bf16 %v420_v27, %v419_v26  ;;  %v411_v24 = vld [vmem:[%s2681_s2 + $0x50] sm:$0xff]  ;;  %v412_v25 = vld [vmem:[%s2681_s2 + $0x58] sm:$0xff]  ;;  %v429_v26 = vld [vmem:[%s2681_s2 + $0xe0] sm:$0xff] }
  0x97   : > { %1312 = vmatpush1.bf16.xpose.msra.mxu1 %v1311_v44  ;;  %v628_v44 = vld [vmem:[%s2682_s3 + $0x5b8] sm:$0xff]  ;;  %v430_v27 = vld [vmem:[%s2681_s2 + $0xe8] sm:$0xff] }
  0x98   : > { %1314 = vmatprep.subr.bf16.mxu1 %v1313_v47  ;;  %v1405_v47 = vpack.c.bf16 %v634_v45, %v628_v44  ;;  %v485_v45 = vld [vmem:[%s2682_s3 + $0x140] sm:$0xff] }
  0x9b   : > { %1380 = vmatpush1.bf16.xpose.msra.mxu0 %v1379_v38  ;;  %v602_v38 = vld [vmem:[%s2682_s3 + $0x4e8] sm:$0xff] }
  0x9c   : > { %1382 = vmatprep.subr.bf16.mxu0 %v1381_v39  ;;  %v608_v39 = vld [vmem:[%s2682_s3 + $0x518] sm:$0xff] }
  0x9d   : > { %v1333_v43 = vpack.c.bf16 %v608_v39, %v602_v38  ;;  %v403_v39 = vld [vmem:[%s2681_s2 + $0x10] sm:$0xff] }
  0x9f   : > { %1316 = vmatpush1.bf16.xpose.msra.mxu1 %v1315_v56  ;;  %v450_v56 = vld [vmem:[%s2682_s3 + $0x28] sm:$0xff] }
  0xa0   : > { %1318 = vmatprep.subr.bf16.mxu1 %v1317_v59  ;;  %v1409_v59 = vpack.c.bf16 %v456_v57, %v450_v56  ;;  %v497_v57 = vld [vmem:[%s2682_s3 + $0x1a0] sm:$0xff] }
  0xa3   : > { %1384 = vmatpush1.bf16.xpose.msra.mxu0 %v1383_v50  ;;  %v614_v50 = vld [vmem:[%s2682_s3 + $0x548] sm:$0xff] }
  0xa4   : > { %1386 = vmatprep.subr.bf16.mxu0 %v1385_v51  ;;  %v620_v51 = vld [vmem:[%s2682_s3 + $0x578] sm:$0xff] }
  0xa5   : > { %v1337_v55 = vpack.c.bf16 %v620_v51, %v614_v50  ;;  %v1425_v51 = vpack.c.bf16 %v504_v49, %v498_v48  ;;  %v415_v49 = vld [vmem:[%s2681_s2 + $0x70] sm:$0xff] }
  0xa7   : > { %1320 = vmatpush1.bf16.xpose.msra.mxu1 %v1319_v4  ;;  %v462_v4 = vld [vmem:[%s2682_s3 + $0x88] sm:$0xff] }
  0xa8   : > { %1322 = vmatprep.subr.bf16.mxu1 %v1321_v7  ;;  %v1411_v7 = vpack.c.bf16 %v455_v2, %v449_v1  ;;  %v1413_v8 = vpack.c.bf16 %v468_v5, %v462_v4  ;;  %v408_v1 = vld [vmem:[%s2681_s2 + $0x38] sm:$0xff]  ;;  %v425_v2 = vld [vmem:[%s2681_s2 + $0xc0] sm:$0xff] }
  0xa9   : > { %v509_v5 = vld [vmem:[%s2682_s3 + $0x200] sm:$0xff] }
  0xab   : > { %1388 = vmatpush1.bf16.xpose.msra.mxu0 %v1387_v62  ;;  %v626_v62 = vld [vmem:[%s2682_s3 + $0x5a8] sm:$0xff] }
  0xac   : > { %1390 = vmatprep.subr.bf16.mxu0 %v1389_v63  ;;  %v632_v63 = vld [vmem:[%s2682_s3 + $0x5d8] sm:$0xff] }
  0xad   : > { %v1341_v3 = vpack.c.bf16 %v632_v63, %v626_v62  ;;  %v1429_v63 = vpack.c.bf16 %v516_v61, %v510_v60  ;;  %v2502_v60 = vld [vmem:[%s2326_s20 + $0x8] sm:$0xff] }
  0xae   : > { %v582_v61 = vld [vmem:[%s2682_s3 + $0x448] sm:$0xff] }
  0xaf   : > { %1324 = vmatpush1.bf16.xpose.msra.mxu1 %v1323_v16  ;;  %v461_v16 = vld [vmem:[%s2682_s3 + $0x80] sm:$0xff] }
  0xb0   : > { %1326 = vmatprep.subr.bf16.mxu1 %v1325_v19  ;;  %v438_v19 = vld [vmem:[%s1968_s23 + $0x28] sm:$0xff] }
  0xb3   : > { %1392 = vmatpush1.bf16.xpose.msra.mxu0 %v1391_v10  ;;  %v631_v10 = vld [vmem:[%s2682_s3 + $0x5d0] sm:$0xff] }
  0xb4   : > { %1394 = vmatprep.subr.bf16.mxu0 %v1393_v11  ;;  %v442_v11 = vld [vmem:[%s1968_s23 + $0x48] sm:$0xff]  ;;  %v1343_v14 = vpack.c.bf16 %v631_v10, %v625_v9  ;;  %v528_v9 = vld [vmem:[%s2682_s3 + $0x298] sm:$0xff] }
  0xb7   : > { %1328 = vmatpush1.bf16.xpose.msra.mxu1 %v1327_v28  ;;  %v433_v28 = vld [vmem:[%s1968_s23] sm:$0xff] }
  0xb8   : > { %1330 = vmatprep.subr.bf16.mxu1 %v1329_v31  ;;  %v479_v31 = vld [vmem:[%s2682_s3 + $0x110] sm:$0xff] }
  0xb9   : > { %v1419_v36 = vpack.c.bf16 %v479_v31, %v473_v30  ;;  %v539_v30 = vld [vmem:[%s2682_s3 + $0x2f0] sm:$0xff]  ;;  %v1497_v31 = vpack.c.bf16 %v430_v27, %v429_v26  ;;  %v969_v27 = vld [vmem:[%s2684_s5 + $0x20] sm:$0xff] }
  0xbb   : > { %1396 = vmatpush1.bf16.xpose.msra.mxu0 %v1395_v22  ;;  %v1415_v22 = vpack.c.bf16 %v467_v17, %v461_v16  ;;  %v1491_v16 = vpack.c.bf16 %v410_v13, %v409_v12  ;;  %v521_v17 = vld [vmem:[%s2682_s3 + $0x260] sm:$0xff]  ;;  %v966_v13 = vld [vmem:[%s2684_s5 + $0x8] sm:$0xff] }
  0xbc   : > { %1398 = vmatprep.subr.bf16.mxu0 %v1397_v23  ;;  %v1417_v23 = vpack.c.bf16 %v480_v21, %v474_v20  ;;  %v534_v20 = vld [vmem:[%s2682_s3 + $0x2c8] sm:$0xff]  ;;  %v540_v21 = vld [vmem:[%s2682_s3 + $0x2f8] sm:$0xff] }
  0xbf   : > { %1332 = vmatpush1.bf16.xpose.msra.mxu1 %v1331_v40  ;;  %v404_v40 = vld [vmem:[%s2681_s2 + $0x18] sm:$0xff] }
  0xc0   : > { %1334 = vmatprep.subr.bf16.mxu1 %v1333_v43  ;;  %v422_v43 = vld [vmem:[%s2681_s2 + $0xa8] sm:$0xff]  ;;  %v1479_v44 = vpack.c.bf16 %v404_v40, %v403_v39  ;;  %v432_v39 = vld [vmem:[%s2681_s2 + $0xf8] sm:$0xff] }
  0xc3   : > { %1400 = vmatpush1.bf16.xpose.msra.mxu0 %v1399_v34  ;;  %v486_v34 = vld [vmem:[%s2682_s3 + $0x148] sm:$0xff] }
  0xc4   : > { %1402 = vmatprep.subr.bf16.mxu0 %v1401_v35  ;;  %v492_v35 = vld [vmem:[%s2682_s3 + $0x178] sm:$0xff] }
  0xc5   : > { %v1421_v38 = vpack.c.bf16 %v492_v35, %v486_v34 }
  0xc7   : > { %1336 = vmatpush1.bf16.xpose.msra.mxu1 %v1335_v52  ;;  %v405_v52 = vld [vmem:[%s2681_s2 + $0x20] sm:$0xff] }
  0xc8   : > { %1338 = vmatprep.subr.bf16.mxu1 %v1337_v55  ;;  %v424_v55 = vld [vmem:[%s2681_s2 + $0xb8] sm:$0xff]  ;;  %v1483_v56 = vpack.c.bf16 %v406_v53, %v405_v52  ;;  %v557_v52 = vld [vmem:[%s2682_s3 + $0x380] sm:$0xff]  ;;  %v563_v53 = vld [vmem:[%s2682_s3 + $0x3b0] sm:$0xff] }
  0xcb   : > { %1404 = vmatpush1.bf16.xpose.msra.mxu0 %v1403_v46  ;;  %v491_v46 = vld [vmem:[%s2682_s3 + $0x170] sm:$0xff] }
  0xcc   : > { %1406 = vmatprep.subr.bf16.mxu0 %v1405_v47  ;;  %v1481_v47 = vpack.c.bf16 %v422_v43, %v421_v42  ;;  %v1423_v50 = vpack.c.bf16 %v491_v46, %v485_v45  ;;  %v545_v42 = vld [vmem:[%s2682_s3 + $0x320] sm:$0xff]  ;;  %v551_v43 = vld [vmem:[%s2682_s3 + $0x350] sm:$0xff]  ;;  %v558_v45 = vld [vmem:[%s2682_s3 + $0x388] sm:$0xff] }
  0xcd   : > { %v564_v46 = vld [vmem:[%s2682_s3 + $0x3b8] sm:$0xff] }
  0xce   : > { %v1445_v48 = vpack.c.bf16 %v564_v46, %v558_v45 }
  0xcf   : > { %1340 = vmatpush1.bf16.xpose.msra.mxu1 %v1339_v0  ;;  %v407_v0 = vld [vmem:[%s2681_s2 + $0x30] sm:$0xff] }
  0xd0   : > { %1342 = vmatprep.subr.bf16.mxu1 %v1341_v3  ;;  %v426_v3 = vld [vmem:[%s2681_s2 + $0xc8] sm:$0xff]  ;;  %v1487_v4 = vpack.c.bf16 %v408_v1, %v407_v0  ;;  %v581_v1 = vld [vmem:[%s2682_s3 + $0x440] sm:$0xff] }
  0xd3   : > { %1408 = vmatpush1.bf16.xpose.msra.mxu0 %v1407_v58  ;;  %v503_v58 = vld [vmem:[%s2682_s3 + $0x1d0] sm:$0xff] }
  0xd4   : > { %1410 = vmatprep.subr.bf16.mxu0 %v1409_v59  ;;  %v1485_v59 = vpack.c.bf16 %v424_v55, %v423_v54  ;;  %v1427_v62 = vpack.c.bf16 %v503_v58, %v497_v57  ;;  %v570_v54 = vld [vmem:[%s2682_s3 + $0x3e8] sm:$0xff]  ;;  %v576_v55 = vld [vmem:[%s2682_s3 + $0x418] sm:$0xff]  ;;  %v569_v58 = vld [vmem:[%s2682_s3 + $0x3e0] sm:$0xff] }
  0xd5   : > { %v1449_v57 = vpack.c.bf16 %v576_v55, %v570_v54 }
  0xd7   : > { %1344 = vmatpush1.bf16.xpose.msra.mxu1 %v1343_v14  ;;  %v427_v14 = vld [vmem:[%s2681_s2 + $0xd0] sm:$0xff] }
  0xd8   : > { %1474 = vmatprep.subr.bf16.mxu1 %v1473_v18  ;;  %v527_v18 = vld [vmem:[%s2682_s3 + $0x290] sm:$0xff] }
  0xda   : > { %779 = vmatmul.mubr.f32.vlgmr.msra.gmra.mrb[0].mxu0 %v435_v6  ;;  %v515_v6 = vld [vmem:[%s2682_s3 + $0x230] sm:$0xff] }
  0xdb   : > { %1412 = vmatpush1.bf16.xpose.msra.mxu0 %v1411_v7  ;;  %784 = vmatprep.mubr.f32.mxu0 %v442_v11  ;;  %v1489_v7 = vpack.c.bf16 %v426_v3, %v425_v2  ;;  %v1431_v10 = vpack.c.bf16 %v515_v6, %v509_v5  ;;  %v587_v2 = vld [vmem:[%s2682_s3 + $0x470] sm:$0xff]  ;;  %v594_v3 = vld [vmem:[%s2682_s3 + $0x4a8] sm:$0xff] }
  0xdc   : > { %1414 = vmatprep.subr.bf16.mxu0 %v1413_v8  ;;  %v522_v8 = vld [vmem:[%s2682_s3 + $0x268] sm:$0xff]  ;;  %v1455_v5 = vpack.c.bf16 %v587_v2, %v581_v1  ;;  %v985_v2 = vld [vmem:[%s2684_s5 + $0xa0] sm:$0xff] }
  0xdd   : > { %v1433_v11 = vpack.c.bf16 %v528_v9, %v522_v8  ;;  %v599_v8 = vld [vmem:[%s2682_s3 + $0x4d0] sm:$0xff]  ;;  %v606_v9 = vld [vmem:[%s2682_s3 + $0x508] sm:$0xff] }
  0xde   : > { %785 = vmatmul.mubr.f32.gmra.mrb[2].mxu0 %v441_v15  ;;  %702 = vmatmul.mubr.f32.vlgmr.msra.gmra.mrb[0].mxu1 %v433_v28  ;;  %v428_v15 = vld [vmem:[%s2681_s2 + $0xd8] sm:$0xff]  ;;  %v1495_v28 = vpack.c.bf16 %v412_v25, %v411_v24  ;;  %v618_v24 = vld [vmem:[%s2682_s3 + $0x568] sm:$0xff] }
  0xdf   : > { %855 = vmatprep.mubr.f32.mxu0 %v438_v19  ;;  %1476 = vmatpush3.bf16.xpose.msra.mxu1 %v1475_v29  ;;  %v1493_v19 = vpack.c.bf16 %v428_v15, %v427_v14  ;;  %v533_v29 = vld [vmem:[%s2682_s3 + $0x2c0] sm:$0xff]  ;;  %v968_v14 = vld [vmem:[%s2684_s5 + $0x18] sm:$0xff] }
  0xe0   : > { %707 = vmatprep.mubr.f32.mxu1 %v440_v33  ;;  %1478 = vmatprep.subr.bf16.mxu1 %v1477_v32  ;;  %v546_v32 = vld [vmem:[%s2682_s3 + $0x328] sm:$0xff]  ;;  %v552_v33 = vld [vmem:[%s2682_s3 + $0x358] sm:$0xff]  ;;  %v1439_v34 = vpack.c.bf16 %v539_v30, %v533_v29  ;;  %v965_v15 = vld [vmem:[%s2684_s5] sm:$0xff] }
  0xe1   : > { %v1441_v35 = vpack.c.bf16 %v552_v33, %v546_v32  ;;  %v624_v25 = vld [vmem:[%s2682_s3 + $0x598] sm:$0xff]  ;;  %v974_v30 = vld [vmem:[%s2684_s5 + $0x48] sm:$0xff] }
  0xe2   : > { %708 = vmatmul.mubr.f32.gmra.mrb[2].mxu1 %v439_v37  ;;  %v414_v37 = vld [vmem:[%s2681_s2 + $0x68] sm:$0xff]  ;;  %v1465_v29 = vpack.c.bf16 %v624_v25, %v618_v24  ;;  %v947_v25 = vlaneseq }
  0xe3   : > { %1416 = vmatpush1.bf16.xpose.msra.mxu0 %v1415_v22  ;;  %1277 = vmatprep.mubr.f32.mxu1 %v2336_v41  ;;  %v1435_v22 = vpack.c.bf16 %v527_v18, %v521_v17  ;;  %v967_v17 = vld [vmem:[%s2684_s5 + $0x10] sm:$0xff]  ;;  %v970_v18 = vld [vmem:[%s2684_s5 + $0x28] sm:$0xff] }
  0xe4   : > { %1418 = vmatprep.subr.bf16.mxu0 %v1417_v23  ;;  %v1437_v23 = vpack.c.bf16 %v540_v21, %v534_v20  ;;  %v605_v20 = vld [vmem:[%s2682_s3 + $0x500] sm:$0xff]  ;;  %v611_v21 = vld [vmem:[%s2682_s3 + $0x530] sm:$0xff] }
  0xe5   : > { %v1463_v26 = vpack.c.bf16 %v611_v21, %v605_v20 }
  0xe7   : > { %1480 = vmatpush3.bf16.xpose.msra.mxu1 %v1479_v44 }
  0xe8   : > { %1482 = vmatprep.subr.bf16.mxu1 %v1481_v47  ;;  %v1443_v47 = vpack.c.bf16 %v551_v43, %v545_v42  ;;  %v978_v43 = vld [vmem:[%s2684_s5 + $0x68] sm:$0xff] }
  0xeb   : > { %1420 = vmatpush1.bf16.xpose.msra.mxu0 %v1419_v36  ;;  %v413_v36 = vld [vmem:[%s2681_s2 + $0x60] sm:$0xff] }
  0xec   : > { %1422 = vmatprep.subr.bf16.mxu0 %v1421_v38  ;;  %v431_v38 = vld [vmem:[%s2681_s2 + $0xf0] sm:$0xff]  ;;  %v1499_v40 = vpack.c.bf16 %v414_v37, %v413_v36  ;;  %v630_v36 = vld [vmem:[%s2682_s3 + $0x5c8] sm:$0xff]  ;;  %v636_v37 = vld [vmem:[%s2682_s3 + $0x5f8] sm:$0xff] }
  0xed   : > { %v1501_v44 = vpack.c.bf16 %v432_v39, %v431_v38  ;;  %v973_v39 = vld [vmem:[%s2684_s5 + $0x40] sm:$0xff]  ;;  %v1469_v42 = vpack.c.bf16 %v636_v37, %v630_v36 }
  0xef   : > { %1484 = vmatpush3.bf16.xpose.msra.mxu1 %v1483_v56  ;;  %v1447_v56 = vpack.c.bf16 %v563_v53, %v557_v52  ;;  %v982_v52 = vld [vmem:[%s2684_s5 + $0x88] sm:$0xff]  ;;  %v984_v53 = vld [vmem:[%s2684_s5 + $0x98] sm:$0xff] }
  0xf0   : > { %1486 = vmatprep.subr.bf16.mxu1 %v1485_v59  ;;  %v575_v59 = vld [vmem:[%s2682_s3 + $0x410] sm:$0xff]  ;;  %v1521_v55 = vpack.c.bf16 %v984_v53, %v982_v52  ;;  %v1240_v53 = vld [vmem:[#allocation2] ss:$0 sm:$0xff] }
  0xf3   : > { %1424 = vmatpush1.bf16.xpose.msra.mxu0 %v1423_v50  ;;  %v416_v50 = vld [vmem:[%s2681_s2 + $0x78] sm:$0xff] }
  0xf4   : > { %1426 = vmatprep.subr.bf16.mxu0 %v1425_v51  ;;  %v1503_v51 = vpack.c.bf16 %v416_v50, %v415_v49  ;;  %v977_v50 = vld [vmem:[%s2684_s5 + $0x60] sm:$0xff] }
  0xf7   : > { %1488 = vmatpush3.bf16.xpose.msra.mxu1 %v1487_v4  ;;  %v600_v4 = vld [vmem:[%s2682_s3 + $0x4d8] sm:$0xff] }
  0xf8   : > { %1490 = vmatprep.subr.bf16.mxu1 %v1489_v7  ;;  %v1457_v6 = vpack.c.bf16 %v600_v4, %v594_v3  ;;  %v593_v7 = vld [vmem:[%s2682_s3 + $0x4a0] sm:$0xff]  ;;  %v987_v3 = vld [vmem:[%s2684_s5 + $0xb0] sm:$0xff]  ;;  %v990_v4 = vld [vmem:[%s2684_s5 + $0xc8] sm:$0xff] }
  0xfb   : > { %1428 = vmatpush1.bf16.xpose.msra.mxu0 %v1427_v62  ;;  %v588_v62 = vld [vmem:[%s2682_s3 + $0x478] sm:$0xff] }
  0xfc   : > { %1430 = vmatprep.subr.bf16.mxu0 %v1429_v63  ;;  %v1451_v63 = vpack.c.bf16 %v575_v59, %v569_v58  ;;  %v1453_v0 = vpack.c.bf16 %v588_v62, %v582_v61  ;;  %v983_v58 = vld [vmem:[%s2684_s5 + $0x90] sm:$0xff]  ;;  %v444_v59 = vld [vmem:[%s1968_s23 + $0x58] sm:$0xff]  ;;  %v986_v61 = vld [vmem:[%s2684_s5 + $0xa8] sm:$0xff] }
  0xfd   : > { %v988_v62 = vld [vmem:[%s2684_s5 + $0xb8] sm:$0xff] }
  0xfe   : > { %v1525_v1 = vpack.c.bf16 %v988_v62, %v986_v61 }
  0xff   : > { %1492 = vmatpush3.bf16.xpose.msra.mxu1 %v1491_v16  ;;  %v1505_v16 = vpack.c.bf16 %v968_v14, %v966_v13  ;;  %v993_v14 = vld [vmem:[%s2684_s5 + $0xe0] sm:$0xff] }
 0x100   : > { %1494 = vmatprep.subr.bf16.mxu1 %v1493_v19  ;;  %v972_v19 = vld [vmem:[%s2684_s5 + $0x38] sm:$0xff] }
 0x103   : > { %1432 = vmatpush1.bf16.xpose.msra.mxu0 %v1431_v10  ;;  %v612_v10 = vld [vmem:[%s2682_s3 + $0x538] sm:$0xff] }
 0x104   : > { %1434 = vmatprep.subr.bf16.mxu0 %v1433_v11  ;;  %v1459_v11 = vpack.c.bf16 %v599_v8, %v593_v7  ;;  %v1461_v12 = vpack.c.bf16 %v612_v10, %v606_v9  ;;  %v989_v8 = vld [vmem:[%s2684_s5 + $0xc0] sm:$0xff]  ;;  %v991_v9 = vld [vmem:[%s2684_s5 + $0xd0] sm:$0xff] }
 0x105   : > { %v1531_v10 = vpack.c.bf16 %v991_v9, %v989_v8 }
 0x107   : > { %1496 = vmatpush3.bf16.xpose.msra.mxu1 %v1495_v28  ;;  %v971_v28 = vld [vmem:[%s2684_s5 + $0x30] sm:$0xff] }
 0x108   : > { %1498 = vmatprep.subr.bf16.mxu1 %v1497_v31  ;;  %v976_v31 = vld [vmem:[%s2684_s5 + $0x58] sm:$0xff]  ;;  %v1511_v32 = vpack.c.bf16 %v971_v28, %v969_v27  ;;  %v945_v28 = vld [vmem:[%s2683_s4] sm:$0x3] }
 0x109   : > { %v1513_v33 = vpack.c.bf16 %v976_v31, %v974_v30 }
 0x10b   : > { %1436 = vmatpush1.bf16.xpose.msra.mxu0 %v1435_v22  ;;  %v1507_v22 = vpack.c.bf16 %v967_v17, %v965_v15  ;;  %v995_v15 = vld [vmem:[%s2684_s5 + $0xf0] sm:$0xff] }
 0x10c   : > { %1438 = vmatprep.subr.bf16.mxu0 %v1437_v23  ;;  %v1509_v23 = vpack.c.bf16 %v972_v19, %v970_v18 }
 0x10f   : > { %1500 = vmatpush3.bf16.xpose.msra.mxu1 %v1499_v40  ;;  %v975_v40 = vld [vmem:[%s2684_s5 + $0x50] sm:$0xff] }
 0x110   : > { %1502 = vmatprep.subr.bf16.mxu1 %v1501_v44  ;;  %v980_v44 = vld [vmem:[%s2684_s5 + $0x78] sm:$0xff]  ;;  %v1515_v45 = vpack.c.bf16 %v975_v40, %v973_v39 }
 0x111   : > { %v1517_v46 = vpack.c.bf16 %v980_v44, %v978_v43 }
 0x113   : > { %1440 = vmatpush1.bf16.xpose.msra.mxu0 %v1439_v34  ;;  %v617_v34 = vld [vmem:[%s2682_s3 + $0x560] sm:$0xff] }
 0x114   : > { %1442 = vmatprep.subr.bf16.mxu0 %v1441_v35  ;;  %v623_v35 = vld [vmem:[%s2682_s3 + $0x590] sm:$0xff] }
 0x115   : > { %v1467_v38 = vpack.c.bf16 %v623_v35, %v617_v34 }
 0x117   : > { %1504 = vmatpush3.bf16.xpose.msra.mxu1 %v1503_v51  ;;  %v979_v51 = vld [vmem:[%s2684_s5 + $0x70] sm:$0xff] }
 0x118   : > { %1506 = vmatprep.subr.bf16.mxu1 %v1505_v16  ;;  %v1519_v54 = vpack.c.bf16 %v979_v51, %v977_v50  ;;  %v1535_v16 = vpack.c.bf16 %v995_v15, %v993_v14  ;;  %v1242_v14 = vld [vmem:[#allocation6] ss:$0 sm:$0xff] }
 0x11b   : > { %1444 = vmatpush1.bf16.xpose.msra.mxu0 %v1443_v47  ;;  %v629_v47 = vld [vmem:[%s2682_s3 + $0x5c0] sm:$0xff] }
 0x11c   : > { %1446 = vmatprep.subr.bf16.mxu0 %v1445_v48  ;;  %v635_v48 = vld [vmem:[%s2682_s3 + $0x5f0] sm:$0xff] }
 0x11d   : > { %v1471_v49 = vpack.c.bf16 %v635_v48, %v629_v47 }
 0x11e   : > { %1278 = vmatmul.mubr.f32.vlgmr.msra.gmra.mrb[4].mxu1 %v2336_v41 }
 0x11f   : > { %1279 = vmatprep.mubr.f32.mxu1 %v2502_v60  ;;  %1508 = vmatpush1.bf16.xpose.msra.mxu1 %v1507_v22 }
 0x120   : > { %1510 = vmatprep.subr.bf16.mxu1 %v1509_v23 }
 0x122   : > { %1280 = vmatmul.mubr.f32.gmra.mrb[6].mxu1 %v2502_v60 }
 0x123   : > { %1448 = vmatpush1.bf16.xpose.msra.mxu0 %v1447_v56  ;;  %v437_v56 = vld [vmem:[%s1968_s23 + $0x20] sm:$0xff] }
 0x124   : > { %1450 = vmatprep.subr.bf16.mxu0 %v1449_v57  ;;  %v981_v57 = vld [vmem:[%s2684_s5 + $0x80] sm:$0xff] }
 0x127   : > { %1512 = vmatpush1.bf16.xpose.msra.mxu1 %v1511_v32 }
 0x128   : > { %1514 = vmatprep.subr.bf16.mxu1 %v1513_v33 }
 0x12b   : > { %1452 = vmatpush1.bf16.xpose.msra.mxu0 %v1451_v63  ;;  %v1523_v63 = vpack.c.bf16 %v983_v58, %v981_v57 }
 0x12c   : > { %1454 = vmatprep.subr.bf16.mxu0 %v1453_v0  ;;  %v443_v0 = vld [vmem:[%s1968_s23 + $0x50] sm:$0xff] }
 0x12f   : > { %1516 = vmatpush1.bf16.xpose.msra.mxu1 %v1515_v45 }
 0x130   : > { %1518 = vmatprep.subr.bf16.mxu1 %v1517_v46 }
 0x133   : > { %1456 = vmatpush1.bf16.xpose.msra.mxu0 %v1455_v5  ;;  %v992_v5 = vld [vmem:[%s2684_s5 + $0xd8] sm:$0xff] }
 0x134   : > { %1458 = vmatprep.subr.bf16.mxu0 %v1457_v6  ;;  %v1527_v6 = vpack.c.bf16 %v987_v3, %v985_v2  ;;  %v1529_v7 = vpack.c.bf16 %v992_v5, %v990_v4 }
 0x137   : > { %1520 = vmatpush1.bf16.xpose.msra.mxu1 %v1519_v54 }
 0x138   : > { %1522 = vmatprep.subr.bf16.mxu1 %v1521_v55 }
 0x13b   : > { %1460 = vmatpush1.bf16.xpose.msra.mxu0 %v1459_v11  ;;  %v994_v11 = vld [vmem:[%s2684_s5 + $0xe8] sm:$0xff] }
 0x13c   : > { %1462 = vmatprep.subr.bf16.mxu0 %v1461_v12  ;;  %v996_v12 = vld [vmem:[%s2684_s5 + $0xf8] sm:$0xff] }
 0x13d   : > { %v1533_v13 = vpack.c.bf16 %v996_v12, %v994_v11  ;;  %v1241_v12 = vld [vmem:[#allocation4] ss:$0 sm:$0xff] }
 0x13f   : > { %1524 = vmatpush1.bf16.xpose.msra.mxu1 %v1523_v63 }
 0x140   : > { %1526 = vmatprep.subr.bf16.mxu1 %v1525_v1 }
 0x143   : > { %1464 = vmatpush1.bf16.xpose.msra.mxu0 %v1463_v26  ;;  %v948_v26 = vshrl.u32 %v947_v25, 7 }
 0x144   : > { %1466 = vmatprep.subr.bf16.mxu0 %v1465_v29 }
 0x145   : > { %v949_v27 = vsub.s32 0, %v948_v26  ;;  %v953_v29 = vsub.s32 1, %v948_v26 }
 0x147   : > { %1528 = vmatpush1.bf16.xpose.msra.mxu1 %v1527_v6  ;;  %v950_v33 = vrot.slane %v945_v28, %v949_v27  ;;  %v954_v35 = vrot.slane %v945_v28, %v953_v29 }
 0x148   : > { %1530 = vmatprep.subr.bf16.mxu1 %v1529_v7 }
 0x14b   : > { %1468 = vmatpush1.bf16.xpose.msra.mxu0 %v1467_v38 }
 0x14c   : > { %1470 = vmatprep.subr.bf16.mxu0 %v1469_v42 }
 0x14f   : > { %1532 = vmatpush1.bf16.xpose.msra.mxu1 %v1531_v10 }
 0x150   : > { %1534 = vmatprep.subr.bf16.mxu1 %v1533_v13 }
 0x153   : > { %1472 = vmatpush1.bf16.xpose.msra.mxu0 %v1471_v49 }
 0x157   : > { %1536 = vmatpush1.bf16.xpose.msra.mxu1 %v1535_v16 }
 0x15a   : > { %856 = vmatmul.mubr.f32.vlgmr.msra.gmra.mrb[0].mxu0 %v437_v56 }
 0x15b   : > { %861 = vmatprep.mubr.f32.mxu0 %v444_v59 }
 0x15e   : > { %862 = vmatmul.mubr.f32.gmra.mrb[2].mxu0 %v443_v0 }
 0x1b1   : > { %v703_v17 = vpop.f32.mrb[0].mxu1 }
 0x1b2   : > { %v705_v18 = vpop.f32.mrb[1].mxu1 }
 0x1b5   : > { %v709_v19 = vpop.f32.mrb[2].mxu1 }
 0x1b6   : > { %v711_v20 = vpop.f32.mrb[3].mxu1 }
 0x1f1   : > { %v934_v21 = vpop.f32.mrb[4].mxu1 }
 0x1f2   : > { %v936_v22 = vpop.f32.mrb[5].mxu1 }
 0x1f5   : > { %v940_v23 = vpop.f32.mrb[6].mxu1 }
 0x1f6   : > { %v942_v24 = vpop.f32.mrb[7].mxu1 }
 0x22d   : > { %v857_v30 = vpop.f32.mrb[0].mxu0 }
 0x22e   : > { %v1537_v31 = vadd.f32 %v857_v30, %v703_v17  ;;  %v859_v32 = vpop.f32.mrb[1].mxu0 }
 0x22f   : > { %v1539_v34 = vadd.f32 %v859_v32, %v705_v18 }
 0x230   : > { %v1538_v36 = vadd.f32 %v1537_v31, %v934_v21 }
 0x231   : > { %v1540_v37 = vadd.f32 %v1539_v34, %v936_v22  ;;  %v863_v38 = vpop.f32.mrb[2].mxu0 }
 0x232   : > { %v957_v39 = vadd.f32 %v1538_v36, %v950_v33  ;;  %v1541_v40 = vadd.f32 %v863_v38, %v709_v19  ;;  %v865_v42 = vpop.f32.mrb[3].mxu0 }
 0x233   : > { %v958_v43 = vadd.f32 %v1540_v37, %v954_v35  ;;  %v1543_v44 = vadd.f32 %v865_v42, %v711_v20 }
 0x234   : > { %v1542_v45 = vadd.f32 %v1541_v40, %v940_v23  ;;  %v961_v48 = vmax.f32 %v957_v39, 0.0 }
 0x235   : > { %v962_v46 = vmax.f32 %v958_v43, 0.0  ;;  %v1544_v47 = vadd.f32 %v1543_v44, %v942_v24 }
 0x236   : > { %v959_v49 = vadd.f32 %v1542_v45, %v950_v33 }
 0x237   : > { %v960_v50 = vadd.f32 %v1544_v47, %v954_v35  ;;  %1068 = vmatprep.mubr.f32.mxu1 %v962_v46 }
 0x238   : > { %1069 = vmatmul.mubr.f32.vlgmr.msra.gmra.mrb[8].mxu1 %v961_v48  ;;  %v963_v52 = vmax.f32 %v959_v49, 0.0 }
 0x239   : > { %v964_v51 = vmax.f32 %v960_v50, 0.0 }
 0x23b   : > { %1073 = vmatprep.mubr.f32.mxu1 %v964_v51 }
 0x23c   : > { %1074 = vmatmul.mubr.f32.gmra.mrb[10].mxu1 %v963_v52 }
 0x30b   : > { %v1070_v54 = vpop.f32.mrb[8].mxu1 }
 0x30c   : > { %v1071_v55 = vadd.f32 %v1240_v53, %v1070_v54  ;;  %v1072_v56 = vpop.f32.mrb[9].mxu1 }
 0x30e   : > { %v1079_v57 = vadd.f32 %v1071_v55, %v2336_v41 }
 0x30f   : > { %v1075_v58 = vpop.f32.mrb[10].mxu1 }
 0x310   : > { %v1076_v59 = vadd.f32 %v1240_v53, %v1075_v58  ;;  %v1077_v61 = vpop.f32.mrb[11].mxu1  ;;  %1083 = vadd.xlane.f32.xlu0 %v1079_v57 }
 0x312   : > { %v1080_v62 = vadd.f32 %v1076_v59, %v2502_v60 }
 0x314   : > { %1085 = vadd.xlane.f32.xlu0 %v1080_v62 }
 0x39d   : > { %v1084_v63 = vpop.xlane.xlu0 %1083 }
 0x39e   : > { %v1088_v0 = vmul.f32 0.0078125, %v1084_v63 }
 0x3a0   : > { %v1090_v1 = vsub.f32 %v1079_v57, %v1088_v0 }
 0x3a1   : > { %v1086_v2 = vpop.xlane.xlu0 %1085 }
 0x3a2   : > { %v1089_v3 = vmul.f32 0.0078125, %v1086_v2  ;;  %v1092_v4 = vmul.f32 %v1090_v1, %v1090_v1 }
 0x3a4   : > { %v1091_v5 = vsub.f32 %v1080_v62, %v1089_v3  ;;  %1094 = vadd.xlane.f32.xlu1 %v1092_v4 }
 0x3a6   : > { %v1093_v6 = vmul.f32 %v1091_v5, %v1091_v5 }
 0x3a8   : > { %1096 = vadd.xlane.f32.xlu1 %v1093_v6 }
 0x431   : > { %v1095_v7 = vpop.xlane.xlu1 %1094 }
 0x432   : > { %v1098_v41 = vmul.f32 0.0078125, %v1095_v7 }
 0x434   : > { %v1100_v8 = vadd.f32 1e-05, %v1098_v41 }
 0x435   : > { %v1097_v9 = vpop.xlane.xlu1 %1096 }
 0x436   : > { %1589 = vrsqrt.f32 %v1100_v8  ;;  %v1099_v10 = vmul.f32 0.0078125, %v1097_v9 }
 0x438   : > { %v1101_v11 = vadd.f32 1e-05, %v1099_v10 }
 0x43a   : > { %1591 = vrsqrt.f32 %v1101_v11 }
 0x440   : > { %v1590_v60 = vpop.eup %1589 }
 0x441   : > { %v1104_v13 = vmul.f32 %v1590_v60, %v1090_v1 }
 0x443   : > { %v1112_v15 = vmul.f32 %v1241_v12, %v1104_v13 }
 0x444   : > { %v1592_v16 = vpop.eup %1591 }
 0x445   : > { %v1120_v17 = vadd.f32 %v1242_v14, %v1112_v15  ;;  %v1105_v18 = vmul.f32 %v1592_v16, %v1091_v5 }
 0x447   : > { %1122 = vst [vmem:[%s397_s26] sm:$0xff] %v1120_v17  ;;  %v1113_v19 = vmul.f32 %v1241_v12, %v1105_v18 }
 0x449   : > { %v1121_v20 = vadd.f32 %v1242_v14, %v1113_v19 }
 0x44b   : > { %1123 = vst [vmem:[%s397_s26 + $0x8] sm:$0xff] %v1121_v20 }
 0x44c PF: > { %s21_s30 = sadd.s32 1, %s1691_s30  }
 0x44d   : > { %p18_p8 = scmp.ge.s32.totalorder %s21_s30, 4  }
 0x44f   :  { %20 = sbr.rel (!%p18_p8) target bundleno = 2 (0x2), region = 102 }
 0x456   :  { %1146 = vsyncpa [#allocation3], 1 }
 0x457   :  { %1148 = vsyncpa [#allocation3 + $0x1], 1 }
 0x458   :  { %1149 = vsyncpa [#allocation5], 1 }

// kernel: transformer_pointnet_forward.7
= control target key start
LH: loop header
LB: loop body
LE: loop exit
PB: predicated region body
PF: predicated region fallthrough
CT: control target
= control target key end

     0   :  { %16 = vsyncpa [#allocation3], 0  ;;  %s6603_s0 = inlined_call_operand.vmem [shape: f32[2,16,128], index: 0, kind: input, shape index: {}]   ;;  %s6604_s1 = inlined_call_operand.hbm [shape: f32[128,128], index: 1, kind: input, shape index: {}]   ;;  %s6605_s2 = inlined_call_operand.hbm [shape: f32[128,128], index: 2, kind: input, shape index: {}]   ;;  %s6606_s3 = inlined_call_operand.hbm [shape: f32[128,128], index: 3, kind: input, shape index: {}]   ;;  %s6607_s4 = inlined_call_operand.vmem [shape: f32[8,16], index: 4, kind: input, shape index: {}]   ;;  %s6608_s5 = inlined_call_operand.vmem [shape: f32[8,16], index: 5, kind: input, shape index: {}]   ;;  %s6609_s6 = inlined_call_operand.vmem [shape: f32[8,16], index: 6, kind: input, shape index: {}]   ;;  %s6610_s7 = inlined_call_operand.vmem [shape: f32[128,128], index: 7, kind: input, shape index: {}]   ;;  %s6611_s8 = inlined_call_operand.hbm [shape: f32[1,128], index: 8, kind: input, shape index: {}]   ;;  %s6612_s9 = inlined_call_operand.hbm [shape: f32[1,128], index: 9, kind: input, shape index: {}]   ;;  %s6613_s10 = inlined_call_operand.hbm [shape: f32[1,128], index: 10, kind: input, shape index: {}]   ;;  %s6614_s11 = inlined_call_operand.vmem [shape: f32[2,16,128], index: 11, kind: output, shape index: {}]  }
   0x1   :  { %17 = vsyncpa [#allocation5], 0 }
   0x2   :  { %18 = vsyncpa [#allocation8], 0 }
   0x3   :  { %19 = vsyncpa [#allocation11], 0  ;;  %s6088_s17 = smov 0  }
   0x4 LB: > { %6618 = sst [smem:[#allocation16_spill]] %s6018_s17  ;;  %s6094_s18 = sadd.s32 4294967295, %s6018_s17   ;;  %s6018_s17 = sphi %s6088_s17, %s25_s17  }
   0x5   : > { %p4823_p0 = scmp.ge.s32.totalorder %s6018_s17, 1  ;;  %p292_p1 = scmp.lt.s32.totalorder %s6018_s17, 3 }
   0x6   : > { %p6616_p2 = scmp.eq.s32.totalorder %s6094_s18, 0  ;;  %s6020_s20 = smov [#allocation4]  }
   0x7   : > { %p6099_p3 = pnand %p4823_p0, %p292_p1  ;;  %s317_s21 = sshll.u32 %s6020_s20, 4  ;;  %s6103_s21 = int_to_ptr.vmem [resolvable:$true] %s317_s21 }
   0x8   : > { %s6021_s22 = smov [#allocation7]   ;;  %s6022_s25 = smov [#allocation2]  }
   0x9   : > { %s6619_s19 = scalar_select %p6099_p3, 1, 0 }
   0xa   : > { %p5711_p4 = pneg %p6099_p3  ;;  %s356_s23 = sshll.u32 %s6021_s22, 4  ;;  %s6107_s23 = int_to_ptr.vmem [resolvable:$true] %s356_s23 }
   0xb   : > { %s304_s26 = sshll.u32 %s6022_s25, 4  ;;  %s6023_s27 = smov [#allocation6]   ;;  %s6115_s26 = int_to_ptr.vmem [resolvable:$true] %s304_s26 }
   0xc   : > { %p6111_p5 = pnand %p6616_p2, %p5711_p4  ;;  %s6117_s28 = sshll.u32 %s6023_s27, 4  ;;  %s331_s28 = int_to_ptr.vmem [resolvable:$true] %s6117_s28 }
   0xd   : > { %s5828_s12 = scalar_lea.hbm %s6605_s2, 2048 }
   0xe   : > { %p5829_p6 = scmp.ne.s32.totalorder %s6605_s2, %s5828_s12  ;;  %p6127_p7 = pneg %p6111_p5 }
   0xf   : > { %p5835_p10 = scmp.lt.u32.totalorder %s5828_s12, %s6605_s2 }
  0x10   : > { %p5831_p8 = pnand %p6127_p7, %p5829_p6 }
  0x12   : > { %p5832_p9 = pneg %p5831_p8 }
  0x14   : > { %p5837_p11 = pnand %p5835_p10, %p5832_p9 }
  0x16   : > { %5840 = shalt.err (!%p5837_p11)
}
  0x17   : > { %s5841_s22 = scalar_lea.vmem %s6103_s21, 2048  ;;  %p5849_p1 = scmp.lt.s32.totalorder %s6103_s21, %s6103_s21 }
  0x18   : > { %p5842_p12 = scmp.ne.s32.totalorder %s6103_s21, %s5841_s22  ;;  %p5850_p4 = scmp.lt.s32.totalorder %s5841_s22, %s5841_s22 }
  0x1a   : > { %p5844_p13 = pnand %p5842_p12, %p6127_p7  ;;  %p5851_p6 = por %p5850_p4, %p5849_p1 }
  0x1c   : > { %p5845_p0 = pneg %p5844_p13 }
  0x1e   : > { %p5852_p8 = pnand %p5851_p6, %p5845_p0 }
  0x20   : > { %5855 = shalt.err (!%p5852_p8)
}
  0x21   : > { %s6024_s25 = smov 128   ;;  %s6025_s27 = smov 8  }
  0x22   : > { %5717 = dma.hbm_to_vmem [thread:$0]  (!%p6111_p5), %s6605_s2, 2048, %s6103_s21, [#allocation5], %s6024_s25, %s6024_s25, %s6025_s27  }
  0x23   : > { %s5856_s14 = scalar_lea.hbm %s6611_s8, 16 }
  0x24   : > { %p5857_p9 = scmp.ne.s32.totalorder %s6611_s8, %s5856_s14  ;;  %p5863_p12 = scmp.lt.u32.totalorder %s5856_s14, %s6611_s8 }
  0x26   : > { %p5859_p10 = pnand %p5857_p9, %p6127_p7 }
  0x28   : > { %p5860_p11 = pneg %p5859_p10 }
  0x2a   : > { %p5865_p13 = pnand %p5863_p12, %p5860_p11 }
  0x2c   : > { %5868 = shalt.err (!%p5865_p13)
}
  0x2d   : > { %s5869_s21 = scalar_lea.vmem %s6107_s23, 16  ;;  %s5876_s29 = scalar_lea.vmem %s6107_s23, 32 }
  0x2e   : > { %p5870_p0 = scmp.ne.s32.totalorder %s6107_s23, %s5869_s21  ;;  %p5877_p6 = scmp.lt.s32.totalorder %s6107_s23, %s6107_s23 }
  0x2f   : > { %p5878_p8 = scmp.lt.s32.totalorder %s5876_s29, %s5869_s21 }
  0x30   : > { %p5872_p1 = pnand %p5870_p0, %p6127_p7 }
  0x31   : > { %p5879_p9 = por %p5878_p8, %p5877_p6 }
  0x32   : > { %p5873_p4 = pneg %p5872_p1 }
  0x34   : > { %p5880_p10 = pnand %p5879_p9, %p5873_p4 }
  0x36   : > { %5883 = shalt.err (!%p5880_p10)
}
  0x37   : > { %5723 = dma.hbm_to_vmem [thread:$0]  (!%p6111_p5), %s6611_s8, 16, %s6107_s23, [#allocation8]  }
  0x38   : > { %s5884_s14 = scalar_lea.hbm %s6604_s1, 2048 }
  0x39   : > { %p5885_p11 = scmp.ne.s32.totalorder %s6604_s1, %s5884_s14  ;;  %p5891_p0 = scmp.lt.u32.totalorder %s5884_s14, %s6604_s1 }
  0x3b   : > { %p5887_p12 = pnand %p5885_p11, %p6127_p7 }
  0x3d   : > { %p5888_p13 = pneg %p5887_p12 }
  0x3f   : > { %p5893_p1 = pnand %p5891_p0, %p5888_p13 }
  0x41   : > { %5896 = shalt.err (!%p5893_p1)
}
  0x42   : > { %s5897_s23 = scalar_lea.vmem %s6115_s26, 2048  ;;  %p5905_p9 = scmp.lt.s32.totalorder %s6115_s26, %s6115_s26 }
  0x43   : > { %p5898_p4 = scmp.ne.s32.totalorder %s6115_s26, %s5897_s23  ;;  %p5906_p10 = scmp.lt.s32.totalorder %s5897_s23, %s5897_s23 }
  0x45   : > { %p5900_p6 = pnand %p5898_p4, %p6127_p7  ;;  %p5907_p11 = por %p5906_p10, %p5905_p9 }
  0x47   : > { %p5901_p8 = pneg %p5900_p6 }
  0x49   : > { %p5908_p12 = pnand %p5907_p11, %p5901_p8 }
  0x4b   : > { %5911 = shalt.err (!%p5908_p12)
}
  0x4c   : > { %5714 = dma.hbm_to_vmem [thread:$0]  (!%p6111_p5), %s6604_s1, 2048, %s6115_s26, [#allocation3], %s6024_s25, %s6024_s25, %s6025_s27  }
  0x4d   : > { %s5912_s13 = scalar_lea.hbm %s6606_s3, 2048 }
  0x4e   : > { %p5913_p13 = scmp.ne.s32.totalorder %s6606_s3, %s5912_s13  ;;  %p5919_p4 = scmp.lt.u32.totalorder %s5912_s13, %s6606_s3 }
  0x50   : > { %p5915_p0 = pnand %p5913_p13, %p6127_p7 }
  0x52   : > { %p5916_p1 = pneg %p5915_p0 }
  0x54   : > { %p5921_p6 = pnand %p5919_p4, %p5916_p1 }
  0x56   : > { %5924 = shalt.err (!%p5921_p6)
}
  0x57   : > { %s5925_s21 = scalar_lea.vmem %s331_s28, 2048  ;;  %p5933_p11 = scmp.lt.s32.totalorder %s331_s28, %s331_s28 }
  0x58   : > { %p5926_p8 = scmp.ne.s32.totalorder %s331_s28, %s5925_s21  ;;  %p5934_p12 = scmp.lt.s32.totalorder %s5925_s21, %s5925_s21 }
  0x5a   : > { %p5928_p9 = pnand %p5926_p8, %p6127_p7  ;;  %p5935_p2 = por %p5934_p12, %p5933_p11 }
  0x5c   : > { %p5929_p10 = pneg %p5928_p9 }
  0x5e   : > { %p5936_p3 = pnand %p5935_p2, %p5929_p10 }
  0x60   : > { %5939 = shalt.err (!%p5936_p3)
}
  0x61   : > { %5720 = dma.hbm_to_vmem [thread:$0]  (!%p6111_p5), %s6606_s3, 2048, %s331_s28, [#allocation5], %s6024_s25, %s6024_s25, %s6025_s27  }
  0x62   : > { %s6026_s29 = smov [#allocation9]   ;;  %s6027_s30 = smov [#allocation10]  }
  0x63   : > { %s367_s17 = sshll.u32 %s6026_s29, 4  ;;  %s378_s12 = sshll.u32 %s6027_s30, 4  ;;  %s368_s17 = int_to_ptr.vmem [resolvable:$true] %s367_s17  ;;  %s379_s12 = int_to_ptr.vmem [resolvable:$true] %s378_s12 }
  0x64   : > { %s5940_s16 = scalar_lea.hbm %s6612_s9, 16 }
  0x65   : > { %p5941_p2 = scmp.ne.s32.totalorder %s6612_s9, %s5940_s16  ;;  %p5947_p0 = scmp.lt.u32.totalorder %s5940_s16, %s6612_s9 }
  0x67   : > { %p5943_p3 = pnand %p5941_p2, %p6127_p7 }
  0x69   : > { %p5944_p13 = pneg %p5943_p3 }
  0x6b   : > { %p5949_p1 = pnand %p5947_p0, %p5944_p13 }
  0x6d   : > { %5952 = shalt.err (!%p5949_p1)
}
  0x6e   : > { %s5953_s28 = scalar_lea.vmem %s368_s17, 16  ;;  %s5960_s25 = scalar_lea.vmem %s368_s17, 32 }
  0x6f   : > { %p5954_p4 = scmp.ne.s32.totalorder %s368_s17, %s5953_s28  ;;  %p5961_p9 = scmp.lt.s32.totalorder %s368_s17, %s368_s17 }
  0x70   : > { %p5962_p10 = scmp.lt.s32.totalorder %s5960_s25, %s5953_s28 }
  0x71   : > { %p5956_p6 = pnand %p5954_p4, %p6127_p7 }
  0x72   : > { %p5963_p11 = por %p5962_p10, %p5961_p9 }
  0x73   : > { %p5957_p8 = pneg %p5956_p6 }
  0x75   : > { %p5964_p12 = pnand %p5963_p11, %p5957_p8 }
  0x77   : > { %5967 = shalt.err (!%p5964_p12)
}
  0x78   : > { %5726 = dma.hbm_to_vmem [thread:$0]  (!%p6111_p5), %s6612_s9, 16, %s368_s17, [#allocation8]  }
  0x79   : > { %s5968_s13 = scalar_lea.hbm %s6613_s10, 16 }
  0x7a   : > { %p5969_p2 = scmp.ne.s32.totalorder %s6613_s10, %s5968_s13  ;;  %p5975_p0 = scmp.lt.u32.totalorder %s5968_s13, %s6613_s10 }
  0x7c   : > { %p5971_p3 = pnand %p5969_p2, %p6127_p7 }
  0x7e   : > { %p5972_p13 = pneg %p5971_p3 }
  0x80   : > { %p5977_p1 = pnand %p5975_p0, %p5972_p13 }
  0x82   : > { %5980 = shalt.err (!%p5977_p1)
}
  0x83   : > { %s5981_s21 = scalar_lea.vmem %s379_s12, 16  ;;  %s5988_s17 = scalar_lea.vmem %s379_s12, 32 }
  0x84   : > { %p5982_p4 = scmp.ne.s32.totalorder %s379_s12, %s5981_s21  ;;  %p5989_p9 = scmp.lt.s32.totalorder %s379_s12, %s379_s12 }
  0x85   : > { %p5990_p10 = scmp.lt.s32.totalorder %s5988_s17, %s5981_s21 }
  0x86   : > { %p5984_p6 = pnand %p5982_p4, %p6127_p7 }
  0x87   : > { %p5991_p11 = por %p5990_p10, %p5989_p9 }
  0x88   : > { %p5985_p8 = pneg %p5984_p6 }
  0x8a   : > { %p5992_p12 = pnand %p5991_p11, %p5985_p8 }
  0x8c   : > { %5995 = shalt.err (!%p5992_p12)
}
  0x8d   : > { %5729 = dma.hbm_to_vmem [thread:$0]  (!%p6111_p5), %s6613_s10, 16, %s379_s12, [#allocation11]  }
  0x8e   : > { %p6622_p2 = scmp.ne.s32.totalorder %s6619_s19, 0 }
  0x8f   : > { %p6623_p3 = scmp.eq.s32.totalorder (!%p6622_p2), %s6094_s18, 0 }
  0x90   : > { %399 = sbr.rel (%p6622_p2) target bundleno = 8299 (0x206b), region = 64 }
  0x97   : > { %6001 = dma.done.wait (%p6623_p3), [#allocation3], 2048   ;;  %p6624_p7 = pmov %p6623_p3 }
  0x98   : > { %p6625_p13 = pmov %p6623_p3 }
  0x99   : > { %6003 = vsyncadd (%p6624_p7), [#allocation3], 4294965248 }
  0x9a   : > { %6005 = dma.done.wait (%p6625_p13), [#allocation5], 4096   ;;  %p6626_p0 = pmov %p6623_p3 }
  0x9c   : > { %6007 = vsyncadd (%p6626_p0), [#allocation5], 4294963200  ;;  %p6627_p1 = pmov %p6626_p0 }
  0x9d   : > { %p6628_p5 = pmov %p6626_p0 }
  0x9e   : > { %6009 = dma.done.wait (%p6627_p1), [#allocation8], 32  }
  0x9f   : > { %6011 = vsyncadd (%p6628_p5), [#allocation8], 4294967264  ;;  %p6629_p4 = pmov %p6626_p0 }
  0xa0   : > { %p6630_p6 = pmov %p6626_p0 }
  0xa1   : > { %6013 = dma.done.wait (%p6629_p4), [#allocation11], 16  }
  0xa2   : > { %6015 = vsyncadd (%p6630_p6), [#allocation11], 4294967280  ;;  %p459_p8 = scmp.lt.s32.totalorder %s6094_s18, 1  ;;  %v553_v0 = vld [vmem:[#allocation4] sm:$0xff]  ;;  %v554_v1 = vld [vmem:[#allocation4 + $0x8] sm:$0xff]  ;;  %vm717_vm0 = vcmask 130048  }
  0xa3   : > { %v5469_v3 = vpack.c.bf16 %v554_v1, %v553_v0  ;;  %v471_v4 = vld [vmem:[#allocation2] sm:$0xff]  ;;  %v472_v5 = vld [vmem:[#allocation2 + $0x8] sm:$0xff]  ;;  %vm6308_vm1 = vmpackc.low %vm717_vm0, %vm717_vm0 }
  0xa4   : > { %s6635_s18 = smov (!%p459_p8, %s6094_s18), 1  ;;  %v5465_v6 = vpack.c.bf16 %v472_v5, %v471_v4  ;;  %v4843_v8 = vld [vmem:[%s6608_s5] ss:$0 sm:$0xff]  ;;  %v636_v21 = vld [vmem:[#allocation6 + $0x8] sm:$0xff]  ;;  %v994_v44 = vld [vmem:[#allocation4 + $0x10] sm:$0xff] }
  0xa5   : > { %s4935_s19 = sshll.u32 %s6635_s18, 4  ;;  %5470 = vmatprep.subr.bf16.mxu1 %v5469_v3  ;;  %v4842_v10 = vld [vmem:[%s6607_s4] ss:$0 sm:$0xff]  ;;  %v995_v45 = vld [vmem:[#allocation4 + $0x18] sm:$0xff]  ;;  %v912_v48 = vld [vmem:[#allocation2 + $0x10] sm:$0xff] }
  0xa6   : > { %s6287_s12 = scalar_lea.vmem %s6603_s0, %s4935_s19  ;;  %5472 = vmatpush3.bf16.xpose.msra.mxu1 %v5469_v3  ;;  %5466 = vmatprep.subr.bf16.mxu0 %v5465_v6  ;;  %v635_v20 = vld [vmem:[#allocation6] sm:$0xff]  ;;  %v5491_v47 = vpack.c.bf16 %v995_v45, %v994_v44  ;;  %v913_v49 = vld [vmem:[#allocation2 + $0x18] sm:$0xff]  ;;  %v911_v44 = vld [vmem:[%s6610_s7 + $0x8] sm:$0xff]  ;;  %s468_s25 = scalar_lea.vmem %s6614_s11, %s4935_s19 }
  0xa7   : > { %v6290_v2 = vld [vmem:[%s6287_s12] sm:$0xff]  ;;  %5468 = vmatpush3.bf16.xpose.msra.mxu0 %v5465_v6  ;;  %v6295_v7 = vld [vmem:[%s6287_s12 + $0x8] sm:$0xff]  ;;  %v5473_v22 = vpack.c.bf16 %v636_v21, %v635_v20  ;;  %v5487_v50 = vpack.c.bf16 %v913_v49, %v912_v48 }
  0xa8   : > { %5140 = vmatprep.mubr.f32.mxu1 %v6290_v2  ;;  %5133 = vmatprep.mubr.f32.mxu0 %v6290_v2  ;;  %v4844_v40 = vld [vmem:[%s6609_s6] ss:$0 sm:$0xff]  ;;  %v4852_v57 = vld [vmem:[%s6608_s5 + $0x1] ss:$0 sm:$0xff] }
  0xa9   : > { %5474 = vmatprep.subr.bf16.mxu0 %v5473_v22  ;;  %v4851_v1 = vld [vmem:[%s6607_s4 + $0x1] ss:$0 sm:$0xff] }
  0xaa   : > { %v1596_v49 = vld [vmem:[#allocation4 + $0x20] sm:$0xff] }
  0xad   : > { %5141 = vmatmul.mubr.f32.vlgmr.msra.gmra.mrb[0].mxu1 %v6295_v7 }
  0xae   : > { %5134 = vmatmul.mubr.f32.vlgmr.msra.gmra.mrb[0].mxu0 %v6295_v7 }
  0xaf   : > { %5147 = vmatprep.mubr.f32.mxu0 %v6290_v2  ;;  %5476 = vmatpush3.bf16.xpose.msra.mxu0 %v5473_v22 }
  0xb0   : > { %5492 = vmatprep.subr.bf16.mxu0 %v5491_v47 }
  0xb6   : > { %5148 = vmatmul.mubr.f32.vlgmr.msra.gmra.mrb[2].mxu0 %v6295_v7 }
  0xb7   : > { %5175 = vmatprep.mubr.f32.mxu0 %v6290_v2  ;;  %5494 = vmatpush3.bf16.xpose.msra.mxu0 %v5491_v47  ;;  %v1515_v47 = vld [vmem:[#allocation2 + $0x28] sm:$0xff] }
  0xbe   : > { %5176 = vmatmul.mubr.f32.vlgmr.msra.gmra.mrb[4].mxu0 %v6295_v7 }
 0x180   : > { %v5142_v9 = vpop.f32.mrb[0].mxu1 }
 0x181   : > { %v632_v11 = vadd.f32 %v5142_v9, %v4843_v8  ;;  %v626_v12 = vpop.f32.mrb[1].mxu1  ;;  %v5135_v13 = vpop.f32.mrb[0].mxu0  ;;  %v1077_v9 = vld [vmem:[#allocation6 + $0x18] sm:$0xff] }
 0x182   : > { %v627_v14 = vadd.f32 %v4843_v8, %v626_v12  ;;  %v544_v15 = vpop.f32.mrb[1].mxu0  ;;  %v550_v19 = vadd.f32 %v5135_v13, %v4842_v10  ;;  %v1076_v8 = vld [vmem:[#allocation6 + $0x10] sm:$0xff] }
 0x183   : > { %v545_v17 = vadd.f32 %v4842_v10, %v544_v15  ;;  %v5495_v10 = vpack.c.bf16 %v1077_v9, %v1076_v8 }
 0x184   : > { %v5477_v18 = vpack.c.bf16 %v632_v11, %v627_v14 }
 0x185   : > { %5154 = vmatprep.mubr.msk.f32.mxu1 %vm717_vm0, %v545_v17 }
 0x186   : > { %5479 = vmatprep.subr.msk.bf16.mxu1 %vm6308_vm1, %v5477_v18 }
 0x187   : > { %5482 = vmatpush3.bf16.xpose.msk.msra.mxu1 %vm6308_vm1, %v5477_v18 }
 0x189   : > { %v5149_v29 = vpop.f32.mrb[2].mxu0 }
 0x18a   : > { %v714_v41 = vadd.f32 %v5149_v29, %v4844_v40  ;;  %v708_v42 = vpop.f32.mrb[3].mxu0  ;;  %v4853_v29 = vld [vmem:[%s6609_s6 + $0x1] ss:$0 sm:$0xff] }
 0x18b   : > { %v709_v43 = vadd.f32 %v4844_v40, %v708_v42 }
 0x18d   : > { %v5483_v46 = vpack.c.bf16 %v714_v41, %v709_v43  ;;  %v910_v43 = vld [vmem:[%s6610_s7] sm:$0xff] }
 0x18e   : > { %5155 = vmatmul.mubr.msk.f32.vlgmr.msra.gmra.mrb[2].mxu1 %vm717_vm0, %v550_v19  ;;  %v5513_v45 = vpack.c.bf16 %v911_v44, %v910_v43 }
 0x18f   : > { %5484 = vmatprep.subr.bf16.mxu1 %v5483_v46 }
 0x190   : > { %5486 = vmatpush3.bf16.msra.mxu1 %v5483_v46  ;;  %v1514_v46 = vld [vmem:[#allocation2 + $0x20] sm:$0xff] }
 0x191   : > { %5488 = vmatprep.subr.bf16.mxu1 %v5487_v50  ;;  %v5177_v58 = vpop.f32.mrb[4].mxu0  ;;  %v5517_v48 = vpack.c.bf16 %v1515_v47, %v1514_v46  ;;  %v4875_v47 = vld [vmem:[%s6607_s4 + $0x3] ss:$0 sm:$0xff] }
 0x192   : > { %v1073_v59 = vadd.f32 %v5177_v58, %v4852_v57  ;;  %v1067_v60 = vpop.f32.mrb[5].mxu0 }
 0x193   : > { %v1068_v61 = vadd.f32 %v4852_v57, %v1067_v60 }
 0x195   : > { %v5499_v62 = vpack.c.bf16 %v1073_v59, %v1068_v61  ;;  %v4865_v59 = vld [vmem:[%s6608_s5 + $0x2] ss:$0 sm:$0xff] }
 0x197   : > { %5501 = vmatprep.subr.msk.bf16.mxu0 %vm6308_vm1, %v5499_v62 }
 0x198   : > { %5504 = vmatpush3.bf16.xpose.msk.msra.mxu0 %vm6308_vm1, %v5499_v62 }
 0x261   : > { %v5156_v23 = vpop.f32.mrb[2].mxu1 }
 0x262   : > { %v796_v24 = vpop.f32.mrb[3].mxu1  ;;  %v806_v26 = vmul.f32 0.25, %v5156_v23 }
 0x263   : > { %v805_v25 = vmul.f32 0.25, %v796_v24 }
 0x264   : > { %v810_v28 = vsel %vm717_vm0, %v806_v26, -inf }
 0x265   : > { %v807_v27 = vsel %vm717_vm0, %v805_v25, -inf }
 0x266   : > { %808 = vmax.xlane.f32.xlu0 %v807_v27 }
 0x26a   : > { %811 = vmax.xlane.f32.xlu0 %v810_v28 }
 0x2f3   : > { %v809_v30 = vpop.xlane.xlu0 %808 }
 0x2f4   : > { %v813_v31 = vsub.f32 %v805_v25, %v809_v30 }
 0x2f6   : > { %v815_v32 = vmul.f32 1.442695, %v813_v31 }
 0x2f7   : > { %v812_v33 = vpop.xlane.xlu0 %811 }
 0x2f8   : > { %5758 = vpow2.f32 %v815_v32  ;;  %v814_v34 = vsub.f32 %v806_v26, %v812_v33 }
 0x2fa   : > { %v817_v35 = vmul.f32 1.442695, %v814_v34  ;;  %v1350_v34 = vld [vmem:[%s6610_s7 + $0x10] sm:$0xff] }
 0x2fc   : > { %5760 = vpow2.f32 %v817_v35  ;;  %v1351_v35 = vld [vmem:[%s6610_s7 + $0x18] sm:$0xff] }
 0x302   : > { %v5759_v36 = vpop.eup %5758 }
 0x303   : > { %v819_v37 = vsel %vm717_vm0, %v5759_v36, 0.0 }
 0x304   : > { %820 = vadd.xlane.f32.xlu1 %v819_v37 }
 0x306   : > { %v5761_v38 = vpop.eup %5760 }
 0x307   : > { %v822_v39 = vsel %vm717_vm0, %v5761_v38, 0.0 }
 0x308   : > { %823 = vadd.xlane.f32.xlu1 %v822_v39 }
 0x391   : > { %v821_v51 = vpop.xlane.xlu1 %820 }
 0x392   : > { %5762 = vrcp.f32 %v821_v51 }
 0x395   : > { %v824_v52 = vpop.xlane.xlu1 %823 }
 0x396   : > { %5764 = vrcp.f32 %v824_v52 }
 0x39c   : > { %v5763_v53 = vpop.eup %5762 }
 0x39d   : > { %v827_v54 = vmul.f32 %v5763_v53, %v5759_v36  ;;  %v5509_v36 = vpack.c.bf16 %v1351_v35, %v1350_v34 }
 0x39f   : > { %5161 = vmatprep.mubr.msk.f32.mxu1 %vm717_vm0, %v827_v54  ;;  %5510 = vmatprep.subr.bf16.mxu0 %v5509_v36 }
 0x3a0   : > { %v5765_v55 = vpop.eup %5764 }
 0x3a1   : > { %v828_v56 = vmul.f32 %v5765_v55, %v5761_v38  ;;  %v4864_v55 = vld [vmem:[%s6607_s4 + $0x2] ss:$0 sm:$0xff] }
 0x3a3   : > { %5162 = vmatmul.mubr.msk.f32.vlgmr.msra.gmra.mrb[4].mxu1 %vm717_vm0, %v828_v56 }
 0x3a4   : > { %5490 = vmatpush3.bf16.xpose.msra.mxu1 %v5487_v50  ;;  %5168 = vmatprep.mubr.f32.mxu1 %v6290_v2  ;;  %v1597_v50 = vld [vmem:[#allocation4 + $0x28] sm:$0xff] }
 0x3a5   : > { %5496 = vmatprep.subr.bf16.mxu1 %v5495_v10  ;;  %v5521_v53 = vpack.c.bf16 %v1597_v50, %v1596_v49 }
 0x3ab   : > { %5169 = vmatmul.mubr.f32.vlgmr.msra.gmra.mrb[6].mxu1 %v6295_v7 }
 0x3ac   : > { %5182 = vmatprep.mubr.f32.mxu1 %v6290_v2  ;;  %5498 = vmatpush3.bf16.xpose.msra.mxu1 %v5495_v10 }
 0x3b3   : > { %5183 = vmatmul.mubr.f32.vlgmr.msra.gmra.mrb[8].mxu1 %v6295_v7 }
 0x476   : > { %v6340_v63 = vpop.f32.mrb[4].mxu1 }
 0x477   : > { %v6342_v0 = vpop.f32.mrb[5].mxu1 }
 0x47e   : > { %v5170_v3 = vpop.f32.mrb[6].mxu1 }
 0x47f   : > { %v985_v4 = vpop.f32.mrb[7].mxu1  ;;  %v991_v6 = vadd.f32 %v5170_v3, %v4851_v1  ;;  %v1679_v3 = vld [vmem:[#allocation6 + $0x28] sm:$0xff] }
 0x480   : > { %v986_v5 = vadd.f32 %v4851_v1, %v985_v4  ;;  %v1678_v1 = vld [vmem:[#allocation6 + $0x20] sm:$0xff] }
 0x481   : > { %v5525_v4 = vpack.c.bf16 %v1679_v3, %v1678_v1 }
 0x482   : > { %5189 = vmatprep.mubr.msk.f32.mxu0 %vm717_vm0, %v986_v5 }
 0x483   : > { %5190 = vmatmul.mubr.msk.f32.vlgmr.msra.gmra.mrb[6].mxu0 %vm717_vm0, %v991_v6 }
 0x484   : > { %5512 = vmatpush3.bf16.msra.mxu0 %v5509_v36 }
 0x485   : > { %5514 = vmatprep.subr.bf16.mxu0 %v5513_v45 }
 0x486   : > { %v5184_v28 = vpop.f32.mrb[8].mxu1 }
 0x487   : > { %v1149_v30 = vpop.f32.mrb[9].mxu1  ;;  %v1155_v31 = vadd.f32 %v5184_v28, %v4853_v29 }
 0x488   : > { %v1150_v32 = vadd.f32 %v4853_v29, %v1149_v30  ;;  %v1952_v29 = vld [vmem:[%s6610_s7 + $0x20] sm:$0xff]  ;;  %v1953_v30 = vld [vmem:[%s6610_s7 + $0x28] sm:$0xff] }
 0x48a   : > { %v5505_v33 = vpack.c.bf16 %v1155_v31, %v1150_v32  ;;  %v5539_v31 = vpack.c.bf16 %v1953_v30, %v1952_v29  ;;  %v2642_v30 = vld [vmem:[#allocation4 + $0x40] sm:$0xff] }
 0x48c   : > { %5506 = vmatprep.subr.bf16.mxu1 %v5505_v33 }
 0x48d   : > { %5508 = vmatpush3.bf16.msra.mxu1 %v5505_v33 }
 0x48e   : > { %5518 = vmatprep.subr.bf16.mxu1 %v5517_v48 }
 0x556   : > { %v5191_v11 = vpop.f32.mrb[6].mxu0 }
 0x557   : > { %v1246_v12 = vmul.f32 0.25, %v5191_v11  ;;  %v1236_v13 = vpop.f32.mrb[7].mxu0 }
 0x558   : > { %v1245_v14 = vmul.f32 0.25, %v1236_v13 }
 0x559   : > { %v1250_v15 = vsel %vm717_vm0, %v1246_v12, -inf }
 0x55a   : > { %1251 = vmax.xlane.f32.xlu1 %v1250_v15  ;;  %v1247_v17 = vsel %vm717_vm0, %v1245_v14, -inf }
 0x55b   : > { %1248 = vmax.xlane.f32.xlu0 %v1247_v17 }
 0x5e7   : > { %v1252_v18 = vpop.xlane.xlu1 %1251 }
 0x5e8   : > { %v1254_v19 = vsub.f32 %v1246_v12, %v1252_v18  ;;  %v1249_v20 = vpop.xlane.xlu0 %1248 }
 0x5e9   : > { %v1253_v21 = vsub.f32 %v1245_v14, %v1249_v20 }
 0x5ea   : > { %v1257_v22 = vmul.f32 1.442695, %v1254_v19 }
 0x5eb   : > { %v1255_v23 = vmul.f32 1.442695, %v1253_v21 }
 0x5ec   : > { %5766 = vpow2.f32 %v1257_v22 }
 0x5ed   : > { %5768 = vpow2.f32 %v1255_v23 }
 0x5f6   : > { %v5767_v24 = vpop.eup %5766 }
 0x5f7   : > { %v5769_v25 = vpop.eup %5768  ;;  %v1262_v26 = vsel %vm717_vm0, %v5767_v24, 0.0 }
 0x5f8   : > { %1263 = vadd.xlane.f32.xlu1 %v1262_v26  ;;  %v1259_v27 = vsel %vm717_vm0, %v5769_v25, 0.0 }
 0x5f9   : > { %1260 = vadd.xlane.f32.xlu0 %v1259_v27 }
 0x685   : > { %v1264_v37 = vpop.xlane.xlu1 %1263 }
 0x686   : > { %5770 = vrcp.f32 %v1264_v37  ;;  %v1261_v38 = vpop.xlane.xlu0 %1260 }
 0x687   : > { %5772 = vrcp.f32 %v1261_v38  ;;  %v2119_v38 = vld [vmem:[#allocation4 + $0x30] sm:$0xff] }
 0x690   : > { %v5771_v39 = vpop.eup %5770 }
 0x691   : > { %v5773_v40 = vpop.eup %5772  ;;  %v1268_v42 = vmul.f32 %v5771_v39, %v5767_v24  ;;  %v4866_v24 = vld [vmem:[%s6609_s6 + $0x2] ss:$0 sm:$0xff]  ;;  %v2120_v39 = vld [vmem:[#allocation4 + $0x38] sm:$0xff] }
 0x692   : > { %v1267_v41 = vmul.f32 %v5773_v40, %v5769_v25  ;;  %v5547_v40 = vpack.c.bf16 %v2120_v39, %v2119_v38  ;;  %v4886_v39 = vld [vmem:[%s6607_s4 + $0x4] ss:$0 sm:$0xff] }
 0x694   : > { %5196 = vmatprep.mubr.msk.f32.mxu1 %vm717_vm0, %v1267_v41  ;;  %v2037_v41 = vld [vmem:[#allocation2 + $0x30] sm:$0xff] }
 0x695   : > { %5197 = vmatmul.mubr.msk.f32.vlgmr.msra.gmra.mrb[10].mxu1 %vm717_vm0, %v1268_v42  ;;  %v2038_v42 = vld [vmem:[#allocation2 + $0x38] sm:$0xff] }
 0x696   : > { %5217 = vmatprep.mubr.f32.mxu1 %v6290_v2  ;;  %5520 = vmatpush3.bf16.xpose.msra.mxu1 %v5517_v48  ;;  %v5543_v43 = vpack.c.bf16 %v2038_v42, %v2037_v41 }
 0x697   : > { %5526 = vmatprep.subr.bf16.mxu1 %v5525_v4 }
 0x69d   : > { %5218 = vmatmul.mubr.f32.vlgmr.msra.gmra.mrb[12].mxu1 %v6295_v7 }
 0x69e   : > { %5231 = vmatprep.mubr.f32.mxu1 %v6290_v2  ;;  %5528 = vmatpush3.bf16.xpose.msra.mxu1 %v5525_v4 }
 0x6a5   : > { %5232 = vmatmul.mubr.f32.vlgmr.msra.gmra.mrb[14].mxu1 %v6295_v7 }
 0x768   : > { %v5198_v51 = vpop.f32.mrb[10].mxu1 }
 0x769   : > { %v1341_v52 = vpop.f32.mrb[11].mxu1 }
 0x76a   : > { %5203 = vmatprep.mubr.msk.f32.mxu0 %vm717_vm0, %v1341_v52 }
 0x76b   : > { %5204 = vmatmul.mubr.msk.f32.vlgmr.msra.gmra.mrb[8].mxu0 %vm717_vm0, %v5198_v51  ;;  %v4876_v51 = vld [vmem:[%s6608_s5 + $0x3] ss:$0 sm:$0xff] }
 0x76c   : > { %5516 = vmatpush3.bf16.msra.mxu0 %v5513_v45  ;;  %5210 = vmatprep.mubr.msk.f32.mxu0 %vm717_vm0, %v6342_v0 }
 0x76d   : > { %5522 = vmatprep.subr.bf16.mxu0 %v5521_v53 }
 0x770   : > { %v5219_v54 = vpop.f32.mrb[12].mxu1 }
 0x771   : > { %v1593_v56 = vadd.f32 %v5219_v54, %v4864_v55  ;;  %v1587_v57 = vpop.f32.mrb[13].mxu1 }
 0x772   : > { %v1588_v58 = vadd.f32 %v4864_v55, %v1587_v57  ;;  %v2201_v57 = vld [vmem:[#allocation6 + $0x30] sm:$0xff] }
 0x773   : > { %5211 = vmatmul.mubr.msk.f32.vlgmr.msra.gmra.mrb[8].mxu0 %vm717_vm0, %v6340_v63 }
 0x774   : > { %5224 = vmatprep.mubr.f32.mxu0 %v6290_v2 }
 0x775   : > { %5524 = vmatpush3.bf16.xpose.msra.mxu0 %v5521_v53 }
 0x778   : > { %v5233_v23 = vpop.f32.mrb[14].mxu1 }
 0x779   : > { %v1751_v25 = vpop.f32.mrb[15].mxu1  ;;  %v1757_v26 = vadd.f32 %v5233_v23, %v4866_v24 }
 0x77a   : > { %v1752_v27 = vadd.f32 %v4866_v24, %v1751_v25 }
 0x77c   : > { %5225 = vmatmul.mubr.f32.vlgmr.msra.gmra.mrb[10].mxu0 %v6295_v7  ;;  %v5535_v28 = vpack.c.bf16 %v1757_v26, %v1752_v27 }
 0x77d   : > { %5238 = vmatprep.mubr.msk.f32.mxu0 %vm717_vm0, %v1588_v58  ;;  %v2202_v58 = vld [vmem:[#allocation6 + $0x38] sm:$0xff] }
 0x77e   : > { %5536 = vmatprep.subr.bf16.mxu1 %v5535_v28 }
 0x77f   : > { %5538 = vmatpush3.bf16.msra.mxu1 %v5535_v28 }
 0x780   : > { %5544 = vmatprep.subr.bf16.mxu1 %v5543_v43 }
 0x84f   : > { %v5226_v60 = vpop.f32.mrb[10].mxu0 }
 0x850   : > { %v1675_v61 = vadd.f32 %v5226_v60, %v4865_v59  ;;  %v1669_v62 = vpop.f32.mrb[11].mxu0 }
 0x851   : > { %v1670_v63 = vadd.f32 %v4865_v59, %v1669_v62  ;;  %v5551_v59 = vpack.c.bf16 %v2202_v58, %v2201_v57 }
 0x853   : > { %v5529_v0 = vpack.c.bf16 %v1675_v61, %v1670_v63 }
 0x855   : > { %5531 = vmatprep.subr.msk.bf16.mxu0 %vm6308_vm1, %v5529_v0 }
 0x856   : > { %5534 = vmatpush3.bf16.xpose.msk.msra.mxu0 %vm6308_vm1, %v5529_v0 }
 0x857   : > { %5540 = vmatprep.subr.bf16.mxu0 %v5539_v31 }
 0x85d   : > { %5239 = vmatmul.mubr.msk.f32.vlgmr.msra.gmra.mrb[12].mxu0 %vm717_vm0, %v1593_v56 }
 0x85e   : > { %5542 = vmatpush3.bf16.msra.mxu0 %v5539_v31  ;;  %v2643_v31 = vld [vmem:[#allocation4 + $0x48] sm:$0xff] }
 0x85f   : > { %5548 = vmatprep.subr.bf16.mxu0 %v5547_v40 }
 0x930   : > { %v5240_v5 = vpop.f32.mrb[12].mxu0 }
 0x931   : > { %v1848_v6 = vmul.f32 0.25, %v5240_v5  ;;  %v1838_v8 = vpop.f32.mrb[13].mxu0 }
 0x932   : > { %v1847_v9 = vmul.f32 0.25, %v1838_v8 }
 0x933   : > { %v1852_v10 = vsel %vm717_vm0, %v1848_v6, -inf }
 0x934   : > { %1853 = vmax.xlane.f32.xlu1 %v1852_v10  ;;  %v1849_v11 = vsel %vm717_vm0, %v1847_v9, -inf }
 0x935   : > { %1850 = vmax.xlane.f32.xlu0 %v1849_v11 }
 0x9c1   : > { %v1854_v12 = vpop.xlane.xlu1 %1853 }
 0x9c2   : > { %v1856_v13 = vsub.f32 %v1848_v6, %v1854_v12  ;;  %v1851_v14 = vpop.xlane.xlu0 %1850 }
 0x9c3   : > { %v1855_v15 = vsub.f32 %v1847_v9, %v1851_v14 }
 0x9c4   : > { %v1859_v17 = vmul.f32 1.442695, %v1856_v13 }
 0x9c5   : > { %v1857_v18 = vmul.f32 1.442695, %v1855_v15  ;;  %v4877_v15 = vld [vmem:[%s6609_s6 + $0x3] ss:$0 sm:$0xff] }
 0x9c6   : > { %5774 = vpow2.f32 %v1859_v17 }
 0x9c7   : > { %5776 = vpow2.f32 %v1857_v18 }
 0x9d0   : > { %v5775_v19 = vpop.eup %5774 }
 0x9d1   : > { %v5777_v20 = vpop.eup %5776  ;;  %v1864_v21 = vsel %vm717_vm0, %v5775_v19, 0.0 }
 0x9d2   : > { %1865 = vadd.xlane.f32.xlu1 %v1864_v21  ;;  %v1861_v22 = vsel %vm717_vm0, %v5777_v20, 0.0  ;;  %v2475_v21 = vld [vmem:[%s6610_s7 + $0x30] sm:$0xff] }
 0x9d3   : > { %1862 = vadd.xlane.f32.xlu0 %v1861_v22  ;;  %v2476_v22 = vld [vmem:[%s6610_s7 + $0x38] sm:$0xff] }
 0x9d4   : > { %v5565_v23 = vpack.c.bf16 %v2476_v22, %v2475_v21  ;;  %v3165_v22 = vld [vmem:[#allocation4 + $0x50] sm:$0xff] }
 0xa5f   : > { %v1866_v32 = vpop.xlane.xlu1 %1865 }
 0xa60   : > { %5778 = vrcp.f32 %v1866_v32  ;;  %v1863_v33 = vpop.xlane.xlu0 %1862  ;;  %v5573_v32 = vpack.c.bf16 %v2643_v31, %v2642_v30  ;;  %v4897_v31 = vld [vmem:[%s6607_s4 + $0x5] ss:$0 sm:$0xff] }
 0xa61   : > { %5780 = vrcp.f32 %v1863_v33  ;;  %v2560_v33 = vld [vmem:[#allocation2 + $0x40] sm:$0xff] }
 0xa6a   : > { %v5779_v34 = vpop.eup %5778 }
 0xa6b   : > { %v5781_v35 = vpop.eup %5780  ;;  %v1870_v37 = vmul.f32 %v5779_v34, %v5775_v19  ;;  %v2561_v34 = vld [vmem:[#allocation2 + $0x48] sm:$0xff] }
 0xa6c   : > { %v1869_v36 = vmul.f32 %v5781_v35, %v5777_v20  ;;  %v5569_v35 = vpack.c.bf16 %v2561_v34, %v2560_v33 }
 0xa6e   : > { %5245 = vmatprep.mubr.msk.f32.mxu1 %vm717_vm0, %v1869_v36 }
 0xa6f   : > { %5246 = vmatmul.mubr.msk.f32.vlgmr.msra.gmra.mrb[16].mxu1 %vm717_vm0, %v1870_v37 }
 0xa70   : > { %5259 = vmatprep.mubr.f32.mxu1 %v6290_v2  ;;  %5546 = vmatpush3.bf16.xpose.msra.mxu1 %v5543_v43  ;;  %v4887_v43 = vld [vmem:[%s6608_s5 + $0x4] ss:$0 sm:$0xff] }
 0xa71   : > { %5552 = vmatprep.subr.bf16.mxu1 %v5551_v59 }
 0xa77   : > { %5260 = vmatmul.mubr.f32.vlgmr.msra.gmra.mrb[18].mxu1 %v6295_v7 }
 0xa78   : > { %5273 = vmatprep.mubr.f32.mxu1 %v6290_v2  ;;  %5554 = vmatpush3.bf16.xpose.msra.mxu1 %v5551_v59 }
 0xa7f   : > { %5274 = vmatmul.mubr.f32.vlgmr.msra.gmra.mrb[20].mxu1 %v6295_v7 }
 0xb42   : > { %v5247_v44 = vpop.f32.mrb[16].mxu1 }
 0xb43   : > { %v1943_v45 = vpop.f32.mrb[17].mxu1 }
 0xb44   : > { %5252 = vmatprep.mubr.msk.f32.mxu0 %vm717_vm0, %v1943_v45 }
 0xb45   : > { %5253 = vmatmul.mubr.msk.f32.vlgmr.msra.gmra.mrb[8].mxu0 %vm717_vm0, %v5247_v44 }
 0xb46   : > { %5550 = vmatpush3.bf16.xpose.msra.mxu0 %v5547_v40  ;;  %5266 = vmatprep.mubr.f32.mxu0 %v6290_v2 }
 0xb4a   : > { %v5261_v46 = vpop.f32.mrb[18].mxu1 }
 0xb4b   : > { %v2116_v48 = vadd.f32 %v5261_v46, %v4875_v47  ;;  %v2110_v49 = vpop.f32.mrb[19].mxu1 }
 0xb4c   : > { %v2111_v50 = vadd.f32 %v4875_v47, %v2110_v49  ;;  %v2724_v49 = vld [vmem:[#allocation6 + $0x40] sm:$0xff] }
 0xb4d   : > { %5267 = vmatmul.mubr.f32.vlgmr.msra.gmra.mrb[14].mxu0 %v6295_v7 }
 0xb4e   : > { %5280 = vmatprep.mubr.msk.f32.mxu0 %vm717_vm0, %v2111_v50  ;;  %v2725_v50 = vld [vmem:[#allocation6 + $0x48] sm:$0xff] }
 0xb52   : > { %v5275_v14 = vpop.f32.mrb[20].mxu1 }
 0xb53   : > { %v2274_v17 = vpop.f32.mrb[21].mxu1  ;;  %v2280_v18 = vadd.f32 %v5275_v14, %v4877_v15 }
 0xb54   : > { %v2275_v19 = vadd.f32 %v4877_v15, %v2274_v17 }
 0xb56   : > { %v5561_v20 = vpack.c.bf16 %v2280_v18, %v2275_v19 }
 0xb58   : > { %5562 = vmatprep.subr.bf16.mxu1 %v5561_v20 }
 0xb59   : > { %5564 = vmatpush3.bf16.msra.mxu1 %v5561_v20 }
 0xb5a   : > { %5570 = vmatprep.subr.bf16.mxu1 %v5569_v35 }
 0xc20   : > { %v5268_v52 = vpop.f32.mrb[14].mxu0 }
 0xc21   : > { %v2198_v53 = vadd.f32 %v5268_v52, %v4876_v51  ;;  %v2192_v54 = vpop.f32.mrb[15].mxu0 }
 0xc22   : > { %v2193_v55 = vadd.f32 %v4876_v51, %v2192_v54  ;;  %v5577_v51 = vpack.c.bf16 %v2725_v50, %v2724_v49 }
 0xc24   : > { %v5555_v56 = vpack.c.bf16 %v2198_v53, %v2193_v55 }
 0xc26   : > { %5557 = vmatprep.subr.msk.bf16.mxu0 %vm6308_vm1, %v5555_v56 }
 0xc27   : > { %5560 = vmatpush3.bf16.xpose.msk.msra.mxu0 %vm6308_vm1, %v5555_v56 }
 0xc28   : > { %5566 = vmatprep.subr.bf16.mxu0 %v5565_v23 }
 0xc2e   : > { %5281 = vmatmul.mubr.msk.f32.vlgmr.msra.gmra.mrb[16].mxu0 %vm717_vm0, %v2116_v48 }
 0xc2f   : > { %5568 = vmatpush3.bf16.msra.mxu0 %v5565_v23  ;;  %v3166_v23 = vld [vmem:[#allocation4 + $0x58] sm:$0xff] }
 0xc30   : > { %5574 = vmatprep.subr.bf16.mxu0 %v5573_v32 }
 0xd01   : > { %v5282_v60 = vpop.f32.mrb[16].mxu0 }
 0xd02   : > { %v2371_v61 = vmul.f32 0.25, %v5282_v60  ;;  %v2361_v62 = vpop.f32.mrb[17].mxu0 }
 0xd03   : > { %v2370_v63 = vmul.f32 0.25, %v2361_v62 }
 0xd04   : > { %v2375_v0 = vsel %vm717_vm0, %v2371_v61, -inf }
 0xd05   : > { %2376 = vmax.xlane.f32.xlu1 %v2375_v0  ;;  %v2372_v1 = vsel %vm717_vm0, %v2370_v63, -inf }
 0xd06   : > { %2373 = vmax.xlane.f32.xlu0 %v2372_v1 }
 0xd92   : > { %v2377_v3 = vpop.xlane.xlu1 %2376 }
 0xd93   : > { %v2379_v4 = vsub.f32 %v2371_v61, %v2377_v3  ;;  %v2374_v5 = vpop.xlane.xlu0 %2373 }
 0xd94   : > { %v2378_v6 = vsub.f32 %v2370_v63, %v2374_v5 }
 0xd95   : > { %v2382_v8 = vmul.f32 1.442695, %v2379_v4 }
 0xd96   : > { %v2380_v9 = vmul.f32 1.442695, %v2378_v6  ;;  %v4888_v6 = vld [vmem:[%s6609_s6 + $0x4] ss:$0 sm:$0xff] }
 0xd97   : > { %5782 = vpow2.f32 %v2382_v8 }
 0xd98   : > { %5784 = vpow2.f32 %v2380_v9 }
 0xda1   : > { %v5783_v10 = vpop.eup %5782 }
 0xda2   : > { %v5785_v11 = vpop.eup %5784  ;;  %v2387_v12 = vsel %vm717_vm0, %v5783_v10, 0.0 }
 0xda3   : > { %2388 = vadd.xlane.f32.xlu1 %v2387_v12  ;;  %v2384_v13 = vsel %vm717_vm0, %v5785_v11, 0.0  ;;  %v2998_v12 = vld [vmem:[%s6610_s7 + $0x40] sm:$0xff] }
 0xda4   : > { %2385 = vadd.xlane.f32.xlu0 %v2384_v13  ;;  %v2999_v13 = vld [vmem:[%s6610_s7 + $0x48] sm:$0xff] }
 0xda5   : > { %v5591_v14 = vpack.c.bf16 %v2999_v13, %v2998_v12  ;;  %v3688_v13 = vld [vmem:[#allocation4 + $0x60] sm:$0xff] }
 0xe30   : > { %v2389_v24 = vpop.xlane.xlu1 %2388 }
 0xe31   : > { %5786 = vrcp.f32 %v2389_v24  ;;  %v2386_v25 = vpop.xlane.xlu0 %2385  ;;  %v5599_v24 = vpack.c.bf16 %v3166_v23, %v3165_v22 }
 0xe32   : > { %5788 = vrcp.f32 %v2386_v25  ;;  %v3083_v25 = vld [vmem:[#allocation2 + $0x50] sm:$0xff] }
 0xe3b   : > { %v5787_v26 = vpop.eup %5786 }
 0xe3c   : > { %v5789_v27 = vpop.eup %5788  ;;  %v2393_v29 = vmul.f32 %v5787_v26, %v5783_v10  ;;  %v3084_v26 = vld [vmem:[#allocation2 + $0x58] sm:$0xff] }
 0xe3d   : > { %v2392_v28 = vmul.f32 %v5789_v27, %v5785_v11  ;;  %v5595_v27 = vpack.c.bf16 %v3084_v26, %v3083_v25 }
 0xe3f   : > { %5287 = vmatprep.mubr.msk.f32.mxu1 %vm717_vm0, %v2392_v28 }
 0xe40   : > { %5288 = vmatmul.mubr.msk.f32.vlgmr.msra.gmra.mrb[22].mxu1 %vm717_vm0, %v2393_v29 }
 0xe41   : > { %5301 = vmatprep.mubr.f32.mxu1 %v6290_v2  ;;  %5572 = vmatpush3.bf16.xpose.msra.mxu1 %v5569_v35  ;;  %v4898_v35 = vld [vmem:[%s6608_s5 + $0x5] ss:$0 sm:$0xff] }
 0xe42   : > { %5578 = vmatprep.subr.bf16.mxu1 %v5577_v51 }
 0xe48   : > { %5302 = vmatmul.mubr.f32.vlgmr.msra.gmra.mrb[24].mxu1 %v6295_v7 }
 0xe49   : > { %5315 = vmatprep.mubr.f32.mxu1 %v6290_v2  ;;  %5580 = vmatpush3.bf16.xpose.msra.mxu1 %v5577_v51 }
 0xe50   : > { %5316 = vmatmul.mubr.f32.vlgmr.msra.gmra.mrb[26].mxu1 %v6295_v7 }
 0xf13   : > { %v5289_v36 = vpop.f32.mrb[22].mxu1 }
 0xf14   : > { %v2466_v37 = vpop.f32.mrb[23].mxu1 }
 0xf15   : > { %5294 = vmatprep.mubr.msk.f32.mxu0 %vm717_vm0, %v2466_v37 }
 0xf16   : > { %5295 = vmatmul.mubr.msk.f32.vlgmr.msra.gmra.mrb[8].mxu0 %vm717_vm0, %v5289_v36 }
 0xf17   : > { %5576 = vmatpush3.bf16.xpose.msra.mxu0 %v5573_v32  ;;  %5308 = vmatprep.mubr.f32.mxu0 %v6290_v2 }
 0xf1b   : > { %v5303_v38 = vpop.f32.mrb[24].mxu1 }
 0xf1c   : > { %v2639_v40 = vadd.f32 %v5303_v38, %v4886_v39  ;;  %v2633_v41 = vpop.f32.mrb[25].mxu1 }
 0xf1d   : > { %v2634_v42 = vadd.f32 %v4886_v39, %v2633_v41  ;;  %v3247_v41 = vld [vmem:[#allocation6 + $0x50] sm:$0xff] }
 0xf1e   : > { %5309 = vmatmul.mubr.f32.vlgmr.msra.gmra.mrb[18].mxu0 %v6295_v7 }
 0xf1f   : > { %5322 = vmatprep.mubr.msk.f32.mxu0 %vm717_vm0, %v2634_v42  ;;  %v3248_v42 = vld [vmem:[#allocation6 + $0x58] sm:$0xff] }
 0xf23   : > { %v5317_v5 = vpop.f32.mrb[26].mxu1 }
 0xf24   : > { %v2797_v8 = vpop.f32.mrb[27].mxu1  ;;  %v2803_v9 = vadd.f32 %v5317_v5, %v4888_v6 }
 0xf25   : > { %v2798_v10 = vadd.f32 %v4888_v6, %v2797_v8 }
 0xf27   : > { %v5587_v11 = vpack.c.bf16 %v2803_v9, %v2798_v10 }
 0xf29   : > { %5588 = vmatprep.subr.bf16.mxu1 %v5587_v11 }
 0xf2a   : > { %5590 = vmatpush3.bf16.msra.mxu1 %v5587_v11 }
 0xf2b   : > { %5596 = vmatprep.subr.bf16.mxu1 %v5595_v27 }
 0xff1   : > { %v5310_v44 = vpop.f32.mrb[18].mxu0 }
 0xff2   : > { %v2721_v45 = vadd.f32 %v5310_v44, %v4887_v43  ;;  %v2715_v46 = vpop.f32.mrb[19].mxu0 }
 0xff3   : > { %v2716_v47 = vadd.f32 %v4887_v43, %v2715_v46  ;;  %v5603_v43 = vpack.c.bf16 %v3248_v42, %v3247_v41 }
 0xff5   : > { %v5581_v48 = vpack.c.bf16 %v2721_v45, %v2716_v47 }
 0xff7   : > { %5583 = vmatprep.subr.msk.bf16.mxu0 %vm6308_vm1, %v5581_v48 }
 0xff8   : > { %5586 = vmatpush3.bf16.xpose.msk.msra.mxu0 %vm6308_vm1, %v5581_v48 }
 0xff9   : > { %5592 = vmatprep.subr.bf16.mxu0 %v5591_v14 }
 0xfff   : > { %5323 = vmatmul.mubr.msk.f32.vlgmr.msra.gmra.mrb[20].mxu0 %vm717_vm0, %v2639_v40 }
0x1000   : > { %5594 = vmatpush3.bf16.msra.mxu0 %v5591_v14  ;;  %v3689_v14 = vld [vmem:[#allocation4 + $0x68] sm:$0xff] }
0x1001   : > { %5600 = vmatprep.subr.bf16.mxu0 %v5599_v24 }
0x10d2   : > { %v5324_v52 = vpop.f32.mrb[20].mxu0 }
0x10d3   : > { %v2894_v53 = vmul.f32 0.25, %v5324_v52  ;;  %v2884_v54 = vpop.f32.mrb[21].mxu0 }
0x10d4   : > { %v2893_v55 = vmul.f32 0.25, %v2884_v54 }
0x10d5   : > { %v2898_v56 = vsel %vm717_vm0, %v2894_v53, -inf }
0x10d6   : > { %2899 = vmax.xlane.f32.xlu1 %v2898_v56  ;;  %v2895_v57 = vsel %vm717_vm0, %v2893_v55, -inf }
0x10d7   : > { %2896 = vmax.xlane.f32.xlu0 %v2895_v57 }
0x1163   : > { %v2900_v58 = vpop.xlane.xlu1 %2899 }
0x1164   : > { %v2902_v59 = vsub.f32 %v2894_v53, %v2900_v58  ;;  %v2897_v60 = vpop.xlane.xlu0 %2896 }
0x1165   : > { %v2901_v61 = vsub.f32 %v2893_v55, %v2897_v60 }
0x1166   : > { %v2905_v62 = vmul.f32 1.442695, %v2902_v59 }
0x1167   : > { %v2903_v63 = vmul.f32 1.442695, %v2901_v61  ;;  %v4899_v61 = vld [vmem:[%s6609_s6 + $0x5] ss:$0 sm:$0xff] }
0x1168   : > { %5790 = vpow2.f32 %v2905_v62 }
0x1169   : > { %5792 = vpow2.f32 %v2903_v63 }
0x1172   : > { %v5791_v0 = vpop.eup %5790 }
0x1173   : > { %v5793_v1 = vpop.eup %5792  ;;  %v2910_v3 = vsel %vm717_vm0, %v5791_v0, 0.0 }
0x1174   : > { %2911 = vadd.xlane.f32.xlu1 %v2910_v3  ;;  %v2907_v4 = vsel %vm717_vm0, %v5793_v1, 0.0  ;;  %v3521_v3 = vld [vmem:[%s6610_s7 + $0x50] sm:$0xff] }
0x1175   : > { %2908 = vadd.xlane.f32.xlu0 %v2907_v4  ;;  %v3522_v4 = vld [vmem:[%s6610_s7 + $0x58] sm:$0xff] }
0x1176   : > { %v5617_v5 = vpack.c.bf16 %v3522_v4, %v3521_v3  ;;  %v4211_v4 = vld [vmem:[#allocation4 + $0x70] sm:$0xff] }
0x1201   : > { %v2912_v15 = vpop.xlane.xlu1 %2911 }
0x1202   : > { %5794 = vrcp.f32 %v2912_v15  ;;  %v2909_v17 = vpop.xlane.xlu0 %2908  ;;  %v5625_v15 = vpack.c.bf16 %v3689_v14, %v3688_v13  ;;  %v4919_v14 = vld [vmem:[%s6607_s4 + $0x7] ss:$0 sm:$0xff] }
0x1203   : > { %5796 = vrcp.f32 %v2909_v17  ;;  %v3606_v17 = vld [vmem:[#allocation2 + $0x60] sm:$0xff] }
0x120c   : > { %v5795_v18 = vpop.eup %5794 }
0x120d   : > { %v5797_v19 = vpop.eup %5796  ;;  %v2916_v21 = vmul.f32 %v5795_v18, %v5791_v0  ;;  %v3607_v18 = vld [vmem:[#allocation2 + $0x68] sm:$0xff] }
0x120e   : > { %v2915_v20 = vmul.f32 %v5797_v19, %v5793_v1  ;;  %v5621_v19 = vpack.c.bf16 %v3607_v18, %v3606_v17 }
0x1210   : > { %5329 = vmatprep.mubr.msk.f32.mxu1 %vm717_vm0, %v2915_v20  ;;  %v6518_v20 = vld [vmem:[%s6287_s12] sm:$0xff] }
0x1211   : > { %5330 = vmatmul.mubr.msk.f32.vlgmr.msra.gmra.mrb[28].mxu1 %vm717_vm0, %v2916_v21 }
0x1212   : > { %5343 = vmatprep.mubr.f32.mxu1 %v6290_v2  ;;  %5598 = vmatpush3.bf16.xpose.msra.mxu1 %v5595_v27  ;;  %v4909_v27 = vld [vmem:[%s6608_s5 + $0x6] ss:$0 sm:$0xff] }
0x1213   : > { %5604 = vmatprep.subr.bf16.mxu1 %v5603_v43 }
0x1219   : > { %5344 = vmatmul.mubr.f32.vlgmr.msra.gmra.mrb[30].mxu1 %v6295_v7 }
0x121a   : > { %5357 = vmatprep.mubr.f32.mxu1 %v6290_v2  ;;  %5606 = vmatpush3.bf16.xpose.msra.mxu1 %v5603_v43 }
0x1221   : > { %5358 = vmatmul.mubr.f32.vlgmr.msra.gmra.mrb[32].mxu1 %v6295_v7 }
0x12e4   : > { %v5331_v28 = vpop.f32.mrb[28].mxu1 }
0x12e5   : > { %v2989_v29 = vpop.f32.mrb[29].mxu1 }
0x12e6   : > { %5336 = vmatprep.mubr.msk.f32.mxu0 %vm717_vm0, %v2989_v29 }
0x12e7   : > { %5337 = vmatmul.mubr.msk.f32.vlgmr.msra.gmra.mrb[8].mxu0 %vm717_vm0, %v5331_v28 }
0x12e8   : > { %5602 = vmatpush3.bf16.xpose.msra.mxu0 %v5599_v24  ;;  %5350 = vmatprep.mubr.f32.mxu0 %v6290_v2 }
0x12ec   : > { %v5345_v30 = vpop.f32.mrb[30].mxu1 }
0x12ed   : > { %v3162_v32 = vadd.f32 %v5345_v30, %v4897_v31  ;;  %v3156_v33 = vpop.f32.mrb[31].mxu1 }
0x12ee   : > { %v3157_v34 = vadd.f32 %v4897_v31, %v3156_v33  ;;  %v3770_v33 = vld [vmem:[#allocation6 + $0x60] sm:$0xff] }
0x12ef   : > { %5351 = vmatmul.mubr.f32.vlgmr.msra.gmra.mrb[22].mxu0 %v6295_v7 }
0x12f0   : > { %5364 = vmatprep.mubr.msk.f32.mxu0 %vm717_vm0, %v3157_v34  ;;  %v3771_v34 = vld [vmem:[#allocation6 + $0x68] sm:$0xff] }
0x12f4   : > { %v5359_v60 = vpop.f32.mrb[32].mxu1 }
0x12f5   : > { %v3320_v62 = vpop.f32.mrb[33].mxu1  ;;  %v3326_v63 = vadd.f32 %v5359_v60, %v4899_v61 }
0x12f6   : > { %v3321_v0 = vadd.f32 %v4899_v61, %v3320_v62 }
0x12f8   : > { %v5613_v1 = vpack.c.bf16 %v3326_v63, %v3321_v0 }
0x12fa   : > { %5614 = vmatprep.subr.bf16.mxu1 %v5613_v1 }
0x12fb   : > { %5616 = vmatpush3.bf16.msra.mxu1 %v5613_v1 }
0x12fc   : > { %5622 = vmatprep.subr.bf16.mxu1 %v5621_v19 }
0x13c2   : > { %v5352_v36 = vpop.f32.mrb[22].mxu0 }
0x13c3   : > { %v3244_v37 = vadd.f32 %v5352_v36, %v4898_v35  ;;  %v3238_v38 = vpop.f32.mrb[23].mxu0 }
0x13c4   : > { %v3239_v39 = vadd.f32 %v4898_v35, %v3238_v38  ;;  %v5629_v35 = vpack.c.bf16 %v3771_v34, %v3770_v33 }
0x13c6   : > { %v5607_v40 = vpack.c.bf16 %v3244_v37, %v3239_v39 }
0x13c8   : > { %5609 = vmatprep.subr.msk.bf16.mxu0 %vm6308_vm1, %v5607_v40 }
0x13c9   : > { %5612 = vmatpush3.bf16.xpose.msk.msra.mxu0 %vm6308_vm1, %v5607_v40 }
0x13ca   : > { %5618 = vmatprep.subr.bf16.mxu0 %v5617_v5 }
0x13d0   : > { %5365 = vmatmul.mubr.msk.f32.vlgmr.msra.gmra.mrb[24].mxu0 %vm717_vm0, %v3162_v32 }
0x13d1   : > { %5620 = vmatpush3.bf16.msra.mxu0 %v5617_v5  ;;  %v4212_v5 = vld [vmem:[#allocation4 + $0x78] sm:$0xff] }
0x13d2   : > { %5626 = vmatprep.subr.bf16.mxu0 %v5625_v15 }
0x14a3   : > { %v5366_v44 = vpop.f32.mrb[24].mxu0 }
0x14a4   : > { %v3417_v45 = vmul.f32 0.25, %v5366_v44  ;;  %v3407_v46 = vpop.f32.mrb[25].mxu0 }
0x14a5   : > { %v3416_v47 = vmul.f32 0.25, %v3407_v46 }
0x14a6   : > { %v3421_v48 = vsel %vm717_vm0, %v3417_v45, -inf }
0x14a7   : > { %3422 = vmax.xlane.f32.xlu1 %v3421_v48  ;;  %v3418_v49 = vsel %vm717_vm0, %v3416_v47, -inf }
0x14a8   : > { %3419 = vmax.xlane.f32.xlu0 %v3418_v49 }
0x1534   : > { %v3423_v50 = vpop.xlane.xlu1 %3422 }
0x1535   : > { %v3425_v51 = vsub.f32 %v3417_v45, %v3423_v50  ;;  %v3420_v52 = vpop.xlane.xlu0 %3419 }
0x1536   : > { %v3424_v53 = vsub.f32 %v3416_v47, %v3420_v52 }
0x1537   : > { %v3428_v54 = vmul.f32 1.442695, %v3425_v51 }
0x1538   : > { %v3426_v55 = vmul.f32 1.442695, %v3424_v53  ;;  %v4910_v53 = vld [vmem:[%s6609_s6 + $0x6] ss:$0 sm:$0xff] }
0x1539   : > { %5798 = vpow2.f32 %v3428_v54 }
0x153a   : > { %5800 = vpow2.f32 %v3426_v55 }
0x1543   : > { %v5799_v56 = vpop.eup %5798 }
0x1544   : > { %v5801_v57 = vpop.eup %5800  ;;  %v3433_v58 = vsel %vm717_vm0, %v5799_v56, 0.0 }
0x1545   : > { %3434 = vadd.xlane.f32.xlu1 %v3433_v58  ;;  %v3430_v59 = vsel %vm717_vm0, %v5801_v57, 0.0  ;;  %v4044_v58 = vld [vmem:[%s6610_s7 + $0x60] sm:$0xff] }
0x1546   : > { %3431 = vadd.xlane.f32.xlu0 %v3430_v59  ;;  %v4045_v59 = vld [vmem:[%s6610_s7 + $0x68] sm:$0xff] }
0x1547   : > { %v5643_v60 = vpack.c.bf16 %v4045_v59, %v4044_v58 }
0x15d2   : > { %v3435_v6 = vpop.xlane.xlu1 %3434 }
0x15d3   : > { %5802 = vrcp.f32 %v3435_v6  ;;  %v3432_v8 = vpop.xlane.xlu0 %3431  ;;  %v5651_v6 = vpack.c.bf16 %v4212_v5, %v4211_v4 }
0x15d4   : > { %5804 = vrcp.f32 %v3432_v8  ;;  %v4129_v8 = vld [vmem:[#allocation2 + $0x70] sm:$0xff] }
0x15dd   : > { %v5803_v9 = vpop.eup %5802 }
0x15de   : > { %v5805_v10 = vpop.eup %5804  ;;  %v3439_v12 = vmul.f32 %v5803_v9, %v5799_v56  ;;  %v4130_v9 = vld [vmem:[#allocation2 + $0x78] sm:$0xff] }
0x15df   : > { %v3438_v11 = vmul.f32 %v5805_v10, %v5801_v57  ;;  %v5647_v10 = vpack.c.bf16 %v4130_v9, %v4129_v8 }
0x15e1   : > { %5371 = vmatprep.mubr.msk.f32.mxu1 %vm717_vm0, %v3438_v11 }
0x15e2   : > { %5372 = vmatmul.mubr.msk.f32.vlgmr.msra.gmra.mrb[34].mxu1 %vm717_vm0, %v3439_v12 }
0x15e3   : > { %5385 = vmatprep.mubr.f32.mxu1 %v6290_v2  ;;  %5624 = vmatpush3.bf16.xpose.msra.mxu1 %v5621_v19  ;;  %v6525_v2 = vld [vmem:[%s6287_s12 + $0x8] sm:$0xff]  ;;  %v4920_v19 = vld [vmem:[%s6608_s5 + $0x7] ss:$0 sm:$0xff] }
0x15e4   : > { %5630 = vmatprep.subr.bf16.mxu1 %v5629_v35 }
0x15ea   : > { %5386 = vmatmul.mubr.f32.vlgmr.msra.gmra.mrb[36].mxu1 %v6295_v7  ;;  %v4908_v7 = vld [vmem:[%s6607_s4 + $0x6] ss:$0 sm:$0xff] }
0x15eb   : > { %5399 = vmatprep.mubr.f32.mxu1 %v6518_v20  ;;  %5632 = vmatpush3.bf16.xpose.msra.mxu1 %v5629_v35 }
0x15f2   : > { %5400 = vmatmul.mubr.f32.vlgmr.msra.gmra.mrb[38].mxu1 %v6525_v2 }
0x16b5   : > { %v5373_v21 = vpop.f32.mrb[34].mxu1 }
0x16b6   : > { %v3512_v22 = vpop.f32.mrb[35].mxu1 }
0x16b7   : > { %5378 = vmatprep.mubr.msk.f32.mxu0 %vm717_vm0, %v3512_v22 }
0x16b8   : > { %5379 = vmatmul.mubr.msk.f32.vlgmr.msra.gmra.mrb[8].mxu0 %vm717_vm0, %v5373_v21 }
0x16b9   : > { %5628 = vmatpush3.bf16.xpose.msra.mxu0 %v5625_v15  ;;  %5392 = vmatprep.mubr.f32.mxu0 %v6518_v20 }
0x16bd   : > { %v5387_v23 = vpop.f32.mrb[36].mxu1 }
0x16be   : > { %v3685_v24 = vadd.f32 %v5387_v23, %v4908_v7  ;;  %v3679_v25 = vpop.f32.mrb[37].mxu1 }
0x16bf   : > { %v3680_v26 = vadd.f32 %v4908_v7, %v3679_v25  ;;  %v4293_v25 = vld [vmem:[#allocation6 + $0x70] sm:$0xff] }
0x16c0   : > { %5393 = vmatmul.mubr.f32.vlgmr.msra.gmra.mrb[26].mxu0 %v6525_v2 }
0x16c1   : > { %5406 = vmatprep.mubr.msk.f32.mxu0 %vm717_vm0, %v3680_v26  ;;  %v4294_v26 = vld [vmem:[#allocation6 + $0x78] sm:$0xff] }
0x16c5   : > { %v5401_v52 = vpop.f32.mrb[38].mxu1 }
0x16c6   : > { %v3843_v54 = vpop.f32.mrb[39].mxu1  ;;  %v3849_v55 = vadd.f32 %v5401_v52, %v4910_v53 }
0x16c7   : > { %v3844_v56 = vadd.f32 %v4910_v53, %v3843_v54 }
0x16c9   : > { %v5639_v57 = vpack.c.bf16 %v3849_v55, %v3844_v56 }
0x16cb   : > { %5640 = vmatprep.subr.bf16.mxu1 %v5639_v57 }
0x16cc   : > { %5642 = vmatpush3.bf16.msra.mxu1 %v5639_v57 }
0x16cd   : > { %5648 = vmatprep.subr.bf16.mxu1 %v5647_v10 }
0x1793   : > { %v5394_v28 = vpop.f32.mrb[26].mxu0 }
0x1794   : > { %v3767_v29 = vadd.f32 %v5394_v28, %v4909_v27  ;;  %v3761_v30 = vpop.f32.mrb[27].mxu0 }
0x1795   : > { %v3762_v31 = vadd.f32 %v4909_v27, %v3761_v30  ;;  %v5655_v27 = vpack.c.bf16 %v4294_v26, %v4293_v25 }
0x1797   : > { %v5633_v32 = vpack.c.bf16 %v3767_v29, %v3762_v31 }
0x1799   : > { %5635 = vmatprep.subr.msk.bf16.mxu0 %vm6308_vm1, %v5633_v32 }
0x179a   : > { %5638 = vmatpush3.bf16.xpose.msk.msra.mxu0 %vm6308_vm1, %v5633_v32 }
0x179b   : > { %5644 = vmatprep.subr.bf16.mxu0 %v5643_v60 }
0x17a1   : > { %5407 = vmatmul.mubr.msk.f32.vlgmr.msra.gmra.mrb[28].mxu0 %vm717_vm0, %v3685_v24 }
0x17a2   : > { %5646 = vmatpush3.bf16.msra.mxu0 %v5643_v60 }
0x17a3   : > { %5652 = vmatprep.subr.bf16.mxu0 %v5651_v6 }
0x1874   : > { %v5408_v36 = vpop.f32.mrb[28].mxu0 }
0x1875   : > { %v3940_v37 = vmul.f32 0.25, %v5408_v36  ;;  %v3930_v38 = vpop.f32.mrb[29].mxu0 }
0x1876   : > { %v3939_v39 = vmul.f32 0.25, %v3930_v38 }
0x1877   : > { %v3944_v40 = vsel %vm717_vm0, %v3940_v37, -inf }
0x1878   : > { %3945 = vmax.xlane.f32.xlu1 %v3944_v40  ;;  %v3941_v41 = vsel %vm717_vm0, %v3939_v39, -inf }
0x1879   : > { %3942 = vmax.xlane.f32.xlu0 %v3941_v41 }
0x1905   : > { %v3946_v42 = vpop.xlane.xlu1 %3945 }
0x1906   : > { %v3948_v43 = vsub.f32 %v3940_v37, %v3946_v42  ;;  %v3943_v44 = vpop.xlane.xlu0 %3942 }
0x1907   : > { %v3947_v45 = vsub.f32 %v3939_v39, %v3943_v44  ;;  %v4921_v44 = vld [vmem:[%s6609_s6 + $0x7] ss:$0 sm:$0xff] }
0x1908   : > { %v3951_v46 = vmul.f32 1.442695, %v3948_v43 }
0x1909   : > { %v3949_v47 = vmul.f32 1.442695, %v3947_v45 }
0x190a   : > { %5806 = vpow2.f32 %v3951_v46 }
0x190b   : > { %5808 = vpow2.f32 %v3949_v47 }
0x1914   : > { %v5807_v48 = vpop.eup %5806 }
0x1915   : > { %v5809_v49 = vpop.eup %5808  ;;  %v3956_v50 = vsel %vm717_vm0, %v5807_v48, 0.0 }
0x1916   : > { %3957 = vadd.xlane.f32.xlu1 %v3956_v50  ;;  %v3953_v51 = vsel %vm717_vm0, %v5809_v49, 0.0  ;;  %v4568_v50 = vld [vmem:[%s6610_s7 + $0x78] sm:$0xff] }
0x1917   : > { %3954 = vadd.xlane.f32.xlu0 %v3953_v51 }
0x19a3   : > { %v3958_v61 = vpop.xlane.xlu1 %3957 }
0x19a4   : > { %5810 = vrcp.f32 %v3958_v61  ;;  %v3955_v62 = vpop.xlane.xlu0 %3954  ;;  %v4930_v61 = vld [vmem:[#allocation7] ss:$0 sm:$0xff] }
0x19a5   : > { %5812 = vrcp.f32 %v3955_v62 }
0x19ae   : > { %v5811_v63 = vpop.eup %5810 }
0x19af   : > { %v5813_v0 = vpop.eup %5812  ;;  %v3962_v3 = vmul.f32 %v5811_v63, %v5807_v48 }
0x19b0   : > { %v3961_v1 = vmul.f32 %v5813_v0, %v5809_v49  ;;  %v4567_v49 = vld [vmem:[%s6610_s7 + $0x70] sm:$0xff] }
0x19b1   : > { %v5669_v51 = vpack.c.bf16 %v4568_v50, %v4567_v49 }
0x19b2   : > { %5413 = vmatprep.mubr.msk.f32.mxu1 %vm717_vm0, %v3961_v1 }
0x19b3   : > { %5414 = vmatmul.mubr.msk.f32.vlgmr.msra.gmra.mrb[40].mxu1 %vm717_vm0, %v3962_v3 }
0x19b4   : > { %5427 = vmatprep.mubr.f32.mxu1 %v6518_v20  ;;  %5650 = vmatpush3.bf16.xpose.msra.mxu1 %v5647_v10 }
0x19b5   : > { %5656 = vmatprep.subr.bf16.mxu1 %v5655_v27 }
0x19bb   : > { %5428 = vmatmul.mubr.f32.vlgmr.msra.gmra.mrb[42].mxu1 %v6525_v2 }
0x19bc   : > { %5441 = vmatprep.mubr.f32.mxu1 %v6518_v20  ;;  %5658 = vmatpush3.bf16.xpose.msra.mxu1 %v5655_v27 }
0x19c3   : > { %5442 = vmatmul.mubr.f32.vlgmr.msra.gmra.mrb[44].mxu1 %v6525_v2 }
0x1a86   : > { %v5415_v11 = vpop.f32.mrb[40].mxu1 }
0x1a87   : > { %v4035_v12 = vpop.f32.mrb[41].mxu1 }
0x1a88   : > { %5420 = vmatprep.mubr.msk.f32.mxu0 %vm717_vm0, %v4035_v12 }
0x1a89   : > { %5421 = vmatmul.mubr.msk.f32.vlgmr.msra.gmra.mrb[8].mxu0 %vm717_vm0, %v5415_v11 }
0x1a8a   : > { %5654 = vmatpush3.bf16.xpose.msra.mxu0 %v5651_v6  ;;  %5434 = vmatprep.mubr.f32.mxu0 %v6518_v20 }
0x1a8e   : > { %v5429_v13 = vpop.f32.mrb[42].mxu1 }
0x1a8f   : > { %v4208_v15 = vadd.f32 %v5429_v13, %v4919_v14  ;;  %v4202_v17 = vpop.f32.mrb[43].mxu1 }
0x1a90   : > { %v4203_v18 = vadd.f32 %v4919_v14, %v4202_v17 }
0x1a91   : > { %5435 = vmatmul.mubr.f32.vlgmr.msra.gmra.mrb[30].mxu0 %v6525_v2 }
0x1a92   : > { %5448 = vmatprep.mubr.msk.f32.mxu0 %vm717_vm0, %v4203_v18 }
0x1a96   : > { %v5443_v43 = vpop.f32.mrb[44].mxu1 }
0x1a97   : > { %v4366_v45 = vpop.f32.mrb[45].mxu1  ;;  %v4372_v46 = vadd.f32 %v5443_v43, %v4921_v44 }
0x1a98   : > { %v4367_v47 = vadd.f32 %v4921_v44, %v4366_v45 }
0x1a9a   : > { %v5665_v48 = vpack.c.bf16 %v4372_v46, %v4367_v47 }
0x1a9c   : > { %5666 = vmatprep.subr.bf16.mxu1 %v5665_v48 }
0x1a9d   : > { %5668 = vmatpush3.bf16.msra.mxu1 %v5665_v48 }
0x1b64   : > { %v5436_v21 = vpop.f32.mrb[30].mxu0 }
0x1b65   : > { %v4290_v22 = vadd.f32 %v5436_v21, %v4920_v19  ;;  %v4284_v23 = vpop.f32.mrb[31].mxu0 }
0x1b66   : > { %v4285_v7 = vadd.f32 %v4920_v19, %v4284_v23  ;;  %v4931_v19 = vld [vmem:[#allocation9] ss:$0 sm:$0xff]  ;;  %v4932_v23 = vld [vmem:[#allocation10] ss:$0 sm:$0xff] }
0x1b68   : > { %v5659_v24 = vpack.c.bf16 %v4290_v22, %v4285_v7 }
0x1b6a   : > { %5661 = vmatprep.subr.msk.bf16.mxu0 %vm6308_vm1, %v5659_v24 }
0x1b6b   : > { %5664 = vmatpush3.bf16.xpose.msk.msra.mxu0 %vm6308_vm1, %v5659_v24 }
0x1b6c   : > { %5670 = vmatprep.subr.bf16.mxu0 %v5669_v51 }
0x1b72   : > { %5449 = vmatmul.mubr.msk.f32.vlgmr.msra.gmra.mrb[32].mxu0 %vm717_vm0, %v4208_v15 }
0x1b73   : > { %5672 = vmatpush3.bf16.msra.mxu0 %v5669_v51 }
0x1c45   : > { %v5450_v28 = vpop.f32.mrb[32].mxu0 }
0x1c46   : > { %v4463_v29 = vmul.f32 0.25, %v5450_v28  ;;  %v4453_v30 = vpop.f32.mrb[33].mxu0 }
0x1c47   : > { %v4462_v31 = vmul.f32 0.25, %v4453_v30 }
0x1c48   : > { %v4467_v32 = vsel %vm717_vm0, %v4463_v29, -inf }
0x1c49   : > { %4468 = vmax.xlane.f32.xlu1 %v4467_v32  ;;  %v4464_v33 = vsel %vm717_vm0, %v4462_v31, -inf }
0x1c4a   : > { %4465 = vmax.xlane.f32.xlu0 %v4464_v33 }
0x1cd6   : > { %v4469_v16 = vpop.xlane.xlu1 %4468 }
0x1cd7   : > { %v4471_v34 = vsub.f32 %v4463_v29, %v4469_v16  ;;  %v4466_v35 = vpop.xlane.xlu0 %4465 }
0x1cd8   : > { %v4470_v36 = vsub.f32 %v4462_v31, %v4466_v35 }
0x1cd9   : > { %v4474_v37 = vmul.f32 1.442695, %v4471_v34 }
0x1cda   : > { %v4472_v38 = vmul.f32 1.442695, %v4470_v36 }
0x1cdb   : > { %5814 = vpow2.f32 %v4474_v37 }
0x1cdc   : > { %5816 = vpow2.f32 %v4472_v38 }
0x1ce5   : > { %v5815_v39 = vpop.eup %5814 }
0x1ce6   : > { %v5817_v40 = vpop.eup %5816  ;;  %v4479_v41 = vsel %vm717_vm0, %v5815_v39, 0.0 }
0x1ce7   : > { %4480 = vadd.xlane.f32.xlu1 %v4479_v41  ;;  %v4476_v42 = vsel %vm717_vm0, %v5817_v40, 0.0 }
0x1ce8   : > { %4477 = vadd.xlane.f32.xlu0 %v4476_v42 }
0x1d74   : > { %v4481_v52 = vpop.xlane.xlu1 %4480 }
0x1d75   : > { %5818 = vrcp.f32 %v4481_v52  ;;  %v4478_v53 = vpop.xlane.xlu0 %4477 }
0x1d76   : > { %5820 = vrcp.f32 %v4478_v53 }
0x1d7f   : > { %v5819_v54 = vpop.eup %5818 }
0x1d80   : > { %v5821_v55 = vpop.eup %5820  ;;  %v4485_v57 = vmul.f32 %v5819_v54, %v5815_v39 }
0x1d81   : > { %v4484_v56 = vmul.f32 %v5821_v55, %v5817_v40 }
0x1d83   : > { %5455 = vmatprep.mubr.msk.f32.mxu1 %vm717_vm0, %v4484_v56 }
0x1d84   : > { %5456 = vmatmul.mubr.msk.f32.vlgmr.msra.gmra.mrb[46].mxu1 %vm717_vm0, %v4485_v57 }
0x1e57   : > { %v5457_v58 = vpop.f32.mrb[46].mxu1 }
0x1e58   : > { %v4558_v59 = vpop.f32.mrb[47].mxu1 }
0x1e59   : > { %5462 = vmatprep.mubr.msk.f32.mxu0 %vm717_vm0, %v4558_v59 }
0x1e5a   : > { %5463 = vmatmul.mubr.msk.f32.vlgmr.msra.gmra.mrb[8].mxu0 %vm717_vm0, %v5457_v58 }
0x1f2d   : > { %v5464_v60 = vpop.f32.mrb[8].mxu0 }
0x1f2e   : > { %v4653_v62 = vadd.f32 %v6525_v2, %v5464_v60  ;;  %v4641_v63 = vpop.f32.mrb[9].mxu0 }
0x1f2f   : > { %v4652_v0 = vadd.f32 %v6518_v20, %v4641_v63 }
0x1f30   : > { %v4662_v1 = vadd.f32 %v4930_v61, %v4653_v62 }
0x1f31   : > { %v4661_v3 = vadd.f32 %v4930_v61, %v4652_v0 }
0x1f32   : > { %4667 = vadd.xlane.f32.xlu1 %v4662_v1 }
0x1f33   : > { %4665 = vadd.xlane.f32.xlu0 %v4661_v3 }
0x1fbf   : > { %v4668_v4 = vpop.xlane.xlu1 %4667 }
0x1fc0   : > { %v4671_v5 = vmul.f32 0.0078125, %v4668_v4  ;;  %v4666_v6 = vpop.xlane.xlu0 %4665 }
0x1fc1   : > { %v4670_v8 = vmul.f32 0.0078125, %v4666_v6 }
0x1fc2   : > { %v4673_v9 = vsub.f32 %v4662_v1, %v4671_v5 }
0x1fc3   : > { %v4672_v10 = vsub.f32 %v4661_v3, %v4670_v8 }
0x1fc4   : > { %v4675_v11 = vmul.f32 %v4673_v9, %v4673_v9 }
0x1fc5   : > { %v4674_v12 = vmul.f32 %v4672_v10, %v4672_v10 }
0x1fc6   : > { %4678 = vadd.xlane.f32.xlu1 %v4675_v11 }
0x1fc7   : > { %4676 = vadd.xlane.f32.xlu0 %v4674_v12 }
0x2053   : > { %v4679_v13 = vpop.xlane.xlu1 %4678 }
0x2054   : > { %v4681_v2 = vmul.f32 0.0078125, %v4679_v13  ;;  %v4677_v14 = vpop.xlane.xlu0 %4676 }
0x2055   : > { %v4680_v15 = vmul.f32 0.0078125, %v4677_v14 }
0x2056   : > { %v4683_v20 = vadd.f32 1e-05, %v4681_v2 }
0x2057   : > { %v4682_v17 = vadd.f32 1e-05, %v4680_v15 }
0x2058   : > { %5822 = vrsqrt.f32 %v4683_v20 }
0x2059   : > { %5824 = vrsqrt.f32 %v4682_v17 }
0x2062   : > { %v5823_v18 = vpop.eup %5822 }
0x2063   : > { %v5825_v21 = vpop.eup %5824  ;;  %v4687_v22 = vmul.f32 %v5823_v18, %v4673_v9 }
0x2064   : > { %v4686_v7 = vmul.f32 %v5825_v21, %v4672_v10 }
0x2065   : > { %v4695_v24 = vmul.f32 %v4931_v19, %v4687_v22 }
0x2066   : > { %v4694_v25 = vmul.f32 %v4931_v19, %v4686_v7 }
0x2067   : > { %v4703_v26 = vadd.f32 %v4932_v23, %v4695_v24 }
0x2068   : > { %v4702_v27 = vadd.f32 %v4932_v23, %v4694_v25 }
0x2069   : > { %4705 = vst [vmem:[%s468_s25 + $0x8] sm:$0xff] %v4703_v26 }
0x206a   : > { %4704 = vst [vmem:[%s468_s25] sm:$0xff] %v4702_v27 }
0x206b PF: > { %s6633_s27 = sld [smem:[#allocation16_spill]] }
0x2071   : > { %s25_s17 = sadd.s32 1, %s6633_s27  }
0x2072   : > { %p22_p9 = scmp.ge.s32.totalorder %s25_s17, 4  }
0x2074   :  { %24 = sbr.rel (!%p22_p9) target bundleno = 4 (0x4), region = 119 }
0x207b   :  { %4727 = vsyncpa [#allocation3], 1 }
0x207c   :  { %4729 = vsyncpa [#allocation3 + $0x1], 1 }
0x207d   :  { %4730 = vsyncpa [#allocation5], 1 }
0x207e   :  { %4731 = vsyncpa [#allocation8], 1 }
0x207f   :  { %4732 = vsyncpa [#allocation11], 1 }

// kernel: transformer_pointnet_forward.11
= control target key start
LH: loop header
LB: loop body
LE: loop exit
PB: predicated region body
PF: predicated region fallthrough
CT: control target
= control target key end

     0   :  { %s892_s11 = smov 0   ;;  %s1132_s0 = inlined_call_operand.vmem [shape: f32[32,128], index: 0, kind: input, shape index: {}]   ;;  %s1133_s1 = inlined_call_operand.vmem [shape: f32[256,128], index: 1, kind: input, shape index: {}]   ;;  %s1134_s2 = inlined_call_operand.vmem [shape: f32[1,256], index: 2, kind: input, shape index: {}]   ;;  %s1135_s3 = inlined_call_operand.vmem [shape: f32[128,256], index: 3, kind: input, shape index: {}]   ;;  %s1136_s4 = inlined_call_operand.vmem [shape: f32[1,128], index: 4, kind: input, shape index: {}]   ;;  %s1137_s5 = inlined_call_operand.vmem [shape: f32[1,128], index: 5, kind: input, shape index: {}]   ;;  %s1138_s6 = inlined_call_operand.vmem [shape: f32[1,128], index: 6, kind: input, shape index: {}]   ;;  %s1139_s7 = inlined_call_operand.vmem [shape: f32[1,128], index: 7, kind: input, shape index: {}]   ;;  %s1140_s8 = inlined_call_operand.<no memory space> [shape: f32[1,1], index: 8, kind: input, shape index: {}]   ;;  %s1141_s9 = inlined_call_operand.vmem [shape: f32[32,1], index: 9, kind: output, shape index: {}]  }
   0x1   :  { %v14_v0 = vstv %s1140_s8 }
   0x2   :  { %15 = vst [vmem:[#allocation2] sm:$0x1] %v14_v0 }
   0x3 LB: > { %s703_s12 = sadd.s32 4294967295, %s837_s11   ;;  %p707_p0 = scmp.ge.s32.totalorder %s837_s11, 1  ;;  %s837_s11 = sphi %s892_s11, %s21_s11  }
   0x4   : > { %p290_p1 = scmp.lt.s32.totalorder %s837_s11, 3 }
   0x6   : > { %p291_p2 = pnand %p707_p0, %p290_p1 }
   0x7   : > { %v356_v1 = vld [vmem:[%s1133_s1 + $0x80] sm:$0xff] (!%p291_p2)  ;;  %v357_v2 = vld [vmem:[%s1133_s1 + $0x88] sm:$0xff] (!%p291_p2)  ;;  %s708_s18 = sshll.u32 (!%p291_p2), %s703_s12, 1  ;;  %v358_v6 = vld [vmem:[%s1133_s1 + $0x90] sm:$0xff] (!%p291_p2)  ;;  %vm644_vm0 = vcmask (!%p291_p2), 7168  }
   0x8   : > { %294 = sbr.rel (%p291_p2) target bundleno = 970 (0x3ca), region = 56  ;;  %v340_v3 = vld [vmem:[%s1133_s1] sm:$0xff] (!%p291_p2)  ;;  %v755_v4 = vpack.c.bf16 (!%p291_p2), %v357_v2, %v356_v1  ;;  %v341_v5 = vld [vmem:[%s1133_s1 + $0x8] sm:$0xff] (!%p291_p2)  ;;  %v359_v7 = vld [vmem:[%s1133_s1 + $0x98] sm:$0xff] (!%p291_p2)  ;;  %p327_p3 = scmp.lt.s32.totalorder (!%p291_p2), %s708_s18, 3 }
   0x9   : > { %v757_v8 = vpack.c.bf16 (!%p291_p2), %v341_v5, %v340_v3  ;;  %v759_v9 = vpack.c.bf16 (!%p291_p2), %v359_v7, %v358_v6  ;;  %v342_v10 = vld [vmem:[%s1133_s1 + $0x10] sm:$0xff] (!%p291_p2)  ;;  %v343_v11 = vld [vmem:[%s1133_s1 + $0x18] sm:$0xff] (!%p291_p2)  ;;  %v360_v12 = vld [vmem:[%s1133_s1 + $0xa0] sm:$0xff] (!%p291_p2) }
   0xa   : > { %756 = vmatprep.subr.bf16.mxu0 (!%p291_p2), %v755_v4  ;;  %v361_v13 = vld [vmem:[%s1133_s1 + $0xa8] sm:$0xff] (!%p291_p2)  ;;  %v761_v14 = vpack.c.bf16 (!%p291_p2), %v343_v11, %v342_v10  ;;  %v468_v18 = vld [vmem:[%s1135_s3 + $0x18] sm:$0xff] (!%p291_p2)  ;;  %v465_v20 = vld [vmem:[%s1135_s3] sm:$0xff] (!%p291_p2) }
   0xb   : > { %758 = vmatpush3.bf16.xpose.msra.mxu0 (!%p291_p2), %v757_v8  ;;  %v763_v15 = vpack.c.bf16 (!%p291_p2), %v361_v13, %v360_v12  ;;  %v466_v17 = vld [vmem:[%s1135_s3 + $0x8] sm:$0xff] (!%p291_p2)  ;;  %v467_v21 = vld [vmem:[%s1135_s3 + $0x10] sm:$0xff] (!%p291_p2)  ;;  %v344_v23 = vld [vmem:[%s1133_s1 + $0x20] sm:$0xff] (!%p291_p2) }
   0xc   : > { %760 = vmatprep.subr.bf16.mxu0 (!%p291_p2), %v759_v9  ;;  %v787_v19 = vpack.c.bf16 (!%p291_p2), %v468_v18, %v466_v17  ;;  %v470_v22 = vld [vmem:[%s1135_s3 + $0x28] sm:$0xff] (!%p291_p2)  ;;  %v789_v25 = vpack.c.bf16 (!%p291_p2), %v467_v21, %v465_v20  ;;  %v472_v26 = vld [vmem:[%s1135_s3 + $0x38] sm:$0xff] (!%p291_p2)  ;;  %v362_v27 = vld [vmem:[%s1133_s1 + $0xb0] sm:$0xff] (!%p291_p2) }
   0xd   : > { %v345_v24 = vld [vmem:[%s1133_s1 + $0x28] sm:$0xff] (!%p291_p2)  ;;  %v363_v28 = vld [vmem:[%s1133_s1 + $0xb8] sm:$0xff] (!%p291_p2)  ;;  %v791_v29 = vpack.c.bf16 (!%p291_p2), %v472_v26, %v470_v22  ;;  %v469_v31 = vld [vmem:[%s1135_s3 + $0x20] sm:$0xff] (!%p291_p2) }
   0xe   : > { %788 = vmatprep.subr.bf16.mxu1 (!%p291_p2), %v787_v19  ;;  %v765_v30 = vpack.c.bf16 (!%p291_p2), %v345_v24, %v344_v23  ;;  %v471_v32 = vld [vmem:[%s1135_s3 + $0x30] sm:$0xff] (!%p291_p2)  ;;  %v767_v33 = vpack.c.bf16 (!%p291_p2), %v363_v28, %v362_v27  ;;  %v474_v34 = vld [vmem:[%s1135_s3 + $0x48] sm:$0xff] (!%p291_p2)  ;;  %v476_v35 = vld [vmem:[%s1135_s3 + $0x58] sm:$0xff] (!%p291_p2) }
   0xf   : > { %s1143_s18 = smov (!%p327_p3, %s708_s18), 3  ;;  %790 = vmatpush1.bf16.xpose.msra.mxu1 %v789_v25  ;;  %v793_v36 = vpack.c.bf16 %v471_v32, %v469_v31  ;;  %v795_v37 = vpack.c.bf16 %v476_v35, %v474_v34  ;;  %v346_v38 = vld [vmem:[%s1133_s1 + $0x30] sm:$0xff]  ;;  %v347_v39 = vld [vmem:[%s1133_s1 + $0x38] sm:$0xff]  ;;  %v364_v40 = vld [vmem:[%s1133_s1 + $0xc0] sm:$0xff] }
  0x10   : > { %s709_s29 = sshll.u32 %s1143_s18, 3  ;;  %792 = vmatprep.subr.bf16.mxu1 %v791_v29  ;;  %v365_v41 = vld [vmem:[%s1133_s1 + $0xc8] sm:$0xff]  ;;  %v769_v42 = vpack.c.bf16 %v347_v39, %v346_v38  ;;  %v473_v43 = vld [vmem:[%s1135_s3 + $0x40] sm:$0xff]  ;;  %v475_v44 = vld [vmem:[%s1135_s3 + $0x50] sm:$0xff] }
  0x11   : > { %s938_s15 = scalar_lea.vmem %s1132_s0, %s709_s29  ;;  %v771_v45 = vpack.c.bf16 %v365_v41, %v364_v40  ;;  %v478_v46 = vld [vmem:[%s1135_s3 + $0x68] sm:$0xff]  ;;  %v480_v47 = vld [vmem:[%s1135_s3 + $0x78] sm:$0xff]  ;;  %v797_v48 = vpack.c.bf16 %v475_v44, %v473_v43  ;;  %v348_v50 = vld [vmem:[%s1133_s1 + $0x40] sm:$0xff]  ;;  %s336_s28 = scalar_lea.vmem %s1141_s9, %s709_s29 }
  0x12   : > { %v941_v16 = vld [vmem:[%s938_s15] sm:$0xff]  ;;  %v799_v49 = vpack.c.bf16 %v480_v47, %v478_v46  ;;  %v349_v51 = vld [vmem:[%s1133_s1 + $0x48] sm:$0xff]  ;;  %v366_v52 = vld [vmem:[%s1133_s1 + $0xd0] sm:$0xff] }
  0x13   : > { %751 = vmatprep.mubr.f32.mxu0 %v941_v16  ;;  %762 = vmatpush3.bf16.xpose.msra.mxu0 %v761_v14  ;;  %v367_v53 = vld [vmem:[%s1133_s1 + $0xd8] sm:$0xff]  ;;  %v773_v54 = vpack.c.bf16 %v349_v51, %v348_v50  ;;  %v477_v55 = vld [vmem:[%s1135_s3 + $0x60] sm:$0xff]  ;;  %v479_v56 = vld [vmem:[%s1135_s3 + $0x70] sm:$0xff] }
  0x14   : > { %764 = vmatprep.subr.bf16.mxu0 %v763_v15  ;;  %v775_v57 = vpack.c.bf16 %v367_v53, %v366_v52  ;;  %v482_v58 = vld [vmem:[%s1135_s3 + $0x88] sm:$0xff]  ;;  %v484_v59 = vld [vmem:[%s1135_s3 + $0x98] sm:$0xff]  ;;  %v801_v60 = vpack.c.bf16 %v479_v56, %v477_v55  ;;  %v350_v62 = vld [vmem:[%s1133_s1 + $0x50] sm:$0xff] }
  0x15   : > { %v803_v61 = vpack.c.bf16 %v484_v59, %v482_v58  ;;  %v351_v63 = vld [vmem:[%s1133_s1 + $0x58] sm:$0xff]  ;;  %v368_v0 = vld [vmem:[%s1133_s1 + $0xe0] sm:$0xff]  ;;  %v369_v1 = vld [vmem:[%s1133_s1 + $0xe8] sm:$0xff] }
  0x16   : > { %v777_v2 = vpack.c.bf16 %v351_v63, %v350_v62  ;;  %v481_v3 = vld [vmem:[%s1135_s3 + $0x80] sm:$0xff]  ;;  %v483_v4 = vld [vmem:[%s1135_s3 + $0x90] sm:$0xff]  ;;  %v779_v5 = vpack.c.bf16 %v369_v1, %v368_v0  ;;  %v486_v6 = vld [vmem:[%s1135_s3 + $0xa8] sm:$0xff] }
  0x17   : > { %794 = vmatpush1.bf16.xpose.msra.mxu1 %v793_v36  ;;  %v488_v7 = vld [vmem:[%s1135_s3 + $0xb8] sm:$0xff]  ;;  %v805_v8 = vpack.c.bf16 %v483_v4, %v481_v3  ;;  %v352_v10 = vld [vmem:[%s1133_s1 + $0x60] sm:$0xff]  ;;  %v353_v11 = vld [vmem:[%s1133_s1 + $0x68] sm:$0xff]  ;;  %v374_v36 = vlaneseq }
  0x18   : > { %796 = vmatprep.subr.bf16.mxu1 %v795_v37  ;;  %v807_v9 = vpack.c.bf16 %v488_v7, %v486_v6  ;;  %v370_v12 = vld [vmem:[%s1133_s1 + $0xf0] sm:$0xff]  ;;  %v371_v13 = vld [vmem:[%s1133_s1 + $0xf8] sm:$0xff]  ;;  %v781_v14 = vpack.c.bf16 %v353_v11, %v352_v10  ;;  %v485_v15 = vld [vmem:[%s1135_s3 + $0xa0] sm:$0xff] }
  0x19   : > { %v487_v17 = vld [vmem:[%s1135_s3 + $0xb0] sm:$0xff]  ;;  %v783_v18 = vpack.c.bf16 %v371_v13, %v370_v12  ;;  %v490_v19 = vld [vmem:[%s1135_s3 + $0xc8] sm:$0xff]  ;;  %v492_v20 = vld [vmem:[%s1135_s3 + $0xd8] sm:$0xff]  ;;  %v375_v37 = vshrl.u32 %v374_v36, 7 }
  0x1a   : > { %v809_v21 = vpack.c.bf16 %v487_v17, %v485_v15  ;;  %v811_v22 = vpack.c.bf16 %v492_v20, %v490_v19  ;;  %v354_v23 = vld [vmem:[%s1133_s1 + $0x70] sm:$0xff]  ;;  %v355_v24 = vld [vmem:[%s1133_s1 + $0x78] sm:$0xff]  ;;  %v489_v26 = vld [vmem:[%s1135_s3 + $0xc0] sm:$0xff] }
  0x1b   : > { %766 = vmatpush3.bf16.xpose.msra.mxu0 %v765_v30  ;;  %v785_v25 = vpack.c.bf16 %v355_v24, %v354_v23  ;;  %v491_v27 = vld [vmem:[%s1135_s3 + $0xd0] sm:$0xff]  ;;  %v494_v28 = vld [vmem:[%s1135_s3 + $0xe8] sm:$0xff]  ;;  %v496_v29 = vld [vmem:[%s1135_s3 + $0xf8] sm:$0xff]  ;;  %v376_v38 = vsub.s32 0, %v375_v37  ;;  %v380_v40 = vsub.s32 1, %v375_v37 }
  0x1c   : > { %768 = vmatprep.subr.bf16.mxu0 %v767_v33  ;;  %v813_v30 = vpack.c.bf16 %v491_v27, %v489_v26  ;;  %v815_v31 = vpack.c.bf16 %v496_v29, %v494_v28  ;;  %v339_v32 = vld [vmem:[%s938_s15 + $0x8] sm:$0xff]  ;;  %v493_v33 = vld [vmem:[%s1135_s3 + $0xe0] sm:$0xff]  ;;  %v495_v34 = vld [vmem:[%s1135_s3 + $0xf0] sm:$0xff] }
  0x1d   : > { %v817_v35 = vpack.c.bf16 %v495_v34, %v493_v33  ;;  %v372_v39 = vld [vmem:[%s1134_s2] sm:$0x3] }
  0x1e   : > { %v377_v41 = vrot.slane %v372_v39, %v376_v38  ;;  %v712_v55 = vld [vmem:[%s1136_s4] ss:$0 sm:$0xff] }
  0x1f   : > { %798 = vmatpush1.bf16.xpose.msra.mxu1 %v797_v48  ;;  %v714_v17 = vld [vmem:[%s1138_s6] ss:$0 sm:$0xff] }
  0x20   : > { %800 = vmatprep.subr.bf16.mxu1 %v799_v49  ;;  %v715_v20 = vld [vmem:[%s1139_s7] ss:$0 sm:$0xff] }
  0x21   : > { %v716_v27 = vld [vmem:[#allocation2] ss:$0 sm:$0xff] }
  0x23   : > { %770 = vmatpush3.bf16.xpose.msra.mxu0 %v769_v42  ;;  %v381_v42 = vrot.slane %v372_v39, %v380_v40 }
  0x24   : > { %772 = vmatprep.subr.bf16.mxu0 %v771_v45 }
  0x27   : > { %802 = vmatpush1.bf16.xpose.msra.mxu1 %v801_v60 }
  0x28   : > { %804 = vmatprep.subr.bf16.mxu1 %v803_v61 }
  0x2b   : > { %774 = vmatpush3.bf16.xpose.msra.mxu0 %v773_v54 }
  0x2c   : > { %776 = vmatprep.subr.bf16.mxu0 %v775_v57 }
  0x2f   : > { %806 = vmatpush1.bf16.xpose.msra.mxu1 %v805_v8 }
  0x30   : > { %808 = vmatprep.subr.bf16.mxu1 %v807_v9 }
  0x33   : > { %778 = vmatpush3.bf16.xpose.msra.mxu0 %v777_v2 }
  0x34   : > { %780 = vmatprep.subr.bf16.mxu0 %v779_v5 }
  0x37   : > { %810 = vmatpush1.bf16.xpose.msra.mxu1 %v809_v21 }
  0x38   : > { %812 = vmatprep.subr.bf16.mxu1 %v811_v22 }
  0x3b   : > { %782 = vmatpush3.bf16.xpose.msra.mxu0 %v781_v14  ;;  %v713_v14 = vld [vmem:[%s1137_s5] ss:$0 sm:$0xff] }
  0x3c   : > { %784 = vmatprep.subr.bf16.mxu0 %v783_v18 }
  0x3f   : > { %814 = vmatpush1.bf16.xpose.msra.mxu1 %v813_v30 }
  0x40   : > { %816 = vmatprep.subr.bf16.mxu1 %v815_v31 }
  0x43   : > { %786 = vmatpush3.bf16.xpose.msra.mxu0 %v785_v25 }
  0x47   : > { %818 = vmatpush1.bf16.xpose.msra.mxu1 %v817_v35 }
  0x4a   : > { %752 = vmatmul.mubr.f32.vlgmr.msra.gmra.mrb[0].mxu0 %v941_v16 }
  0x4b   : > { %753 = vmatprep.mubr.f32.mxu0 %v339_v32 }
  0x4e   : > { %754 = vmatmul.mubr.f32.gmra.mrb[2].mxu0 %v339_v32 }
 0x11d   : > { %v450_v43 = vpop.f32.mrb[0].mxu0 }
 0x11e   : > { %v451_v44 = vadd.f32 %v450_v43, %v377_v41  ;;  %v452_v45 = vpop.f32.mrb[1].mxu0 }
 0x11f   : > { %v453_v46 = vadd.f32 %v452_v45, %v381_v42 }
 0x120   : > { %v461_v49 = vmax.f32 %v451_v44, 0.0 }
 0x121   : > { %v456_v47 = vpop.f32.mrb[2].mxu0  ;;  %v462_v48 = vmax.f32 %v453_v46, 0.0 }
 0x122   : > { %v457_v50 = vadd.f32 %v456_v47, %v377_v41  ;;  %v458_v51 = vpop.f32.mrb[3].mxu0 }
 0x123   : > { %v459_v52 = vadd.f32 %v458_v51, %v381_v42  ;;  %568 = vmatprep.mubr.f32.mxu1 %v462_v48 }
 0x124   : > { %569 = vmatmul.mubr.f32.vlgmr.msra.gmra.mrb[0].mxu1 %v461_v49  ;;  %v463_v54 = vmax.f32 %v457_v50, 0.0 }
 0x125   : > { %v464_v53 = vmax.f32 %v459_v52, 0.0 }
 0x127   : > { %573 = vmatprep.mubr.f32.mxu1 %v464_v53 }
 0x128   : > { %574 = vmatmul.mubr.f32.gmra.mrb[2].mxu1 %v463_v54 }
 0x1f7   : > { %v570_v56 = vpop.f32.mrb[0].mxu1 }
 0x1f8   : > { %v571_v57 = vadd.f32 %v712_v55, %v570_v56  ;;  %v572_v58 = vpop.f32.mrb[1].mxu1 }
 0x1fa   : > { %v579_v59 = vadd.f32 %v571_v57, %v941_v16 }
 0x1fb   : > { %v575_v60 = vpop.f32.mrb[2].mxu1 }
 0x1fc   : > { %v576_v61 = vadd.f32 %v712_v55, %v575_v60  ;;  %v577_v62 = vpop.f32.mrb[3].mxu1  ;;  %583 = vadd.xlane.f32.xlu0 %v579_v59 }
 0x1fe   : > { %v580_v63 = vadd.f32 %v576_v61, %v339_v32 }
 0x200   : > { %585 = vadd.xlane.f32.xlu0 %v580_v63 }
 0x289   : > { %v584_v0 = vpop.xlane.xlu0 %583 }
 0x28a   : > { %v588_v1 = vmul.f32 0.0078125, %v584_v0 }
 0x28c   : > { %v590_v2 = vsub.f32 %v579_v59, %v588_v1 }
 0x28d   : > { %v586_v3 = vpop.xlane.xlu0 %585 }
 0x28e   : > { %v589_v4 = vmul.f32 0.0078125, %v586_v3  ;;  %v592_v5 = vmul.f32 %v590_v2, %v590_v2 }
 0x290   : > { %v591_v6 = vsub.f32 %v580_v63, %v589_v4  ;;  %594 = vadd.xlane.f32.xlu1 %v592_v5 }
 0x292   : > { %v593_v7 = vmul.f32 %v591_v6, %v591_v6 }
 0x294   : > { %596 = vadd.xlane.f32.xlu1 %v593_v7 }
 0x31d   : > { %v595_v8 = vpop.xlane.xlu1 %594 }
 0x31e   : > { %v598_v9 = vmul.f32 0.0078125, %v595_v8 }
 0x320   : > { %v600_v10 = vadd.f32 1e-05, %v598_v9 }
 0x321   : > { %v597_v16 = vpop.xlane.xlu1 %596 }
 0x322   : > { %827 = vrsqrt.f32 %v600_v10  ;;  %v599_v11 = vmul.f32 0.0078125, %v597_v16 }
 0x324   : > { %v601_v12 = vadd.f32 1e-05, %v599_v11 }
 0x326   : > { %829 = vrsqrt.f32 %v601_v12 }
 0x32c   : > { %v828_v13 = vpop.eup %827 }
 0x32d   : > { %v604_v15 = vmul.f32 %v828_v13, %v590_v2 }
 0x32f   : > { %v612_v18 = vmul.f32 %v713_v14, %v604_v15 }
 0x330   : > { %v830_v19 = vpop.eup %829 }
 0x331   : > { %v620_v21 = vadd.f32 %v714_v17, %v612_v18  ;;  %v605_v22 = vmul.f32 %v830_v19, %v591_v6 }
 0x333   : > { %v629_v23 = vmul.f32 %v715_v20, %v620_v21  ;;  %v613_v24 = vmul.f32 %v713_v14, %v605_v22 }
 0x335   : > { %631 = vadd.xlane.f32.xlu0 %v629_v23  ;;  %v621_v25 = vadd.f32 %v714_v17, %v613_v24 }
 0x337   : > { %v630_v26 = vmul.f32 %v715_v20, %v621_v25 }
 0x339   : > { %633 = vadd.xlane.f32.xlu1 %v630_v26 }
 0x3c2   : > { %v632_v28 = vpop.xlane.xlu0 %631 }
 0x3c3   : > { %v642_v29 = vadd.f32 %v716_v27, %v632_v28 }
 0x3c5   : > { %645 = vst.msk [vmem:[%s336_s28] sm:$0xff] %vm644_vm0, %v642_v29 }
 0x3c6   : > { %v634_v30 = vpop.xlane.xlu1 %633 }
 0x3c7   : > { %v643_v31 = vadd.f32 %v716_v27, %v634_v30 }
 0x3c9   : > { %646 = vst.msk [vmem:[%s336_s28 + $0x8] sm:$0xff] %vm644_vm0, %v643_v31 }
 0x3ca PF: > { %s21_s11 = sadd.s32 1, %s837_s11  }
 0x3cb   : > { %p18_p4 = scmp.ge.s32.totalorder %s21_s11, 4  }
 0x3cd   :  { %20 = sbr.rel (!%p18_p4) target bundleno = 3 (0x3), region = 86 }

// kernel: transformer_pointnet_forward.10
= control target key start
LH: loop header
LB: loop body
LE: loop exit
PB: predicated region body
PF: predicated region fallthrough
CT: control target
= control target key end

     0   :  { %s5750_s21 = smov 0   ;;  %s6250_s0 = inlined_call_operand.vmem [shape: f32[2,16,128], index: 0, kind: input, shape index: {}]   ;;  %s6251_s1 = inlined_call_operand.vmem [shape: f32[2,16,128], index: 1, kind: input, shape index: {}]   ;;  %s6252_s2 = inlined_call_operand.vmem [shape: f32[128,128], index: 2, kind: input, shape index: {}]   ;;  %s6253_s3 = inlined_call_operand.vmem [shape: f32[128,128], index: 3, kind: input, shape index: {}]   ;;  %s6254_s4 = inlined_call_operand.vmem [shape: f32[128,128], index: 4, kind: input, shape index: {}]   ;;  %s6255_s5 = inlined_call_operand.vmem [shape: f32[8,16], index: 5, kind: input, shape index: {}]   ;;  %s6256_s6 = inlined_call_operand.vmem [shape: f32[8,16], index: 6, kind: input, shape index: {}]   ;;  %s6257_s7 = inlined_call_operand.vmem [shape: f32[8,16], index: 7, kind: input, shape index: {}]   ;;  %s6258_s8 = inlined_call_operand.vmem [shape: f32[128,128], index: 8, kind: input, shape index: {}]   ;;  %s6259_s9 = inlined_call_operand.vmem [shape: f32[1,128], index: 9, kind: input, shape index: {}]   ;;  %s6260_s10 = inlined_call_operand.vmem [shape: f32[1,128], index: 10, kind: input, shape index: {}]   ;;  %s6261_s11 = inlined_call_operand.vmem [shape: f32[1,128], index: 11, kind: input, shape index: {}]   ;;  %s6262_s12 = inlined_call_operand.vmem [shape: f32[2,16,128], index: 12, kind: output, shape index: {}]  }
   0x1 LB: > { %s4740_s22 = sadd.s32 4294967295, %s5683_s21   ;;  %p4744_p0 = scmp.ge.s32.totalorder %s5683_s21, 1  ;;  %s5683_s21 = sphi %s5750_s21, %s22_s21  }
   0x2   : > { %p372_p1 = scmp.lt.s32.totalorder %s5683_s21, 3 }
   0x4   : > { %p373_p2 = pnand %p4744_p0, %p372_p1 }
   0x5   : > { %v520_v0 = vld [vmem:[%s6253_s3] sm:$0xff] (!%p373_p2)  ;;  %v521_v1 = vld [vmem:[%s6253_s3 + $0x8] sm:$0xff] (!%p373_p2)  ;;  %p419_p3 = scmp.lt.s32.totalorder (!%p373_p2), %s4740_s22, 1  ;;  %vm684_vm0 = vcmask (!%p373_p2), 130048   ;;  %v961_v46 = vld [vmem:[%s6253_s3 + $0x10] sm:$0xff] (!%p373_p2) }
   0x6   : > { %376 = sbr.rel (%p373_p2) target bundleno = 8144 (0x1fd0), region = 68  ;;  %v438_v2 = vld [vmem:[%s6252_s2] sm:$0xff] (!%p373_p2)  ;;  %v5379_v3 = vpack.c.bf16 (!%p373_p2), %v521_v1, %v520_v0  ;;  %v439_v4 = vld [vmem:[%s6252_s2 + $0x8] sm:$0xff] (!%p373_p2)  ;;  %vm5809_vm1 = vmpackc.low (!%p373_p2), %vm684_vm0, %vm684_vm0 }
   0x7   : > { %v5375_v5 = vpack.c.bf16 (!%p373_p2), %v439_v4, %v438_v2  ;;  %v4752_v10 = vld [vmem:[%s6256_s6] ss:$0 sm:$0xff] (!%p373_p2)  ;;  %v603_v23 = vld [vmem:[%s6254_s4 + $0x8] sm:$0xff] (!%p373_p2)  ;;  %v962_v47 = vld [vmem:[%s6253_s3 + $0x18] sm:$0xff] (!%p373_p2) }
   0x8   : > { %5380 = vmatprep.subr.bf16.mxu1 (!%p373_p2), %v5379_v3  ;;  %v4751_v12 = vld [vmem:[%s6255_s5] ss:$0 sm:$0xff] (!%p373_p2)  ;;  %v5401_v49 = vpack.c.bf16 (!%p373_p2), %v962_v47, %v961_v46  ;;  %v879_v50 = vld [vmem:[%s6252_s2 + $0x10] sm:$0xff] (!%p373_p2)  ;;  %v880_v51 = vld [vmem:[%s6252_s2 + $0x18] sm:$0xff] (!%p373_p2) }
   0x9   : > { %5382 = vmatpush3.bf16.xpose.msra.mxu1 (!%p373_p2), %v5379_v3  ;;  %5376 = vmatprep.subr.bf16.mxu0 (!%p373_p2), %v5375_v5  ;;  %v602_v22 = vld [vmem:[%s6254_s4] sm:$0xff] (!%p373_p2)  ;;  %v5397_v52 = vpack.c.bf16 (!%p373_p2), %v880_v51, %v879_v50  ;;  %v1482_v51 = vld [vmem:[%s6252_s2 + $0x28] sm:$0xff] (!%p373_p2) }
   0xa   : > { %5378 = vmatpush3.bf16.xpose.msra.mxu0 (!%p373_p2), %v5375_v5  ;;  %v5383_v24 = vpack.c.bf16 (!%p373_p2), %v603_v23, %v602_v22  ;;  %v4753_v42 = vld [vmem:[%s6257_s7] ss:$0 sm:$0xff] (!%p373_p2)  ;;  %v4761_v59 = vld [vmem:[%s6256_s6 + $0x1] ss:$0 sm:$0xff] (!%p373_p2) }
   0xb   : > { %v4760_v3 = vld [vmem:[%s6255_s5 + $0x1] ss:$0 sm:$0xff] (!%p373_p2) }
   0xc   : > { %5384 = vmatprep.subr.bf16.mxu0 (!%p373_p2), %v5383_v24  ;;  %v877_v47 = vld [vmem:[%s6258_s8] sm:$0xff] (!%p373_p2) }
   0xd   : > { %s6266_s22 = smov (!%p419_p3, %s4740_s22), 1  ;;  %v1481_v50 = vld [vmem:[%s6252_s2 + $0x20] sm:$0xff] }
   0xe   : > { %s5770_s13 = sshll.u32 %s6266_s22, 4 }
   0xf   : > { %s5776_s16 = scalar_lea.vmem %s6251_s1, %s5770_s13  ;;  %s5782_s19 = scalar_lea.vmem %s6250_s0, %s5770_s13 }
  0x10   : > { %v5785_v6 = vld [vmem:[%s5776_s16] sm:$0xff]  ;;  %v5793_v8 = vld [vmem:[%s5776_s16 + $0x8] sm:$0xff]  ;;  %s433_s24 = scalar_lea.vmem %s6262_s12, %s5770_s13 }
  0x11   : > { %v5788_v7 = vld [vmem:[%s5782_s19] sm:$0xff]  ;;  %5050 = vmatprep.mubr.f32.mxu1 %v5785_v6  ;;  %v5796_v9 = vld [vmem:[%s5782_s19 + $0x8] sm:$0xff] }
  0x12   : > { %5043 = vmatprep.mubr.f32.mxu0 %v5788_v7  ;;  %5051 = vmatmul.mubr.f32.vlgmr.msra.gmra.mrb[0].mxu1 %v5793_v8 }
  0x13   : > { %5044 = vmatmul.mubr.f32.vlgmr.msra.gmra.mrb[0].mxu0 %v5796_v9 }
  0x14   : > { %5057 = vmatprep.mubr.f32.mxu0 %v5785_v6  ;;  %5386 = vmatpush3.bf16.xpose.msra.mxu0 %v5383_v24 }
  0x15   : > { %5402 = vmatprep.subr.bf16.mxu0 %v5401_v49 }
  0x1b   : > { %5058 = vmatmul.mubr.f32.vlgmr.msra.gmra.mrb[2].mxu0 %v5793_v8 }
  0x1c   : > { %5085 = vmatprep.mubr.f32.mxu0 %v5785_v6  ;;  %5404 = vmatpush3.bf16.xpose.msra.mxu0 %v5401_v49 }
  0x23   : > { %5086 = vmatmul.mubr.f32.vlgmr.msra.gmra.mrb[4].mxu0 %v5793_v8 }
  0xe5   : > { %v5052_v11 = vpop.f32.mrb[0].mxu1 }
  0xe6   : > { %v599_v13 = vadd.f32 %v5052_v11, %v4752_v10  ;;  %v593_v14 = vpop.f32.mrb[1].mxu1  ;;  %v5045_v15 = vpop.f32.mrb[0].mxu0 }
  0xe7   : > { %v594_v16 = vadd.f32 %v4752_v10, %v593_v14  ;;  %v511_v17 = vpop.f32.mrb[1].mxu0  ;;  %v517_v21 = vadd.f32 %v5045_v15, %v4751_v12 }
  0xe8   : > { %v512_v19 = vadd.f32 %v4751_v12, %v511_v17  ;;  %v1043_v12 = vld [vmem:[%s6254_s4 + $0x10] sm:$0xff] }
  0xe9   : > { %v5387_v20 = vpack.c.bf16 %v599_v13, %v594_v16  ;;  %v1044_v13 = vld [vmem:[%s6254_s4 + $0x18] sm:$0xff] }
  0xea   : > { %5064 = vmatprep.mubr.msk.f32.mxu1 %vm684_vm0, %v512_v19  ;;  %v5405_v14 = vpack.c.bf16 %v1044_v13, %v1043_v12 }
  0xeb   : > { %5389 = vmatprep.subr.msk.bf16.mxu1 %vm5809_vm1, %v5387_v20 }
  0xec   : > { %5392 = vmatpush3.bf16.xpose.msk.msra.mxu1 %vm5809_vm1, %v5387_v20 }
  0xee   : > { %v5059_v31 = vpop.f32.mrb[2].mxu0 }
  0xef   : > { %v681_v43 = vadd.f32 %v5059_v31, %v4753_v42  ;;  %v675_v44 = vpop.f32.mrb[3].mxu0 }
  0xf0   : > { %v676_v45 = vadd.f32 %v4753_v42, %v675_v44 }
  0xf2   : > { %v5393_v48 = vpack.c.bf16 %v681_v43, %v676_v45 }
  0xf3   : > { %5065 = vmatmul.mubr.msk.f32.vlgmr.msra.gmra.mrb[2].mxu1 %vm684_vm0, %v517_v21 }
  0xf4   : > { %5394 = vmatprep.subr.bf16.mxu1 %v5393_v48 }
  0xf5   : > { %5396 = vmatpush3.bf16.msra.mxu1 %v5393_v48  ;;  %v878_v48 = vld [vmem:[%s6258_s8 + $0x8] sm:$0xff] }
  0xf6   : > { %5398 = vmatprep.subr.bf16.mxu1 %v5397_v52  ;;  %v5087_v60 = vpop.f32.mrb[4].mxu0  ;;  %v5423_v49 = vpack.c.bf16 %v878_v48, %v877_v47  ;;  %v2004_v47 = vld [vmem:[%s6252_s2 + $0x30] sm:$0xff]  ;;  %v2005_v48 = vld [vmem:[%s6252_s2 + $0x38] sm:$0xff] }
  0xf7   : > { %v1040_v61 = vadd.f32 %v5087_v60, %v4761_v59  ;;  %v1034_v62 = vpop.f32.mrb[5].mxu0 }
  0xf8   : > { %v1035_v63 = vadd.f32 %v4761_v59, %v1034_v62  ;;  %v4773_v59 = vld [vmem:[%s6255_s5 + $0x2] ss:$0 sm:$0xff] }
  0xfa   : > { %v5409_v0 = vpack.c.bf16 %v1040_v61, %v1035_v63  ;;  %v4774_v63 = vld [vmem:[%s6256_s6 + $0x2] ss:$0 sm:$0xff] }
  0xfc   : > { %5411 = vmatprep.subr.msk.bf16.mxu0 %vm5809_vm1, %v5409_v0 }
  0xfd   : > { %5414 = vmatpush3.bf16.xpose.msk.msra.mxu0 %vm5809_vm1, %v5409_v0 }
 0x1c6   : > { %v5066_v25 = vpop.f32.mrb[2].mxu1 }
 0x1c7   : > { %v763_v26 = vpop.f32.mrb[3].mxu1  ;;  %v773_v28 = vmul.f32 0.25, %v5066_v25 }
 0x1c8   : > { %v772_v27 = vmul.f32 0.25, %v763_v26 }
 0x1c9   : > { %v777_v30 = vsel %vm684_vm0, %v773_v28, -inf }
 0x1ca   : > { %v774_v29 = vsel %vm684_vm0, %v772_v27, -inf }
 0x1cb   : > { %775 = vmax.xlane.f32.xlu0 %v774_v29 }
 0x1cf   : > { %778 = vmax.xlane.f32.xlu0 %v777_v30 }
 0x258   : > { %v776_v32 = vpop.xlane.xlu0 %775 }
 0x259   : > { %v780_v33 = vsub.f32 %v772_v27, %v776_v32 }
 0x25b   : > { %v782_v34 = vmul.f32 1.442695, %v780_v33  ;;  %v4762_v33 = vld [vmem:[%s6257_s7 + $0x1] ss:$0 sm:$0xff] }
 0x25c   : > { %v779_v35 = vpop.xlane.xlu0 %778 }
 0x25d   : > { %5605 = vpow2.f32 %v782_v34  ;;  %v781_v36 = vsub.f32 %v773_v28, %v779_v35 }
 0x25f   : > { %v784_v37 = vmul.f32 1.442695, %v781_v36 }
 0x261   : > { %5607 = vpow2.f32 %v784_v37 }
 0x267   : > { %v5606_v38 = vpop.eup %5605 }
 0x268   : > { %v786_v39 = vsel %vm684_vm0, %v5606_v38, 0.0 }
 0x269   : > { %787 = vadd.xlane.f32.xlu1 %v786_v39  ;;  %v1318_v39 = vld [vmem:[%s6258_s8 + $0x18] sm:$0xff] }
 0x26b   : > { %v5608_v40 = vpop.eup %5607 }
 0x26c   : > { %v789_v41 = vsel %vm684_vm0, %v5608_v40, 0.0 }
 0x26d   : > { %790 = vadd.xlane.f32.xlu1 %v789_v41 }
 0x2f6   : > { %v788_v53 = vpop.xlane.xlu1 %787 }
 0x2f7   : > { %5609 = vrcp.f32 %v788_v53  ;;  %v1563_v53 = vld [vmem:[%s6253_s3 + $0x20] sm:$0xff] }
 0x2fa   : > { %v791_v54 = vpop.xlane.xlu1 %790 }
 0x2fb   : > { %5611 = vrcp.f32 %v791_v54  ;;  %v1564_v54 = vld [vmem:[%s6253_s3 + $0x28] sm:$0xff] }
 0x301   : > { %v5610_v55 = vpop.eup %5609 }
 0x302   : > { %v794_v56 = vmul.f32 %v5610_v55, %v5606_v38  ;;  %v1317_v38 = vld [vmem:[%s6258_s8 + $0x10] sm:$0xff] }
 0x304   : > { %5071 = vmatprep.mubr.msk.f32.mxu1 %vm684_vm0, %v794_v56 }
 0x305   : > { %v5612_v57 = vpop.eup %5611 }
 0x306   : > { %v795_v58 = vmul.f32 %v5612_v57, %v5608_v40  ;;  %v5419_v40 = vpack.c.bf16 %v1318_v39, %v1317_v38  ;;  %v5431_v57 = vpack.c.bf16 %v1564_v54, %v1563_v53  ;;  %v4784_v53 = vld [vmem:[%s6255_s5 + $0x3] ss:$0 sm:$0xff] }
 0x308   : > { %5072 = vmatmul.mubr.msk.f32.vlgmr.msra.gmra.mrb[4].mxu1 %vm684_vm0, %v795_v58  ;;  %5420 = vmatprep.subr.bf16.mxu0 %v5419_v40 }
 0x309   : > { %5400 = vmatpush3.bf16.xpose.msra.mxu1 %v5397_v52  ;;  %5078 = vmatprep.mubr.f32.mxu1 %v5788_v7  ;;  %v5427_v52 = vpack.c.bf16 %v1482_v51, %v1481_v50 }
 0x30a   : > { %5406 = vmatprep.subr.bf16.mxu1 %v5405_v14 }
 0x310   : > { %5079 = vmatmul.mubr.f32.vlgmr.msra.gmra.mrb[6].mxu1 %v5796_v9 }
 0x311   : > { %5092 = vmatprep.mubr.f32.mxu1 %v5785_v6  ;;  %5408 = vmatpush3.bf16.xpose.msra.mxu1 %v5405_v14 }
 0x318   : > { %5093 = vmatmul.mubr.f32.vlgmr.msra.gmra.mrb[8].mxu1 %v5793_v8 }
 0x3db   : > { %v5859_v1 = vpop.f32.mrb[4].mxu1 }
 0x3dc   : > { %v5861_v2 = vpop.f32.mrb[5].mxu1 }
 0x3e3   : > { %v5080_v4 = vpop.f32.mrb[6].mxu1 }
 0x3e4   : > { %v952_v5 = vpop.f32.mrb[7].mxu1  ;;  %v958_v11 = vadd.f32 %v5080_v4, %v4760_v3 }
 0x3e5   : > { %v953_v10 = vadd.f32 %v4760_v3, %v952_v5  ;;  %v1645_v5 = vld [vmem:[%s6254_s4 + $0x20] sm:$0xff] }
 0x3e7   : > { %5099 = vmatprep.mubr.msk.f32.mxu0 %vm684_vm0, %v953_v10  ;;  %v1646_v10 = vld [vmem:[%s6254_s4 + $0x28] sm:$0xff] }
 0x3e8   : > { %5100 = vmatmul.mubr.msk.f32.vlgmr.msra.gmra.mrb[6].mxu0 %vm684_vm0, %v958_v11  ;;  %v5435_v11 = vpack.c.bf16 %v1646_v10, %v1645_v5 }
 0x3e9   : > { %5422 = vmatpush3.bf16.msra.mxu0 %v5419_v40 }
 0x3ea   : > { %5424 = vmatprep.subr.bf16.mxu0 %v5423_v49 }
 0x3eb   : > { %v5094_v32 = vpop.f32.mrb[8].mxu1 }
 0x3ec   : > { %v1116_v34 = vpop.f32.mrb[9].mxu1  ;;  %v1122_v35 = vadd.f32 %v5094_v32, %v4762_v33 }
 0x3ed   : > { %v1117_v36 = vadd.f32 %v4762_v33, %v1116_v34 }
 0x3ef   : > { %v5415_v37 = vpack.c.bf16 %v1122_v35, %v1117_v36  ;;  %v1919_v35 = vld [vmem:[%s6258_s8 + $0x20] sm:$0xff]  ;;  %v1920_v36 = vld [vmem:[%s6258_s8 + $0x28] sm:$0xff] }
 0x3f1   : > { %5416 = vmatprep.subr.bf16.mxu1 %v5415_v37 }
 0x3f2   : > { %5418 = vmatpush3.bf16.msra.mxu1 %v5415_v37  ;;  %v5449_v37 = vpack.c.bf16 %v1920_v36, %v1919_v35 }
 0x3f3   : > { %5428 = vmatprep.subr.bf16.mxu1 %v5427_v52 }
 0x4bb   : > { %v5101_v15 = vpop.f32.mrb[6].mxu0 }
 0x4bc   : > { %v1213_v16 = vmul.f32 0.25, %v5101_v15  ;;  %v1203_v17 = vpop.f32.mrb[7].mxu0 }
 0x4bd   : > { %v1212_v19 = vmul.f32 0.25, %v1203_v17 }
 0x4be   : > { %v1217_v20 = vsel %vm684_vm0, %v1213_v16, -inf }
 0x4bf   : > { %1218 = vmax.xlane.f32.xlu1 %v1217_v20  ;;  %v1214_v21 = vsel %vm684_vm0, %v1212_v19, -inf }
 0x4c0   : > { %1215 = vmax.xlane.f32.xlu0 %v1214_v21 }
 0x54c   : > { %v1219_v22 = vpop.xlane.xlu1 %1218 }
 0x54d   : > { %v1221_v23 = vsub.f32 %v1213_v16, %v1219_v22  ;;  %v1216_v24 = vpop.xlane.xlu0 %1215 }
 0x54e   : > { %v1220_v25 = vsub.f32 %v1212_v19, %v1216_v24 }
 0x54f   : > { %v1224_v26 = vmul.f32 1.442695, %v1221_v23 }
 0x550   : > { %v1222_v27 = vmul.f32 1.442695, %v1220_v25 }
 0x551   : > { %5613 = vpow2.f32 %v1224_v26 }
 0x552   : > { %5615 = vpow2.f32 %v1222_v27 }
 0x55b   : > { %v5614_v28 = vpop.eup %5613 }
 0x55c   : > { %v5616_v29 = vpop.eup %5615  ;;  %v1229_v30 = vsel %vm684_vm0, %v5614_v28, 0.0 }
 0x55d   : > { %1230 = vadd.xlane.f32.xlu1 %v1229_v30  ;;  %v1226_v31 = vsel %vm684_vm0, %v5616_v29, 0.0  ;;  %v4775_v30 = vld [vmem:[%s6257_s7 + $0x2] ss:$0 sm:$0xff] }
 0x55e   : > { %1227 = vadd.xlane.f32.xlu0 %v1226_v31 }
 0x5ea   : > { %v1231_v41 = vpop.xlane.xlu1 %1230 }
 0x5eb   : > { %5617 = vrcp.f32 %v1231_v41  ;;  %v1228_v42 = vpop.xlane.xlu0 %1227 }
 0x5ec   : > { %5619 = vrcp.f32 %v1228_v42 }
 0x5f5   : > { %v5618_v43 = vpop.eup %5617 }
 0x5f6   : > { %v5620_v44 = vpop.eup %5619  ;;  %v1235_v46 = vmul.f32 %v5618_v43, %v5614_v28 }
 0x5f7   : > { %v1234_v45 = vmul.f32 %v5620_v44, %v5616_v29  ;;  %v2086_v44 = vld [vmem:[%s6253_s3 + $0x30] sm:$0xff] }
 0x5f9   : > { %5106 = vmatprep.mubr.msk.f32.mxu1 %vm684_vm0, %v1234_v45  ;;  %v2087_v45 = vld [vmem:[%s6253_s3 + $0x38] sm:$0xff] }
 0x5fa   : > { %5107 = vmatmul.mubr.msk.f32.vlgmr.msra.gmra.mrb[10].mxu1 %vm684_vm0, %v1235_v46  ;;  %v5457_v46 = vpack.c.bf16 %v2087_v45, %v2086_v44 }
 0x5fb   : > { %5127 = vmatprep.mubr.f32.mxu1 %v5788_v7  ;;  %5430 = vmatpush3.bf16.xpose.msra.mxu1 %v5427_v52 }
 0x5fc   : > { %5436 = vmatprep.subr.bf16.mxu1 %v5435_v11 }
 0x602   : > { %5128 = vmatmul.mubr.f32.vlgmr.msra.gmra.mrb[12].mxu1 %v5796_v9 }
 0x603   : > { %5141 = vmatprep.mubr.f32.mxu1 %v5785_v6  ;;  %5438 = vmatpush3.bf16.xpose.msra.mxu1 %v5435_v11 }
 0x60a   : > { %5142 = vmatmul.mubr.f32.vlgmr.msra.gmra.mrb[14].mxu1 %v5793_v8 }
 0x6cd   : > { %v5108_v55 = vpop.f32.mrb[10].mxu1 }
 0x6ce   : > { %v1308_v56 = vpop.f32.mrb[11].mxu1 }
 0x6cf   : > { %5113 = vmatprep.mubr.msk.f32.mxu0 %vm684_vm0, %v1308_v56 }
 0x6d0   : > { %5114 = vmatmul.mubr.msk.f32.vlgmr.msra.gmra.mrb[8].mxu0 %vm684_vm0, %v5108_v55 }
 0x6d1   : > { %5426 = vmatpush3.bf16.msra.mxu0 %v5423_v49  ;;  %5120 = vmatprep.mubr.msk.f32.mxu0 %vm684_vm0, %v5861_v2  ;;  %v5453_v49 = vpack.c.bf16 %v2005_v48, %v2004_v47  ;;  %v4795_v47 = vld [vmem:[%s6255_s5 + $0x4] ss:$0 sm:$0xff] }
 0x6d2   : > { %5432 = vmatprep.subr.bf16.mxu0 %v5431_v57 }
 0x6d5   : > { %v5129_v58 = vpop.f32.mrb[12].mxu1 }
 0x6d6   : > { %v1560_v60 = vadd.f32 %v5129_v58, %v4773_v59  ;;  %v1554_v61 = vpop.f32.mrb[13].mxu1 }
 0x6d7   : > { %v1555_v62 = vadd.f32 %v4773_v59, %v1554_v61 }
 0x6d8   : > { %5121 = vmatmul.mubr.msk.f32.vlgmr.msra.gmra.mrb[8].mxu0 %vm684_vm0, %v5859_v1 }
 0x6d9   : > { %5134 = vmatprep.mubr.f32.mxu0 %v5785_v6 }
 0x6da   : > { %5434 = vmatpush3.bf16.xpose.msra.mxu0 %v5431_v57  ;;  %v4785_v57 = vld [vmem:[%s6256_s6 + $0x3] ss:$0 sm:$0xff] }
 0x6dd   : > { %v5143_v29 = vpop.f32.mrb[14].mxu1 }
 0x6de   : > { %v1718_v31 = vpop.f32.mrb[15].mxu1  ;;  %v1724_v32 = vadd.f32 %v5143_v29, %v4775_v30  ;;  %v2442_v29 = vld [vmem:[%s6258_s8 + $0x30] sm:$0xff] }
 0x6df   : > { %v1719_v33 = vadd.f32 %v4775_v30, %v1718_v31  ;;  %v2443_v30 = vld [vmem:[%s6258_s8 + $0x38] sm:$0xff] }
 0x6e0   : > { %v5475_v31 = vpack.c.bf16 %v2443_v30, %v2442_v29 }
 0x6e1   : > { %5135 = vmatmul.mubr.f32.vlgmr.msra.gmra.mrb[10].mxu0 %v5793_v8  ;;  %v5445_v34 = vpack.c.bf16 %v1724_v32, %v1719_v33 }
 0x6e2   : > { %5148 = vmatprep.mubr.msk.f32.mxu0 %vm684_vm0, %v1555_v62 }
 0x6e3   : > { %5446 = vmatprep.subr.bf16.mxu1 %v5445_v34 }
 0x6e4   : > { %5448 = vmatpush3.bf16.msra.mxu1 %v5445_v34 }
 0x6e5   : > { %5454 = vmatprep.subr.bf16.mxu1 %v5453_v49 }
 0x7b4   : > { %v5136_v0 = vpop.f32.mrb[10].mxu0 }
 0x7b5   : > { %v1642_v1 = vadd.f32 %v5136_v0, %v4774_v63  ;;  %v1636_v2 = vpop.f32.mrb[11].mxu0  ;;  %v2169_v0 = vld [vmem:[%s6254_s4 + $0x38] sm:$0xff] }
 0x7b6   : > { %v1637_v3 = vadd.f32 %v4774_v63, %v1636_v2  ;;  %v2168_v63 = vld [vmem:[%s6254_s4 + $0x30] sm:$0xff] }
 0x7b8   : > { %v5439_v4 = vpack.c.bf16 %v1642_v1, %v1637_v3  ;;  %v5461_v1 = vpack.c.bf16 %v2169_v0, %v2168_v63 }
 0x7ba   : > { %5441 = vmatprep.subr.msk.bf16.mxu0 %vm5809_vm1, %v5439_v4 }
 0x7bb   : > { %5444 = vmatpush3.bf16.xpose.msk.msra.mxu0 %vm5809_vm1, %v5439_v4 }
 0x7bc   : > { %5450 = vmatprep.subr.bf16.mxu0 %v5449_v37 }
 0x7c2   : > { %5149 = vmatmul.mubr.msk.f32.vlgmr.msra.gmra.mrb[12].mxu0 %vm684_vm0, %v1560_v60 }
 0x7c3   : > { %5452 = vmatpush3.bf16.msra.mxu0 %v5449_v37 }
 0x7c4   : > { %5458 = vmatprep.subr.bf16.mxu0 %v5457_v46 }
 0x895   : > { %v5150_v12 = vpop.f32.mrb[12].mxu0 }
 0x896   : > { %v1815_v13 = vmul.f32 0.25, %v5150_v12  ;;  %v1805_v14 = vpop.f32.mrb[13].mxu0 }
 0x897   : > { %v1814_v15 = vmul.f32 0.25, %v1805_v14 }
 0x898   : > { %v1819_v16 = vsel %vm684_vm0, %v1815_v13, -inf }
 0x899   : > { %1820 = vmax.xlane.f32.xlu1 %v1819_v16  ;;  %v1816_v17 = vsel %vm684_vm0, %v1814_v15, -inf }
 0x89a   : > { %1817 = vmax.xlane.f32.xlu0 %v1816_v17 }
 0x926   : > { %v1821_v19 = vpop.xlane.xlu1 %1820 }
 0x927   : > { %v1823_v20 = vsub.f32 %v1815_v13, %v1821_v19  ;;  %v1818_v21 = vpop.xlane.xlu0 %1817 }
 0x928   : > { %v1822_v22 = vsub.f32 %v1814_v15, %v1818_v21 }
 0x929   : > { %v1826_v23 = vmul.f32 1.442695, %v1823_v20 }
 0x92a   : > { %v1824_v24 = vmul.f32 1.442695, %v1822_v22 }
 0x92b   : > { %5621 = vpow2.f32 %v1826_v23 }
 0x92c   : > { %5623 = vpow2.f32 %v1824_v24  ;;  %v4786_v24 = vld [vmem:[%s6257_s7 + $0x3] ss:$0 sm:$0xff] }
 0x935   : > { %v5622_v25 = vpop.eup %5621 }
 0x936   : > { %v5624_v26 = vpop.eup %5623  ;;  %v1831_v27 = vsel %vm684_vm0, %v5622_v25, 0.0 }
 0x937   : > { %1832 = vadd.xlane.f32.xlu1 %v1831_v27  ;;  %v1828_v28 = vsel %vm684_vm0, %v5624_v26, 0.0 }
 0x938   : > { %1829 = vadd.xlane.f32.xlu0 %v1828_v28 }
 0x9c4   : > { %v1833_v38 = vpop.xlane.xlu1 %1832 }
 0x9c5   : > { %5625 = vrcp.f32 %v1833_v38  ;;  %v1830_v39 = vpop.xlane.xlu0 %1829  ;;  %v2609_v38 = vld [vmem:[%s6253_s3 + $0x40] sm:$0xff] }
 0x9c6   : > { %5627 = vrcp.f32 %v1830_v39  ;;  %v2610_v39 = vld [vmem:[%s6253_s3 + $0x48] sm:$0xff] }
 0x9cf   : > { %v5626_v40 = vpop.eup %5625 }
 0x9d0   : > { %v5628_v41 = vpop.eup %5627  ;;  %v1837_v43 = vmul.f32 %v5626_v40, %v5622_v25  ;;  %v5483_v40 = vpack.c.bf16 %v2610_v39, %v2609_v38 }
 0x9d1   : > { %v1836_v42 = vmul.f32 %v5628_v41, %v5624_v26  ;;  %v2527_v41 = vld [vmem:[%s6252_s2 + $0x40] sm:$0xff] }
 0x9d3   : > { %5155 = vmatprep.mubr.msk.f32.mxu1 %vm684_vm0, %v1836_v42  ;;  %v2528_v42 = vld [vmem:[%s6252_s2 + $0x48] sm:$0xff] }
 0x9d4   : > { %5156 = vmatmul.mubr.msk.f32.vlgmr.msra.gmra.mrb[16].mxu1 %vm684_vm0, %v1837_v43  ;;  %v5479_v43 = vpack.c.bf16 %v2528_v42, %v2527_v41  ;;  %v4806_v41 = vld [vmem:[%s6255_s5 + $0x5] ss:$0 sm:$0xff] }
 0x9d5   : > { %5169 = vmatprep.mubr.f32.mxu1 %v5788_v7  ;;  %5456 = vmatpush3.bf16.xpose.msra.mxu1 %v5453_v49 }
 0x9d6   : > { %5462 = vmatprep.subr.bf16.mxu1 %v5461_v1 }
 0x9dc   : > { %5170 = vmatmul.mubr.f32.vlgmr.msra.gmra.mrb[18].mxu1 %v5796_v9 }
 0x9dd   : > { %5183 = vmatprep.mubr.f32.mxu1 %v5785_v6  ;;  %5464 = vmatpush3.bf16.xpose.msra.mxu1 %v5461_v1 }
 0x9e4   : > { %5184 = vmatmul.mubr.f32.vlgmr.msra.gmra.mrb[20].mxu1 %v5793_v8 }
 0xaa7   : > { %v5157_v50 = vpop.f32.mrb[16].mxu1 }
 0xaa8   : > { %v1910_v51 = vpop.f32.mrb[17].mxu1 }
 0xaa9   : > { %5162 = vmatprep.mubr.msk.f32.mxu0 %vm684_vm0, %v1910_v51  ;;  %v4796_v51 = vld [vmem:[%s6256_s6 + $0x4] ss:$0 sm:$0xff] }
 0xaaa   : > { %5163 = vmatmul.mubr.msk.f32.vlgmr.msra.gmra.mrb[8].mxu0 %vm684_vm0, %v5157_v50 }
 0xaab   : > { %5460 = vmatpush3.bf16.xpose.msra.mxu0 %v5457_v46  ;;  %5176 = vmatprep.mubr.f32.mxu0 %v5785_v6 }
 0xaaf   : > { %v5171_v52 = vpop.f32.mrb[18].mxu1 }
 0xab0   : > { %v2083_v54 = vadd.f32 %v5171_v52, %v4784_v53  ;;  %v2077_v55 = vpop.f32.mrb[19].mxu1 }
 0xab1   : > { %v2078_v56 = vadd.f32 %v4784_v53, %v2077_v55 }
 0xab2   : > { %5177 = vmatmul.mubr.f32.vlgmr.msra.gmra.mrb[14].mxu0 %v5793_v8 }
 0xab3   : > { %5190 = vmatprep.mubr.msk.f32.mxu0 %vm684_vm0, %v2078_v56 }
 0xab7   : > { %v5185_v23 = vpop.f32.mrb[20].mxu1 }
 0xab8   : > { %v2241_v25 = vpop.f32.mrb[21].mxu1  ;;  %v2247_v26 = vadd.f32 %v5185_v23, %v4786_v24  ;;  %v2965_v23 = vld [vmem:[%s6258_s8 + $0x40] sm:$0xff] }
 0xab9   : > { %v2242_v27 = vadd.f32 %v4786_v24, %v2241_v25  ;;  %v2966_v24 = vld [vmem:[%s6258_s8 + $0x48] sm:$0xff] }
 0xaba   : > { %v5501_v25 = vpack.c.bf16 %v2966_v24, %v2965_v23  ;;  %v3655_v24 = vld [vmem:[%s6253_s3 + $0x60] sm:$0xff] }
 0xabb   : > { %v5471_v28 = vpack.c.bf16 %v2247_v26, %v2242_v27 }
 0xabd   : > { %5472 = vmatprep.subr.bf16.mxu1 %v5471_v28 }
 0xabe   : > { %5474 = vmatpush3.bf16.msra.mxu1 %v5471_v28 }
 0xabf   : > { %5480 = vmatprep.subr.bf16.mxu1 %v5479_v43 }
 0xb85   : > { %v5178_v58 = vpop.f32.mrb[14].mxu0 }
 0xb86   : > { %v2165_v59 = vadd.f32 %v5178_v58, %v4785_v57  ;;  %v2159_v60 = vpop.f32.mrb[15].mxu0  ;;  %v2692_v58 = vld [vmem:[%s6254_s4 + $0x48] sm:$0xff] }
 0xb87   : > { %v2160_v61 = vadd.f32 %v4785_v57, %v2159_v60  ;;  %v2691_v57 = vld [vmem:[%s6254_s4 + $0x40] sm:$0xff] }
 0xb89   : > { %v5465_v62 = vpack.c.bf16 %v2165_v59, %v2160_v61  ;;  %v5487_v59 = vpack.c.bf16 %v2692_v58, %v2691_v57 }
 0xb8b   : > { %5467 = vmatprep.subr.msk.bf16.mxu0 %vm5809_vm1, %v5465_v62 }
 0xb8c   : > { %5470 = vmatpush3.bf16.xpose.msk.msra.mxu0 %vm5809_vm1, %v5465_v62 }
 0xb8d   : > { %5476 = vmatprep.subr.bf16.mxu0 %v5475_v31 }
 0xb93   : > { %5191 = vmatmul.mubr.msk.f32.vlgmr.msra.gmra.mrb[16].mxu0 %vm684_vm0, %v2083_v54 }
 0xb94   : > { %5478 = vmatpush3.bf16.msra.mxu0 %v5475_v31 }
 0xb95   : > { %5484 = vmatprep.subr.bf16.mxu0 %v5483_v40 }
 0xc66   : > { %v5192_v2 = vpop.f32.mrb[16].mxu0 }
 0xc67   : > { %v2338_v3 = vmul.f32 0.25, %v5192_v2  ;;  %v2328_v4 = vpop.f32.mrb[17].mxu0 }
 0xc68   : > { %v2337_v5 = vmul.f32 0.25, %v2328_v4 }
 0xc69   : > { %v2342_v10 = vsel %vm684_vm0, %v2338_v3, -inf }
 0xc6a   : > { %2343 = vmax.xlane.f32.xlu1 %v2342_v10  ;;  %v2339_v11 = vsel %vm684_vm0, %v2337_v5, -inf }
 0xc6b   : > { %2340 = vmax.xlane.f32.xlu0 %v2339_v11 }
 0xcf7   : > { %v2344_v12 = vpop.xlane.xlu1 %2343 }
 0xcf8   : > { %v2346_v13 = vsub.f32 %v2338_v3, %v2344_v12  ;;  %v2341_v14 = vpop.xlane.xlu0 %2340 }
 0xcf9   : > { %v2345_v15 = vsub.f32 %v2337_v5, %v2341_v14 }
 0xcfa   : > { %v2349_v16 = vmul.f32 1.442695, %v2346_v13 }
 0xcfb   : > { %v2347_v17 = vmul.f32 1.442695, %v2345_v15 }
 0xcfc   : > { %5629 = vpow2.f32 %v2349_v16 }
 0xcfd   : > { %5631 = vpow2.f32 %v2347_v17  ;;  %v4797_v17 = vld [vmem:[%s6257_s7 + $0x4] ss:$0 sm:$0xff] }
 0xd06   : > { %v5630_v19 = vpop.eup %5629 }
 0xd07   : > { %v5632_v20 = vpop.eup %5631  ;;  %v2354_v21 = vsel %vm684_vm0, %v5630_v19, 0.0 }
 0xd08   : > { %2355 = vadd.xlane.f32.xlu1 %v2354_v21  ;;  %v2351_v22 = vsel %vm684_vm0, %v5632_v20, 0.0 }
 0xd09   : > { %2352 = vadd.xlane.f32.xlu0 %v2351_v22 }
 0xd95   : > { %v2356_v32 = vpop.xlane.xlu1 %2355 }
 0xd96   : > { %5633 = vrcp.f32 %v2356_v32  ;;  %v2353_v33 = vpop.xlane.xlu0 %2352  ;;  %v3132_v32 = vld [vmem:[%s6253_s3 + $0x50] sm:$0xff] }
 0xd97   : > { %5635 = vrcp.f32 %v2353_v33  ;;  %v3133_v33 = vld [vmem:[%s6253_s3 + $0x58] sm:$0xff] }
 0xda0   : > { %v5634_v34 = vpop.eup %5633 }
 0xda1   : > { %v5636_v35 = vpop.eup %5635  ;;  %v2360_v37 = vmul.f32 %v5634_v34, %v5630_v19  ;;  %v5509_v34 = vpack.c.bf16 %v3133_v33, %v3132_v32  ;;  %v6134_v32 = vld [vmem:[%s5776_s16 + $0x8] sm:$0xff] }
 0xda2   : > { %v2359_v36 = vmul.f32 %v5636_v35, %v5632_v20  ;;  %v3050_v35 = vld [vmem:[%s6252_s2 + $0x50] sm:$0xff] }
 0xda4   : > { %5197 = vmatprep.mubr.msk.f32.mxu1 %vm684_vm0, %v2359_v36  ;;  %v3051_v36 = vld [vmem:[%s6252_s2 + $0x58] sm:$0xff] }
 0xda5   : > { %5198 = vmatmul.mubr.msk.f32.vlgmr.msra.gmra.mrb[22].mxu1 %vm684_vm0, %v2360_v37  ;;  %v5505_v37 = vpack.c.bf16 %v3051_v36, %v3050_v35 }
 0xda6   : > { %5211 = vmatprep.mubr.f32.mxu1 %v5788_v7  ;;  %5482 = vmatpush3.bf16.xpose.msra.mxu1 %v5479_v43 }
 0xda7   : > { %5488 = vmatprep.subr.bf16.mxu1 %v5487_v59 }
 0xdad   : > { %5212 = vmatmul.mubr.f32.vlgmr.msra.gmra.mrb[24].mxu1 %v5796_v9 }
 0xdae   : > { %5225 = vmatprep.mubr.f32.mxu1 %v5785_v6  ;;  %5490 = vmatpush3.bf16.xpose.msra.mxu1 %v5487_v59 }
 0xdb5   : > { %5226 = vmatmul.mubr.f32.vlgmr.msra.gmra.mrb[26].mxu1 %v5793_v8 }
 0xe78   : > { %v5199_v44 = vpop.f32.mrb[22].mxu1 }
 0xe79   : > { %v2433_v45 = vpop.f32.mrb[23].mxu1 }
 0xe7a   : > { %5204 = vmatprep.mubr.msk.f32.mxu0 %vm684_vm0, %v2433_v45  ;;  %v4807_v45 = vld [vmem:[%s6256_s6 + $0x5] ss:$0 sm:$0xff] }
 0xe7b   : > { %5205 = vmatmul.mubr.msk.f32.vlgmr.msra.gmra.mrb[8].mxu0 %vm684_vm0, %v5199_v44 }
 0xe7c   : > { %5486 = vmatpush3.bf16.xpose.msra.mxu0 %v5483_v40  ;;  %5218 = vmatprep.mubr.f32.mxu0 %v5785_v6 }
 0xe80   : > { %v5213_v46 = vpop.f32.mrb[24].mxu1 }
 0xe81   : > { %v2606_v48 = vadd.f32 %v5213_v46, %v4795_v47  ;;  %v2600_v49 = vpop.f32.mrb[25].mxu1 }
 0xe82   : > { %v2601_v50 = vadd.f32 %v4795_v47, %v2600_v49 }
 0xe83   : > { %5219 = vmatmul.mubr.f32.vlgmr.msra.gmra.mrb[18].mxu0 %v5793_v8 }
 0xe84   : > { %5232 = vmatprep.mubr.msk.f32.mxu0 %vm684_vm0, %v2601_v50  ;;  %v3214_v50 = vld [vmem:[%s6254_s4 + $0x50] sm:$0xff] }
 0xe88   : > { %v5227_v16 = vpop.f32.mrb[26].mxu1 }
 0xe89   : > { %v2764_v19 = vpop.f32.mrb[27].mxu1  ;;  %v2770_v20 = vadd.f32 %v5227_v16, %v4797_v17 }
 0xe8a   : > { %v2765_v21 = vadd.f32 %v4797_v17, %v2764_v19 }
 0xe8c   : > { %v5497_v22 = vpack.c.bf16 %v2770_v20, %v2765_v21 }
 0xe8e   : > { %5498 = vmatprep.subr.bf16.mxu1 %v5497_v22 }
 0xe8f   : > { %5500 = vmatpush3.bf16.msra.mxu1 %v5497_v22 }
 0xe90   : > { %5506 = vmatprep.subr.bf16.mxu1 %v5505_v37 }
 0xf56   : > { %v5220_v52 = vpop.f32.mrb[18].mxu0 }
 0xf57   : > { %v2688_v53 = vadd.f32 %v5220_v52, %v4796_v51  ;;  %v2682_v54 = vpop.f32.mrb[19].mxu0 }
 0xf58   : > { %v2683_v55 = vadd.f32 %v4796_v51, %v2682_v54  ;;  %v3215_v51 = vld [vmem:[%s6254_s4 + $0x58] sm:$0xff] }
 0xf59   : > { %v5513_v52 = vpack.c.bf16 %v3215_v51, %v3214_v50 }
 0xf5a   : > { %v5491_v56 = vpack.c.bf16 %v2688_v53, %v2683_v55 }
 0xf5c   : > { %5493 = vmatprep.subr.msk.bf16.mxu0 %vm5809_vm1, %v5491_v56 }
 0xf5d   : > { %5496 = vmatpush3.bf16.xpose.msk.msra.mxu0 %vm5809_vm1, %v5491_v56 }
 0xf5e   : > { %5502 = vmatprep.subr.bf16.mxu0 %v5501_v25 }
 0xf64   : > { %5233 = vmatmul.mubr.msk.f32.vlgmr.msra.gmra.mrb[20].mxu0 %vm684_vm0, %v2606_v48 }
 0xf65   : > { %5504 = vmatpush3.bf16.msra.mxu0 %v5501_v25  ;;  %v3656_v25 = vld [vmem:[%s6253_s3 + $0x68] sm:$0xff] }
 0xf66   : > { %5510 = vmatprep.subr.bf16.mxu0 %v5509_v34 }
0x1037   : > { %v5234_v60 = vpop.f32.mrb[20].mxu0 }
0x1038   : > { %v2861_v61 = vmul.f32 0.25, %v5234_v60  ;;  %v2851_v62 = vpop.f32.mrb[21].mxu0 }
0x1039   : > { %v2860_v63 = vmul.f32 0.25, %v2851_v62 }
0x103a   : > { %v2865_v0 = vsel %vm684_vm0, %v2861_v61, -inf }
0x103b   : > { %2866 = vmax.xlane.f32.xlu1 %v2865_v0  ;;  %v2862_v1 = vsel %vm684_vm0, %v2860_v63, -inf }
0x103c   : > { %2863 = vmax.xlane.f32.xlu0 %v2862_v1 }
0x10c8   : > { %v2867_v2 = vpop.xlane.xlu1 %2866 }
0x10c9   : > { %v2869_v3 = vsub.f32 %v2861_v61, %v2867_v2  ;;  %v2864_v4 = vpop.xlane.xlu0 %2863 }
0x10ca   : > { %v2868_v5 = vsub.f32 %v2860_v63, %v2864_v4 }
0x10cb   : > { %v2872_v10 = vmul.f32 1.442695, %v2869_v3 }
0x10cc   : > { %v2870_v11 = vmul.f32 1.442695, %v2868_v5  ;;  %v4808_v5 = vld [vmem:[%s6257_s7 + $0x5] ss:$0 sm:$0xff] }
0x10cd   : > { %5637 = vpow2.f32 %v2872_v10 }
0x10ce   : > { %5639 = vpow2.f32 %v2870_v11 }
0x10d7   : > { %v5638_v12 = vpop.eup %5637 }
0x10d8   : > { %v5640_v13 = vpop.eup %5639  ;;  %v2877_v14 = vsel %vm684_vm0, %v5638_v12, 0.0 }
0x10d9   : > { %2878 = vadd.xlane.f32.xlu1 %v2877_v14  ;;  %v2874_v15 = vsel %vm684_vm0, %v5640_v13, 0.0  ;;  %v3488_v14 = vld [vmem:[%s6258_s8 + $0x50] sm:$0xff] }
0x10da   : > { %2875 = vadd.xlane.f32.xlu0 %v2874_v15  ;;  %v3489_v15 = vld [vmem:[%s6258_s8 + $0x58] sm:$0xff] }
0x10db   : > { %v5527_v16 = vpack.c.bf16 %v3489_v15, %v3488_v14  ;;  %v6172_v15 = vld [vmem:[%s5782_s19] sm:$0xff] }
0x1166   : > { %v2879_v26 = vpop.xlane.xlu1 %2878 }
0x1167   : > { %5641 = vrcp.f32 %v2879_v26  ;;  %v2876_v27 = vpop.xlane.xlu0 %2875  ;;  %v5535_v26 = vpack.c.bf16 %v3656_v25, %v3655_v24 }
0x1168   : > { %5643 = vrcp.f32 %v2876_v27  ;;  %v3573_v27 = vld [vmem:[%s6252_s2 + $0x60] sm:$0xff] }
0x1171   : > { %v5642_v28 = vpop.eup %5641 }
0x1172   : > { %v5644_v29 = vpop.eup %5643  ;;  %v2883_v31 = vmul.f32 %v5642_v28, %v5638_v12  ;;  %v3574_v28 = vld [vmem:[%s6252_s2 + $0x68] sm:$0xff] }
0x1173   : > { %v2882_v30 = vmul.f32 %v5644_v29, %v5640_v13  ;;  %v6127_v29 = vld [vmem:[%s5776_s16] sm:$0xff] }
0x1175   : > { %5239 = vmatprep.mubr.msk.f32.mxu1 %vm684_vm0, %v2882_v30 }
0x1176   : > { %5240 = vmatmul.mubr.msk.f32.vlgmr.msra.gmra.mrb[28].mxu1 %vm684_vm0, %v2883_v31 }
0x1177   : > { %5253 = vmatprep.mubr.f32.mxu1 %v5788_v7  ;;  %5508 = vmatpush3.bf16.xpose.msra.mxu1 %v5505_v37  ;;  %v4818_v37 = vld [vmem:[%s6256_s6 + $0x6] ss:$0 sm:$0xff] }
0x1178   : > { %5514 = vmatprep.subr.bf16.mxu1 %v5513_v52 }
0x117e   : > { %5254 = vmatmul.mubr.f32.vlgmr.msra.gmra.mrb[30].mxu1 %v5796_v9 }
0x117f   : > { %5267 = vmatprep.mubr.f32.mxu1 %v5785_v6  ;;  %5516 = vmatpush3.bf16.xpose.msra.mxu1 %v5513_v52 }
0x1186   : > { %5268 = vmatmul.mubr.f32.vlgmr.msra.gmra.mrb[32].mxu1 %v5793_v8 }
0x1249   : > { %v5241_v38 = vpop.f32.mrb[28].mxu1 }
0x124a   : > { %v2956_v39 = vpop.f32.mrb[29].mxu1 }
0x124b   : > { %5246 = vmatprep.mubr.msk.f32.mxu0 %vm684_vm0, %v2956_v39 }
0x124c   : > { %5247 = vmatmul.mubr.msk.f32.vlgmr.msra.gmra.mrb[8].mxu0 %vm684_vm0, %v5241_v38 }
0x124d   : > { %5512 = vmatpush3.bf16.xpose.msra.mxu0 %v5509_v34  ;;  %5260 = vmatprep.mubr.f32.mxu0 %v5785_v6 }
0x1251   : > { %v5255_v40 = vpop.f32.mrb[30].mxu1 }
0x1252   : > { %v3129_v42 = vadd.f32 %v5255_v40, %v4806_v41  ;;  %v3123_v43 = vpop.f32.mrb[31].mxu1 }
0x1253   : > { %v3124_v44 = vadd.f32 %v4806_v41, %v3123_v43  ;;  %v3737_v43 = vld [vmem:[%s6254_s4 + $0x60] sm:$0xff] }
0x1254   : > { %5261 = vmatmul.mubr.f32.vlgmr.msra.gmra.mrb[22].mxu0 %v5793_v8 }
0x1255   : > { %5274 = vmatprep.mubr.msk.f32.mxu0 %vm684_vm0, %v3124_v44  ;;  %v3738_v44 = vld [vmem:[%s6254_s4 + $0x68] sm:$0xff] }
0x1259   : > { %v5269_v4 = vpop.f32.mrb[32].mxu1 }
0x125a   : > { %v3287_v10 = vpop.f32.mrb[33].mxu1  ;;  %v3293_v11 = vadd.f32 %v5269_v4, %v4808_v5 }
0x125b   : > { %v3288_v12 = vadd.f32 %v4808_v5, %v3287_v10 }
0x125d   : > { %v5523_v13 = vpack.c.bf16 %v3293_v11, %v3288_v12 }
0x125f   : > { %5524 = vmatprep.subr.bf16.mxu1 %v5523_v13 }
0x1260   : > { %5526 = vmatpush3.bf16.msra.mxu1 %v5523_v13 }
0x1327   : > { %v5262_v46 = vpop.f32.mrb[22].mxu0 }
0x1328   : > { %v3211_v47 = vadd.f32 %v5262_v46, %v4807_v45  ;;  %v3205_v48 = vpop.f32.mrb[23].mxu0 }
0x1329   : > { %v3206_v6 = vadd.f32 %v4807_v45, %v3205_v48  ;;  %v5539_v45 = vpack.c.bf16 %v3738_v44, %v3737_v43 }
0x132b   : > { %v5517_v49 = vpack.c.bf16 %v3211_v47, %v3206_v6 }
0x132d   : > { %5519 = vmatprep.subr.msk.bf16.mxu0 %vm5809_vm1, %v5517_v49 }
0x132e   : > { %5522 = vmatpush3.bf16.xpose.msk.msra.mxu0 %vm5809_vm1, %v5517_v49 }
0x132f   : > { %5528 = vmatprep.subr.bf16.mxu0 %v5527_v16 }
0x1335   : > { %5275 = vmatmul.mubr.msk.f32.vlgmr.msra.gmra.mrb[24].mxu0 %vm684_vm0, %v3129_v42 }
0x1336   : > { %5530 = vmatpush3.bf16.msra.mxu0 %v5527_v16  ;;  %v4178_v16 = vld [vmem:[%s6253_s3 + $0x70] sm:$0xff] }
0x1337   : > { %5536 = vmatprep.subr.bf16.mxu0 %v5535_v26 }
0x1408   : > { %v5276_v53 = vpop.f32.mrb[24].mxu0 }
0x1409   : > { %v3384_v54 = vmul.f32 0.25, %v5276_v53  ;;  %v3374_v55 = vpop.f32.mrb[25].mxu0 }
0x140a   : > { %v3383_v56 = vmul.f32 0.25, %v3374_v55 }
0x140b   : > { %v3388_v57 = vsel %vm684_vm0, %v3384_v54, -inf }
0x140c   : > { %3389 = vmax.xlane.f32.xlu1 %v3388_v57  ;;  %v3385_v58 = vsel %vm684_vm0, %v3383_v56, -inf }
0x140d   : > { %3386 = vmax.xlane.f32.xlu0 %v3385_v58 }
0x1499   : > { %v3390_v59 = vpop.xlane.xlu1 %3389 }
0x149a   : > { %v3392_v60 = vsub.f32 %v3384_v54, %v3390_v59  ;;  %v3387_v61 = vpop.xlane.xlu0 %3386 }
0x149b   : > { %v3391_v62 = vsub.f32 %v3383_v56, %v3387_v61 }
0x149c   : > { %v3395_v63 = vmul.f32 1.442695, %v3392_v60 }
0x149d   : > { %v3393_v0 = vmul.f32 1.442695, %v3391_v62  ;;  %v4819_v62 = vld [vmem:[%s6257_s7 + $0x6] ss:$0 sm:$0xff] }
0x149e   : > { %5645 = vpow2.f32 %v3395_v63 }
0x149f   : > { %5647 = vpow2.f32 %v3393_v0 }
0x14a8   : > { %v5646_v1 = vpop.eup %5645 }
0x14a9   : > { %v5648_v8 = vpop.eup %5647  ;;  %v3400_v2 = vsel %vm684_vm0, %v5646_v1, 0.0 }
0x14aa   : > { %3401 = vadd.xlane.f32.xlu1 %v3400_v2  ;;  %v3397_v3 = vsel %vm684_vm0, %v5648_v8, 0.0  ;;  %v4011_v2 = vld [vmem:[%s6258_s8 + $0x60] sm:$0xff] }
0x14ab   : > { %3398 = vadd.xlane.f32.xlu0 %v3397_v3  ;;  %v4012_v3 = vld [vmem:[%s6258_s8 + $0x68] sm:$0xff] }
0x14ac   : > { %v5553_v4 = vpack.c.bf16 %v4012_v3, %v4011_v2 }
0x1537   : > { %v3402_v17 = vpop.xlane.xlu1 %3401 }
0x1538   : > { %5649 = vrcp.f32 %v3402_v17  ;;  %v3399_v19 = vpop.xlane.xlu0 %3398  ;;  %v4179_v17 = vld [vmem:[%s6253_s3 + $0x78] sm:$0xff] }
0x1539   : > { %5651 = vrcp.f32 %v3399_v19  ;;  %v5561_v19 = vpack.c.bf16 %v4179_v17, %v4178_v16 }
0x1542   : > { %v5650_v20 = vpop.eup %5649 }
0x1543   : > { %v5652_v21 = vpop.eup %5651  ;;  %v3406_v23 = vmul.f32 %v5650_v20, %v5646_v1  ;;  %v4096_v20 = vld [vmem:[%s6252_s2 + $0x70] sm:$0xff] }
0x1544   : > { %v3405_v22 = vmul.f32 %v5652_v21, %v5648_v8  ;;  %v4097_v21 = vld [vmem:[%s6252_s2 + $0x78] sm:$0xff] }
0x1546   : > { %5281 = vmatprep.mubr.msk.f32.mxu1 %vm684_vm0, %v3405_v22  ;;  %v5557_v22 = vpack.c.bf16 %v4097_v21, %v4096_v20 }
0x1547   : > { %5282 = vmatmul.mubr.msk.f32.vlgmr.msra.gmra.mrb[34].mxu1 %vm684_vm0, %v3406_v23  ;;  %v6188_v23 = vld [vmem:[%s5782_s19 + $0x8] sm:$0xff] }
0x1548   : > { %5295 = vmatprep.mubr.f32.mxu1 %v5788_v7  ;;  %v5531_v7 = vpack.c.bf16 %v3574_v28, %v3573_v27  ;;  %v4828_v27 = vld [vmem:[%s6255_s5 + $0x7] ss:$0 sm:$0xff] }
0x154a   : > { %5532 = vmatprep.subr.bf16.mxu1 %v5531_v7 }
0x154b   : > { %5534 = vmatpush3.bf16.xpose.msra.mxu1 %v5531_v7 }
0x154c   : > { %5540 = vmatprep.subr.bf16.mxu1 %v5539_v45 }
0x1552   : > { %5296 = vmatmul.mubr.f32.vlgmr.msra.gmra.mrb[36].mxu1 %v5796_v9  ;;  %v4817_v9 = vld [vmem:[%s6255_s5 + $0x6] ss:$0 sm:$0xff] }
0x1553   : > { %5309 = vmatprep.mubr.f32.mxu1 %v6127_v29  ;;  %5542 = vmatpush3.bf16.xpose.msra.mxu1 %v5539_v45 }
0x155a   : > { %5310 = vmatmul.mubr.f32.vlgmr.msra.gmra.mrb[38].mxu1 %v6134_v32 }
0x161a   : > { %v5283_v30 = vpop.f32.mrb[34].mxu1 }
0x161b   : > { %v3479_v31 = vpop.f32.mrb[35].mxu1 }
0x161c   : > { %5288 = vmatprep.mubr.msk.f32.mxu0 %vm684_vm0, %v3479_v31  ;;  %v4829_v31 = vld [vmem:[%s6256_s6 + $0x7] ss:$0 sm:$0xff] }
0x161d   : > { %5289 = vmatmul.mubr.msk.f32.vlgmr.msra.gmra.mrb[8].mxu0 %vm684_vm0, %v5283_v30 }
0x161e   : > { %5538 = vmatpush3.bf16.xpose.msra.mxu0 %v5535_v26  ;;  %5302 = vmatprep.mubr.f32.mxu0 %v6127_v29 }
0x1625   : > { %5303 = vmatmul.mubr.f32.vlgmr.msra.gmra.mrb[26].mxu0 %v6134_v32  ;;  %v5297_v33 = vpop.f32.mrb[36].mxu1 }
0x1626   : > { %v3652_v34 = vadd.f32 %v5297_v33, %v4817_v9  ;;  %v3646_v35 = vpop.f32.mrb[37].mxu1 }
0x1627   : > { %v3647_v36 = vadd.f32 %v4817_v9, %v3646_v35 }
0x1629   : > { %5316 = vmatprep.mubr.msk.f32.mxu0 %vm684_vm0, %v3647_v36  ;;  %v4260_v36 = vld [vmem:[%s6254_s4 + $0x70] sm:$0xff] }
0x162d   : > { %v5311_v61 = vpop.f32.mrb[38].mxu1 }
0x162e   : > { %v3810_v63 = vpop.f32.mrb[39].mxu1  ;;  %v3816_v0 = vadd.f32 %v5311_v61, %v4819_v62 }
0x162f   : > { %v3811_v1 = vadd.f32 %v4819_v62, %v3810_v63 }
0x1631   : > { %v5549_v8 = vpack.c.bf16 %v3816_v0, %v3811_v1 }
0x1633   : > { %5550 = vmatprep.subr.bf16.mxu1 %v5549_v8 }
0x1634   : > { %5552 = vmatpush3.bf16.msra.mxu1 %v5549_v8 }
0x1635   : > { %5558 = vmatprep.subr.bf16.mxu1 %v5557_v22 }
0x16f8   : > { %v5304_v38 = vpop.f32.mrb[26].mxu0 }
0x16f9   : > { %v3734_v39 = vadd.f32 %v5304_v38, %v4818_v37  ;;  %v3728_v40 = vpop.f32.mrb[27].mxu0 }
0x16fa   : > { %v3729_v41 = vadd.f32 %v4818_v37, %v3728_v40  ;;  %v4261_v37 = vld [vmem:[%s6254_s4 + $0x78] sm:$0xff] }
0x16fb   : > { %v5565_v38 = vpack.c.bf16 %v4261_v37, %v4260_v36 }
0x16fc   : > { %v5543_v42 = vpack.c.bf16 %v3734_v39, %v3729_v41 }
0x16fe   : > { %5545 = vmatprep.subr.msk.bf16.mxu0 %vm5809_vm1, %v5543_v42 }
0x16ff   : > { %5548 = vmatpush3.bf16.xpose.msk.msra.mxu0 %vm5809_vm1, %v5543_v42 }
0x1700   : > { %5554 = vmatprep.subr.bf16.mxu0 %v5553_v4 }
0x1706   : > { %5317 = vmatmul.mubr.msk.f32.vlgmr.msra.gmra.mrb[28].mxu0 %vm684_vm0, %v3652_v34 }
0x1707   : > { %5556 = vmatpush3.bf16.msra.mxu0 %v5553_v4 }
0x1708   : > { %5562 = vmatprep.subr.bf16.mxu0 %v5561_v19 }
0x17d9   : > { %v5318_v46 = vpop.f32.mrb[28].mxu0 }
0x17da   : > { %v3907_v47 = vmul.f32 0.25, %v5318_v46  ;;  %v3897_v48 = vpop.f32.mrb[29].mxu0 }
0x17db   : > { %v3906_v6 = vmul.f32 0.25, %v3897_v48 }
0x17dc   : > { %v3911_v49 = vsel %vm684_vm0, %v3907_v47, -inf }
0x17dd   : > { %3912 = vmax.xlane.f32.xlu1 %v3911_v49  ;;  %v3908_v50 = vsel %vm684_vm0, %v3906_v6, -inf }
0x17de   : > { %3909 = vmax.xlane.f32.xlu0 %v3908_v50 }
0x186a   : > { %v3913_v51 = vpop.xlane.xlu1 %3912 }
0x186b   : > { %v3915_v52 = vsub.f32 %v3907_v47, %v3913_v51  ;;  %v3910_v53 = vpop.xlane.xlu0 %3909 }
0x186c   : > { %v3914_v54 = vsub.f32 %v3906_v6, %v3910_v53  ;;  %v4830_v53 = vld [vmem:[%s6257_s7 + $0x7] ss:$0 sm:$0xff] }
0x186d   : > { %v3918_v55 = vmul.f32 1.442695, %v3915_v52 }
0x186e   : > { %v3916_v56 = vmul.f32 1.442695, %v3914_v54 }
0x186f   : > { %5653 = vpow2.f32 %v3918_v55 }
0x1870   : > { %5655 = vpow2.f32 %v3916_v56 }
0x1879   : > { %v5654_v57 = vpop.eup %5653 }
0x187a   : > { %v5656_v58 = vpop.eup %5655  ;;  %v3923_v59 = vsel %vm684_vm0, %v5654_v57, 0.0 }
0x187b   : > { %3924 = vadd.xlane.f32.xlu1 %v3923_v59  ;;  %v3920_v60 = vsel %vm684_vm0, %v5656_v58, 0.0  ;;  %v4535_v59 = vld [vmem:[%s6258_s8 + $0x78] sm:$0xff] }
0x187c   : > { %3921 = vadd.xlane.f32.xlu0 %v3920_v60 }
0x1908   : > { %v3925_v5 = vpop.xlane.xlu1 %3924 }
0x1909   : > { %5657 = vrcp.f32 %v3925_v5  ;;  %v3922_v10 = vpop.xlane.xlu0 %3921  ;;  %v4839_v5 = vld [vmem:[%s6259_s9] ss:$0 sm:$0xff] }
0x190a   : > { %5659 = vrcp.f32 %v3922_v10 }
0x1913   : > { %v5658_v11 = vpop.eup %5657 }
0x1914   : > { %v5660_v12 = vpop.eup %5659  ;;  %v3929_v14 = vmul.f32 %v5658_v11, %v5654_v57 }
0x1915   : > { %v3928_v13 = vmul.f32 %v5660_v12, %v5656_v58  ;;  %v4534_v58 = vld [vmem:[%s6258_s8 + $0x70] sm:$0xff] }
0x1916   : > { %v5579_v60 = vpack.c.bf16 %v4535_v59, %v4534_v58 }
0x1917   : > { %5323 = vmatprep.mubr.msk.f32.mxu1 %vm684_vm0, %v3928_v13 }
0x1918   : > { %5324 = vmatmul.mubr.msk.f32.vlgmr.msra.gmra.mrb[40].mxu1 %vm684_vm0, %v3929_v14 }
0x1919   : > { %5337 = vmatprep.mubr.f32.mxu1 %v6172_v15  ;;  %5560 = vmatpush3.bf16.xpose.msra.mxu1 %v5557_v22 }
0x191a   : > { %5566 = vmatprep.subr.bf16.mxu1 %v5565_v38 }
0x1920   : > { %5338 = vmatmul.mubr.f32.vlgmr.msra.gmra.mrb[42].mxu1 %v6188_v23 }
0x1921   : > { %5351 = vmatprep.mubr.f32.mxu1 %v6127_v29  ;;  %5568 = vmatpush3.bf16.xpose.msra.mxu1 %v5565_v38 }
0x1928   : > { %5352 = vmatmul.mubr.f32.vlgmr.msra.gmra.mrb[44].mxu1 %v6134_v32 }
0x19eb   : > { %v5325_v24 = vpop.f32.mrb[40].mxu1 }
0x19ec   : > { %v4002_v25 = vpop.f32.mrb[41].mxu1 }
0x19ed   : > { %5330 = vmatprep.mubr.msk.f32.mxu0 %vm684_vm0, %v4002_v25 }
0x19ee   : > { %5331 = vmatmul.mubr.msk.f32.vlgmr.msra.gmra.mrb[8].mxu0 %vm684_vm0, %v5325_v24 }
0x19ef   : > { %5564 = vmatpush3.bf16.xpose.msra.mxu0 %v5561_v19  ;;  %5344 = vmatprep.mubr.f32.mxu0 %v6127_v29 }
0x19f3   : > { %v5339_v26 = vpop.f32.mrb[42].mxu1 }
0x19f4   : > { %v4175_v28 = vadd.f32 %v5339_v26, %v4828_v27  ;;  %v4169_v7 = vpop.f32.mrb[43].mxu1 }
0x19f5   : > { %v4170_v30 = vadd.f32 %v4828_v27, %v4169_v7 }
0x19f6   : > { %5345 = vmatmul.mubr.f32.vlgmr.msra.gmra.mrb[30].mxu0 %v6134_v32 }
0x19f7   : > { %5358 = vmatprep.mubr.msk.f32.mxu0 %vm684_vm0, %v4170_v30 }
0x19fb   : > { %v5353_v52 = vpop.f32.mrb[44].mxu1 }
0x19fc   : > { %v4333_v54 = vpop.f32.mrb[45].mxu1  ;;  %v4339_v55 = vadd.f32 %v5353_v52, %v4830_v53 }
0x19fd   : > { %v4334_v56 = vadd.f32 %v4830_v53, %v4333_v54 }
0x19ff   : > { %v5575_v57 = vpack.c.bf16 %v4339_v55, %v4334_v56 }
0x1a01   : > { %5576 = vmatprep.subr.bf16.mxu1 %v5575_v57 }
0x1a02   : > { %5578 = vmatpush3.bf16.msra.mxu1 %v5575_v57 }
0x1ac9   : > { %v5346_v33 = vpop.f32.mrb[30].mxu0 }
0x1aca   : > { %v4257_v9 = vadd.f32 %v5346_v33, %v4829_v31  ;;  %v4251_v34 = vpop.f32.mrb[31].mxu0 }
0x1acb   : > { %v4252_v29 = vadd.f32 %v4829_v31, %v4251_v34  ;;  %v4840_v31 = vld [vmem:[%s6260_s10] ss:$0 sm:$0xff] }
0x1acc   : > { %v4841_v34 = vld [vmem:[%s6261_s11] ss:$0 sm:$0xff] }
0x1acd   : > { %v5569_v35 = vpack.c.bf16 %v4257_v9, %v4252_v29 }
0x1acf   : > { %5571 = vmatprep.subr.msk.bf16.mxu0 %vm5809_vm1, %v5569_v35 }
0x1ad0   : > { %5574 = vmatpush3.bf16.xpose.msk.msra.mxu0 %vm5809_vm1, %v5569_v35 }
0x1ad1   : > { %5580 = vmatprep.subr.bf16.mxu0 %v5579_v60 }
0x1ad7   : > { %5359 = vmatmul.mubr.msk.f32.vlgmr.msra.gmra.mrb[32].mxu0 %vm684_vm0, %v4175_v28 }
0x1ad8   : > { %5582 = vmatpush3.bf16.msra.mxu0 %v5579_v60 }
0x1baa   : > { %v5360_v39 = vpop.f32.mrb[32].mxu0 }
0x1bab   : > { %v4430_v40 = vmul.f32 0.25, %v5360_v39  ;;  %v4420_v41 = vpop.f32.mrb[33].mxu0 }
0x1bac   : > { %v4429_v18 = vmul.f32 0.25, %v4420_v41 }
0x1bad   : > { %v4434_v42 = vsel %vm684_vm0, %v4430_v40, -inf }
0x1bae   : > { %4435 = vmax.xlane.f32.xlu1 %v4434_v42  ;;  %v4431_v43 = vsel %vm684_vm0, %v4429_v18, -inf }
0x1baf   : > { %4432 = vmax.xlane.f32.xlu0 %v4431_v43 }
0x1c3b   : > { %v4436_v44 = vpop.xlane.xlu1 %4435 }
0x1c3c   : > { %v4438_v45 = vsub.f32 %v4430_v40, %v4436_v44  ;;  %v4433_v46 = vpop.xlane.xlu0 %4432 }
0x1c3d   : > { %v4437_v47 = vsub.f32 %v4429_v18, %v4433_v46 }
0x1c3e   : > { %v4441_v48 = vmul.f32 1.442695, %v4438_v45 }
0x1c3f   : > { %v4439_v6 = vmul.f32 1.442695, %v4437_v47 }
0x1c40   : > { %5661 = vpow2.f32 %v4441_v48 }
0x1c41   : > { %5663 = vpow2.f32 %v4439_v6 }
0x1c4a   : > { %v5662_v49 = vpop.eup %5661 }
0x1c4b   : > { %v5664_v32 = vpop.eup %5663  ;;  %v4446_v50 = vsel %vm684_vm0, %v5662_v49, 0.0 }
0x1c4c   : > { %4447 = vadd.xlane.f32.xlu1 %v4446_v50  ;;  %v4443_v51 = vsel %vm684_vm0, %v5664_v32, 0.0 }
0x1c4d   : > { %4444 = vadd.xlane.f32.xlu0 %v4443_v51 }
0x1cd9   : > { %v4448_v61 = vpop.xlane.xlu1 %4447 }
0x1cda   : > { %5665 = vrcp.f32 %v4448_v61  ;;  %v4445_v62 = vpop.xlane.xlu0 %4444 }
0x1cdb   : > { %5667 = vrcp.f32 %v4445_v62 }
0x1ce4   : > { %v5666_v63 = vpop.eup %5665 }
0x1ce5   : > { %v5668_v0 = vpop.eup %5667  ;;  %v4452_v8 = vmul.f32 %v5666_v63, %v5662_v49 }
0x1ce6   : > { %v4451_v1 = vmul.f32 %v5668_v0, %v5664_v32 }
0x1ce8   : > { %5365 = vmatprep.mubr.msk.f32.mxu1 %vm684_vm0, %v4451_v1 }
0x1ce9   : > { %5366 = vmatmul.mubr.msk.f32.vlgmr.msra.gmra.mrb[46].mxu1 %vm684_vm0, %v4452_v8 }
0x1dbc   : > { %v5367_v2 = vpop.f32.mrb[46].mxu1 }
0x1dbd   : > { %v4525_v3 = vpop.f32.mrb[47].mxu1 }
0x1dbe   : > { %5372 = vmatprep.mubr.msk.f32.mxu0 %vm684_vm0, %v4525_v3 }
0x1dbf   : > { %5373 = vmatmul.mubr.msk.f32.vlgmr.msra.gmra.mrb[8].mxu0 %vm684_vm0, %v5367_v2 }
0x1e92   : > { %v5374_v4 = vpop.f32.mrb[8].mxu0 }
0x1e93   : > { %v4620_v10 = vadd.f32 %v6188_v23, %v5374_v4  ;;  %v4608_v11 = vpop.f32.mrb[9].mxu0 }
0x1e94   : > { %v4619_v12 = vadd.f32 %v6172_v15, %v4608_v11 }
0x1e95   : > { %v4629_v13 = vadd.f32 %v4839_v5, %v4620_v10 }
0x1e96   : > { %v4628_v14 = vadd.f32 %v4839_v5, %v4619_v12 }
0x1e97   : > { %4634 = vadd.xlane.f32.xlu1 %v4629_v13 }
0x1e98   : > { %4632 = vadd.xlane.f32.xlu0 %v4628_v14 }
0x1f24   : > { %v4635_v16 = vpop.xlane.xlu1 %4634 }
0x1f25   : > { %v4638_v17 = vmul.f32 0.0078125, %v4635_v16  ;;  %v4633_v19 = vpop.xlane.xlu0 %4632 }
0x1f26   : > { %v4637_v20 = vmul.f32 0.0078125, %v4633_v19 }
0x1f27   : > { %v4640_v21 = vsub.f32 %v4629_v13, %v4638_v17 }
0x1f28   : > { %v4639_v22 = vsub.f32 %v4628_v14, %v4637_v20 }
0x1f29   : > { %v4642_v24 = vmul.f32 %v4640_v21, %v4640_v21 }
0x1f2a   : > { %v4641_v25 = vmul.f32 %v4639_v22, %v4639_v22 }
0x1f2b   : > { %4645 = vadd.xlane.f32.xlu1 %v4642_v24 }
0x1f2c   : > { %4643 = vadd.xlane.f32.xlu0 %v4641_v25 }
0x1fb8   : > { %v4646_v26 = vpop.xlane.xlu1 %4645 }
0x1fb9   : > { %v4648_v23 = vmul.f32 0.0078125, %v4646_v26  ;;  %v4644_v27 = vpop.xlane.xlu0 %4643 }
0x1fba   : > { %v4647_v28 = vmul.f32 0.0078125, %v4644_v27 }
0x1fbb   : > { %v4650_v15 = vadd.f32 1e-05, %v4648_v23 }
0x1fbc   : > { %v4649_v7 = vadd.f32 1e-05, %v4647_v28 }
0x1fbd   : > { %5669 = vrsqrt.f32 %v4650_v15 }
0x1fbe   : > { %5671 = vrsqrt.f32 %v4649_v7 }
0x1fc7   : > { %v5670_v30 = vpop.eup %5669 }
0x1fc8   : > { %v5672_v33 = vpop.eup %5671  ;;  %v4654_v9 = vmul.f32 %v5670_v30, %v4640_v21 }
0x1fc9   : > { %v4653_v29 = vmul.f32 %v5672_v33, %v4639_v22 }
0x1fca   : > { %v4662_v35 = vmul.f32 %v4840_v31, %v4654_v9 }
0x1fcb   : > { %v4661_v36 = vmul.f32 %v4840_v31, %v4653_v29 }
0x1fcc   : > { %v4670_v37 = vadd.f32 %v4841_v34, %v4662_v35 }
0x1fcd   : > { %v4669_v38 = vadd.f32 %v4841_v34, %v4661_v36 }
0x1fce   : > { %4672 = vst [vmem:[%s433_s24 + $0x8] sm:$0xff] %v4670_v37 }
0x1fcf   : > { %4671 = vst [vmem:[%s433_s24] sm:$0xff] %v4669_v38 }
0x1fd0 PF: > { %s22_s21 = sadd.s32 1, %s5683_s21  }
0x1fd1   : > { %p19_p4 = scmp.ge.s32.totalorder %s22_s21, 4  }
0x1fd3   :  { %21 = sbr.rel (!%p19_p4) target bundleno = 1 (0x1), region = 101 }

// kernel: transformer_pointnet_forward.9
= control target key start
LH: loop header
LB: loop body
LE: loop exit
PB: predicated region body
PF: predicated region fallthrough
CT: control target
= control target key end

     0   :  { %s5679_s17 = smov 0   ;;  %s6164_s0 = inlined_call_operand.vmem [shape: f32[2,16,128], index: 0, kind: input, shape index: {}]   ;;  %s6165_s1 = inlined_call_operand.vmem [shape: f32[128,128], index: 1, kind: input, shape index: {}]   ;;  %s6166_s2 = inlined_call_operand.vmem [shape: f32[128,128], index: 2, kind: input, shape index: {}]   ;;  %s6167_s3 = inlined_call_operand.vmem [shape: f32[128,128], index: 3, kind: input, shape index: {}]   ;;  %s6168_s4 = inlined_call_operand.vmem [shape: f32[8,16], index: 4, kind: input, shape index: {}]   ;;  %s6169_s5 = inlined_call_operand.vmem [shape: f32[8,16], index: 5, kind: input, shape index: {}]   ;;  %s6170_s6 = inlined_call_operand.vmem [shape: f32[8,16], index: 6, kind: input, shape index: {}]   ;;  %s6171_s7 = inlined_call_operand.vmem [shape: f32[128,128], index: 7, kind: input, shape index: {}]   ;;  %s6172_s8 = inlined_call_operand.vmem [shape: f32[1,128], index: 8, kind: input, shape index: {}]   ;;  %s6173_s9 = inlined_call_operand.vmem [shape: f32[1,128], index: 9, kind: input, shape index: {}]   ;;  %s6174_s10 = inlined_call_operand.vmem [shape: f32[1,128], index: 10, kind: input, shape index: {}]   ;;  %s6175_s11 = inlined_call_operand.vmem [shape: f32[2,16,128], index: 11, kind: output, shape index: {}]  }
   0x1 LB: > { %s4679_s18 = sadd.s32 4294967295, %s5617_s17   ;;  %p4683_p0 = scmp.ge.s32.totalorder %s5617_s17, 1  ;;  %s5617_s17 = sphi %s5679_s17, %s21_s17  }
   0x2   : > { %p337_p1 = scmp.lt.s32.totalorder %s5617_s17, 3 }
   0x4   : > { %p338_p2 = pnand %p4683_p0, %p337_p1 }
   0x5   : > { %v471_v0 = vld [vmem:[%s6166_s2] sm:$0xff] (!%p338_p2)  ;;  %v472_v1 = vld [vmem:[%s6166_s2 + $0x8] sm:$0xff] (!%p338_p2)  ;;  %p377_p3 = scmp.lt.s32.totalorder (!%p338_p2), %s4679_s18, 1  ;;  %vm635_vm0 = vcmask (!%p338_p2), 130048   ;;  %v912_v44 = vld [vmem:[%s6166_s2 + $0x10] sm:$0xff] (!%p338_p2) }
   0x6   : > { %341 = sbr.rel (%p338_p2) target bundleno = 8144 (0x1fd0), region = 64  ;;  %v389_v2 = vld [vmem:[%s6165_s1] sm:$0xff] (!%p338_p2)  ;;  %v5315_v3 = vpack.c.bf16 (!%p338_p2), %v472_v1, %v471_v0  ;;  %v390_v4 = vld [vmem:[%s6165_s1 + $0x8] sm:$0xff] (!%p338_p2)  ;;  %vm5728_vm1 = vmpackc.low (!%p338_p2), %vm635_vm0, %vm635_vm0 }
   0x7   : > { %v5311_v5 = vpack.c.bf16 (!%p338_p2), %v390_v4, %v389_v2  ;;  %v4689_v8 = vld [vmem:[%s6169_s5] ss:$0 sm:$0xff] (!%p338_p2)  ;;  %v554_v21 = vld [vmem:[%s6167_s3 + $0x8] sm:$0xff] (!%p338_p2)  ;;  %v913_v45 = vld [vmem:[%s6166_s2 + $0x18] sm:$0xff] (!%p338_p2) }
   0x8   : > { %5316 = vmatprep.subr.bf16.mxu1 (!%p338_p2), %v5315_v3  ;;  %v4688_v10 = vld [vmem:[%s6168_s4] ss:$0 sm:$0xff] (!%p338_p2)  ;;  %v5337_v47 = vpack.c.bf16 (!%p338_p2), %v913_v45, %v912_v44  ;;  %v830_v48 = vld [vmem:[%s6165_s1 + $0x10] sm:$0xff] (!%p338_p2)  ;;  %v831_v49 = vld [vmem:[%s6165_s1 + $0x18] sm:$0xff] (!%p338_p2) }
   0x9   : > { %5318 = vmatpush3.bf16.xpose.msra.mxu1 (!%p338_p2), %v5315_v3  ;;  %5312 = vmatprep.subr.bf16.mxu0 (!%p338_p2), %v5311_v5  ;;  %v553_v20 = vld [vmem:[%s6167_s3] sm:$0xff] (!%p338_p2)  ;;  %v5333_v50 = vpack.c.bf16 (!%p338_p2), %v831_v49, %v830_v48  ;;  %v829_v44 = vld [vmem:[%s6171_s7 + $0x8] sm:$0xff] (!%p338_p2) }
   0xa   : > { %5314 = vmatpush3.bf16.xpose.msra.mxu0 (!%p338_p2), %v5311_v5  ;;  %v5319_v22 = vpack.c.bf16 (!%p338_p2), %v554_v21, %v553_v20  ;;  %v4690_v40 = vld [vmem:[%s6170_s6] ss:$0 sm:$0xff] (!%p338_p2)  ;;  %v4698_v57 = vld [vmem:[%s6169_s5 + $0x1] ss:$0 sm:$0xff] (!%p338_p2) }
   0xb   : > { %v4697_v1 = vld [vmem:[%s6168_s4 + $0x1] ss:$0 sm:$0xff] (!%p338_p2) }
   0xc   : > { %5320 = vmatprep.subr.bf16.mxu0 (!%p338_p2), %v5319_v22  ;;  %v1514_v49 = vld [vmem:[%s6166_s2 + $0x20] sm:$0xff] (!%p338_p2) }
   0xd   : > { %s6179_s18 = smov (!%p377_p3, %s4679_s18), 1 }
   0xe   : > { %s4781_s27 = sshll.u32 %s6179_s18, 4 }
   0xf   : > { %s5707_s30 = scalar_lea.vmem %s6164_s0, %s4781_s27  ;;  %s386_s22 = scalar_lea.vmem %s6175_s11, %s4781_s27 }
  0x10   : > { %v5710_v6 = vld [vmem:[%s5707_s30] sm:$0xff]  ;;  %v5715_v7 = vld [vmem:[%s5707_s30 + $0x8] sm:$0xff] }
  0x11   : > { %4986 = vmatprep.mubr.f32.mxu1 %v5710_v6  ;;  %4979 = vmatprep.mubr.f32.mxu0 %v5710_v6 }
  0x12   : > { %4987 = vmatmul.mubr.f32.vlgmr.msra.gmra.mrb[0].mxu1 %v5715_v7  ;;  %4980 = vmatmul.mubr.f32.vlgmr.msra.gmra.mrb[0].mxu0 %v5715_v7 }
  0x13   : > { %4993 = vmatprep.mubr.f32.mxu0 %v5710_v6  ;;  %5322 = vmatpush3.bf16.xpose.msra.mxu0 %v5319_v22 }
  0x14   : > { %5338 = vmatprep.subr.bf16.mxu0 %v5337_v47 }
  0x1a   : > { %4994 = vmatmul.mubr.f32.vlgmr.msra.gmra.mrb[2].mxu0 %v5715_v7 }
  0x1b   : > { %5021 = vmatprep.mubr.f32.mxu0 %v5710_v6  ;;  %5340 = vmatpush3.bf16.xpose.msra.mxu0 %v5337_v47  ;;  %v1433_v47 = vld [vmem:[%s6165_s1 + $0x28] sm:$0xff] }
  0x22   : > { %5022 = vmatmul.mubr.f32.vlgmr.msra.gmra.mrb[4].mxu0 %v5715_v7 }
  0xe5   : > { %v4988_v9 = vpop.f32.mrb[0].mxu1  ;;  %v4981_v13 = vpop.f32.mrb[0].mxu0 }
  0xe6   : > { %v550_v11 = vadd.f32 %v4988_v9, %v4689_v8  ;;  %v544_v12 = vpop.f32.mrb[1].mxu1  ;;  %v462_v15 = vpop.f32.mrb[1].mxu0  ;;  %v468_v19 = vadd.f32 %v4981_v13, %v4688_v10  ;;  %v995_v9 = vld [vmem:[%s6167_s3 + $0x18] sm:$0xff] }
  0xe7   : > { %v545_v14 = vadd.f32 %v4689_v8, %v544_v12  ;;  %v463_v17 = vadd.f32 %v4688_v10, %v462_v15  ;;  %v994_v8 = vld [vmem:[%s6167_s3 + $0x10] sm:$0xff] }
  0xe8   : > { %v5341_v10 = vpack.c.bf16 %v995_v9, %v994_v8 }
  0xe9   : > { %v5323_v18 = vpack.c.bf16 %v550_v11, %v545_v14  ;;  %5000 = vmatprep.mubr.msk.f32.mxu1 %vm635_vm0, %v463_v17 }
  0xeb   : > { %5325 = vmatprep.subr.msk.bf16.mxu1 %vm5728_vm1, %v5323_v18 }
  0xec   : > { %5328 = vmatpush3.bf16.xpose.msk.msra.mxu1 %vm5728_vm1, %v5323_v18 }
  0xed   : > { %v4995_v29 = vpop.f32.mrb[2].mxu0 }
  0xee   : > { %v632_v41 = vadd.f32 %v4995_v29, %v4690_v40  ;;  %v626_v42 = vpop.f32.mrb[3].mxu0  ;;  %v4699_v29 = vld [vmem:[%s6170_s6 + $0x1] ss:$0 sm:$0xff] }
  0xef   : > { %v627_v43 = vadd.f32 %v4690_v40, %v626_v42 }
  0xf1   : > { %v5329_v46 = vpack.c.bf16 %v632_v41, %v627_v43  ;;  %v828_v43 = vld [vmem:[%s6171_s7] sm:$0xff] }
  0xf2   : > { %v5359_v45 = vpack.c.bf16 %v829_v44, %v828_v43 }
  0xf3   : > { %5001 = vmatmul.mubr.msk.f32.vlgmr.msra.gmra.mrb[2].mxu1 %vm635_vm0, %v468_v19  ;;  %5330 = vmatprep.subr.bf16.mxu1 %v5329_v46 }
  0xf4   : > { %5332 = vmatpush3.bf16.msra.mxu1 %v5329_v46  ;;  %v1432_v46 = vld [vmem:[%s6165_s1 + $0x20] sm:$0xff] }
  0xf5   : > { %5334 = vmatprep.subr.bf16.mxu1 %v5333_v50  ;;  %v5023_v58 = vpop.f32.mrb[4].mxu0  ;;  %v5363_v48 = vpack.c.bf16 %v1433_v47, %v1432_v46  ;;  %v4721_v47 = vld [vmem:[%s6168_s4 + $0x3] ss:$0 sm:$0xff] }
  0xf6   : > { %v991_v59 = vadd.f32 %v5023_v58, %v4698_v57  ;;  %v985_v60 = vpop.f32.mrb[5].mxu0 }
  0xf7   : > { %v986_v61 = vadd.f32 %v4698_v57, %v985_v60 }
  0xf9   : > { %v5345_v62 = vpack.c.bf16 %v991_v59, %v986_v61  ;;  %v4711_v59 = vld [vmem:[%s6169_s5 + $0x2] ss:$0 sm:$0xff] }
  0xfb   : > { %5347 = vmatprep.subr.msk.bf16.mxu0 %vm5728_vm1, %v5345_v62 }
  0xfc   : > { %5350 = vmatpush3.bf16.xpose.msk.msra.mxu0 %vm5728_vm1, %v5345_v62 }
 0x1c6   : > { %v5002_v23 = vpop.f32.mrb[2].mxu1 }
 0x1c7   : > { %v714_v24 = vpop.f32.mrb[3].mxu1  ;;  %v724_v26 = vmul.f32 0.25, %v5002_v23 }
 0x1c8   : > { %v723_v25 = vmul.f32 0.25, %v714_v24 }
 0x1c9   : > { %v728_v28 = vsel %vm635_vm0, %v724_v26, -inf }
 0x1ca   : > { %v725_v27 = vsel %vm635_vm0, %v723_v25, -inf }
 0x1cb   : > { %726 = vmax.xlane.f32.xlu0 %v725_v27 }
 0x1cf   : > { %729 = vmax.xlane.f32.xlu0 %v728_v28 }
 0x258   : > { %v727_v30 = vpop.xlane.xlu0 %726 }
 0x259   : > { %v731_v31 = vsub.f32 %v723_v25, %v727_v30 }
 0x25b   : > { %v733_v32 = vmul.f32 1.442695, %v731_v31 }
 0x25c   : > { %v730_v33 = vpop.xlane.xlu0 %729 }
 0x25d   : > { %5541 = vpow2.f32 %v733_v32  ;;  %v732_v34 = vsub.f32 %v724_v26, %v730_v33 }
 0x25f   : > { %v735_v35 = vmul.f32 1.442695, %v732_v34  ;;  %v1268_v34 = vld [vmem:[%s6171_s7 + $0x10] sm:$0xff] }
 0x261   : > { %5543 = vpow2.f32 %v735_v35  ;;  %v1269_v35 = vld [vmem:[%s6171_s7 + $0x18] sm:$0xff] }
 0x267   : > { %v5542_v36 = vpop.eup %5541 }
 0x268   : > { %v737_v37 = vsel %vm635_vm0, %v5542_v36, 0.0 }
 0x269   : > { %738 = vadd.xlane.f32.xlu1 %v737_v37 }
 0x26b   : > { %v5544_v38 = vpop.eup %5543 }
 0x26c   : > { %v740_v39 = vsel %vm635_vm0, %v5544_v38, 0.0 }
 0x26d   : > { %741 = vadd.xlane.f32.xlu1 %v740_v39 }
 0x2f6   : > { %v739_v51 = vpop.xlane.xlu1 %738 }
 0x2f7   : > { %5545 = vrcp.f32 %v739_v51 }
 0x2fa   : > { %v742_v52 = vpop.xlane.xlu1 %741 }
 0x2fb   : > { %5547 = vrcp.f32 %v742_v52 }
 0x301   : > { %v5546_v53 = vpop.eup %5545 }
 0x302   : > { %v745_v54 = vmul.f32 %v5546_v53, %v5542_v36  ;;  %v5355_v36 = vpack.c.bf16 %v1269_v35, %v1268_v34 }
 0x304   : > { %5007 = vmatprep.mubr.msk.f32.mxu1 %vm635_vm0, %v745_v54  ;;  %5356 = vmatprep.subr.bf16.mxu0 %v5355_v36 }
 0x305   : > { %v5548_v55 = vpop.eup %5547 }
 0x306   : > { %v746_v56 = vmul.f32 %v5548_v55, %v5544_v38  ;;  %v4710_v55 = vld [vmem:[%s6168_s4 + $0x2] ss:$0 sm:$0xff] }
 0x308   : > { %5008 = vmatmul.mubr.msk.f32.vlgmr.msra.gmra.mrb[4].mxu1 %vm635_vm0, %v746_v56 }
 0x309   : > { %5336 = vmatpush3.bf16.xpose.msra.mxu1 %v5333_v50  ;;  %5014 = vmatprep.mubr.f32.mxu1 %v5710_v6  ;;  %v1515_v50 = vld [vmem:[%s6166_s2 + $0x28] sm:$0xff] }
 0x30a   : > { %5342 = vmatprep.subr.bf16.mxu1 %v5341_v10  ;;  %v5367_v53 = vpack.c.bf16 %v1515_v50, %v1514_v49 }
 0x310   : > { %5015 = vmatmul.mubr.f32.vlgmr.msra.gmra.mrb[6].mxu1 %v5715_v7 }
 0x311   : > { %5028 = vmatprep.mubr.f32.mxu1 %v5710_v6  ;;  %5344 = vmatpush3.bf16.xpose.msra.mxu1 %v5341_v10 }
 0x318   : > { %5029 = vmatmul.mubr.f32.vlgmr.msra.gmra.mrb[8].mxu1 %v5715_v7 }
 0x3db   : > { %v5778_v63 = vpop.f32.mrb[4].mxu1 }
 0x3dc   : > { %v5780_v0 = vpop.f32.mrb[5].mxu1 }
 0x3e3   : > { %v5016_v2 = vpop.f32.mrb[6].mxu1 }
 0x3e4   : > { %v903_v3 = vpop.f32.mrb[7].mxu1  ;;  %v909_v5 = vadd.f32 %v5016_v2, %v4697_v1  ;;  %v1597_v2 = vld [vmem:[%s6167_s3 + $0x28] sm:$0xff] }
 0x3e5   : > { %v904_v4 = vadd.f32 %v4697_v1, %v903_v3  ;;  %v1596_v1 = vld [vmem:[%s6167_s3 + $0x20] sm:$0xff] }
 0x3e6   : > { %v5371_v3 = vpack.c.bf16 %v1597_v2, %v1596_v1 }
 0x3e7   : > { %5035 = vmatprep.mubr.msk.f32.mxu0 %vm635_vm0, %v904_v4 }
 0x3e8   : > { %5036 = vmatmul.mubr.msk.f32.vlgmr.msra.gmra.mrb[6].mxu0 %vm635_vm0, %v909_v5 }
 0x3e9   : > { %5358 = vmatpush3.bf16.msra.mxu0 %v5355_v36 }
 0x3ea   : > { %5360 = vmatprep.subr.bf16.mxu0 %v5359_v45 }
 0x3eb   : > { %v5030_v28 = vpop.f32.mrb[8].mxu1 }
 0x3ec   : > { %v1067_v30 = vpop.f32.mrb[9].mxu1  ;;  %v1073_v31 = vadd.f32 %v5030_v28, %v4699_v29 }
 0x3ed   : > { %v1068_v32 = vadd.f32 %v4699_v29, %v1067_v30  ;;  %v1870_v29 = vld [vmem:[%s6171_s7 + $0x20] sm:$0xff]  ;;  %v1871_v30 = vld [vmem:[%s6171_s7 + $0x28] sm:$0xff] }
 0x3ef   : > { %v5351_v33 = vpack.c.bf16 %v1073_v31, %v1068_v32  ;;  %v5385_v31 = vpack.c.bf16 %v1871_v30, %v1870_v29  ;;  %v2560_v30 = vld [vmem:[%s6166_s2 + $0x40] sm:$0xff] }
 0x3f1   : > { %5352 = vmatprep.subr.bf16.mxu1 %v5351_v33 }
 0x3f2   : > { %5354 = vmatpush3.bf16.msra.mxu1 %v5351_v33 }
 0x3f3   : > { %5364 = vmatprep.subr.bf16.mxu1 %v5363_v48 }
 0x4bb   : > { %v5037_v11 = vpop.f32.mrb[6].mxu0 }
 0x4bc   : > { %v1164_v12 = vmul.f32 0.25, %v5037_v11  ;;  %v1154_v13 = vpop.f32.mrb[7].mxu0 }
 0x4bd   : > { %v1163_v14 = vmul.f32 0.25, %v1154_v13 }
 0x4be   : > { %v1168_v15 = vsel %vm635_vm0, %v1164_v12, -inf }
 0x4bf   : > { %1169 = vmax.xlane.f32.xlu1 %v1168_v15  ;;  %v1165_v17 = vsel %vm635_vm0, %v1163_v14, -inf }
 0x4c0   : > { %1166 = vmax.xlane.f32.xlu0 %v1165_v17 }
 0x54c   : > { %v1170_v18 = vpop.xlane.xlu1 %1169 }
 0x54d   : > { %v1172_v19 = vsub.f32 %v1164_v12, %v1170_v18  ;;  %v1167_v20 = vpop.xlane.xlu0 %1166 }
 0x54e   : > { %v1171_v21 = vsub.f32 %v1163_v14, %v1167_v20 }
 0x54f   : > { %v1175_v22 = vmul.f32 1.442695, %v1172_v19 }
 0x550   : > { %v1173_v23 = vmul.f32 1.442695, %v1171_v21 }
 0x551   : > { %5549 = vpow2.f32 %v1175_v22 }
 0x552   : > { %5551 = vpow2.f32 %v1173_v23 }
 0x55b   : > { %v5550_v24 = vpop.eup %5549 }
 0x55c   : > { %v5552_v25 = vpop.eup %5551  ;;  %v1180_v26 = vsel %vm635_vm0, %v5550_v24, 0.0 }
 0x55d   : > { %1181 = vadd.xlane.f32.xlu1 %v1180_v26  ;;  %v1177_v27 = vsel %vm635_vm0, %v5552_v25, 0.0 }
 0x55e   : > { %1178 = vadd.xlane.f32.xlu0 %v1177_v27 }
 0x5ea   : > { %v1182_v37 = vpop.xlane.xlu1 %1181 }
 0x5eb   : > { %5553 = vrcp.f32 %v1182_v37  ;;  %v1179_v38 = vpop.xlane.xlu0 %1178 }
 0x5ec   : > { %5555 = vrcp.f32 %v1179_v38  ;;  %v2037_v38 = vld [vmem:[%s6166_s2 + $0x30] sm:$0xff] }
 0x5f5   : > { %v5554_v39 = vpop.eup %5553 }
 0x5f6   : > { %v5556_v40 = vpop.eup %5555  ;;  %v1186_v42 = vmul.f32 %v5554_v39, %v5550_v24  ;;  %v4712_v24 = vld [vmem:[%s6170_s6 + $0x2] ss:$0 sm:$0xff]  ;;  %v2038_v39 = vld [vmem:[%s6166_s2 + $0x38] sm:$0xff] }
 0x5f7   : > { %v1185_v41 = vmul.f32 %v5556_v40, %v5552_v25  ;;  %v5393_v40 = vpack.c.bf16 %v2038_v39, %v2037_v38  ;;  %v4732_v39 = vld [vmem:[%s6168_s4 + $0x4] ss:$0 sm:$0xff] }
 0x5f9   : > { %5042 = vmatprep.mubr.msk.f32.mxu1 %vm635_vm0, %v1185_v41  ;;  %v1955_v41 = vld [vmem:[%s6165_s1 + $0x30] sm:$0xff] }
 0x5fa   : > { %5043 = vmatmul.mubr.msk.f32.vlgmr.msra.gmra.mrb[10].mxu1 %vm635_vm0, %v1186_v42  ;;  %v1956_v42 = vld [vmem:[%s6165_s1 + $0x38] sm:$0xff] }
 0x5fb   : > { %5063 = vmatprep.mubr.f32.mxu1 %v5710_v6  ;;  %5366 = vmatpush3.bf16.xpose.msra.mxu1 %v5363_v48  ;;  %v5389_v43 = vpack.c.bf16 %v1956_v42, %v1955_v41 }
 0x5fc   : > { %5372 = vmatprep.subr.bf16.mxu1 %v5371_v3 }
 0x602   : > { %5064 = vmatmul.mubr.f32.vlgmr.msra.gmra.mrb[12].mxu1 %v5715_v7 }
 0x603   : > { %5077 = vmatprep.mubr.f32.mxu1 %v5710_v6  ;;  %5374 = vmatpush3.bf16.xpose.msra.mxu1 %v5371_v3 }
 0x60a   : > { %5078 = vmatmul.mubr.f32.vlgmr.msra.gmra.mrb[14].mxu1 %v5715_v7 }
 0x6cd   : > { %v5044_v51 = vpop.f32.mrb[10].mxu1 }
 0x6ce   : > { %v1259_v52 = vpop.f32.mrb[11].mxu1 }
 0x6cf   : > { %5049 = vmatprep.mubr.msk.f32.mxu0 %vm635_vm0, %v1259_v52 }
 0x6d0   : > { %5050 = vmatmul.mubr.msk.f32.vlgmr.msra.gmra.mrb[8].mxu0 %vm635_vm0, %v5044_v51  ;;  %v4722_v51 = vld [vmem:[%s6169_s5 + $0x3] ss:$0 sm:$0xff] }
 0x6d1   : > { %5362 = vmatpush3.bf16.msra.mxu0 %v5359_v45  ;;  %5056 = vmatprep.mubr.msk.f32.mxu0 %vm635_vm0, %v5780_v0 }
 0x6d2   : > { %5368 = vmatprep.subr.bf16.mxu0 %v5367_v53 }
 0x6d5   : > { %v5065_v54 = vpop.f32.mrb[12].mxu1 }
 0x6d6   : > { %v1511_v56 = vadd.f32 %v5065_v54, %v4710_v55  ;;  %v1505_v57 = vpop.f32.mrb[13].mxu1 }
 0x6d7   : > { %v1506_v58 = vadd.f32 %v4710_v55, %v1505_v57  ;;  %v2119_v57 = vld [vmem:[%s6167_s3 + $0x30] sm:$0xff] }
 0x6d8   : > { %5057 = vmatmul.mubr.msk.f32.vlgmr.msra.gmra.mrb[8].mxu0 %vm635_vm0, %v5778_v63 }
 0x6d9   : > { %5070 = vmatprep.mubr.f32.mxu0 %v5710_v6 }
 0x6da   : > { %5370 = vmatpush3.bf16.xpose.msra.mxu0 %v5367_v53 }
 0x6dd   : > { %v5079_v23 = vpop.f32.mrb[14].mxu1 }
 0x6de   : > { %v1669_v25 = vpop.f32.mrb[15].mxu1  ;;  %v1675_v26 = vadd.f32 %v5079_v23, %v4712_v24 }
 0x6df   : > { %v1670_v27 = vadd.f32 %v4712_v24, %v1669_v25 }
 0x6e1   : > { %5071 = vmatmul.mubr.f32.vlgmr.msra.gmra.mrb[10].mxu0 %v5715_v7  ;;  %v5381_v28 = vpack.c.bf16 %v1675_v26, %v1670_v27 }
 0x6e2   : > { %5084 = vmatprep.mubr.msk.f32.mxu0 %vm635_vm0, %v1506_v58  ;;  %v2120_v58 = vld [vmem:[%s6167_s3 + $0x38] sm:$0xff] }
 0x6e3   : > { %5382 = vmatprep.subr.bf16.mxu1 %v5381_v28 }
 0x6e4   : > { %5384 = vmatpush3.bf16.msra.mxu1 %v5381_v28 }
 0x6e5   : > { %5390 = vmatprep.subr.bf16.mxu1 %v5389_v43 }
 0x7b4   : > { %v5072_v60 = vpop.f32.mrb[10].mxu0 }
 0x7b5   : > { %v1593_v61 = vadd.f32 %v5072_v60, %v4711_v59  ;;  %v1587_v62 = vpop.f32.mrb[11].mxu0 }
 0x7b6   : > { %v1588_v63 = vadd.f32 %v4711_v59, %v1587_v62  ;;  %v5397_v59 = vpack.c.bf16 %v2120_v58, %v2119_v57 }
 0x7b8   : > { %v5375_v0 = vpack.c.bf16 %v1593_v61, %v1588_v63 }
 0x7ba   : > { %5377 = vmatprep.subr.msk.bf16.mxu0 %vm5728_vm1, %v5375_v0 }
 0x7bb   : > { %5380 = vmatpush3.bf16.xpose.msk.msra.mxu0 %vm5728_vm1, %v5375_v0 }
 0x7bc   : > { %5386 = vmatprep.subr.bf16.mxu0 %v5385_v31 }
 0x7c2   : > { %5085 = vmatmul.mubr.msk.f32.vlgmr.msra.gmra.mrb[12].mxu0 %vm635_vm0, %v1511_v56 }
 0x7c3   : > { %5388 = vmatpush3.bf16.msra.mxu0 %v5385_v31  ;;  %v2561_v31 = vld [vmem:[%s6166_s2 + $0x48] sm:$0xff] }
 0x7c4   : > { %5394 = vmatprep.subr.bf16.mxu0 %v5393_v40 }
 0x895   : > { %v5086_v4 = vpop.f32.mrb[12].mxu0 }
 0x896   : > { %v1766_v5 = vmul.f32 0.25, %v5086_v4  ;;  %v1756_v8 = vpop.f32.mrb[13].mxu0 }
 0x897   : > { %v1765_v9 = vmul.f32 0.25, %v1756_v8 }
 0x898   : > { %v1770_v10 = vsel %vm635_vm0, %v1766_v5, -inf }
 0x899   : > { %1771 = vmax.xlane.f32.xlu1 %v1770_v10  ;;  %v1767_v11 = vsel %vm635_vm0, %v1765_v9, -inf }
 0x89a   : > { %1768 = vmax.xlane.f32.xlu0 %v1767_v11 }
 0x926   : > { %v1772_v12 = vpop.xlane.xlu1 %1771 }
 0x927   : > { %v1774_v13 = vsub.f32 %v1766_v5, %v1772_v12  ;;  %v1769_v14 = vpop.xlane.xlu0 %1768 }
 0x928   : > { %v1773_v15 = vsub.f32 %v1765_v9, %v1769_v14 }
 0x929   : > { %v1777_v17 = vmul.f32 1.442695, %v1774_v13 }
 0x92a   : > { %v1775_v18 = vmul.f32 1.442695, %v1773_v15  ;;  %v4723_v15 = vld [vmem:[%s6170_s6 + $0x3] ss:$0 sm:$0xff] }
 0x92b   : > { %5557 = vpow2.f32 %v1777_v17 }
 0x92c   : > { %5559 = vpow2.f32 %v1775_v18 }
 0x935   : > { %v5558_v19 = vpop.eup %5557 }
 0x936   : > { %v5560_v20 = vpop.eup %5559  ;;  %v1782_v21 = vsel %vm635_vm0, %v5558_v19, 0.0 }
 0x937   : > { %1783 = vadd.xlane.f32.xlu1 %v1782_v21  ;;  %v1779_v22 = vsel %vm635_vm0, %v5560_v20, 0.0  ;;  %v2393_v21 = vld [vmem:[%s6171_s7 + $0x30] sm:$0xff] }
 0x938   : > { %1780 = vadd.xlane.f32.xlu0 %v1779_v22  ;;  %v2394_v22 = vld [vmem:[%s6171_s7 + $0x38] sm:$0xff] }
 0x939   : > { %v5411_v23 = vpack.c.bf16 %v2394_v22, %v2393_v21  ;;  %v3083_v22 = vld [vmem:[%s6166_s2 + $0x50] sm:$0xff] }
 0x9c4   : > { %v1784_v32 = vpop.xlane.xlu1 %1783 }
 0x9c5   : > { %5561 = vrcp.f32 %v1784_v32  ;;  %v1781_v33 = vpop.xlane.xlu0 %1780  ;;  %v5419_v32 = vpack.c.bf16 %v2561_v31, %v2560_v30  ;;  %v4743_v31 = vld [vmem:[%s6168_s4 + $0x5] ss:$0 sm:$0xff] }
 0x9c6   : > { %5563 = vrcp.f32 %v1781_v33  ;;  %v2478_v33 = vld [vmem:[%s6165_s1 + $0x40] sm:$0xff] }
 0x9cf   : > { %v5562_v34 = vpop.eup %5561 }
 0x9d0   : > { %v5564_v35 = vpop.eup %5563  ;;  %v1788_v37 = vmul.f32 %v5562_v34, %v5558_v19  ;;  %v2479_v34 = vld [vmem:[%s6165_s1 + $0x48] sm:$0xff] }
 0x9d1   : > { %v1787_v36 = vmul.f32 %v5564_v35, %v5560_v20  ;;  %v5415_v35 = vpack.c.bf16 %v2479_v34, %v2478_v33 }
 0x9d3   : > { %5091 = vmatprep.mubr.msk.f32.mxu1 %vm635_vm0, %v1787_v36 }
 0x9d4   : > { %5092 = vmatmul.mubr.msk.f32.vlgmr.msra.gmra.mrb[16].mxu1 %vm635_vm0, %v1788_v37 }
 0x9d5   : > { %5105 = vmatprep.mubr.f32.mxu1 %v5710_v6  ;;  %5392 = vmatpush3.bf16.xpose.msra.mxu1 %v5389_v43  ;;  %v4733_v43 = vld [vmem:[%s6169_s5 + $0x4] ss:$0 sm:$0xff] }
 0x9d6   : > { %5398 = vmatprep.subr.bf16.mxu1 %v5397_v59 }
 0x9dc   : > { %5106 = vmatmul.mubr.f32.vlgmr.msra.gmra.mrb[18].mxu1 %v5715_v7 }
 0x9dd   : > { %5119 = vmatprep.mubr.f32.mxu1 %v5710_v6  ;;  %5400 = vmatpush3.bf16.xpose.msra.mxu1 %v5397_v59 }
 0x9e4   : > { %5120 = vmatmul.mubr.f32.vlgmr.msra.gmra.mrb[20].mxu1 %v5715_v7 }
 0xaa7   : > { %v5093_v44 = vpop.f32.mrb[16].mxu1 }
 0xaa8   : > { %v1861_v45 = vpop.f32.mrb[17].mxu1 }
 0xaa9   : > { %5098 = vmatprep.mubr.msk.f32.mxu0 %vm635_vm0, %v1861_v45 }
 0xaaa   : > { %5099 = vmatmul.mubr.msk.f32.vlgmr.msra.gmra.mrb[8].mxu0 %vm635_vm0, %v5093_v44 }
 0xaab   : > { %5396 = vmatpush3.bf16.xpose.msra.mxu0 %v5393_v40  ;;  %5112 = vmatprep.mubr.f32.mxu0 %v5710_v6 }
 0xaaf   : > { %v5107_v46 = vpop.f32.mrb[18].mxu1 }
 0xab0   : > { %v2034_v48 = vadd.f32 %v5107_v46, %v4721_v47  ;;  %v2028_v49 = vpop.f32.mrb[19].mxu1 }
 0xab1   : > { %v2029_v50 = vadd.f32 %v4721_v47, %v2028_v49  ;;  %v2642_v49 = vld [vmem:[%s6167_s3 + $0x40] sm:$0xff] }
 0xab2   : > { %5113 = vmatmul.mubr.f32.vlgmr.msra.gmra.mrb[14].mxu0 %v5715_v7 }
 0xab3   : > { %5126 = vmatprep.mubr.msk.f32.mxu0 %vm635_vm0, %v2029_v50  ;;  %v2643_v50 = vld [vmem:[%s6167_s3 + $0x48] sm:$0xff] }
 0xab7   : > { %v5121_v14 = vpop.f32.mrb[20].mxu1 }
 0xab8   : > { %v2192_v17 = vpop.f32.mrb[21].mxu1  ;;  %v2198_v18 = vadd.f32 %v5121_v14, %v4723_v15 }
 0xab9   : > { %v2193_v19 = vadd.f32 %v4723_v15, %v2192_v17 }
 0xabb   : > { %v5407_v20 = vpack.c.bf16 %v2198_v18, %v2193_v19 }
 0xabd   : > { %5408 = vmatprep.subr.bf16.mxu1 %v5407_v20 }
 0xabe   : > { %5410 = vmatpush3.bf16.msra.mxu1 %v5407_v20 }
 0xabf   : > { %5416 = vmatprep.subr.bf16.mxu1 %v5415_v35 }
 0xb85   : > { %v5114_v52 = vpop.f32.mrb[14].mxu0 }
 0xb86   : > { %v2116_v53 = vadd.f32 %v5114_v52, %v4722_v51  ;;  %v2110_v54 = vpop.f32.mrb[15].mxu0 }
 0xb87   : > { %v2111_v55 = vadd.f32 %v4722_v51, %v2110_v54  ;;  %v5423_v51 = vpack.c.bf16 %v2643_v50, %v2642_v49 }
 0xb89   : > { %v5401_v56 = vpack.c.bf16 %v2116_v53, %v2111_v55 }
 0xb8b   : > { %5403 = vmatprep.subr.msk.bf16.mxu0 %vm5728_vm1, %v5401_v56 }
 0xb8c   : > { %5406 = vmatpush3.bf16.xpose.msk.msra.mxu0 %vm5728_vm1, %v5401_v56 }
 0xb8d   : > { %5412 = vmatprep.subr.bf16.mxu0 %v5411_v23 }
 0xb93   : > { %5127 = vmatmul.mubr.msk.f32.vlgmr.msra.gmra.mrb[16].mxu0 %vm635_vm0, %v2034_v48 }
 0xb94   : > { %5414 = vmatpush3.bf16.msra.mxu0 %v5411_v23  ;;  %v3084_v23 = vld [vmem:[%s6166_s2 + $0x58] sm:$0xff] }
 0xb95   : > { %5420 = vmatprep.subr.bf16.mxu0 %v5419_v32 }
 0xc66   : > { %v5128_v60 = vpop.f32.mrb[16].mxu0 }
 0xc67   : > { %v2289_v61 = vmul.f32 0.25, %v5128_v60  ;;  %v2279_v62 = vpop.f32.mrb[17].mxu0 }
 0xc68   : > { %v2288_v63 = vmul.f32 0.25, %v2279_v62 }
 0xc69   : > { %v2293_v0 = vsel %vm635_vm0, %v2289_v61, -inf }
 0xc6a   : > { %2294 = vmax.xlane.f32.xlu1 %v2293_v0  ;;  %v2290_v1 = vsel %vm635_vm0, %v2288_v63, -inf }
 0xc6b   : > { %2291 = vmax.xlane.f32.xlu0 %v2290_v1 }
 0xcf7   : > { %v2295_v2 = vpop.xlane.xlu1 %2294 }
 0xcf8   : > { %v2297_v3 = vsub.f32 %v2289_v61, %v2295_v2  ;;  %v2292_v4 = vpop.xlane.xlu0 %2291 }
 0xcf9   : > { %v2296_v5 = vsub.f32 %v2288_v63, %v2292_v4 }
 0xcfa   : > { %v2300_v8 = vmul.f32 1.442695, %v2297_v3 }
 0xcfb   : > { %v2298_v9 = vmul.f32 1.442695, %v2296_v5  ;;  %v4734_v5 = vld [vmem:[%s6170_s6 + $0x4] ss:$0 sm:$0xff] }
 0xcfc   : > { %5565 = vpow2.f32 %v2300_v8 }
 0xcfd   : > { %5567 = vpow2.f32 %v2298_v9 }
 0xd06   : > { %v5566_v10 = vpop.eup %5565 }
 0xd07   : > { %v5568_v11 = vpop.eup %5567  ;;  %v2305_v12 = vsel %vm635_vm0, %v5566_v10, 0.0 }
 0xd08   : > { %2306 = vadd.xlane.f32.xlu1 %v2305_v12  ;;  %v2302_v13 = vsel %vm635_vm0, %v5568_v11, 0.0  ;;  %v2916_v12 = vld [vmem:[%s6171_s7 + $0x40] sm:$0xff] }
 0xd09   : > { %2303 = vadd.xlane.f32.xlu0 %v2302_v13  ;;  %v2917_v13 = vld [vmem:[%s6171_s7 + $0x48] sm:$0xff] }
 0xd0a   : > { %v5437_v14 = vpack.c.bf16 %v2917_v13, %v2916_v12  ;;  %v3606_v13 = vld [vmem:[%s6166_s2 + $0x60] sm:$0xff] }
 0xd95   : > { %v2307_v24 = vpop.xlane.xlu1 %2306 }
 0xd96   : > { %5569 = vrcp.f32 %v2307_v24  ;;  %v2304_v25 = vpop.xlane.xlu0 %2303  ;;  %v5445_v24 = vpack.c.bf16 %v3084_v23, %v3083_v22  ;;  %v6049_v22 = vld [vmem:[%s5707_s30] sm:$0xff]  ;;  %v6053_v23 = vld [vmem:[%s5707_s30 + $0x8] sm:$0xff] }
 0xd97   : > { %5571 = vrcp.f32 %v2304_v25  ;;  %v3001_v25 = vld [vmem:[%s6165_s1 + $0x50] sm:$0xff] }
 0xda0   : > { %v5570_v26 = vpop.eup %5569 }
 0xda1   : > { %v5572_v27 = vpop.eup %5571  ;;  %v2311_v29 = vmul.f32 %v5570_v26, %v5566_v10  ;;  %v3002_v26 = vld [vmem:[%s6165_s1 + $0x58] sm:$0xff] }
 0xda2   : > { %v2310_v28 = vmul.f32 %v5572_v27, %v5568_v11  ;;  %v5441_v27 = vpack.c.bf16 %v3002_v26, %v3001_v25 }
 0xda4   : > { %5133 = vmatprep.mubr.msk.f32.mxu1 %vm635_vm0, %v2310_v28 }
 0xda5   : > { %5134 = vmatmul.mubr.msk.f32.vlgmr.msra.gmra.mrb[22].mxu1 %vm635_vm0, %v2311_v29 }
 0xda6   : > { %5147 = vmatprep.mubr.f32.mxu1 %v5710_v6  ;;  %5418 = vmatpush3.bf16.xpose.msra.mxu1 %v5415_v35  ;;  %v4744_v35 = vld [vmem:[%s6169_s5 + $0x5] ss:$0 sm:$0xff] }
 0xda7   : > { %5424 = vmatprep.subr.bf16.mxu1 %v5423_v51 }
 0xdad   : > { %5148 = vmatmul.mubr.f32.vlgmr.msra.gmra.mrb[24].mxu1 %v5715_v7 }
 0xdae   : > { %5161 = vmatprep.mubr.f32.mxu1 %v5710_v6  ;;  %5426 = vmatpush3.bf16.xpose.msra.mxu1 %v5423_v51 }
 0xdb5   : > { %5162 = vmatmul.mubr.f32.vlgmr.msra.gmra.mrb[26].mxu1 %v5715_v7 }
 0xe78   : > { %v5135_v36 = vpop.f32.mrb[22].mxu1 }
 0xe79   : > { %v2384_v37 = vpop.f32.mrb[23].mxu1 }
 0xe7a   : > { %5140 = vmatprep.mubr.msk.f32.mxu0 %vm635_vm0, %v2384_v37 }
 0xe7b   : > { %5141 = vmatmul.mubr.msk.f32.vlgmr.msra.gmra.mrb[8].mxu0 %vm635_vm0, %v5135_v36 }
 0xe7c   : > { %5422 = vmatpush3.bf16.xpose.msra.mxu0 %v5419_v32  ;;  %5154 = vmatprep.mubr.f32.mxu0 %v5710_v6 }
 0xe80   : > { %v5149_v38 = vpop.f32.mrb[24].mxu1 }
 0xe81   : > { %v2557_v40 = vadd.f32 %v5149_v38, %v4732_v39  ;;  %v2551_v41 = vpop.f32.mrb[25].mxu1 }
 0xe82   : > { %v2552_v42 = vadd.f32 %v4732_v39, %v2551_v41  ;;  %v3165_v41 = vld [vmem:[%s6167_s3 + $0x50] sm:$0xff] }
 0xe83   : > { %5155 = vmatmul.mubr.f32.vlgmr.msra.gmra.mrb[18].mxu0 %v5715_v7 }
 0xe84   : > { %5168 = vmatprep.mubr.msk.f32.mxu0 %vm635_vm0, %v2552_v42  ;;  %v3166_v42 = vld [vmem:[%s6167_s3 + $0x58] sm:$0xff] }
 0xe88   : > { %v5163_v4 = vpop.f32.mrb[26].mxu1 }
 0xe89   : > { %v2715_v8 = vpop.f32.mrb[27].mxu1  ;;  %v2721_v9 = vadd.f32 %v5163_v4, %v4734_v5 }
 0xe8a   : > { %v2716_v10 = vadd.f32 %v4734_v5, %v2715_v8 }
 0xe8c   : > { %v5433_v11 = vpack.c.bf16 %v2721_v9, %v2716_v10 }
 0xe8e   : > { %5434 = vmatprep.subr.bf16.mxu1 %v5433_v11 }
 0xe8f   : > { %5436 = vmatpush3.bf16.msra.mxu1 %v5433_v11 }
 0xe90   : > { %5442 = vmatprep.subr.bf16.mxu1 %v5441_v27 }
 0xf56   : > { %v5156_v44 = vpop.f32.mrb[18].mxu0 }
 0xf57   : > { %v2639_v45 = vadd.f32 %v5156_v44, %v4733_v43  ;;  %v2633_v46 = vpop.f32.mrb[19].mxu0 }
 0xf58   : > { %v2634_v47 = vadd.f32 %v4733_v43, %v2633_v46  ;;  %v5449_v43 = vpack.c.bf16 %v3166_v42, %v3165_v41 }
 0xf5a   : > { %v5427_v48 = vpack.c.bf16 %v2639_v45, %v2634_v47 }
 0xf5c   : > { %5429 = vmatprep.subr.msk.bf16.mxu0 %vm5728_vm1, %v5427_v48 }
 0xf5d   : > { %5432 = vmatpush3.bf16.xpose.msk.msra.mxu0 %vm5728_vm1, %v5427_v48 }
 0xf5e   : > { %5438 = vmatprep.subr.bf16.mxu0 %v5437_v14 }
 0xf64   : > { %5169 = vmatmul.mubr.msk.f32.vlgmr.msra.gmra.mrb[20].mxu0 %vm635_vm0, %v2557_v40 }
 0xf65   : > { %5440 = vmatpush3.bf16.msra.mxu0 %v5437_v14  ;;  %v3607_v14 = vld [vmem:[%s6166_s2 + $0x68] sm:$0xff] }
 0xf66   : > { %5446 = vmatprep.subr.bf16.mxu0 %v5445_v24 }
0x1037   : > { %v5170_v52 = vpop.f32.mrb[20].mxu0 }
0x1038   : > { %v2812_v53 = vmul.f32 0.25, %v5170_v52  ;;  %v2802_v54 = vpop.f32.mrb[21].mxu0 }
0x1039   : > { %v2811_v55 = vmul.f32 0.25, %v2802_v54 }
0x103a   : > { %v2816_v56 = vsel %vm635_vm0, %v2812_v53, -inf }
0x103b   : > { %2817 = vmax.xlane.f32.xlu1 %v2816_v56  ;;  %v2813_v57 = vsel %vm635_vm0, %v2811_v55, -inf }
0x103c   : > { %2814 = vmax.xlane.f32.xlu0 %v2813_v57 }
0x10c8   : > { %v2818_v58 = vpop.xlane.xlu1 %2817 }
0x10c9   : > { %v2820_v59 = vsub.f32 %v2812_v53, %v2818_v58  ;;  %v2815_v60 = vpop.xlane.xlu0 %2814 }
0x10ca   : > { %v2819_v61 = vsub.f32 %v2811_v55, %v2815_v60 }
0x10cb   : > { %v2823_v62 = vmul.f32 1.442695, %v2820_v59 }
0x10cc   : > { %v2821_v63 = vmul.f32 1.442695, %v2819_v61  ;;  %v4745_v61 = vld [vmem:[%s6170_s6 + $0x5] ss:$0 sm:$0xff] }
0x10cd   : > { %5573 = vpow2.f32 %v2823_v62 }
0x10ce   : > { %5575 = vpow2.f32 %v2821_v63 }
0x10d7   : > { %v5574_v0 = vpop.eup %5573 }
0x10d8   : > { %v5576_v1 = vpop.eup %5575  ;;  %v2828_v2 = vsel %vm635_vm0, %v5574_v0, 0.0 }
0x10d9   : > { %2829 = vadd.xlane.f32.xlu1 %v2828_v2  ;;  %v2825_v3 = vsel %vm635_vm0, %v5576_v1, 0.0  ;;  %v3439_v2 = vld [vmem:[%s6171_s7 + $0x50] sm:$0xff] }
0x10da   : > { %2826 = vadd.xlane.f32.xlu0 %v2825_v3  ;;  %v3440_v3 = vld [vmem:[%s6171_s7 + $0x58] sm:$0xff] }
0x10db   : > { %v5463_v4 = vpack.c.bf16 %v3440_v3, %v3439_v2  ;;  %v4129_v3 = vld [vmem:[%s6166_s2 + $0x70] sm:$0xff] }
0x1166   : > { %v2830_v15 = vpop.xlane.xlu1 %2829 }
0x1167   : > { %5577 = vrcp.f32 %v2830_v15  ;;  %v2827_v17 = vpop.xlane.xlu0 %2826  ;;  %v5471_v15 = vpack.c.bf16 %v3607_v14, %v3606_v13  ;;  %v4765_v14 = vld [vmem:[%s6168_s4 + $0x7] ss:$0 sm:$0xff] }
0x1168   : > { %5579 = vrcp.f32 %v2827_v17  ;;  %v3524_v17 = vld [vmem:[%s6165_s1 + $0x60] sm:$0xff] }
0x1171   : > { %v5578_v18 = vpop.eup %5577 }
0x1172   : > { %v5580_v19 = vpop.eup %5579  ;;  %v2834_v21 = vmul.f32 %v5578_v18, %v5574_v0  ;;  %v3525_v18 = vld [vmem:[%s6165_s1 + $0x68] sm:$0xff] }
0x1173   : > { %v2833_v20 = vmul.f32 %v5580_v19, %v5576_v1  ;;  %v5467_v19 = vpack.c.bf16 %v3525_v18, %v3524_v17 }
0x1175   : > { %5175 = vmatprep.mubr.msk.f32.mxu1 %vm635_vm0, %v2833_v20 }
0x1176   : > { %5176 = vmatmul.mubr.msk.f32.vlgmr.msra.gmra.mrb[28].mxu1 %vm635_vm0, %v2834_v21 }
0x1177   : > { %5189 = vmatprep.mubr.f32.mxu1 %v5710_v6  ;;  %5444 = vmatpush3.bf16.xpose.msra.mxu1 %v5441_v27  ;;  %v4755_v27 = vld [vmem:[%s6169_s5 + $0x6] ss:$0 sm:$0xff] }
0x1178   : > { %5450 = vmatprep.subr.bf16.mxu1 %v5449_v43 }
0x117e   : > { %5190 = vmatmul.mubr.f32.vlgmr.msra.gmra.mrb[30].mxu1 %v5715_v7 }
0x117f   : > { %5203 = vmatprep.mubr.f32.mxu1 %v5710_v6  ;;  %5452 = vmatpush3.bf16.xpose.msra.mxu1 %v5449_v43 }
0x1186   : > { %5204 = vmatmul.mubr.f32.vlgmr.msra.gmra.mrb[32].mxu1 %v5715_v7 }
0x1249   : > { %v5177_v28 = vpop.f32.mrb[28].mxu1 }
0x124a   : > { %v2907_v29 = vpop.f32.mrb[29].mxu1 }
0x124b   : > { %5182 = vmatprep.mubr.msk.f32.mxu0 %vm635_vm0, %v2907_v29 }
0x124c   : > { %5183 = vmatmul.mubr.msk.f32.vlgmr.msra.gmra.mrb[8].mxu0 %vm635_vm0, %v5177_v28 }
0x124d   : > { %5448 = vmatpush3.bf16.xpose.msra.mxu0 %v5445_v24  ;;  %5196 = vmatprep.mubr.f32.mxu0 %v5710_v6 }
0x1251   : > { %v5191_v30 = vpop.f32.mrb[30].mxu1 }
0x1252   : > { %v3080_v32 = vadd.f32 %v5191_v30, %v4743_v31  ;;  %v3074_v33 = vpop.f32.mrb[31].mxu1 }
0x1253   : > { %v3075_v34 = vadd.f32 %v4743_v31, %v3074_v33  ;;  %v3688_v33 = vld [vmem:[%s6167_s3 + $0x60] sm:$0xff] }
0x1254   : > { %5197 = vmatmul.mubr.f32.vlgmr.msra.gmra.mrb[22].mxu0 %v5715_v7 }
0x1255   : > { %5210 = vmatprep.mubr.msk.f32.mxu0 %vm635_vm0, %v3075_v34  ;;  %v3689_v34 = vld [vmem:[%s6167_s3 + $0x68] sm:$0xff] }
0x1259   : > { %v5205_v60 = vpop.f32.mrb[32].mxu1 }
0x125a   : > { %v3238_v62 = vpop.f32.mrb[33].mxu1  ;;  %v3244_v63 = vadd.f32 %v5205_v60, %v4745_v61 }
0x125b   : > { %v3239_v0 = vadd.f32 %v4745_v61, %v3238_v62 }
0x125d   : > { %v5459_v1 = vpack.c.bf16 %v3244_v63, %v3239_v0 }
0x125f   : > { %5460 = vmatprep.subr.bf16.mxu1 %v5459_v1 }
0x1260   : > { %5462 = vmatpush3.bf16.msra.mxu1 %v5459_v1 }
0x1261   : > { %5468 = vmatprep.subr.bf16.mxu1 %v5467_v19 }
0x1327   : > { %v5198_v36 = vpop.f32.mrb[22].mxu0 }
0x1328   : > { %v3162_v37 = vadd.f32 %v5198_v36, %v4744_v35  ;;  %v3156_v38 = vpop.f32.mrb[23].mxu0 }
0x1329   : > { %v3157_v39 = vadd.f32 %v4744_v35, %v3156_v38  ;;  %v5475_v35 = vpack.c.bf16 %v3689_v34, %v3688_v33 }
0x132b   : > { %v5453_v40 = vpack.c.bf16 %v3162_v37, %v3157_v39 }
0x132d   : > { %5455 = vmatprep.subr.msk.bf16.mxu0 %vm5728_vm1, %v5453_v40 }
0x132e   : > { %5458 = vmatpush3.bf16.xpose.msk.msra.mxu0 %vm5728_vm1, %v5453_v40 }
0x132f   : > { %5464 = vmatprep.subr.bf16.mxu0 %v5463_v4 }
0x1335   : > { %5211 = vmatmul.mubr.msk.f32.vlgmr.msra.gmra.mrb[24].mxu0 %vm635_vm0, %v3080_v32 }
0x1336   : > { %5466 = vmatpush3.bf16.msra.mxu0 %v5463_v4  ;;  %v4130_v4 = vld [vmem:[%s6166_s2 + $0x78] sm:$0xff] }
0x1337   : > { %5472 = vmatprep.subr.bf16.mxu0 %v5471_v15 }
0x1408   : > { %v5212_v44 = vpop.f32.mrb[24].mxu0 }
0x1409   : > { %v3335_v45 = vmul.f32 0.25, %v5212_v44  ;;  %v3325_v46 = vpop.f32.mrb[25].mxu0 }
0x140a   : > { %v3334_v47 = vmul.f32 0.25, %v3325_v46 }
0x140b   : > { %v3339_v48 = vsel %vm635_vm0, %v3335_v45, -inf }
0x140c   : > { %3340 = vmax.xlane.f32.xlu1 %v3339_v48  ;;  %v3336_v49 = vsel %vm635_vm0, %v3334_v47, -inf }
0x140d   : > { %3337 = vmax.xlane.f32.xlu0 %v3336_v49 }
0x1499   : > { %v3341_v50 = vpop.xlane.xlu1 %3340 }
0x149a   : > { %v3343_v51 = vsub.f32 %v3335_v45, %v3341_v50  ;;  %v3338_v52 = vpop.xlane.xlu0 %3337 }
0x149b   : > { %v3342_v53 = vsub.f32 %v3334_v47, %v3338_v52 }
0x149c   : > { %v3346_v54 = vmul.f32 1.442695, %v3343_v51 }
0x149d   : > { %v3344_v55 = vmul.f32 1.442695, %v3342_v53  ;;  %v4756_v53 = vld [vmem:[%s6170_s6 + $0x6] ss:$0 sm:$0xff] }
0x149e   : > { %5581 = vpow2.f32 %v3346_v54 }
0x149f   : > { %5583 = vpow2.f32 %v3344_v55 }
0x14a8   : > { %v5582_v56 = vpop.eup %5581 }
0x14a9   : > { %v5584_v57 = vpop.eup %5583  ;;  %v3351_v58 = vsel %vm635_vm0, %v5582_v56, 0.0 }
0x14aa   : > { %3352 = vadd.xlane.f32.xlu1 %v3351_v58  ;;  %v3348_v59 = vsel %vm635_vm0, %v5584_v57, 0.0  ;;  %v3962_v58 = vld [vmem:[%s6171_s7 + $0x60] sm:$0xff] }
0x14ab   : > { %3349 = vadd.xlane.f32.xlu0 %v3348_v59  ;;  %v3963_v59 = vld [vmem:[%s6171_s7 + $0x68] sm:$0xff] }
0x14ac   : > { %v5489_v60 = vpack.c.bf16 %v3963_v59, %v3962_v58 }
0x1537   : > { %v3353_v5 = vpop.xlane.xlu1 %3352 }
0x1538   : > { %5585 = vrcp.f32 %v3353_v5  ;;  %v3350_v8 = vpop.xlane.xlu0 %3349  ;;  %v5497_v5 = vpack.c.bf16 %v4130_v4, %v4129_v3 }
0x1539   : > { %5587 = vrcp.f32 %v3350_v8  ;;  %v4047_v8 = vld [vmem:[%s6165_s1 + $0x70] sm:$0xff] }
0x1542   : > { %v5586_v9 = vpop.eup %5585 }
0x1543   : > { %v5588_v10 = vpop.eup %5587  ;;  %v3357_v12 = vmul.f32 %v5586_v9, %v5582_v56  ;;  %v4048_v9 = vld [vmem:[%s6165_s1 + $0x78] sm:$0xff] }
0x1544   : > { %v3356_v11 = vmul.f32 %v5588_v10, %v5584_v57  ;;  %v5493_v10 = vpack.c.bf16 %v4048_v9, %v4047_v8 }
0x1546   : > { %5217 = vmatprep.mubr.msk.f32.mxu1 %vm635_vm0, %v3356_v11 }
0x1547   : > { %5218 = vmatmul.mubr.msk.f32.vlgmr.msra.gmra.mrb[34].mxu1 %vm635_vm0, %v3357_v12 }
0x1548   : > { %5231 = vmatprep.mubr.f32.mxu1 %v5710_v6  ;;  %5470 = vmatpush3.bf16.xpose.msra.mxu1 %v5467_v19  ;;  %v4766_v19 = vld [vmem:[%s6169_s5 + $0x7] ss:$0 sm:$0xff] }
0x1549   : > { %5476 = vmatprep.subr.bf16.mxu1 %v5475_v35 }
0x154f   : > { %5232 = vmatmul.mubr.f32.vlgmr.msra.gmra.mrb[36].mxu1 %v5715_v7 }
0x1550   : > { %5245 = vmatprep.mubr.f32.mxu1 %v5710_v6  ;;  %v4754_v6 = vld [vmem:[%s6168_s4 + $0x6] ss:$0 sm:$0xff]  ;;  %5478 = vmatpush3.bf16.xpose.msra.mxu1 %v5475_v35 }
0x1557   : > { %5246 = vmatmul.mubr.f32.vlgmr.msra.gmra.mrb[38].mxu1 %v6053_v23 }
0x161a   : > { %v5219_v20 = vpop.f32.mrb[34].mxu1 }
0x161b   : > { %v3430_v21 = vpop.f32.mrb[35].mxu1 }
0x161c   : > { %5224 = vmatprep.mubr.msk.f32.mxu0 %vm635_vm0, %v3430_v21 }
0x161d   : > { %5225 = vmatmul.mubr.msk.f32.vlgmr.msra.gmra.mrb[8].mxu0 %vm635_vm0, %v5219_v20 }
0x161e   : > { %5474 = vmatpush3.bf16.xpose.msra.mxu0 %v5471_v15  ;;  %5238 = vmatprep.mubr.f32.mxu0 %v6049_v22 }
0x1622   : > { %v5233_v24 = vpop.f32.mrb[36].mxu1 }
0x1623   : > { %v3603_v7 = vadd.f32 %v5233_v24, %v4754_v6  ;;  %v3597_v25 = vpop.f32.mrb[37].mxu1 }
0x1624   : > { %v3598_v26 = vadd.f32 %v4754_v6, %v3597_v25  ;;  %v4211_v25 = vld [vmem:[%s6167_s3 + $0x70] sm:$0xff] }
0x1625   : > { %5239 = vmatmul.mubr.f32.vlgmr.msra.gmra.mrb[26].mxu0 %v6053_v23 }
0x1626   : > { %5252 = vmatprep.mubr.msk.f32.mxu0 %vm635_vm0, %v3598_v26  ;;  %v4212_v26 = vld [vmem:[%s6167_s3 + $0x78] sm:$0xff] }
0x162a   : > { %v5247_v52 = vpop.f32.mrb[38].mxu1 }
0x162b   : > { %v3761_v54 = vpop.f32.mrb[39].mxu1  ;;  %v3767_v55 = vadd.f32 %v5247_v52, %v4756_v53 }
0x162c   : > { %v3762_v56 = vadd.f32 %v4756_v53, %v3761_v54 }
0x162e   : > { %v5485_v57 = vpack.c.bf16 %v3767_v55, %v3762_v56 }
0x1630   : > { %5486 = vmatprep.subr.bf16.mxu1 %v5485_v57 }
0x1631   : > { %5488 = vmatpush3.bf16.msra.mxu1 %v5485_v57 }
0x1632   : > { %5494 = vmatprep.subr.bf16.mxu1 %v5493_v10 }
0x16f8   : > { %v5240_v28 = vpop.f32.mrb[26].mxu0 }
0x16f9   : > { %v3685_v29 = vadd.f32 %v5240_v28, %v4755_v27  ;;  %v3679_v30 = vpop.f32.mrb[27].mxu0 }
0x16fa   : > { %v3680_v31 = vadd.f32 %v4755_v27, %v3679_v30  ;;  %v5501_v27 = vpack.c.bf16 %v4212_v26, %v4211_v25 }
0x16fc   : > { %v5479_v32 = vpack.c.bf16 %v3685_v29, %v3680_v31 }
0x16fe   : > { %5481 = vmatprep.subr.msk.bf16.mxu0 %vm5728_vm1, %v5479_v32 }
0x16ff   : > { %5484 = vmatpush3.bf16.xpose.msk.msra.mxu0 %vm5728_vm1, %v5479_v32 }
0x1700   : > { %5490 = vmatprep.subr.bf16.mxu0 %v5489_v60 }
0x1706   : > { %5253 = vmatmul.mubr.msk.f32.vlgmr.msra.gmra.mrb[28].mxu0 %vm635_vm0, %v3603_v7 }
0x1707   : > { %5492 = vmatpush3.bf16.msra.mxu0 %v5489_v60 }
0x1708   : > { %5498 = vmatprep.subr.bf16.mxu0 %v5497_v5 }
0x17d9   : > { %v5254_v36 = vpop.f32.mrb[28].mxu0 }
0x17da   : > { %v3858_v37 = vmul.f32 0.25, %v5254_v36  ;;  %v3848_v38 = vpop.f32.mrb[29].mxu0 }
0x17db   : > { %v3857_v39 = vmul.f32 0.25, %v3848_v38 }
0x17dc   : > { %v3862_v40 = vsel %vm635_vm0, %v3858_v37, -inf }
0x17dd   : > { %3863 = vmax.xlane.f32.xlu1 %v3862_v40  ;;  %v3859_v41 = vsel %vm635_vm0, %v3857_v39, -inf }
0x17de   : > { %3860 = vmax.xlane.f32.xlu0 %v3859_v41 }
0x186a   : > { %v3864_v42 = vpop.xlane.xlu1 %3863 }
0x186b   : > { %v3866_v43 = vsub.f32 %v3858_v37, %v3864_v42  ;;  %v3861_v44 = vpop.xlane.xlu0 %3860 }
0x186c   : > { %v3865_v45 = vsub.f32 %v3857_v39, %v3861_v44  ;;  %v4767_v44 = vld [vmem:[%s6170_s6 + $0x7] ss:$0 sm:$0xff] }
0x186d   : > { %v3869_v46 = vmul.f32 1.442695, %v3866_v43 }
0x186e   : > { %v3867_v47 = vmul.f32 1.442695, %v3865_v45 }
0x186f   : > { %5589 = vpow2.f32 %v3869_v46 }
0x1870   : > { %5591 = vpow2.f32 %v3867_v47 }
0x1879   : > { %v5590_v48 = vpop.eup %5589 }
0x187a   : > { %v5592_v49 = vpop.eup %5591  ;;  %v3874_v50 = vsel %vm635_vm0, %v5590_v48, 0.0 }
0x187b   : > { %3875 = vadd.xlane.f32.xlu1 %v3874_v50  ;;  %v3871_v51 = vsel %vm635_vm0, %v5592_v49, 0.0  ;;  %v4486_v50 = vld [vmem:[%s6171_s7 + $0x78] sm:$0xff] }
0x187c   : > { %3872 = vadd.xlane.f32.xlu0 %v3871_v51 }
0x1908   : > { %v3876_v61 = vpop.xlane.xlu1 %3875 }
0x1909   : > { %5593 = vrcp.f32 %v3876_v61  ;;  %v3873_v62 = vpop.xlane.xlu0 %3872  ;;  %v4776_v61 = vld [vmem:[%s6172_s8] ss:$0 sm:$0xff] }
0x190a   : > { %5595 = vrcp.f32 %v3873_v62 }
0x1913   : > { %v5594_v63 = vpop.eup %5593 }
0x1914   : > { %v5596_v0 = vpop.eup %5595  ;;  %v3880_v2 = vmul.f32 %v5594_v63, %v5590_v48 }
0x1915   : > { %v3879_v1 = vmul.f32 %v5596_v0, %v5592_v49  ;;  %v4485_v49 = vld [vmem:[%s6171_s7 + $0x70] sm:$0xff] }
0x1916   : > { %v5515_v51 = vpack.c.bf16 %v4486_v50, %v4485_v49 }
0x1917   : > { %5259 = vmatprep.mubr.msk.f32.mxu1 %vm635_vm0, %v3879_v1 }
0x1918   : > { %5260 = vmatmul.mubr.msk.f32.vlgmr.msra.gmra.mrb[40].mxu1 %vm635_vm0, %v3880_v2 }
0x1919   : > { %5273 = vmatprep.mubr.f32.mxu1 %v6049_v22  ;;  %5496 = vmatpush3.bf16.xpose.msra.mxu1 %v5493_v10 }
0x191a   : > { %5502 = vmatprep.subr.bf16.mxu1 %v5501_v27 }
0x1920   : > { %5274 = vmatmul.mubr.f32.vlgmr.msra.gmra.mrb[42].mxu1 %v6053_v23 }
0x1921   : > { %5287 = vmatprep.mubr.f32.mxu1 %v6049_v22  ;;  %5504 = vmatpush3.bf16.xpose.msra.mxu1 %v5501_v27 }
0x1928   : > { %5288 = vmatmul.mubr.f32.vlgmr.msra.gmra.mrb[44].mxu1 %v6053_v23 }
0x19eb   : > { %v5261_v11 = vpop.f32.mrb[40].mxu1 }
0x19ec   : > { %v3953_v12 = vpop.f32.mrb[41].mxu1 }
0x19ed   : > { %5266 = vmatprep.mubr.msk.f32.mxu0 %vm635_vm0, %v3953_v12 }
0x19ee   : > { %5267 = vmatmul.mubr.msk.f32.vlgmr.msra.gmra.mrb[8].mxu0 %vm635_vm0, %v5261_v11 }
0x19ef   : > { %5500 = vmatpush3.bf16.xpose.msra.mxu0 %v5497_v5  ;;  %5280 = vmatprep.mubr.f32.mxu0 %v6049_v22 }
0x19f3   : > { %v5275_v13 = vpop.f32.mrb[42].mxu1 }
0x19f4   : > { %v4126_v15 = vadd.f32 %v5275_v13, %v4765_v14  ;;  %v4120_v17 = vpop.f32.mrb[43].mxu1 }
0x19f5   : > { %v4121_v18 = vadd.f32 %v4765_v14, %v4120_v17 }
0x19f6   : > { %5281 = vmatmul.mubr.f32.vlgmr.msra.gmra.mrb[30].mxu0 %v6053_v23 }
0x19f7   : > { %5294 = vmatprep.mubr.msk.f32.mxu0 %vm635_vm0, %v4121_v18 }
0x19fb   : > { %v5289_v43 = vpop.f32.mrb[44].mxu1 }
0x19fc   : > { %v4284_v45 = vpop.f32.mrb[45].mxu1  ;;  %v4290_v46 = vadd.f32 %v5289_v43, %v4767_v44 }
0x19fd   : > { %v4285_v47 = vadd.f32 %v4767_v44, %v4284_v45 }
0x19ff   : > { %v5511_v48 = vpack.c.bf16 %v4290_v46, %v4285_v47 }
0x1a01   : > { %5512 = vmatprep.subr.bf16.mxu1 %v5511_v48 }
0x1a02   : > { %5514 = vmatpush3.bf16.msra.mxu1 %v5511_v48 }
0x1ac9   : > { %v5282_v20 = vpop.f32.mrb[30].mxu0 }
0x1aca   : > { %v4208_v21 = vadd.f32 %v5282_v20, %v4766_v19  ;;  %v4202_v24 = vpop.f32.mrb[31].mxu0 }
0x1acb   : > { %v4203_v6 = vadd.f32 %v4766_v19, %v4202_v24  ;;  %v4777_v19 = vld [vmem:[%s6173_s9] ss:$0 sm:$0xff] }
0x1acc   : > { %v4778_v24 = vld [vmem:[%s6174_s10] ss:$0 sm:$0xff] }
0x1acd   : > { %v5505_v7 = vpack.c.bf16 %v4208_v21, %v4203_v6 }
0x1acf   : > { %5507 = vmatprep.subr.msk.bf16.mxu0 %vm5728_vm1, %v5505_v7 }
0x1ad0   : > { %5510 = vmatpush3.bf16.xpose.msk.msra.mxu0 %vm5728_vm1, %v5505_v7 }
0x1ad1   : > { %5516 = vmatprep.subr.bf16.mxu0 %v5515_v51 }
0x1ad7   : > { %5295 = vmatmul.mubr.msk.f32.vlgmr.msra.gmra.mrb[32].mxu0 %vm635_vm0, %v4126_v15 }
0x1ad8   : > { %5518 = vmatpush3.bf16.msra.mxu0 %v5515_v51 }
0x1baa   : > { %v5296_v28 = vpop.f32.mrb[32].mxu0 }
0x1bab   : > { %v4381_v29 = vmul.f32 0.25, %v5296_v28  ;;  %v4371_v30 = vpop.f32.mrb[33].mxu0 }
0x1bac   : > { %v4380_v16 = vmul.f32 0.25, %v4371_v30 }
0x1bad   : > { %v4385_v31 = vsel %vm635_vm0, %v4381_v29, -inf }
0x1bae   : > { %4386 = vmax.xlane.f32.xlu1 %v4385_v31  ;;  %v4382_v32 = vsel %vm635_vm0, %v4380_v16, -inf }
0x1baf   : > { %4383 = vmax.xlane.f32.xlu0 %v4382_v32 }
0x1c3b   : > { %v4387_v33 = vpop.xlane.xlu1 %4386 }
0x1c3c   : > { %v4389_v34 = vsub.f32 %v4381_v29, %v4387_v33  ;;  %v4384_v35 = vpop.xlane.xlu0 %4383 }
0x1c3d   : > { %v4388_v36 = vsub.f32 %v4380_v16, %v4384_v35 }
0x1c3e   : > { %v4392_v37 = vmul.f32 1.442695, %v4389_v34 }
0x1c3f   : > { %v4390_v38 = vmul.f32 1.442695, %v4388_v36 }
0x1c40   : > { %5597 = vpow2.f32 %v4392_v37 }
0x1c41   : > { %5599 = vpow2.f32 %v4390_v38 }
0x1c4a   : > { %v5598_v39 = vpop.eup %5597 }
0x1c4b   : > { %v5600_v40 = vpop.eup %5599  ;;  %v4397_v41 = vsel %vm635_vm0, %v5598_v39, 0.0 }
0x1c4c   : > { %4398 = vadd.xlane.f32.xlu1 %v4397_v41  ;;  %v4394_v42 = vsel %vm635_vm0, %v5600_v40, 0.0 }
0x1c4d   : > { %4395 = vadd.xlane.f32.xlu0 %v4394_v42 }
0x1cd9   : > { %v4399_v52 = vpop.xlane.xlu1 %4398 }
0x1cda   : > { %5601 = vrcp.f32 %v4399_v52  ;;  %v4396_v53 = vpop.xlane.xlu0 %4395 }
0x1cdb   : > { %5603 = vrcp.f32 %v4396_v53 }
0x1ce4   : > { %v5602_v54 = vpop.eup %5601 }
0x1ce5   : > { %v5604_v55 = vpop.eup %5603  ;;  %v4403_v57 = vmul.f32 %v5602_v54, %v5598_v39 }
0x1ce6   : > { %v4402_v56 = vmul.f32 %v5604_v55, %v5600_v40 }
0x1ce8   : > { %5301 = vmatprep.mubr.msk.f32.mxu1 %vm635_vm0, %v4402_v56 }
0x1ce9   : > { %5302 = vmatmul.mubr.msk.f32.vlgmr.msra.gmra.mrb[46].mxu1 %vm635_vm0, %v4403_v57 }
0x1dbc   : > { %v5303_v58 = vpop.f32.mrb[46].mxu1 }
0x1dbd   : > { %v4476_v59 = vpop.f32.mrb[47].mxu1 }
0x1dbe   : > { %5308 = vmatprep.mubr.msk.f32.mxu0 %vm635_vm0, %v4476_v59 }
0x1dbf   : > { %5309 = vmatmul.mubr.msk.f32.vlgmr.msra.gmra.mrb[8].mxu0 %vm635_vm0, %v5303_v58 }
0x1e92   : > { %v5310_v60 = vpop.f32.mrb[8].mxu0 }
0x1e93   : > { %v4571_v62 = vadd.f32 %v6053_v23, %v5310_v60  ;;  %v4559_v63 = vpop.f32.mrb[9].mxu0 }
0x1e94   : > { %v4570_v0 = vadd.f32 %v6049_v22, %v4559_v63 }
0x1e95   : > { %v4580_v1 = vadd.f32 %v4776_v61, %v4571_v62 }
0x1e96   : > { %v4579_v2 = vadd.f32 %v4776_v61, %v4570_v0 }
0x1e97   : > { %4585 = vadd.xlane.f32.xlu1 %v4580_v1 }
0x1e98   : > { %4583 = vadd.xlane.f32.xlu0 %v4579_v2 }
0x1f24   : > { %v4586_v3 = vpop.xlane.xlu1 %4585 }
0x1f25   : > { %v4589_v4 = vmul.f32 0.0078125, %v4586_v3  ;;  %v4584_v5 = vpop.xlane.xlu0 %4583 }
0x1f26   : > { %v4588_v8 = vmul.f32 0.0078125, %v4584_v5 }
0x1f27   : > { %v4591_v9 = vsub.f32 %v4580_v1, %v4589_v4 }
0x1f28   : > { %v4590_v10 = vsub.f32 %v4579_v2, %v4588_v8 }
0x1f29   : > { %v4593_v11 = vmul.f32 %v4591_v9, %v4591_v9 }
0x1f2a   : > { %v4592_v12 = vmul.f32 %v4590_v10, %v4590_v10 }
0x1f2b   : > { %4596 = vadd.xlane.f32.xlu1 %v4593_v11 }
0x1f2c   : > { %4594 = vadd.xlane.f32.xlu0 %v4592_v12 }
0x1fb8   : > { %v4597_v13 = vpop.xlane.xlu1 %4596 }
0x1fb9   : > { %v4599_v23 = vmul.f32 0.0078125, %v4597_v13  ;;  %v4595_v14 = vpop.xlane.xlu0 %4594 }
0x1fba   : > { %v4598_v15 = vmul.f32 0.0078125, %v4595_v14 }
0x1fbb   : > { %v4601_v22 = vadd.f32 1e-05, %v4599_v23 }
0x1fbc   : > { %v4600_v17 = vadd.f32 1e-05, %v4598_v15 }
0x1fbd   : > { %5605 = vrsqrt.f32 %v4601_v22 }
0x1fbe   : > { %5607 = vrsqrt.f32 %v4600_v17 }
0x1fc7   : > { %v5606_v18 = vpop.eup %5605 }
0x1fc8   : > { %v5608_v20 = vpop.eup %5607  ;;  %v4605_v21 = vmul.f32 %v5606_v18, %v4591_v9 }
0x1fc9   : > { %v4604_v6 = vmul.f32 %v5608_v20, %v4590_v10 }
0x1fca   : > { %v4613_v7 = vmul.f32 %v4777_v19, %v4605_v21 }
0x1fcb   : > { %v4612_v25 = vmul.f32 %v4777_v19, %v4604_v6 }
0x1fcc   : > { %v4621_v26 = vadd.f32 %v4778_v24, %v4613_v7 }
0x1fcd   : > { %v4620_v27 = vadd.f32 %v4778_v24, %v4612_v25 }
0x1fce   : > { %4623 = vst [vmem:[%s386_s22 + $0x8] sm:$0xff] %v4621_v26 }
0x1fcf   : > { %4622 = vst [vmem:[%s386_s22] sm:$0xff] %v4620_v27 }
0x1fd0 PF: > { %s21_s17 = sadd.s32 1, %s5617_s17  }
0x1fd1   : > { %p18_p4 = scmp.ge.s32.totalorder %s21_s17, 4  }
0x1fd3   :  { %20 = sbr.rel (!%p18_p4) target bundleno = 1 (0x1), region = 94 }

</bundles_post_ra>
